<compile_context>
chip_gen: v7x
topology: tpu7x:2x2x1
jax: 0.10.0
libtpu: 0.0.40
codegen_flags: <defaults>
</compile_context>

<pallas_src>
import functools

import jax
import jax.numpy as jnp
from jax.experimental import pallas as pl
from jax.experimental.pallas import tpu as pltpu

BN_EPS = 1e-5
_CONV_ROW_BUDGET = 1 << 20   # bounds th so the f32 conv accumulator stays small
_ELEM_ROW_BUDGET = 4 << 20   # 1-4 MiB elementwise tiles per the perf review


@functools.lru_cache(maxsize=None)
def _vmem_limit_bytes():
    """Generation-aware VMEM limit (v5e/v6e: 128 MiB phys, v7x: 64 MiB/TC)."""
    try:
        cap = int(pltpu.get_tpu_info().vmem_capacity_bytes)
        if cap >= (32 << 20):
            return min(int(cap * 0.45), 72 << 20)
    except Exception:
        pass
    return 32 << 20  # safe everywhere


def _row_block(ho, bytes_per_row, budget, sublane_aligned):
    """Largest divisor of ho whose tile fits the byte budget.

    If `sublane_aligned`, th is the second-to-last block dim and must be a
    multiple of 8 (or the full extent ho).
    """
    cands = []
    for t in range(1, ho + 1):
        if ho % t:
            continue
        if sublane_aligned and t != ho and t % 8:
            continue
        cands.append(t)
    fit = [t for t in cands if t * bytes_per_row <= budget]
    return max(fit) if fit else min(cands)


# ------------------------------ Pallas kernels --------------------------------
def _conv3x3_kernel(x_ref, w_ref, ab_ref, y_ref, stats_ref, xpad_ref, *,
                    stride, th, hin, win, cin, cout, wo, relu_in):
    """3x3 conv over a bf16 image + per-channel sum/sumsq partials.

    x_ref:     (1, Hin, Win, Cin)  bf16 raw input image (resident per batch)
    w_ref:     (9, Cin, Cout)      bf16 HWIO weights flattened over taps
    ab_ref:    (2, Cin)            f32 [scale, shift] applied to the input
                                   (identity for conv1/downsample; BN1 for
                                   conv2, with relu_in=True)
    y_ref:     (1, TH, Wo, Cout)   bf16 raw conv output tile
    stats_ref: (1, 2, Cout)        f32 [sum, sumsq] accumulated across rows
    xpad_ref:  (Hin+2, Win+2, Cin) bf16 zero-padded image scratch
    """
    r = pl.program_id(1)

    @pl.when(r == 0)
    def _():
        # Build the zero-padded image in VMEM once per batch, fusing the
        # previous layer's BN affine (+ ReLU) into the copy.  No HBM pad.
        xpad_ref[...] = jnp.zeros_like(xpad_ref)
        img = x_ref[0].astype(jnp.float32)
        img = img * ab_ref[0].reshape(1, 1, cin) + ab_ref[1].reshape(1, 1, cin)
        if relu_in:
            img = jnp.maximum(img, 0.0)
        xpad_ref[pl.ds(1, hin), pl.ds(1, win), :] = img.astype(xpad_ref.dtype)
        stats_ref[...] = jnp.zeros_like(stats_ref)

    rows = (th - 1) * stride + 1
    cols = (wo - 1) * stride + 1
    m = th * wo
    row0 = pl.multiple_of(r * (th * stride), th * stride)

    # Single f32 accumulation chain over the 9 bf16 MXU taps.
    acc = jnp.zeros((m, cout), jnp.float32)
    for ky in range(3):
        for kx in range(3):
            patch = xpad_ref[pl.ds(row0 + ky, rows), pl.ds(kx, cols), :]
            if stride > 1:
                patch = patch[::stride, ::stride, :]
            acc = acc + jnp.dot(
                patch.reshape(m, cin), w_ref[3 * ky + kx],
                preferred_element_type=jnp.float32)

    y_ref[...] = acc.reshape(1, th, wo, cout).astype(y_ref.dtype)

    colsum = jnp.sum(acc, axis=0, keepdims=True)        # (1, Cout)
    colsq = jnp.sum(acc * acc, axis=0, keepdims=True)   # (1, Cout)
    stats_ref[...] += jnp.concatenate([colsum, colsq], axis=0)[None]


def _bn_add_relu_kernel(y_ref, ab_ref, id_ref, abid_ref, o_ref):
    """relu( bn(y) + bn(identity) ) on lane-dense (1, TH, Wo*Cout) tiles.

    ab_ref / abid_ref: (2, Wo*Cout) per-channel affines pre-tiled across Wo.
    For the plain shortcut abid = [ones, zeros] so bn(identity) == identity.
    """
    y = y_ref[...].astype(jnp.float32)
    idn = id_ref[...].astype(jnp.float32)
    s = ab_ref[0].reshape(1, 1, -1)
    b = ab_ref[1].reshape(1, 1, -1)
    si = abid_ref[0].reshape(1, 1, -1)
    bi = abid_ref[1].reshape(1, 1, -1)
    out = (y * s + b) + (idn * si + bi)
    o_ref[...] = jnp.maximum(out, 0.0).astype(o_ref.dtype)


# ---------------------------- pallas_call wrappers -----------------------------
def _conv3x3_bn_stats(x, w9, ab_in, *, stride, relu_in, vmem_limit):
    """Raw 3x3 conv (+ fused input affine/ReLU) and BN batch statistics."""
    n, hin, win, cin = x.shape
    cout = w9.shape[-1]
    ho = (hin - 1) // stride + 1
    wo = (win - 1) // stride + 1
    th = _row_block(ho, wo * cout * 8, _CONV_ROW_BUDGET, sublane_aligned=False)
    nrb = ho // th
    kernel = functools.partial(
        _conv3x3_kernel, stride=stride, th=th, hin=hin, win=win,
        cin=cin, cout=cout, wo=wo, relu_in=relu_in)
    y, stats = pl.pallas_call(
        kernel,
        grid=(n, nrb),
        in_specs=[
            pl.BlockSpec((1, hin, win, cin), lambda i, j: (i, 0, 0, 0)),
            pl.BlockSpec((9, cin, cout), lambda i, j: (0, 0, 0)),
            pl.BlockSpec((2, cin), lambda i, j: (0, 0)),
        ],
        out_specs=[
            pl.BlockSpec((1, th, wo, cout), lambda i, j: (i, j, 0, 0)),
            pl.BlockSpec((1, 2, cout), lambda i, j: (i, 0, 0)),
        ],
        out_shape=[
            jax.ShapeDtypeStruct((n, ho, wo, cout), jnp.bfloat16),
            jax.ShapeDtypeStruct((n, 2, cout), jnp.float32),
        ],
        scratch_shapes=[pltpu.VMEM((hin + 2, win + 2, cin), jnp.bfloat16)],
        compiler_params=pltpu.CompilerParams(
            dimension_semantics=("parallel", "arbitrary"),
            vmem_limit_bytes=vmem_limit,
        ),
    )(x, w9, ab_in)
    return y, stats


def _bn_add_relu(y2, ab2, identity, abid, *, wo, cout, vmem_limit):
    """Fused finalize: relu( bn(conv2) + bn(downsample)|x ), lane-dense tiles."""
    n, ho = y2.shape[0], y2.shape[1]
    woc = wo * cout
    y2f = y2.reshape(n, ho, woc)
    idf = identity.reshape(n, ho, woc)
    ab2t = jnp.tile(ab2, (1, wo))     # (2, Wo*Cout), lane-dense per-channel
    abidt = jnp.tile(abid, (1, wo))
    th = _row_block(ho, woc * 20, _ELEM_ROW_BUDGET, sublane_aligned=True)
    nrb = ho // th
    out = pl.pallas_call(
        _bn_add_relu_kernel,
        grid=(n, nrb),
        in_specs=[
            pl.BlockSpec((1, th, woc), lambda i, j: (i, j, 0)),
            pl.BlockSpec((2, woc), lambda i, j: (0, 0)),
            pl.BlockSpec((1, th, woc), lambda i, j: (i, j, 0)),
            pl.BlockSpec((2, woc), lambda i, j: (0, 0)),
        ],
        out_specs=pl.BlockSpec((1, th, woc), lambda i, j: (i, j, 0)),
        out_shape=jax.ShapeDtypeStruct((n, ho, woc), jnp.float32),
        compiler_params=pltpu.CompilerParams(
            dimension_semantics=("parallel", "parallel"),
            vmem_limit_bytes=vmem_limit,
        ),
    )(y2f, ab2t, idf, abidt)
    return out.reshape(n, ho, wo, cout)


# --------------------------- parameters & forward ------------------------------
def init_resblock_params(key, in_channels, out_channels, stride):
    """xavier_normal_ init for the 3x3 conv weights (HWIO layout, no bias)."""
    def xavier(k, cin, cout):
        fan_in, fan_out = cin * 9, cout * 9
        std = (2.0 / (fan_in + fan_out)) ** 0.5
        return std * jax.random.normal(k, (3, 3, cin, cout), jnp.float32)

    k1, k2, k3 = jax.random.split(key, 3)
    params = {
        "w1": xavier(k1, in_channels, out_channels),
        "w2": xavier(k2, out_channels, out_channels),
    }
    if in_channels != out_channels or stride != 1:
        params["wds"] = xavier(k3, in_channels, out_channels)
    return params


def _bn_affine(stats, m):
    """(N,2,C) partial [sum, sumsq] -> (2,C) [scale, shift] per channel.

    Note: E[x^2]-E[x]^2 variance; fine at these magnitudes (values are O(1)
    after xavier init), a shifted two-pass variance would be needed for very
    large activations.
    """
    total = jnp.sum(stats, axis=0)                        # (2, C)
    mean = total[0] / m
    var = jnp.maximum(total[1] / m - mean * mean, 0.0)
    inv = jax.lax.rsqrt(var + BN_EPS)
    return jnp.stack([inv, -mean * inv]).astype(jnp.float32)


@functools.partial(jax.jit, static_argnames=("stride",))
def resblock_forward(x_nchw, params, stride=1):
    """ResBlock.forward (training-mode BN). NCHW in -> NCHW out."""
    vmem_limit = _vmem_limit_bytes()
    x = jnp.transpose(x_nchw, (0, 2, 3, 1)).astype(jnp.float32)   # NHWC
    n, h, w, cin = x.shape
    cout = params["w1"].shape[-1]
    ho = (h - 1) // stride + 1
    wo = (w - 1) // stride + 1
    m = n * ho * wo

    x_bf = x.astype(jnp.bfloat16)
    w1 = params["w1"].astype(jnp.bfloat16).reshape(9, cin, cout)
    w2 = params["w2"].astype(jnp.bfloat16).reshape(9, cout, cout)

    eye_in = jnp.stack([jnp.ones((cin,), jnp.float32),
                        jnp.zeros((cin,), jnp.float32)])

    # conv1: raw conv output + batch stats (BN1 + ReLU deferred into conv2).
    y1, s1 = _conv3x3_bn_stats(x_bf, w1, eye_in, stride=stride,
                               relu_in=False, vmem_limit=vmem_limit)
    ab1 = _bn_affine(s1, m)

    # conv2 with BN1 + ReLU fused into its input path (reads raw y1).
    y2, s2 = _conv3x3_bn_stats(y1, w2, ab1, stride=1,
                               relu_in=True, vmem_limit=vmem_limit)
    ab2 = _bn_affine(s2, m)

    # identity / downsample branch
    if "wds" in params:
        wds = params["wds"].astype(jnp.bfloat16).reshape(9, cin, cout)
        yds, sds = _conv3x3_bn_stats(x_bf, wds, eye_in, stride=stride,
                                     relu_in=False, vmem_limit=vmem_limit)
        identity, abid = yds, _bn_affine(sds, m)
    else:
        identity = x                         # f32 passthrough shortcut
        abid = jnp.stack([jnp.ones((cout,), jnp.float32),
                          jnp.zeros((cout,), jnp.float32)])

    # fused finalize: relu( bn(conv2) + bn(downsample)|x )
    out = _bn_add_relu(y2, ab2, identity, abid, wo=wo, cout=cout,
                       vmem_limit=vmem_limit)
    return jnp.transpose(out, (0, 3, 1, 2))   # back to NCHW


# ----------------------------- pure-JAX reference -----------------------------
def _ref_conv_bn(x_nhwc, w_hwio, stride, relu):
    y = jax.lax.conv_general_dilated(
        x_nhwc, w_hwio, window_strides=(stride, stride),
        padding=((1, 1), (1, 1)), dimension_numbers=("NHWC", "HWIO", "NHWC"))
    mean = jnp.mean(y, axis=(0, 1, 2), keepdims=True)
    var = jnp.mean((y - mean) ** 2, axis=(0, 1, 2), keepdims=True)
    y = (y - mean) * jax.lax.rsqrt(var + BN_EPS)
    return jnp.maximum(y, 0.0) if relu else y


def resblock_reference(x_nchw, params, stride=1):
    x = jnp.transpose(x_nchw, (0, 2, 3, 1)).astype(jnp.float32)
    cin, cout = x.shape[-1], params["w1"].shape[-1]
    h1 = _ref_conv_bn(x, params["w1"], stride, True)
    h2 = _ref_conv_bn(h1, params["w2"], 1, False)
    identity = (_ref_conv_bn(x, params["wds"], stride, False)
                if (cin != cout or stride != 1) else x)
    out = jnp.maximum(h2 + identity, 0.0)
    return jnp.transpose(out, (0, 3, 1, 2))


if __name__ == "__main__":
    key = jax.random.PRNGKey(0)

    configs = [
        # (N, Cin, Cout, H, W, stride)
        (2, 4, 8, 16, 16, 1),   # channel change -> 3x3 downsample branch
        (2, 8, 8, 16, 16, 1),   # plain identity shortcut
        (2, 4, 8, 16, 16, 2),   # strided conv + strided downsample
    ]
    for idx, (n, cin, cout, h, w, s) in enumerate(configs):
        kx, kp = jax.random.split(jax.random.fold_in(key, idx))
        x = jax.random.normal(kx, (n, cin, h, w), jnp.float32)
        params = init_resblock_params(kp, cin, cout, s)

        out = jax.block_until_ready(resblock_forward(x, params, stride=s))
        ref = jax.block_until_ready(resblock_reference(x, params, stride=s))

        ho = (h - 1) // s + 1
        wo = (w - 1) // s + 1
        assert out.shape == (n, cout, ho, wo), out.shape
        err = float(jnp.max(jnp.abs(out - ref)))
        rel = float(jnp.linalg.norm(out - ref) / (jnp.linalg.norm(ref) + 1e-12))
        # bf16 MXU operands / bf16 intermediates => looser-than-f32 tolerance.
        assert err < 0.15 and rel < 0.04, (idx, err, rel)

    print("KERNEL_OK")
</pallas_src>

<mosaic_0001>
module attributes {stable_mosaic.version = 11 : i64} {
  func.func @_conv3x3_kernel(%arg0: i32, %arg1: i32, %arg2: memref<1x16x16x4xbf16, #tpu.memory_space<vmem>>, %arg3: memref<9x4x8xbf16, #tpu.memory_space<vmem>>, %arg4: memref<2x4xf32, #tpu.memory_space<vmem>>, %arg5: memref<1x16x16x8xbf16, #tpu.memory_space<vmem>>, %arg6: memref<1x2x8xf32, #tpu.memory_space<vmem>>, %arg7: memref<18x18x4xbf16, #tpu.memory_space<vmem>>) attributes {dimension_semantics = [#tpu.dimension_semantics<parallel>, #tpu.dimension_semantics<arbitrary>], iteration_bounds = array<i64: 2, 1>, scalar_prefetch = 0 : i64, scratch_operands = 1 : i64, tpu.core_type = #tpu.core_type<tc>, window_params = [{transform_indices = @transform_0, window_bounds = array<i64: 1, 16, 16, 4>}, {pipeline_mode = #tpu.pipeline_mode<synchronous>, transform_indices = @transform_1, window_bounds = array<i64: 9, 4, 8>}, {pipeline_mode = #tpu.pipeline_mode<synchronous>, transform_indices = @transform_2, window_bounds = array<i64: 2, 4>}, {transform_indices = @transform_3, window_bounds = array<i64: 1, 16, 16, 8>}, {transform_indices = @transform_4, window_bounds = array<i64: 1, 2, 8>}]} {
    %c0_i32 = arith.constant 0 : i32
    %0 = arith.cmpi eq, %arg1, %c0_i32 : i32
    %1 = arith.extui %0 : i1 to i32
    %c0_i32_0 = arith.constant 0 : i32
    %2 = arith.cmpi ne, %1, %c0_i32_0 : i32
    scf.if %2 {
      %cst_65 = arith.constant 0.000000e+00 : bf16
      %91 = vector.broadcast %cst_65 : bf16 to vector<18x18x4xbf16>
      %c0_66 = arith.constant 0 : index
      %c0_67 = arith.constant 0 : index
      %c0_68 = arith.constant 0 : index
      %92 = vector.load %arg7[%c0_66, %c0_67, %c0_68] : memref<18x18x4xbf16, #tpu.memory_space<vmem>>, vector<18x18x4xbf16>
      tpu.vector_store %arg7[%c0_66, %c0_67, %c0_68], %91 {strides = array<i32>} : memref<18x18x4xbf16, #tpu.memory_space<vmem>>, vector<18x18x4xbf16>,
      %c0_69 = arith.constant 0 : index
      %c0_70 = arith.constant 0 : index
      %c0_71 = arith.constant 0 : index
      %c0_72 = arith.constant 0 : index
      %93 = vector.load %arg2[%c0_69, %c0_70, %c0_71, %c0_72] : memref<1x16x16x4xbf16, #tpu.memory_space<vmem>>, vector<1x16x16x4xbf16>
      %94 = vector.shape_cast %93 : vector<1x16x16x4xbf16> to vector<16x16x4xbf16>
      %95 = arith.extf %94 : vector<16x16x4xbf16> to vector<16x16x4xf32>
      %c0_73 = arith.constant 0 : index
      %c0_74 = arith.constant 0 : index
      %96 = vector.load %arg4[%c0_73, %c0_74] : memref<2x4xf32, #tpu.memory_space<vmem>>, vector<1x4xf32>
      %97 = vector.shape_cast %96 : vector<1x4xf32> to vector<4xf32>
      %98 = vector.shape_cast %97 : vector<4xf32> to vector<1x1x4xf32>
      %99 = vector.broadcast %98 : vector<1x1x4xf32> to vector<16x16x4xf32>
      %100 = arith.mulf %95, %99 : vector<16x16x4xf32>
      %c1_75 = arith.constant 1 : index
      %c0_76 = arith.constant 0 : index
      %101 = vector.load %arg4[%c1_75, %c0_76] : memref<2x4xf32, #tpu.memory_space<vmem>>, vector<1x4xf32>
      %102 = vector.shape_cast %101 : vector<1x4xf32> to vector<4xf32>
      %103 = vector.shape_cast %102 : vector<4xf32> to vector<1x1x4xf32>
      %104 = vector.broadcast %103 : vector<1x1x4xf32> to vector<16x16x4xf32>
      %105 = arith.addf %100, %104 : vector<16x16x4xf32>
      %106 = arith.truncf %105 : vector<16x16x4xf32> to vector<16x16x4xbf16>
      %c1_77 = arith.constant 1 : index
      %c1_78 = arith.constant 1 : index
      %c0_79 = arith.constant 0 : index
      %107 = vector.load %arg7[%c1_77, %c1_78, %c0_79] : memref<18x18x4xbf16, #tpu.memory_space<vmem>>, vector<16x16x4xbf16>
      tpu.vector_store %arg7[%c1_77, %c1_78, %c0_79], %106 {strides = array<i32>} : memref<18x18x4xbf16, #tpu.memory_space<vmem>>, vector<16x16x4xbf16>,
      %cst_80 = arith.constant 0.000000e+00 : f32
      %108 = vector.broadcast %cst_80 : f32 to vector<1x2x8xf32>
      %c0_81 = arith.constant 0 : index
      %c0_82 = arith.constant 0 : index
      %c0_83 = arith.constant 0 : index
      %109 = vector.load %arg6[%c0_81, %c0_82, %c0_83] : memref<1x2x8xf32, #tpu.memory_space<vmem>>, vector<1x2x8xf32>
      tpu.vector_store %arg6[%c0_81, %c0_82, %c0_83], %108 {strides = array<i32>} : memref<1x2x8xf32, #tpu.memory_space<vmem>>, vector<1x2x8xf32>,
    } else {
    }
    %c16_i32 = arith.constant 16 : i32
    %3 = arith.muli %arg1, %c16_i32 : i32
    %4 = tpu.assume_multiple %3, 16 : i32
    %cst = arith.constant 0.000000e+00 : f32
    %5 = vector.broadcast %cst : f32 to vector<256x8xf32>
    %c0_i32_1 = arith.constant 0 : i32
    %6 = arith.addi %4, %c0_i32_1 : i32
    %7 = arith.index_cast %6 : i32 to index
    %c0 = arith.constant 0 : index
    %c0_2 = arith.constant 0 : index
    %8 = vector.load %arg7[%7, %c0, %c0_2] : memref<18x18x4xbf16, #tpu.memory_space<vmem>>, vector<16x16x4xbf16>
    %9 = vector.shape_cast %8 : vector<16x16x4xbf16> to vector<256x4xbf16>
    %c0_3 = arith.constant 0 : index
    %c0_4 = arith.constant 0 : index
    %c0_5 = arith.constant 0 : index
    %10 = vector.load %arg3[%c0_3, %c0_4, %c0_5] : memref<9x4x8xbf16, #tpu.memory_space<vmem>>, vector<1x4x8xbf16>
    %11 = vector.shape_cast %10 : vector<1x4x8xbf16> to vector<4x8xbf16>
    %cst_6 = arith.constant dense<0.000000e+00> : vector<256x8xf32>
    %12 = tpu.matmul %9, %11, %cst_6 {dimension_numbers = #tpu.dot_dimension_numbers<[1], [0], [0], [1], [0, 0, 1, 1], [], []>} : vector<256x4xbf16>, vector<4x8xbf16>, vector<256x8xf32> -> vector<256x8xf32>
    %13 = arith.addf %5, %12 : vector<256x8xf32>
    %c0_i32_7 = arith.constant 0 : i32
    %14 = arith.addi %4, %c0_i32_7 : i32
    %15 = arith.index_cast %14 : i32 to index
    %c1 = arith.constant 1 : index
    %c0_8 = arith.constant 0 : index
    %16 = vector.load %arg7[%15, %c1, %c0_8] : memref<18x18x4xbf16, #tpu.memory_space<vmem>>, vector<16x16x4xbf16>
    %17 = vector.shape_cast %16 : vector<16x16x4xbf16> to vector<256x4xbf16>
    %c1_9 = arith.constant 1 : index
    %c0_10 = arith.constant 0 : index
    %c0_11 = arith.constant 0 : index
    %18 = vector.load %arg3[%c1_9, %c0_10, %c0_11] : memref<9x4x8xbf16, #tpu.memory_space<vmem>>, vector<1x4x8xbf16>
    %19 = vector.shape_cast %18 : vector<1x4x8xbf16> to vector<4x8xbf16>
    %cst_12 = arith.constant dense<0.000000e+00> : vector<256x8xf32>
    %20 = tpu.matmul %17, %19, %cst_12 {dimension_numbers = #tpu.dot_dimension_numbers<[1], [0], [0], [1], [0, 0, 1, 1], [], []>} : vector<256x4xbf16>, vector<4x8xbf16>, vector<256x8xf32> -> vector<256x8xf32>
    %21 = arith.addf %13, %20 : vector<256x8xf32>
    %c0_i32_13 = arith.constant 0 : i32
    %22 = arith.addi %4, %c0_i32_13 : i32
    %23 = arith.index_cast %22 : i32 to index
    %c2 = arith.constant 2 : index
    %c0_14 = arith.constant 0 : index
    %24 = vector.load %arg7[%23, %c2, %c0_14] : memref<18x18x4xbf16, #tpu.memory_space<vmem>>, vector<16x16x4xbf16>
    %25 = vector.shape_cast %24 : vector<16x16x4xbf16> to vector<256x4xbf16>
    %c2_15 = arith.constant 2 : index
    %c0_16 = arith.constant 0 : index
    %c0_17 = arith.constant 0 : index
    %26 = vector.load %arg3[%c2_15, %c0_16, %c0_17] : memref<9x4x8xbf16, #tpu.memory_space<vmem>>, vector<1x4x8xbf16>
    %27 = vector.shape_cast %26 : vector<1x4x8xbf16> to vector<4x8xbf16>
    %cst_18 = arith.constant dense<0.000000e+00> : vector<256x8xf32>
    %28 = tpu.matmul %25, %27, %cst_18 {dimension_numbers = #tpu.dot_dimension_numbers<[1], [0], [0], [1], [0, 0, 1, 1], [], []>} : vector<256x4xbf16>, vector<4x8xbf16>, vector<256x8xf32> -> vector<256x8xf32>
    %29 = arith.addf %21, %28 : vector<256x8xf32>
    %c1_i32 = arith.constant 1 : i32
    %30 = arith.addi %4, %c1_i32 : i32
    %31 = arith.index_cast %30 : i32 to index
    %c0_19 = arith.constant 0 : index
    %c0_20 = arith.constant 0 : index
    %32 = vector.load %arg7[%31, %c0_19, %c0_20] : memref<18x18x4xbf16, #tpu.memory_space<vmem>>, vector<16x16x4xbf16>
    %33 = vector.shape_cast %32 : vector<16x16x4xbf16> to vector<256x4xbf16>
    %c3 = arith.constant 3 : index
    %c0_21 = arith.constant 0 : index
    %c0_22 = arith.constant 0 : index
    %34 = vector.load %arg3[%c3, %c0_21, %c0_22] : memref<9x4x8xbf16, #tpu.memory_space<vmem>>, vector<1x4x8xbf16>
    %35 = vector.shape_cast %34 : vector<1x4x8xbf16> to vector<4x8xbf16>
    %cst_23 = arith.constant dense<0.000000e+00> : vector<256x8xf32>
    %36 = tpu.matmul %33, %35, %cst_23 {dimension_numbers = #tpu.dot_dimension_numbers<[1], [0], [0], [1], [0, 0, 1, 1], [], []>} : vector<256x4xbf16>, vector<4x8xbf16>, vector<256x8xf32> -> vector<256x8xf32>
    %37 = arith.addf %29, %36 : vector<256x8xf32>
    %c1_i32_24 = arith.constant 1 : i32
    %38 = arith.addi %4, %c1_i32_24 : i32
    %39 = arith.index_cast %38 : i32 to index
    %c1_25 = arith.constant 1 : index
    %c0_26 = arith.constant 0 : index
    %40 = vector.load %arg7[%39, %c1_25, %c0_26] : memref<18x18x4xbf16, #tpu.memory_space<vmem>>, vector<16x16x4xbf16>
    %41 = vector.shape_cast %40 : vector<16x16x4xbf16> to vector<256x4xbf16>
    %c4 = arith.constant 4 : index
    %c0_27 = arith.constant 0 : index
    %c0_28 = arith.constant 0 : index
    %42 = vector.load %arg3[%c4, %c0_27, %c0_28] : memref<9x4x8xbf16, #tpu.memory_space<vmem>>, vector<1x4x8xbf16>
    %43 = vector.shape_cast %42 : vector<1x4x8xbf16> to vector<4x8xbf16>
    %cst_29 = arith.constant dense<0.000000e+00> : vector<256x8xf32>
    %44 = tpu.matmul %41, %43, %cst_29 {dimension_numbers = #tpu.dot_dimension_numbers<[1], [0], [0], [1], [0, 0, 1, 1], [], []>} : vector<256x4xbf16>, vector<4x8xbf16>, vector<256x8xf32> -> vector<256x8xf32>
    %45 = arith.addf %37, %44 : vector<256x8xf32>
    %c1_i32_30 = arith.constant 1 : i32
    %46 = arith.addi %4, %c1_i32_30 : i32
    %47 = arith.index_cast %46 : i32 to index
    %c2_31 = arith.constant 2 : index
    %c0_32 = arith.constant 0 : index
    %48 = vector.load %arg7[%47, %c2_31, %c0_32] : memref<18x18x4xbf16, #tpu.memory_space<vmem>>, vector<16x16x4xbf16>
    %49 = vector.shape_cast %48 : vector<16x16x4xbf16> to vector<256x4xbf16>
    %c5 = arith.constant 5 : index
    %c0_33 = arith.constant 0 : index
    %c0_34 = arith.constant 0 : index
    %50 = vector.load %arg3[%c5, %c0_33, %c0_34] : memref<9x4x8xbf16, #tpu.memory_space<vmem>>, vector<1x4x8xbf16>
    %51 = vector.shape_cast %50 : vector<1x4x8xbf16> to vector<4x8xbf16>
    %cst_35 = arith.constant dense<0.000000e+00> : vector<256x8xf32>
    %52 = tpu.matmul %49, %51, %cst_35 {dimension_numbers = #tpu.dot_dimension_numbers<[1], [0], [0], [1], [0, 0, 1, 1], [], []>} : vector<256x4xbf16>, vector<4x8xbf16>, vector<256x8xf32> -> vector<256x8xf32>
    %53 = arith.addf %45, %52 : vector<256x8xf32>
    %c2_i32 = arith.constant 2 : i32
    %54 = arith.addi %4, %c2_i32 : i32
    %55 = arith.index_cast %54 : i32 to index
    %c0_36 = arith.constant 0 : index
    %c0_37 = arith.constant 0 : index
    %56 = vector.load %arg7[%55, %c0_36, %c0_37] : memref<18x18x4xbf16, #tpu.memory_space<vmem>>, vector<16x16x4xbf16>
    %57 = vector.shape_cast %56 : vector<16x16x4xbf16> to vector<256x4xbf16>
    %c6 = arith.constant 6 : index
    %c0_38 = arith.constant 0 : index
    %c0_39 = arith.constant 0 : index
    %58 = vector.load %arg3[%c6, %c0_38, %c0_39] : memref<9x4x8xbf16, #tpu.memory_space<vmem>>, vector<1x4x8xbf16>
    %59 = vector.shape_cast %58 : vector<1x4x8xbf16> to vector<4x8xbf16>
    %cst_40 = arith.constant dense<0.000000e+00> : vector<256x8xf32>
    %60 = tpu.matmul %57, %59, %cst_40 {dimension_numbers = #tpu.dot_dimension_numbers<[1], [0], [0], [1], [0, 0, 1, 1], [], []>} : vector<256x4xbf16>, vector<4x8xbf16>, vector<256x8xf32> -> vector<256x8xf32>
    %61 = arith.addf %53, %60 : vector<256x8xf32>
    %c2_i32_41 = arith.constant 2 : i32
    %62 = arith.addi %4, %c2_i32_41 : i32
    %63 = arith.index_cast %62 : i32 to index
    %c1_42 = arith.constant 1 : index
    %c0_43 = arith.constant 0 : index
    %64 = vector.load %arg7[%63, %c1_42, %c0_43] : memref<18x18x4xbf16, #tpu.memory_space<vmem>>, vector<16x16x4xbf16>
    %65 = vector.shape_cast %64 : vector<16x16x4xbf16> to vector<256x4xbf16>
    %c7 = arith.constant 7 : index
    %c0_44 = arith.constant 0 : index
    %c0_45 = arith.constant 0 : index
    %66 = vector.load %arg3[%c7, %c0_44, %c0_45] : memref<9x4x8xbf16, #tpu.memory_space<vmem>>, vector<1x4x8xbf16>
    %67 = vector.shape_cast %66 : vector<1x4x8xbf16> to vector<4x8xbf16>
    %cst_46 = arith.constant dense<0.000000e+00> : vector<256x8xf32>
    %68 = tpu.matmul %65, %67, %cst_46 {dimension_numbers = #tpu.dot_dimension_numbers<[1], [0], [0], [1], [0, 0, 1, 1], [], []>} : vector<256x4xbf16>, vector<4x8xbf16>, vector<256x8xf32> -> vector<256x8xf32>
    %69 = arith.addf %61, %68 : vector<256x8xf32>
    %c2_i32_47 = arith.constant 2 : i32
    %70 = arith.addi %4, %c2_i32_47 : i32
    %71 = arith.index_cast %70 : i32 to index
    %c2_48 = arith.constant 2 : index
    %c0_49 = arith.constant 0 : index
    %72 = vector.load %arg7[%71, %c2_48, %c0_49] : memref<18x18x4xbf16, #tpu.memory_space<vmem>>, vector<16x16x4xbf16>
    %73 = vector.shape_cast %72 : vector<16x16x4xbf16> to vector<256x4xbf16>
    %c8 = arith.constant 8 : index
    %c0_50 = arith.constant 0 : index
    %c0_51 = arith.constant 0 : index
    %74 = vector.load %arg3[%c8, %c0_50, %c0_51] : memref<9x4x8xbf16, #tpu.memory_space<vmem>>, vector<1x4x8xbf16>
    %75 = vector.shape_cast %74 : vector<1x4x8xbf16> to vector<4x8xbf16>
    %cst_52 = arith.constant dense<0.000000e+00> : vector<256x8xf32>
    %76 = tpu.matmul %73, %75, %cst_52 {dimension_numbers = #tpu.dot_dimension_numbers<[1], [0], [0], [1], [0, 0, 1, 1], [], []>} : vector<256x4xbf16>, vector<4x8xbf16>, vector<256x8xf32> -> vector<256x8xf32>
    %77 = arith.addf %69, %76 : vector<256x8xf32>
    %78 = vector.shape_cast %77 : vector<256x8xf32> to vector<1x16x16x8xf32>
    %79 = arith.truncf %78 : vector<1x16x16x8xf32> to vector<1x16x16x8xbf16>
    %c0_53 = arith.constant 0 : index
    %c0_54 = arith.constant 0 : index
    %c0_55 = arith.constant 0 : index
    %c0_56 = arith.constant 0 : index
    %80 = vector.load %arg5[%c0_53, %c0_54, %c0_55, %c0_56] : memref<1x16x16x8xbf16, #tpu.memory_space<vmem>>, vector<1x16x16x8xbf16>
    tpu.vector_store %arg5[%c0_53, %c0_54, %c0_55, %c0_56], %79 {strides = array<i32>} : memref<1x16x16x8xbf16, #tpu.memory_space<vmem>>, vector<1x16x16x8xbf16>,
    %cst_57 = arith.constant dense<0.000000e+00> : vector<8xf32>
    %81 = vector.multi_reduction <add>, %77, %cst_57 [0] : vector<256x8xf32> to vector<8xf32>
    %82 = vector.shape_cast %81 : vector<8xf32> to vector<1x8xf32>
    %83 = arith.mulf %77, %77 : vector<256x8xf32>
    %cst_58 = arith.constant dense<0.000000e+00> : vector<8xf32>
    %84 = vector.multi_reduction <add>, %83, %cst_58 [0] : vector<256x8xf32> to vector<8xf32>
    %85 = vector.shape_cast %84 : vector<8xf32> to vector<1x8xf32>
    %c0_59 = arith.constant 0 : index
    %c0_60 = arith.constant 0 : index
    %c0_61 = arith.constant 0 : index
    %86 = vector.load %arg6[%c0_59, %c0_60, %c0_61] : memref<1x2x8xf32, #tpu.memory_space<vmem>>, vector<1x2x8xf32>
    %87 = tpu.concatenate %82, %85 in 0 : vector<1x8xf32>, vector<1x8xf32> -> vector<2x8xf32>
    %88 = vector.shape_cast %87 : vector<2x8xf32> to vector<1x2x8xf32>
    %89 = arith.addf %86, %88 : vector<1x2x8xf32>
    %c0_62 = arith.constant 0 : index
    %c0_63 = arith.constant 0 : index
    %c0_64 = arith.constant 0 : index
    %90 = vector.load %arg6[%c0_62, %c0_63, %c0_64] : memref<1x2x8xf32, #tpu.memory_space<vmem>>, vector<1x2x8xf32>
    tpu.vector_store %arg6[%c0_62, %c0_63, %c0_64], %89 {strides = array<i32>} : memref<1x2x8xf32, #tpu.memory_space<vmem>>, vector<1x2x8xf32>,
    return
  }
  func.func @transform_0(%arg0: i32, %arg1: i32) -> (i32, i32, i32, i32) {
    %c0_i32 = arith.constant 0 : i32
    %c0_i32_0 = arith.constant 0 : i32
    %c0_i32_1 = arith.constant 0 : i32
    %c0_i32_2 = arith.constant 0 : i32
    return %arg0, %c0_i32, %c0_i32_0, %c0_i32_1 : i32, i32, i32, i32
  }
  func.func @transform_1(%arg0: i32, %arg1: i32) -> (i32, i32, i32) {
    %c0_i32 = arith.constant 0 : i32
    %c0_i32_0 = arith.constant 0 : i32
    %c0_i32_1 = arith.constant 0 : i32
    %c0_i32_2 = arith.constant 0 : i32
    return %c0_i32, %c0_i32_0, %c0_i32_1 : i32, i32, i32
  }
  func.func @transform_2(%arg0: i32, %arg1: i32) -> (i32, i32) {
    %c0_i32 = arith.constant 0 : i32
    %c0_i32_0 = arith.constant 0 : i32
    %c0_i32_1 = arith.constant 0 : i32
    return %c0_i32, %c0_i32_0 : i32, i32
  }
  func.func @transform_3(%arg0: i32, %arg1: i32) -> (i32, i32, i32, i32) {
    %c0_i32 = arith.constant 0 : i32
    %c0_i32_0 = arith.constant 0 : i32
    %c0_i32_1 = arith.constant 0 : i32
    return %arg0, %arg1, %c0_i32, %c0_i32_0 : i32, i32, i32, i32
  }
  func.func @transform_4(%arg0: i32, %arg1: i32) -> (i32, i32, i32) {
    %c0_i32 = arith.constant 0 : i32
    %c0_i32_0 = arith.constant 0 : i32
    %c0_i32_1 = arith.constant 0 : i32
    return %arg0, %c0_i32, %c0_i32_0 : i32, i32, i32
  }
}

module attributes {stable_mosaic.version = 11 : i64} {
  func.func @_conv3x3_kernel(%arg0: i32, %arg1: i32, %arg2: memref<1x16x16x8xbf16, #tpu.memory_space<vmem>>, %arg3: memref<9x8x8xbf16, #tpu.memory_space<vmem>>, %arg4: memref<2x8xf32, #tpu.memory_space<vmem>>, %arg5: memref<1x16x16x8xbf16, #tpu.memory_space<vmem>>, %arg6: memref<1x2x8xf32, #tpu.memory_space<vmem>>, %arg7: memref<18x18x8xbf16, #tpu.memory_space<vmem>>) attributes {dimension_semantics = [#tpu.dimension_semantics<parallel>, #tpu.dimension_semantics<arbitrary>], iteration_bounds = array<i64: 2, 1>, scalar_prefetch = 0 : i64, scratch_operands = 1 : i64, tpu.core_type = #tpu.core_type<tc>, window_params = [{transform_indices = @transform_0, window_bounds = array<i64: 1, 16, 16, 8>}, {pipeline_mode = #tpu.pipeline_mode<synchronous>, transform_indices = @transform_1, window_bounds = array<i64: 9, 8, 8>}, {pipeline_mode = #tpu.pipeline_mode<synchronous>, transform_indices = @transform_2, window_bounds = array<i64: 2, 8>}, {transform_indices = @transform_3, window_bounds = array<i64: 1, 16, 16, 8>}, {transform_indices = @transform_4, window_bounds = array<i64: 1, 2, 8>}]} {
    %c0_i32 = arith.constant 0 : i32
    %0 = arith.cmpi eq, %arg1, %c0_i32 : i32
    %1 = arith.extui %0 : i1 to i32
    %c0_i32_0 = arith.constant 0 : i32
    %2 = arith.cmpi ne, %1, %c0_i32_0 : i32
    scf.if %2 {
      %cst_65 = arith.constant 0.000000e+00 : bf16
      %91 = vector.broadcast %cst_65 : bf16 to vector<18x18x8xbf16>
      %c0_66 = arith.constant 0 : index
      %c0_67 = arith.constant 0 : index
      %c0_68 = arith.constant 0 : index
      %92 = vector.load %arg7[%c0_66, %c0_67, %c0_68] : memref<18x18x8xbf16, #tpu.memory_space<vmem>>, vector<18x18x8xbf16>
      tpu.vector_store %arg7[%c0_66, %c0_67, %c0_68], %91 {strides = array<i32>} : memref<18x18x8xbf16, #tpu.memory_space<vmem>>, vector<18x18x8xbf16>,
      %c0_69 = arith.constant 0 : index
      %c0_70 = arith.constant 0 : index
      %c0_71 = arith.constant 0 : index
      %c0_72 = arith.constant 0 : index
      %93 = vector.load %arg2[%c0_69, %c0_70, %c0_71, %c0_72] : memref<1x16x16x8xbf16, #tpu.memory_space<vmem>>, vector<1x16x16x8xbf16>
      %94 = vector.shape_cast %93 : vector<1x16x16x8xbf16> to vector<16x16x8xbf16>
      %95 = arith.extf %94 : vector<16x16x8xbf16> to vector<16x16x8xf32>
      %c0_73 = arith.constant 0 : index
      %c0_74 = arith.constant 0 : index
      %96 = vector.load %arg4[%c0_73, %c0_74] : memref<2x8xf32, #tpu.memory_space<vmem>>, vector<1x8xf32>
      %97 = vector.shape_cast %96 : vector<1x8xf32> to vector<8xf32>
      %98 = vector.shape_cast %97 : vector<8xf32> to vector<1x1x8xf32>
      %99 = vector.broadcast %98 : vector<1x1x8xf32> to vector<16x16x8xf32>
      %100 = arith.mulf %95, %99 : vector<16x16x8xf32>
      %c1_75 = arith.constant 1 : index
      %c0_76 = arith.constant 0 : index
      %101 = vector.load %arg4[%c1_75, %c0_76] : memref<2x8xf32, #tpu.memory_space<vmem>>, vector<1x8xf32>
      %102 = vector.shape_cast %101 : vector<1x8xf32> to vector<8xf32>
      %103 = vector.shape_cast %102 : vector<8xf32> to vector<1x1x8xf32>
      %104 = vector.broadcast %103 : vector<1x1x8xf32> to vector<16x16x8xf32>
      %105 = arith.addf %100, %104 : vector<16x16x8xf32>
      %cst_77 = arith.constant 0.000000e+00 : f32
      %106 = vector.broadcast %cst_77 : f32 to vector<16x16x8xf32>
      %107 = arith.maximumf %105, %106 : vector<16x16x8xf32>
      %108 = arith.truncf %107 : vector<16x16x8xf32> to vector<16x16x8xbf16>
      %c1_78 = arith.constant 1 : index
      %c1_79 = arith.constant 1 : index
      %c0_80 = arith.constant 0 : index
      %109 = vector.load %arg7[%c1_78, %c1_79, %c0_80] : memref<18x18x8xbf16, #tpu.memory_space<vmem>>, vector<16x16x8xbf16>
      tpu.vector_store %arg7[%c1_78, %c1_79, %c0_80], %108 {strides = array<i32>} : memref<18x18x8xbf16, #tpu.memory_space<vmem>>, vector<16x16x8xbf16>,
      %cst_81 = arith.constant 0.000000e+00 : f32
      %110 = vector.broadcast %cst_81 : f32 to vector<1x2x8xf32>
      %c0_82 = arith.constant 0 : index
      %c0_83 = arith.constant 0 : index
      %c0_84 = arith.constant 0 : index
      %111 = vector.load %arg6[%c0_82, %c0_83, %c0_84] : memref<1x2x8xf32, #tpu.memory_space<vmem>>, vector<1x2x8xf32>
      tpu.vector_store %arg6[%c0_82, %c0_83, %c0_84], %110 {strides = array<i32>} : memref<1x2x8xf32, #tpu.memory_space<vmem>>, vector<1x2x8xf32>,
    } else {
    }
    %c16_i32 = arith.constant 16 : i32
    %3 = arith.muli %arg1, %c16_i32 : i32
    %4 = tpu.assume_multiple %3, 16 : i32
    %cst = arith.constant 0.000000e+00 : f32
    %5 = vector.broadcast %cst : f32 to vector<256x8xf32>
    %c0_i32_1 = arith.constant 0 : i32
    %6 = arith.addi %4, %c0_i32_1 : i32
    %7 = arith.index_cast %6 : i32 to index
    %c0 = arith.constant 0 : index
    %c0_2 = arith.constant 0 : index
    %8 = vector.load %arg7[%7, %c0, %c0_2] : memref<18x18x8xbf16, #tpu.memory_space<vmem>>, vector<16x16x8xbf16>
    %9 = vector.shape_cast %8 : vector<16x16x8xbf16> to vector<256x8xbf16>
    %c0_3 = arith.constant 0 : index
    %c0_4 = arith.constant 0 : index
    %c0_5 = arith.constant 0 : index
    %10 = vector.load %arg3[%c0_3, %c0_4, %c0_5] : memref<9x8x8xbf16, #tpu.memory_space<vmem>>, vector<1x8x8xbf16>
    %11 = vector.shape_cast %10 : vector<1x8x8xbf16> to vector<8x8xbf16>
    %cst_6 = arith.constant dense<0.000000e+00> : vector<256x8xf32>
    %12 = tpu.matmul %9, %11, %cst_6 {dimension_numbers = #tpu.dot_dimension_numbers<[1], [0], [0], [1], [0, 0, 1, 1], [], []>} : vector<256x8xbf16>, vector<8x8xbf16>, vector<256x8xf32> -> vector<256x8xf32>
    %13 = arith.addf %5, %12 : vector<256x8xf32>
    %c0_i32_7 = arith.constant 0 : i32
    %14 = arith.addi %4, %c0_i32_7 : i32
    %15 = arith.index_cast %14 : i32 to index
    %c1 = arith.constant 1 : index
    %c0_8 = arith.constant 0 : index
    %16 = vector.load %arg7[%15, %c1, %c0_8] : memref<18x18x8xbf16, #tpu.memory_space<vmem>>, vector<16x16x8xbf16>
    %17 = vector.shape_cast %16 : vector<16x16x8xbf16> to vector<256x8xbf16>
    %c1_9 = arith.constant 1 : index
    %c0_10 = arith.constant 0 : index
    %c0_11 = arith.constant 0 : index
    %18 = vector.load %arg3[%c1_9, %c0_10, %c0_11] : memref<9x8x8xbf16, #tpu.memory_space<vmem>>, vector<1x8x8xbf16>
    %19 = vector.shape_cast %18 : vector<1x8x8xbf16> to vector<8x8xbf16>
    %cst_12 = arith.constant dense<0.000000e+00> : vector<256x8xf32>
    %20 = tpu.matmul %17, %19, %cst_12 {dimension_numbers = #tpu.dot_dimension_numbers<[1], [0], [0], [1], [0, 0, 1, 1], [], []>} : vector<256x8xbf16>, vector<8x8xbf16>, vector<256x8xf32> -> vector<256x8xf32>
    %21 = arith.addf %13, %20 : vector<256x8xf32>
    %c0_i32_13 = arith.constant 0 : i32
    %22 = arith.addi %4, %c0_i32_13 : i32
    %23 = arith.index_cast %22 : i32 to index
    %c2 = arith.constant 2 : index
    %c0_14 = arith.constant 0 : index
    %24 = vector.load %arg7[%23, %c2, %c0_14] : memref<18x18x8xbf16, #tpu.memory_space<vmem>>, vector<16x16x8xbf16>
    %25 = vector.shape_cast %24 : vector<16x16x8xbf16> to vector<256x8xbf16>
    %c2_15 = arith.constant 2 : index
    %c0_16 = arith.constant 0 : index
    %c0_17 = arith.constant 0 : index
    %26 = vector.load %arg3[%c2_15, %c0_16, %c0_17] : memref<9x8x8xbf16, #tpu.memory_space<vmem>>, vector<1x8x8xbf16>
    %27 = vector.shape_cast %26 : vector<1x8x8xbf16> to vector<8x8xbf16>
    %cst_18 = arith.constant dense<0.000000e+00> : vector<256x8xf32>
    %28 = tpu.matmul %25, %27, %cst_18 {dimension_numbers = #tpu.dot_dimension_numbers<[1], [0], [0], [1], [0, 0, 1, 1], [], []>} : vector<256x8xbf16>, vector<8x8xbf16>, vector<256x8xf32> -> vector<256x8xf32>
    %29 = arith.addf %21, %28 : vector<256x8xf32>
    %c1_i32 = arith.constant 1 : i32
    %30 = arith.addi %4, %c1_i32 : i32
    %31 = arith.index_cast %30 : i32 to index
    %c0_19 = arith.constant 0 : index
    %c0_20 = arith.constant 0 : index
    %32 = vector.load %arg7[%31, %c0_19, %c0_20] : memref<18x18x8xbf16, #tpu.memory_space<vmem>>, vector<16x16x8xbf16>
    %33 = vector.shape_cast %32 : vector<16x16x8xbf16> to vector<256x8xbf16>
    %c3 = arith.constant 3 : index
    %c0_21 = arith.constant 0 : index
    %c0_22 = arith.constant 0 : index
    %34 = vector.load %arg3[%c3, %c0_21, %c0_22] : memref<9x8x8xbf16, #tpu.memory_space<vmem>>, vector<1x8x8xbf16>
    %35 = vector.shape_cast %34 : vector<1x8x8xbf16> to vector<8x8xbf16>
    %cst_23 = arith.constant dense<0.000000e+00> : vector<256x8xf32>
    %36 = tpu.matmul %33, %35, %cst_23 {dimension_numbers = #tpu.dot_dimension_numbers<[1], [0], [0], [1], [0, 0, 1, 1], [], []>} : vector<256x8xbf16>, vector<8x8xbf16>, vector<256x8xf32> -> vector<256x8xf32>
    %37 = arith.addf %29, %36 : vector<256x8xf32>
    %c1_i32_24 = arith.constant 1 : i32
    %38 = arith.addi %4, %c1_i32_24 : i32
    %39 = arith.index_cast %38 : i32 to index
    %c1_25 = arith.constant 1 : index
    %c0_26 = arith.constant 0 : index
    %40 = vector.load %arg7[%39, %c1_25, %c0_26] : memref<18x18x8xbf16, #tpu.memory_space<vmem>>, vector<16x16x8xbf16>
    %41 = vector.shape_cast %40 : vector<16x16x8xbf16> to vector<256x8xbf16>
    %c4 = arith.constant 4 : index
    %c0_27 = arith.constant 0 : index
    %c0_28 = arith.constant 0 : index
    %42 = vector.load %arg3[%c4, %c0_27, %c0_28] : memref<9x8x8xbf16, #tpu.memory_space<vmem>>, vector<1x8x8xbf16>
    %43 = vector.shape_cast %42 : vector<1x8x8xbf16> to vector<8x8xbf16>
    %cst_29 = arith.constant dense<0.000000e+00> : vector<256x8xf32>
    %44 = tpu.matmul %41, %43, %cst_29 {dimension_numbers = #tpu.dot_dimension_numbers<[1], [0], [0], [1], [0, 0, 1, 1], [], []>} : vector<256x8xbf16>, vector<8x8xbf16>, vector<256x8xf32> -> vector<256x8xf32>
    %45 = arith.addf %37, %44 : vector<256x8xf32>
    %c1_i32_30 = arith.constant 1 : i32
    %46 = arith.addi %4, %c1_i32_30 : i32
    %47 = arith.index_cast %46 : i32 to index
    %c2_31 = arith.constant 2 : index
    %c0_32 = arith.constant 0 : index
    %48 = vector.load %arg7[%47, %c2_31, %c0_32] : memref<18x18x8xbf16, #tpu.memory_space<vmem>>, vector<16x16x8xbf16>
    %49 = vector.shape_cast %48 : vector<16x16x8xbf16> to vector<256x8xbf16>
    %c5 = arith.constant 5 : index
    %c0_33 = arith.constant 0 : index
    %c0_34 = arith.constant 0 : index
    %50 = vector.load %arg3[%c5, %c0_33, %c0_34] : memref<9x8x8xbf16, #tpu.memory_space<vmem>>, vector<1x8x8xbf16>
    %51 = vector.shape_cast %50 : vector<1x8x8xbf16> to vector<8x8xbf16>
    %cst_35 = arith.constant dense<0.000000e+00> : vector<256x8xf32>
    %52 = tpu.matmul %49, %51, %cst_35 {dimension_numbers = #tpu.dot_dimension_numbers<[1], [0], [0], [1], [0, 0, 1, 1], [], []>} : vector<256x8xbf16>, vector<8x8xbf16>, vector<256x8xf32> -> vector<256x8xf32>
    %53 = arith.addf %45, %52 : vector<256x8xf32>
    %c2_i32 = arith.constant 2 : i32
    %54 = arith.addi %4, %c2_i32 : i32
    %55 = arith.index_cast %54 : i32 to index
    %c0_36 = arith.constant 0 : index
    %c0_37 = arith.constant 0 : index
    %56 = vector.load %arg7[%55, %c0_36, %c0_37] : memref<18x18x8xbf16, #tpu.memory_space<vmem>>, vector<16x16x8xbf16>
    %57 = vector.shape_cast %56 : vector<16x16x8xbf16> to vector<256x8xbf16>
    %c6 = arith.constant 6 : index
    %c0_38 = arith.constant 0 : index
    %c0_39 = arith.constant 0 : index
    %58 = vector.load %arg3[%c6, %c0_38, %c0_39] : memref<9x8x8xbf16, #tpu.memory_space<vmem>>, vector<1x8x8xbf16>
    %59 = vector.shape_cast %58 : vector<1x8x8xbf16> to vector<8x8xbf16>
    %cst_40 = arith.constant dense<0.000000e+00> : vector<256x8xf32>
    %60 = tpu.matmul %57, %59, %cst_40 {dimension_numbers = #tpu.dot_dimension_numbers<[1], [0], [0], [1], [0, 0, 1, 1], [], []>} : vector<256x8xbf16>, vector<8x8xbf16>, vector<256x8xf32> -> vector<256x8xf32>
    %61 = arith.addf %53, %60 : vector<256x8xf32>
    %c2_i32_41 = arith.constant 2 : i32
    %62 = arith.addi %4, %c2_i32_41 : i32
    %63 = arith.index_cast %62 : i32 to index
    %c1_42 = arith.constant 1 : index
    %c0_43 = arith.constant 0 : index
    %64 = vector.load %arg7[%63, %c1_42, %c0_43] : memref<18x18x8xbf16, #tpu.memory_space<vmem>>, vector<16x16x8xbf16>
    %65 = vector.shape_cast %64 : vector<16x16x8xbf16> to vector<256x8xbf16>
    %c7 = arith.constant 7 : index
    %c0_44 = arith.constant 0 : index
    %c0_45 = arith.constant 0 : index
    %66 = vector.load %arg3[%c7, %c0_44, %c0_45] : memref<9x8x8xbf16, #tpu.memory_space<vmem>>, vector<1x8x8xbf16>
    %67 = vector.shape_cast %66 : vector<1x8x8xbf16> to vector<8x8xbf16>
    %cst_46 = arith.constant dense<0.000000e+00> : vector<256x8xf32>
    %68 = tpu.matmul %65, %67, %cst_46 {dimension_numbers = #tpu.dot_dimension_numbers<[1], [0], [0], [1], [0, 0, 1, 1], [], []>} : vector<256x8xbf16>, vector<8x8xbf16>, vector<256x8xf32> -> vector<256x8xf32>
    %69 = arith.addf %61, %68 : vector<256x8xf32>
    %c2_i32_47 = arith.constant 2 : i32
    %70 = arith.addi %4, %c2_i32_47 : i32
    %71 = arith.index_cast %70 : i32 to index
    %c2_48 = arith.constant 2 : index
    %c0_49 = arith.constant 0 : index
    %72 = vector.load %arg7[%71, %c2_48, %c0_49] : memref<18x18x8xbf16, #tpu.memory_space<vmem>>, vector<16x16x8xbf16>
    %73 = vector.shape_cast %72 : vector<16x16x8xbf16> to vector<256x8xbf16>
    %c8 = arith.constant 8 : index
    %c0_50 = arith.constant 0 : index
    %c0_51 = arith.constant 0 : index
    %74 = vector.load %arg3[%c8, %c0_50, %c0_51] : memref<9x8x8xbf16, #tpu.memory_space<vmem>>, vector<1x8x8xbf16>
    %75 = vector.shape_cast %74 : vector<1x8x8xbf16> to vector<8x8xbf16>
    %cst_52 = arith.constant dense<0.000000e+00> : vector<256x8xf32>
    %76 = tpu.matmul %73, %75, %cst_52 {dimension_numbers = #tpu.dot_dimension_numbers<[1], [0], [0], [1], [0, 0, 1, 1], [], []>} : vector<256x8xbf16>, vector<8x8xbf16>, vector<256x8xf32> -> vector<256x8xf32>
    %77 = arith.addf %69, %76 : vector<256x8xf32>
    %78 = vector.shape_cast %77 : vector<256x8xf32> to vector<1x16x16x8xf32>
    %79 = arith.truncf %78 : vector<1x16x16x8xf32> to vector<1x16x16x8xbf16>
    %c0_53 = arith.constant 0 : index
    %c0_54 = arith.constant 0 : index
    %c0_55 = arith.constant 0 : index
    %c0_56 = arith.constant 0 : index
    %80 = vector.load %arg5[%c0_53, %c0_54, %c0_55, %c0_56] : memref<1x16x16x8xbf16, #tpu.memory_space<vmem>>, vector<1x16x16x8xbf16>
    tpu.vector_store %arg5[%c0_53, %c0_54, %c0_55, %c0_56], %79 {strides = array<i32>} : memref<1x16x16x8xbf16, #tpu.memory_space<vmem>>, vector<1x16x16x8xbf16>,
    %cst_57 = arith.constant dense<0.000000e+00> : vector<8xf32>
    %81 = vector.multi_reduction <add>, %77, %cst_57 [0] : vector<256x8xf32> to vector<8xf32>
    %82 = vector.shape_cast %81 : vector<8xf32> to vector<1x8xf32>
    %83 = arith.mulf %77, %77 : vector<256x8xf32>
    %cst_58 = arith.constant dense<0.000000e+00> : vector<8xf32>
    %84 = vector.multi_reduction <add>, %83, %cst_58 [0] : vector<256x8xf32> to vector<8xf32>
    %85 = vector.shape_cast %84 : vector<8xf32> to vector<1x8xf32>
    %c0_59 = arith.constant 0 : index
    %c0_60 = arith.constant 0 : index
    %c0_61 = arith.constant 0 : index
    %86 = vector.load %arg6[%c0_59, %c0_60, %c0_61] : memref<1x2x8xf32, #tpu.memory_space<vmem>>, vector<1x2x8xf32>
    %87 = tpu.concatenate %82, %85 in 0 : vector<1x8xf32>, vector<1x8xf32> -> vector<2x8xf32>
    %88 = vector.shape_cast %87 : vector<2x8xf32> to vector<1x2x8xf32>
    %89 = arith.addf %86, %88 : vector<1x2x8xf32>
    %c0_62 = arith.constant 0 : index
    %c0_63 = arith.constant 0 : index
    %c0_64 = arith.constant 0 : index
    %90 = vector.load %arg6[%c0_62, %c0_63, %c0_64] : memref<1x2x8xf32, #tpu.memory_space<vmem>>, vector<1x2x8xf32>
    tpu.vector_store %arg6[%c0_62, %c0_63, %c0_64], %89 {strides = array<i32>} : memref<1x2x8xf32, #tpu.memory_space<vmem>>, vector<1x2x8xf32>,
    return
  }
  func.func @transform_0(%arg0: i32, %arg1: i32) -> (i32, i32, i32, i32) {
    %c0_i32 = arith.constant 0 : i32
    %c0_i32_0 = arith.constant 0 : i32
    %c0_i32_1 = arith.constant 0 : i32
    %c0_i32_2 = arith.constant 0 : i32
    return %arg0, %c0_i32, %c0_i32_0, %c0_i32_1 : i32, i32, i32, i32
  }
  func.func @transform_1(%arg0: i32, %arg1: i32) -> (i32, i32, i32) {
    %c0_i32 = arith.constant 0 : i32
    %c0_i32_0 = arith.constant 0 : i32
    %c0_i32_1 = arith.constant 0 : i32
    %c0_i32_2 = arith.constant 0 : i32
    return %c0_i32, %c0_i32_0, %c0_i32_1 : i32, i32, i32
  }
  func.func @transform_2(%arg0: i32, %arg1: i32) -> (i32, i32) {
    %c0_i32 = arith.constant 0 : i32
    %c0_i32_0 = arith.constant 0 : i32
    %c0_i32_1 = arith.constant 0 : i32
    return %c0_i32, %c0_i32_0 : i32, i32
  }
  func.func @transform_3(%arg0: i32, %arg1: i32) -> (i32, i32, i32, i32) {
    %c0_i32 = arith.constant 0 : i32
    %c0_i32_0 = arith.constant 0 : i32
    %c0_i32_1 = arith.constant 0 : i32
    return %arg0, %arg1, %c0_i32, %c0_i32_0 : i32, i32, i32, i32
  }
  func.func @transform_4(%arg0: i32, %arg1: i32) -> (i32, i32, i32) {
    %c0_i32 = arith.constant 0 : i32
    %c0_i32_0 = arith.constant 0 : i32
    %c0_i32_1 = arith.constant 0 : i32
    return %arg0, %c0_i32, %c0_i32_0 : i32, i32, i32
  }
}

module attributes {stable_mosaic.version = 11 : i64} {
  func.func @_bn_add_relu_kernel(%arg0: i32, %arg1: i32, %arg2: memref<1x16x128xbf16, #tpu.memory_space<vmem>>, %arg3: memref<2x128xf32, #tpu.memory_space<vmem>>, %arg4: memref<1x16x128xbf16, #tpu.memory_space<vmem>>, %arg5: memref<2x128xf32, #tpu.memory_space<vmem>>, %arg6: memref<1x16x128xf32, #tpu.memory_space<vmem>>) attributes {dimension_semantics = [#tpu.dimension_semantics<parallel>, #tpu.dimension_semantics<parallel>], iteration_bounds = array<i64: 2, 1>, scalar_prefetch = 0 : i64, scratch_operands = 0 : i64, tpu.core_type = #tpu.core_type<tc>, window_params = [{transform_indices = @transform_0, window_bounds = array<i64: 1, 16, 128>}, {pipeline_mode = #tpu.pipeline_mode<synchronous>, transform_indices = @transform_1, window_bounds = array<i64: 2, 128>}, {transform_indices = @transform_2, window_bounds = array<i64: 1, 16, 128>}, {pipeline_mode = #tpu.pipeline_mode<synchronous>, transform_indices = @transform_3, window_bounds = array<i64: 2, 128>}, {transform_indices = @transform_4, window_bounds = array<i64: 1, 16, 128>}]} {
    %c0 = arith.constant 0 : index
    %c0_0 = arith.constant 0 : index
    %c0_1 = arith.constant 0 : index
    %0 = vector.load %arg2[%c0, %c0_0, %c0_1] : memref<1x16x128xbf16, #tpu.memory_space<vmem>>, vector<1x16x128xbf16>
    %1 = arith.extf %0 : vector<1x16x128xbf16> to vector<1x16x128xf32>
    %c0_2 = arith.constant 0 : index
    %c0_3 = arith.constant 0 : index
    %c0_4 = arith.constant 0 : index
    %2 = vector.load %arg4[%c0_2, %c0_3, %c0_4] : memref<1x16x128xbf16, #tpu.memory_space<vmem>>, vector<1x16x128xbf16>
    %3 = arith.extf %2 : vector<1x16x128xbf16> to vector<1x16x128xf32>
    %c0_5 = arith.constant 0 : index
    %c0_6 = arith.constant 0 : index
    %4 = vector.load %arg3[%c0_5, %c0_6] : memref<2x128xf32, #tpu.memory_space<vmem>>, vector<1x128xf32>
    %5 = vector.shape_cast %4 : vector<1x128xf32> to vector<128xf32>
    %6 = vector.shape_cast %5 : vector<128xf32> to vector<1x1x128xf32>
    %c1 = arith.constant 1 : index
    %c0_7 = arith.constant 0 : index
    %7 = vector.load %arg3[%c1, %c0_7] : memref<2x128xf32, #tpu.memory_space<vmem>>, vector<1x128xf32>
    %8 = vector.shape_cast %7 : vector<1x128xf32> to vector<128xf32>
    %9 = vector.shape_cast %8 : vector<128xf32> to vector<1x1x128xf32>
    %c0_8 = arith.constant 0 : index
    %c0_9 = arith.constant 0 : index
    %10 = vector.load %arg5[%c0_8, %c0_9] : memref<2x128xf32, #tpu.memory_space<vmem>>, vector<1x128xf32>
    %11 = vector.shape_cast %10 : vector<1x128xf32> to vector<128xf32>
    %12 = vector.shape_cast %11 : vector<128xf32> to vector<1x1x128xf32>
    %c1_10 = arith.constant 1 : index
    %c0_11 = arith.constant 0 : index
    %13 = vector.load %arg5[%c1_10, %c0_11] : memref<2x128xf32, #tpu.memory_space<vmem>>, vector<1x128xf32>
    %14 = vector.shape_cast %13 : vector<1x128xf32> to vector<128xf32>
    %15 = vector.shape_cast %14 : vector<128xf32> to vector<1x1x128xf32>
    %16 = vector.broadcast %6 : vector<1x1x128xf32> to vector<1x16x128xf32>
    %17 = arith.mulf %1, %16 : vector<1x16x128xf32>
    %18 = vector.broadcast %9 : vector<1x1x128xf32> to vector<1x16x128xf32>
    %19 = arith.addf %17, %18 : vector<1x16x128xf32>
    %20 = vector.broadcast %12 : vector<1x1x128xf32> to vector<1x16x128xf32>
    %21 = arith.mulf %3, %20 : vector<1x16x128xf32>
    %22 = vector.broadcast %15 : vector<1x1x128xf32> to vector<1x16x128xf32>
    %23 = arith.addf %21, %22 : vector<1x16x128xf32>
    %24 = arith.addf %19, %23 : vector<1x16x128xf32>
    %cst = arith.constant 0.000000e+00 : f32
    %25 = vector.broadcast %cst : f32 to vector<1x16x128xf32>
    %26 = arith.maximumf %24, %25 : vector<1x16x128xf32>
    %c0_12 = arith.constant 0 : index
    %c0_13 = arith.constant 0 : index
    %c0_14 = arith.constant 0 : index
    %27 = vector.load %arg6[%c0_12, %c0_13, %c0_14] : memref<1x16x128xf32, #tpu.memory_space<vmem>>, vector<1x16x128xf32>
    tpu.vector_store %arg6[%c0_12, %c0_13, %c0_14], %26 {strides = array<i32>} : memref<1x16x128xf32, #tpu.memory_space<vmem>>, vector<1x16x128xf32>,
    return
  }
  func.func @transform_0(%arg0: i32, %arg1: i32) -> (i32, i32, i32) {
    %c0_i32 = arith.constant 0 : i32
    %c0_i32_0 = arith.constant 0 : i32
    return %arg0, %arg1, %c0_i32 : i32, i32, i32
  }
  func.func @transform_1(%arg0: i32, %arg1: i32) -> (i32, i32) {
    %c0_i32 = arith.constant 0 : i32
    %c0_i32_0 = arith.constant 0 : i32
    %c0_i32_1 = arith.constant 0 : i32
    return %c0_i32, %c0_i32_0 : i32, i32
  }
  func.func @transform_2(%arg0: i32, %arg1: i32) -> (i32, i32, i32) {
    %c0_i32 = arith.constant 0 : i32
    %c0_i32_0 = arith.constant 0 : i32
    return %arg0, %arg1, %c0_i32 : i32, i32, i32
  }
  func.func @transform_3(%arg0: i32, %arg1: i32) -> (i32, i32) {
    %c0_i32 = arith.constant 0 : i32
    %c0_i32_0 = arith.constant 0 : i32
    %c0_i32_1 = arith.constant 0 : i32
    return %c0_i32, %c0_i32_0 : i32, i32
  }
  func.func @transform_4(%arg0: i32, %arg1: i32) -> (i32, i32, i32) {
    %c0_i32 = arith.constant 0 : i32
    %c0_i32_0 = arith.constant 0 : i32
    return %arg0, %arg1, %c0_i32 : i32, i32, i32
  }
}

</mosaic_0001>

<bundles_post_ra>
// kernel: tile.14
= control target key start
LH: loop header
LB: loop body
LE: loop exit
PB: predicated region body
PF: predicated region fallthrough
CT: control target
= control target key end

     0   :  { %s7_s6 = smov 3  ;;  %s21_s9 = smov 3  ;;  %vm4_vm0 = vcmask 64512   ;;  %vm11_vm1 = vcmask 1048512   ;;  %vm18_vm2 = vcmask 982912   ;;  %vm25_vm3 = vcmask 917312   ;;  %s223_s0 = inlined_call_operand.vmem [shape: f32[2,16,8], index: 0, kind: input, shape index: {}]   ;;  %s224_s1 = inlined_call_operand.vmem [shape: f32[2,128], index: 1, kind: output, shape index: {}]  }
   0x1   :  { %v117_v0 = vld [vmem:[%s223_s0 + $0xf] ss:$16 sm:%s7_s6]   ;;  %s147_s10 = smov 120   ;;  %v119_v1 = vld [vmem:[%s223_s0 + $0xd] ss:$16 sm:%s21_s9]   ;;  %s14_s13 = smov 3 }
   0x2   :  { %9 = vrot.lane.b32.xlu0 %v117_v0, %s147_s10  ;;  %s148_s14 = smov 104   ;;  %v118_v2 = vld [vmem:[%s223_s0 + $0xe] ss:$16 sm:%s14_s13]   ;;  %s28_s17 = smov 3  ;;  %vm32_vm4 = vcmask 851712   ;;  %vm39_vm5 = vcmask 786112  }
   0x3   :  { %23 = vrot.lane.b32.xlu1 %v119_v1, %s148_s14  ;;  %v120_v3 = vld [vmem:[%s223_s0 + $0xc] ss:$16 sm:%s28_s17]   ;;  %s35_s20 = smov 3  ;;  %s42_s21 = smov 3  ;;  %vm46_vm6 = vcmask 720512   ;;  %vm53_vm7 = vcmask 654912  }
   0x4   :  { %s149_s22 = smov 112   ;;  %s150_s23 = smov 96   ;;  %v121_v4 = vld [vmem:[%s223_s0 + $0xb] ss:$16 sm:%s35_s20]   ;;  %v122_v5 = vld [vmem:[%s223_s0 + $0xa] ss:$16 sm:%s42_s21]  }
   0x5   :  { %s49_s28 = smov 3  ;;  %s56_s29 = smov 3  ;;  %vm60_vm8 = vcmask 589312   ;;  %vm67_vm9 = vcmask 523712   ;;  %vm74_vm10 = vcmask 458112   ;;  %vm81_vm11 = vcmask 392512  }
   0x6   :  { %16 = vrot.lane.b32.xlu0 %v118_v2, %s149_s22  ;;  %s151_s30 = smov 88   ;;  %s152_s2 = smov 80   ;;  %v123_v6 = vld [vmem:[%s223_s0 + $0x9] ss:$16 sm:%s49_s28]   ;;  %vm88_vm12 = vcmask 326912   ;;  %vm95_vm13 = vcmask 261312  }
   0x7   :  { %30 = vrot.lane.b32.xlu1 %v120_v3, %s150_s23  ;;  %v124_v7 = vld [vmem:[%s223_s0 + $0x8] ss:$16 sm:%s56_s29]   ;;  %s63_s7 = smov 3  ;;  %s70_s8 = smov 3  ;;  %vm102_vm14 = vcmask 195712   ;;  %vm109_vm15 = vcmask 130112  }
   0x8   :  { %s153_s9 = smov 72   ;;  %s154_s10 = smov 64   ;;  %v125_v8 = vld [vmem:[%s223_s0 + $0x7] ss:$16 sm:%s63_s7]   ;;  %v126_v9 = vld [vmem:[%s223_s0 + $0x6] ss:$16 sm:%s70_s8]  }
   0x9   :  { %s2_s13 = smov 3  ;;  %s77_s16 = smov 3 }
   0xa   :  { %37 = vrot.lane.b32.xlu0 %v121_v4, %s151_s30  ;;  %v3_v10 = vld [vmem:[%s223_s0] ss:$16 sm:%s2_s13]   ;;  %s84_s19 = smov 3  ;;  %s155_s20 = smov 56  }
   0xb   :  { %44 = vrot.lane.b32.xlu1 %v122_v5, %s152_s2  ;;  %5 = vst.msk [vmem:[#allocation0] sm:$0x3] %vm4_vm0, %v3_v10   ;;  %s156_s21 = smov 48   ;;  %v127_v11 = vld [vmem:[%s223_s0 + $0x5] ss:$16 sm:%s77_s16]   ;;  %s91_s26 = smov 3 }
   0xc   :  { %v128_v12 = vld [vmem:[%s223_s0 + $0x4] ss:$16 sm:%s84_s19]   ;;  %s98_s27 = smov 3  ;;  %s157_s28 = smov 40   ;;  %v129_v13 = vld [vmem:[%s223_s0 + $0x3] ss:$16 sm:%s91_s26]  }
   0xd   :  { %s158_s29 = smov 32   ;;  %v130_v14 = vld [vmem:[%s223_s0 + $0x2] ss:$16 sm:%s98_s27]   ;;  %s105_s5 = smov 3 }
   0xe   :  { %51 = vrot.lane.b32.xlu0 %v123_v6, %s153_s9  ;;  %s159_s6 = smov 24   ;;  %s160_s7 = smov 16   ;;  %v131_v15 = vld [vmem:[%s223_s0 + $0x1] ss:$16 sm:%s105_s5]  }
   0xf   :  { %58 = vrot.lane.b32.xlu1 %v124_v7, %s154_s10  ;;  %s161_s0 = smov 8  }
  0x12   :  { %65 = vrot.lane.b32.xlu0 %v125_v8, %s155_s20 }
  0x13   :  { %72 = vrot.lane.b32.xlu1 %v126_v9, %s156_s21 }
  0x16   :  { %79 = vrot.lane.b32.xlu0 %v127_v11, %s157_s28 }
  0x17   :  { %86 = vrot.lane.b32.xlu1 %v128_v12, %s158_s29 }
  0x1a   :  { %93 = vrot.lane.b32.xlu0 %v129_v13, %s159_s6 }
  0x1b   :  { %100 = vrot.lane.b32.xlu1 %v130_v14, %s160_s7 }
  0x1e   :  { %107 = vrot.lane.b32.xlu0 %v131_v15, %s161_s0 }
  0x74   :  { %v10_v16 = vpop.permute.xlu0 %9  }
  0x75   :  { %12 = vst.msk [vmem:[#allocation0] sm:$0x3] %vm11_vm1, %v10_v16   ;;  %v24_v17 = vpop.permute.xlu1 %23  }
  0x78   :  { %v17_v18 = vpop.permute.xlu0 %16  }
  0x79   :  { %19 = vst.msk [vmem:[#allocation0] sm:$0x3] %vm18_vm2, %v17_v18   ;;  %v31_v19 = vpop.permute.xlu1 %30  }
  0x7a   :  { %26 = vst.msk [vmem:[#allocation0] sm:$0x3] %vm25_vm3, %v24_v17  }
  0x7b   :  { %33 = vst.msk [vmem:[#allocation0] sm:$0x3] %vm32_vm4, %v31_v19  }
  0x7c   :  { %v38_v20 = vpop.permute.xlu0 %37  }
  0x7d   :  { %40 = vst.msk [vmem:[#allocation0] sm:$0x3] %vm39_vm5, %v38_v20   ;;  %v45_v21 = vpop.permute.xlu1 %44  }
  0x7e   :  { %47 = vst.msk [vmem:[#allocation0] sm:$0x3] %vm46_vm6, %v45_v21  }
  0x80   :  { %v52_v22 = vpop.permute.xlu0 %51  }
  0x81   :  { %54 = vst.msk [vmem:[#allocation0] sm:$0x3] %vm53_vm7, %v52_v22   ;;  %v59_v23 = vpop.permute.xlu1 %58  }
  0x82   :  { %61 = vst.msk [vmem:[#allocation0] sm:$0x3] %vm60_vm8, %v59_v23  }
  0x84   :  { %v66_v24 = vpop.permute.xlu0 %65  }
  0x85   :  { %68 = vst.msk [vmem:[#allocation0] sm:$0x3] %vm67_vm9, %v66_v24   ;;  %v73_v25 = vpop.permute.xlu1 %72  }
  0x86   :  { %75 = vst.msk [vmem:[#allocation0] sm:$0x3] %vm74_vm10, %v73_v25  }
  0x88   :  { %v80_v26 = vpop.permute.xlu0 %79  }
  0x89   :  { %82 = vst.msk [vmem:[#allocation0] sm:$0x3] %vm81_vm11, %v80_v26   ;;  %v87_v27 = vpop.permute.xlu1 %86  }
  0x8a   :  { %89 = vst.msk [vmem:[#allocation0] sm:$0x3] %vm88_vm12, %v87_v27  }
  0x8c   :  { %v94_v28 = vpop.permute.xlu0 %93  }
  0x8d   :  { %96 = vst.msk [vmem:[#allocation0] sm:$0x3] %vm95_vm13, %v94_v28   ;;  %v101_v29 = vpop.permute.xlu1 %100  }
  0x8e   :  { %103 = vst.msk [vmem:[#allocation0] sm:$0x3] %vm102_vm14, %v101_v29  }
  0x90   :  { %v108_v30 = vpop.permute.xlu0 %107  }
  0x91   :  { %110 = vst.msk [vmem:[#allocation0] sm:$0x3] %vm109_vm15, %v108_v30  }
  0x98   :  { %v114_v31 = vld [vmem:[#allocation0] sm:$0x3] }
  0x99   :  { %116 = vst [vmem:[%s224_s1] sm:$0x3] %v114_v31 }

// kernel: resblock_forward.7
= control target key start
LH: loop header
LB: loop body
LE: loop exit
PB: predicated region body
PF: predicated region fallthrough
CT: control target
= control target key end

     0   :  { %s521_s15 = smov 0   ;;  %s523_s16 = smov 0   ;;  %s569_s0 = inlined_call_operand.vmem [shape: bf16[2,16,128], index: 0, kind: input, shape index: {}]   ;;  %s570_s1 = inlined_call_operand.vmem [shape: f32[2,128], index: 1, kind: input, shape index: {}]   ;;  %s571_s2 = inlined_call_operand.vmem [shape: bf16[2,16,128], index: 2, kind: input, shape index: {}]   ;;  %s572_s3 = inlined_call_operand.vmem [shape: f32[2,128], index: 3, kind: input, shape index: {}]   ;;  %s573_s4 = inlined_call_operand.vmem [shape: f32[2,16,128], index: 4, kind: output, shape index: {}]  }
   0x1   :  { %s525_s17 = smov 0  }
   0x2 LB: > { %s26_s18 = sadd.s32 1, %s490_s16  ;;  %p424_p0 = scmp.ge.s32.totalorder %s494_s17, 1  ;;  %s494_s17 = sphi %s525_s17, %s14_s17   ;;  %s490_s16 = sphi %s523_s16, %s575_s16   ;;  %s486_s15 = sphi %s521_s15, %s574_s15  }
   0x3   : > { %p28_p1 = scmp.ge.s32.totalorder %s26_s18, 2  ;;  %p200_p2 = scmp.lt.s32.totalorder %s494_s17, 3 }
   0x5   : > { %s577_s18 = smov (%p28_p1, %s26_s18), 0  ;;  %p201_p3 = pnand %p424_p0, %p200_p2 }
   0x6   : > { %p244_p4 = scmp.lt.s32.totalorder (!%p201_p3), %s486_s15, 1  ;;  %v431_v0 = vld [vmem:[%s570_s1] ss:$0 sm:$0xff] (!%p201_p3)  ;;  %v432_v8 = vld [vmem:[%s570_s1 + $0x1] ss:$0 sm:$0xff] (!%p201_p3) }
   0x7   : > { %204 = sbr.rel (%p201_p3) target bundleno = 30 (0x1e), region = 36  ;;  %v433_v3 = vld [vmem:[%s572_s3] ss:$0 sm:$0xff] (!%p201_p3)  ;;  %v434_v9 = vld [vmem:[%s572_s3 + $0x1] ss:$0 sm:$0xff] (!%p201_p3) }
   0xe   : > { %s579_s15 = smov (!%p244_p4, %s486_s15), 1 }
   0xf   : > { %s437_s19 = sshll.u32 %s579_s15, 3  ;;  %s439_s8 = sshll.u32 %s579_s15, 4 }
  0x10   : > { %s251_s22 = scalar_lea.vmem %s569_s0, %s437_s19  ;;  %s261_s25 = scalar_lea.vmem %s571_s2, %s437_s19 }
  0x11   : > { %v441_v1 = vld [vmem:[%s251_s22] sm:$0xff]   ;;  %s271_s11 = scalar_lea.vmem %s573_s4, %s439_s8 }
  0x12   : > { %v445_v2 = vld [vmem:[%s261_s25] sm:$0xff]   ;;  %v442_v4 = vunpack.c.l.bf16 %v441_v1  ;;  %v443_v5 = vunpack.c.h.bf16 %v441_v1 }
  0x13   : > { %v446_v6 = vunpack.c.l.bf16 %v445_v2  ;;  %v447_v7 = vunpack.c.h.bf16 %v445_v2 }
  0x14   : > { %v289_v10 = vmul.f32 %v442_v4, %v431_v0  ;;  %v290_v12 = vmul.f32 %v443_v5, %v431_v0 }
  0x15   : > { %v301_v11 = vmul.f32 %v446_v6, %v433_v3  ;;  %v302_v13 = vmul.f32 %v447_v7, %v433_v3 }
  0x16   : > { %v295_v14 = vadd.f32 %v432_v8, %v289_v10  ;;  %v296_v16 = vadd.f32 %v432_v8, %v290_v12 }
  0x17   : > { %v307_v15 = vadd.f32 %v434_v9, %v301_v11  ;;  %v308_v17 = vadd.f32 %v434_v9, %v302_v13 }
  0x19   : > { %v309_v18 = vadd.f32 %v307_v15, %v295_v14  ;;  %v310_v19 = vadd.f32 %v308_v17, %v296_v16 }
  0x1b   : > { %v311_v20 = vmax.f32 %v309_v18, 0.0  ;;  %v312_v21 = vmax.f32 %v310_v19, 0.0 }
  0x1d   : > { %313 = vst [vmem:[%s271_s11] sm:$0xff] %v311_v20  ;;  %314 = vst [vmem:[%s271_s11 + $0x8] sm:$0xff] %v312_v21 }
  0x1e PF: > { %s14_s17 = sadd.s32 1, %s494_s17   ;;  %s574_s15 = smov %s490_s16 }
  0x1f   : > { %p11_p5 = scmp.ge.s32.totalorder %s14_s17, 4   ;;  %s575_s16 = smov %s577_s18 }
  0x21   :  { %13 = sbr.rel (!%p11_p5) target bundleno = 2 (0x2), region = 69 }

// kernel: resblock_forward.4
= control target key start
LH: loop header
LB: loop body
LE: loop exit
PB: predicated region body
PF: predicated region fallthrough
CT: control target
= control target key end

     0   :  { %s7665_s15 = smov 0   ;;  %s7667_s16 = smov 0   ;;  %s9651_s0 = inlined_call_operand.vmem [shape: bf16[2,16,16,4], index: 0, kind: input, shape index: {}]   ;;  %s9652_s1 = inlined_call_operand.vmem [shape: bf16[9,4,8], index: 1, kind: input, shape index: {}]   ;;  %s9653_s2 = inlined_call_operand.vmem [shape: f32[2,4], index: 2, kind: input, shape index: {}]   ;;  %s9654_s3 = inlined_call_operand.vmem [shape: bf16[2,16,16,8], index: 3, kind: output, shape index: {0}]   ;;  %s9655_s4 = inlined_call_operand.vmem [shape: f32[2,2,8], index: 4, kind: output, shape index: {1}]  }
   0x1   :  { %s7669_s17 = smov 0  }
   0x2 LB: > { %s27_s18 = sadd.s32 1, %s7632_s16  ;;  %p6011_p0 = scmp.ge.s32.totalorder %s7636_s17, 1  ;;  %s7636_s17 = sphi %s7669_s17, %s15_s17   ;;  %s7632_s16 = sphi %s7667_s16, %s9740_s16   ;;  %s7628_s15 = sphi %s7665_s15, %s9739_s15  }
   0x3   : > { %p29_p1 = scmp.ge.s32.totalorder %s27_s18, 2  ;;  %p179_p2 = scmp.lt.s32.totalorder %s7636_s17, 3 }
   0x5   : > { %s9742_s18 = smov (%p29_p1, %s27_s18), 0  ;;  %p180_p3 = pnand %p6011_p0, %p179_p2 }
   0x7   : > { %183 = sbr.rel (%p180_p3) target bundleno = 705 (0x2c1), region = 32 }
   0xe   : > { %v6051_v0 = vld [vmem:[%s9652_s1 + $0x2] sm:$0x3]  ;;  %vm1511_vm0 = vcmask 1041408   ;;  %v6278_v1 = vld [vmem:[%s9652_s1 + $0x8] sm:$0x3]  ;;  %vm239_vm1 = vcmask 27648  }
   0xf   : > { %7483 = vmatprep.subr.msk.bf16.mxu1 %vm1511_vm0, %v6051_v0  ;;  %7487 = vmatprep.subr.msk.bf16.mxu0 %vm1511_vm0, %v6278_v1  ;;  %v1513_v2 = vsel %vm1511_vm0, %v6051_v0, 0  ;;  %v7695_v3 = vsel %vm1511_vm0, %v6278_v1, 0  ;;  %vm242_vm2 = vcmask 24576   ;;  %p214_p4 = scmp.lt.s32.totalorder %s7628_s15, 1  ;;  %v7638_v4 = vmov 0  }
  0x10   : > { %9673 = vst [vmem:[#allocation3_spill] sm:$0xff] %v7695_v3  ;;  %6920 = vmatpush3.bf16.msra.mxu1 %v1513_v2  ;;  %7056 = vmatpush3.bf16.msra.mxu0 %v7695_v3  ;;  %240 = vst.msk [vmem:[#allocation2] sm:$0xf] %vm239_vm1, %v7638_v4  ;;  %v7762_v5 = vld [vmem:[%s9652_s1] sm:$0x3]  ;;  %vm1462_vm8 = vcmask 31744  }
  0x11   : > { %241 = vst.msk [vmem:[#allocation2 + $0x4] sm:$0xf] %vm239_vm1, %v7638_v4  ;;  %244 = vst.msk [vmem:[#allocation2 + $0xc] sm:$0xf] %vm239_vm1, %v7638_v4  ;;  %s9744_s15 = smov (!%p214_p4, %s7628_s15), 1  ;;  %7484 = vmatprep.subr.msk.bf16.mxu1 %vm1511_vm0, %v7762_v5  ;;  %vm2016_vm13 = vcmask 1042432  }
  0x12   : > { %243 = vst.msk [vmem:[#allocation2 + $0x8] sm:$0x1] %vm242_vm2, %v7638_v4  ;;  %246 = vst.msk [vmem:[#allocation2 + $0x14] sm:$0x1] %vm242_vm2, %v7638_v4  ;;  %s6621_s23 = sshll.u32 %s9744_s15, 7  ;;  %vm2017_vm14 = vcmask 1046532  }
  0x13   : > { %245 = vst.msk [vmem:[#allocation2 + $0x10] sm:$0xf] %vm239_vm1, %v7638_v4  ;;  %247 = vst.msk [vmem:[#allocation2 + $0x18] sm:$0xf] %vm239_vm1, %v7638_v4  ;;  %v7767_v6 = vld [vmem:[%s9652_s1 + $0xa] sm:$0x3]  ;;  %s7774_s30 = scalar_lea.vmem %s9651_s0, %s6621_s23  ;;  %s9501_s20 = scalar_lea.vmem %s9654_s3, %s6621_s23 }
  0x14   : > { %248 = vst.msk [vmem:[#allocation2 + $0x1c] sm:$0xf] %vm239_vm1, %v7638_v4  ;;  %250 = vst.msk [vmem:[#allocation2 + $0x24] sm:$0xf] %vm239_vm1, %v7638_v4  ;;  %vm1025_vm3 = vsmask.f32 3328  ;;  %7489 = vmatprep.subr.msk.bf16.mxu0 %vm1511_vm0, %v7767_v6 }
  0x15   : > { %249 = vst.msk [vmem:[#allocation2 + $0x20] sm:$0x1] %vm242_vm2, %v7638_v4  ;;  %252 = vst.msk [vmem:[#allocation2 + $0x2c] sm:$0x1] %vm242_vm2, %v7638_v4  ;;  %vm1026_vm4 = vsmask.f32 7440 }
  0x16   : > { %251 = vst.msk [vmem:[#allocation2 + $0x28] sm:$0xf] %vm239_vm1, %v7638_v4  ;;  %253 = vst.msk [vmem:[#allocation2 + $0x30] sm:$0xf] %vm239_vm1, %v7638_v4  ;;  %v6688_v7 = vld [vmem:[%s7774_s30] sm:$0xff]   ;;  %v6751_v8 = vld [vmem:[%s7774_s30 + $0x8] sm:$0xff]  }
  0x17   : > { %254 = vst.msk [vmem:[#allocation2 + $0x34] sm:$0xf] %vm239_vm1, %v7638_v4  ;;  %256 = vst.msk [vmem:[#allocation2 + $0x3c] sm:$0xf] %vm239_vm1, %v7638_v4  ;;  %vm529_vm5 = vsmask.f32 256  ;;  %v6689_v9 = vunpack.c.l.bf16 %v6688_v7  ;;  %v6690_v10 = vunpack.c.h.bf16 %v6688_v7  ;;  %v6693_v12 = vunpack.c.l.bf16 %v6751_v8 }
  0x18   : > { %255 = vst.msk [vmem:[#allocation2 + $0x38] sm:$0x1] %vm242_vm2, %v7638_v4  ;;  %258 = vst.msk [vmem:[#allocation2 + $0x44] sm:$0x1] %vm242_vm2, %v7638_v4  ;;  %vm530_vm6 = vsmask.f32 4368  ;;  %v6694_v18 = vunpack.c.h.bf16 %v6751_v8 }
  0x19   : > { %257 = vst.msk [vmem:[#allocation2 + $0x40] sm:$0xf] %vm239_vm1, %v7638_v4  ;;  %259 = vst.msk [vmem:[#allocation2 + $0x48] sm:$0xf] %vm239_vm1, %v7638_v4  ;;  %v7785_v11 = vld [vmem:[%s9653_s2] ss:$0 sm:$0xff] }
  0x1a   : > { %260 = vst.msk [vmem:[#allocation2 + $0x4c] sm:$0xf] %vm239_vm1, %v7638_v4  ;;  %262 = vst.msk [vmem:[#allocation2 + $0x54] sm:$0xf] %vm239_vm1, %v7638_v4  ;;  %vm854_vm7 = vsmask.f32 7938  ;;  %v364_v28 = vmul.f32 %v6689_v9, %v7785_v11  ;;  %v365_v29 = vmul.f32 %v6690_v10, %v7785_v11  ;;  %v366_v38 = vmul.f32 %v6693_v12, %v7785_v11 }
  0x1b   : > { %261 = vst.msk [vmem:[#allocation2 + $0x50] sm:$0x1] %vm242_vm2, %v7638_v4  ;;  %264 = vst.msk [vmem:[#allocation2 + $0x5c] sm:$0x1] %vm242_vm2, %v7638_v4  ;;  %v6752_v13 = vld [vmem:[%s7774_s30 + $0x10] sm:$0xff]   ;;  %v7789_v14 = vld [vmem:[%s7774_s30 + $0x18] sm:$0xff]   ;;  %v367_v41 = vmul.f32 %v6694_v18, %v7785_v11 }
  0x1c   : > { %263 = vst.msk [vmem:[#allocation2 + $0x58] sm:$0xf] %vm239_vm1, %v7638_v4  ;;  %265 = vst.msk [vmem:[#allocation2 + $0x60] sm:$0xf] %vm239_vm1, %v7638_v4  ;;  %v976_v15 = vld [vmem:[#allocation2] sm:$0xf]  ;;  %v6697_v19 = vunpack.c.l.bf16 %v6752_v13  ;;  %v6698_v20 = vunpack.c.h.bf16 %v6752_v13  ;;  %v6701_v21 = vunpack.c.l.bf16 %v7789_v14  ;;  %v6702_v30 = vunpack.c.h.bf16 %v7789_v14 }
  0x1d   : > { %266 = vst.msk [vmem:[#allocation2 + $0x64] sm:$0xf] %vm239_vm1, %v7638_v4  ;;  %268 = vst.msk [vmem:[#allocation2 + $0x6c] sm:$0xf] %vm239_vm1, %v7638_v4  ;;  %v977_v16 = vld [vmem:[#allocation2 + $0x4] sm:$0xf] }
  0x1e   : > { %267 = vst.msk [vmem:[#allocation2 + $0x68] sm:$0x1] %vm242_vm2, %v7638_v4  ;;  %270 = vst.msk [vmem:[#allocation2 + $0x74] sm:$0x1] %vm242_vm2, %v7638_v4  ;;  %v1009_v17 = vld [vmem:[#allocation2 + $0x8] sm:$0x1]  ;;  %v368_v42 = vmul.f32 %v6697_v19, %v7785_v11  ;;  %v369_v47 = vmul.f32 %v6698_v20, %v7785_v11 }
  0x1f   : > { %269 = vst.msk [vmem:[#allocation2 + $0x70] sm:$0xf] %vm239_vm1, %v7638_v4  ;;  %271 = vst.msk [vmem:[#allocation2 + $0x78] sm:$0xf] %vm239_vm1, %v7638_v4  ;;  %v1029_v22 = vshrl.u32 %v976_v15, 16  ;;  %v1032_v23 = vshll.u32 %v976_v15, 16 }
  0x20   : > { %272 = vst.msk [vmem:[#allocation2 + $0x7c] sm:$0xf] %vm239_vm1, %v7638_v4  ;;  %274 = vst.msk [vmem:[#allocation2 + $0x84] sm:$0xf] %vm239_vm1, %v7638_v4  ;;  %v1038_v24 = vshll.u32 %v977_v16, 16  ;;  %v1042_v25 = vshrl.u32 %v977_v16, 16 }
  0x21   : > { %273 = vst.msk [vmem:[#allocation2 + $0x80] sm:$0x1] %vm242_vm2, %v7638_v4  ;;  %276 = vst.msk [vmem:[#allocation2 + $0x8c] sm:$0x1] %vm242_vm2, %v7638_v4  ;;  %v7795_v26 = vld [vmem:[%s9653_s2 + $0x1] ss:$0 sm:$0xff] }
  0x22   : > { %275 = vst.msk [vmem:[#allocation2 + $0x88] sm:$0xf] %vm239_vm1, %v7638_v4  ;;  %277 = vst.msk [vmem:[#allocation2 + $0x90] sm:$0xf] %vm239_vm1, %v7638_v4  ;;  %v1048_v27 = vshll.u32 %v1009_v17, 16  ;;  %v1031_v31 = vrot.slane %v1029_v22, 4  ;;  %v401_v36 = vadd.f32 %v7795_v26, %v364_v28  ;;  %v402_v37 = vadd.f32 %v7795_v26, %v365_v29 }
  0x23   : > { %278 = vst.msk [vmem:[#allocation2 + $0x94] sm:$0xf] %vm239_vm1, %v7638_v4  ;;  %280 = vst.msk [vmem:[#allocation2 + $0x9c] sm:$0xf] %vm239_vm1, %v7638_v4  ;;  %v1034_v32 = vrot.slane %v1032_v23, 5  ;;  %v1040_v33 = vrot.slane %v1038_v24, 5  ;;  %v403_v46 = vadd.f32 %v7795_v26, %v366_v38  ;;  %v404_v50 = vadd.f32 %v7795_v26, %v367_v41 }
  0x24   : > { %279 = vst.msk [vmem:[#allocation2 + $0x98] sm:$0x1] %vm242_vm2, %v7638_v4  ;;  %282 = vst.msk [vmem:[#allocation2 + $0xa4] sm:$0x1] %vm242_vm2, %v7638_v4  ;;  %v1044_v34 = vrot.slane %v1042_v25, 4  ;;  %v1050_v35 = vrot.slane %v1048_v27, 5  ;;  %v6623_v44 = vpack.c.bf16 %v401_v36, %v401_v36  ;;  %v6624_v45 = vpack.c.bf16 %v402_v37, %v402_v37 }
  0x25   : > { %281 = vst.msk [vmem:[#allocation2 + $0xa0] sm:$0xf] %vm239_vm1, %v7638_v4  ;;  %283 = vst.msk [vmem:[#allocation2 + $0xa8] sm:$0xf] %vm239_vm1, %v7638_v4  ;;  %v1035_v39 = vor.u32 %v1034_v32, %v1031_v31  ;;  %v405_v51 = vadd.f32 %v7795_v26, %v368_v42  ;;  %v6625_v59 = vpack.c.bf16 %v403_v46, %v403_v46  ;;  %v856_v1 = vld [vmem:[#allocation2 + $0xc] sm:$0xf] }
  0x26   : > { %284 = vst.msk [vmem:[#allocation2 + $0xac] sm:$0xf] %vm239_vm1, %v7638_v4  ;;  %286 = vst.msk [vmem:[#allocation2 + $0xb4] sm:$0xf] %vm239_vm1, %v7638_v4  ;;  %v1045_v40 = vor.u32 %v1044_v34, %v1040_v33  ;;  %v533_v52 = vshrl.u32 %v6623_v44, 16  ;;  %v536_v53 = vshll.u32 %v6623_v44, 16  ;;  %v6626_v60 = vpack.c.bf16 %v404_v50, %v404_v50 }
  0x27   : > { %285 = vst.msk [vmem:[#allocation2 + $0xb0] sm:$0x1] %vm242_vm2, %v7638_v4  ;;  %288 = vst.msk [vmem:[#allocation2 + $0xbc] sm:$0x1] %vm242_vm2, %v7638_v4  ;;  %v1036_v48 = vrot.slane %v1035_v39, 4  ;;  %v541_v54 = vshrl.u32 %v6624_v45, 16  ;;  %v406_v2 = vadd.f32 %v7795_v26, %v369_v47  ;;  %v6627_v20 = vpack.c.bf16 %v405_v51, %v405_v51 }
  0x28   : > { %287 = vst.msk [vmem:[#allocation2 + $0xb8] sm:$0xf] %vm239_vm1, %v7638_v4  ;;  %289 = vst.msk [vmem:[#allocation2 + $0xc0] sm:$0xf] %vm239_vm1, %v7638_v4  ;;  %v1046_v49 = vrot.slane %v1045_v40, 4  ;;  %v544_v55 = vshll.u32 %v6624_v45, 16  ;;  %v370_v29 = vmul.f32 %v6701_v21, %v7785_v11  ;;  %v371_v44 = vmul.f32 %v6702_v30, %v7785_v11 }
  0x29   : > { %290 = vst.msk [vmem:[#allocation2 + $0xc4] sm:$0xf] %vm239_vm1, %v7638_v4  ;;  %292 = vst.msk [vmem:[#allocation2 + $0xcc] sm:$0xf] %vm239_vm1, %v7638_v4  ;;  %v535_v62 = vrot.slane %v533_v52, 7  ;;  %v543_v63 = vrot.slane %v541_v54, 7  ;;  %v6628_v22 = vpack.c.bf16 %v406_v2, %v406_v2 }
  0x2a   : > { %291 = vst.msk [vmem:[#allocation2 + $0xc8] sm:$0x1] %vm242_vm2, %v7638_v4  ;;  %294 = vst.msk [vmem:[#allocation2 + $0xd4] sm:$0x1] %vm242_vm2, %v7638_v4  ;;  %v862_v7 = vld [vmem:[#allocation2 + $0x14] sm:$0x1]  ;;  %v407_v47 = vadd.f32 %v7795_v26, %v370_v29  ;;  %v408_v52 = vadd.f32 %v7795_v26, %v371_v44 }
  0x2b   : > { %293 = vst.msk [vmem:[#allocation2 + $0xd0] sm:$0xf] %vm239_vm1, %v7638_v4  ;;  %vm7807_vm9 = vmor %vm1025_vm3, %vm1026_vm4  ;;  %v550_v8 = vshrl.u32 %v6625_v59, 16  ;;  %v553_v9 = vshll.u32 %v6625_v59, 16  ;;  %v558_v10 = vshrl.u32 %v6626_v60, 16  ;;  %v561_v12 = vshll.u32 %v6626_v60, 16 }
  0x2c   : > { %v1041_v56 = vsel %vm7807_vm9, %v1036_v48, %v1040_v33  ;;  %v1051_v57 = vsel %vm7807_vm9, %v1046_v49, %v1050_v35  ;;  %vm7821_vm10 = vmor %vm529_vm5, %vm530_vm6  ;;  %v538_v13 = vor.u32 %v536_v53, %v535_v62  ;;  %v539_v15 = vrot.slane %v535_v62, 4  ;;  %v865_v27 = vld [vmem:[#allocation2 + $0x18] sm:$0xf]  ;;  %v869_v28 = vld [vmem:[#allocation2 + $0x20] sm:$0x1]  ;;  %s6016_s10 = sshll.u32 %s9744_s15, 1 }
  0x2d   : > { %v6052_v61 = vcombine.low %v1041_v56, %v1051_v57  ;;  %vm7827_vm11 = vmand %vm239_vm1, %vm854_vm7  ;;  %v546_v16 = vor.u32 %v544_v55, %v543_v63  ;;  %v548_v17 = vrot.slane %v543_v63, 4  ;;  %v552_v18 = vrot.slane %v550_v8, 7  ;;  %v6754_v35 = vld [vmem:[%s7774_s30 + $0x20] sm:$0xff]   ;;  %v7851_v40 = vld [vmem:[%s7774_s30 + $0x28] sm:$0xff]   ;;  %s9476_s13 = scalar_lea.vmem %s9655_s4, %s6016_s10 }
  0x2e   : > { %vm7834_vm12 = vmand %vm242_vm2, %vm529_vm5  ;;  %v560_v19 = vrot.slane %v558_v10, 7  ;;  %v857_v24 = vsel %vm7827_vm11, %v538_v13, %v856_v1  ;;  %v567_v36 = vshrl.u32 %v6627_v20, 16  ;;  %v570_v37 = vshll.u32 %v6627_v20, 16  ;;  %v872_v50 = vld [vmem:[#allocation2 + $0x24] sm:$0xf] }
  0x2f   : > { %6921 = vmatprep.mubr.msk.bf16.mxu1 %vm1462_vm8, %v6052_v61  ;;  %v547_v23 = vsel %vm7821_vm10, %v539_v15, %v546_v16  ;;  %v863_v25 = vsel %vm7834_vm12, %v548_v17, %v862_v7  ;;  %858 = vst [vmem:[#allocation2 + $0xc] sm:$0xf] %v857_v24  ;;  %v555_v31 = vor.u32 %v553_v9, %v552_v18  ;;  %v556_v32 = vrot.slane %v552_v18, 4  ;;  %v876_v51 = vld [vmem:[#allocation2 + $0x2c] sm:$0x1]  ;;  %vm8133_vm15 = vmor %vm2016_vm13, %vm2017_vm14 }
  0x30   : > { %859 = vst.msk [vmem:[#allocation2 + $0x10] sm:$0xf] %vm239_vm1, %v547_v23  ;;  %864 = vst [vmem:[#allocation2 + $0x14] sm:$0x1] %v863_v25  ;;  %v563_v33 = vor.u32 %v561_v12, %v560_v19  ;;  %v565_v34 = vrot.slane %v560_v19, 4  ;;  %v575_v38 = vshrl.u32 %v6628_v22, 16  ;;  %v6705_v48 = vunpack.c.l.bf16 %v6754_v35 }
  0x31   : > { %v578_v39 = vshll.u32 %v6628_v22, 16  ;;  %v866_v21 = vsel %vm7827_vm11, %v555_v31, %v865_v27  ;;  %v569_v45 = vrot.slane %v567_v36, 7  ;;  %v7866_v49 = vsel %vm1511_vm0, %v7762_v5, 0 }
  0x32   : > { %v564_v41 = vsel %vm7821_vm10, %v556_v32, %v563_v33  ;;  %v870_v42 = vsel %vm7834_vm12, %v565_v34, %v869_v28  ;;  %867 = vst [vmem:[#allocation2 + $0x18] sm:$0xf] %v866_v21  ;;  %v577_v46 = vrot.slane %v575_v38, 7  ;;  %v6706_v53 = vunpack.c.h.bf16 %v6754_v35 }
  0x33   : > { %868 = vst.msk [vmem:[#allocation2 + $0x1c] sm:$0xf] %vm239_vm1, %v564_v41  ;;  %871 = vst [vmem:[#allocation2 + $0x20] sm:$0x1] %v870_v42  ;;  %v6709_v14 = vunpack.c.l.bf16 %v7851_v40  ;;  %v572_v30 = vor.u32 %v570_v37, %v569_v45  ;;  %v573_v54 = vrot.slane %v569_v45, 4  ;;  %v7872_v57 = vsel %vm1511_vm0, %v7767_v6, 0 }
  0x34   : > { %v580_v55 = vor.u32 %v578_v39, %v577_v46  ;;  %v582_v56 = vrot.slane %v577_v46, 4  ;;  %v7874_v59 = vpack.c.bf16 %v407_v47, %v407_v47  ;;  %v7876_v60 = vpack.c.bf16 %v408_v52, %v408_v52 }
  0x35   : > { %v6710_v5 = vunpack.c.h.bf16 %v7851_v40  ;;  %v873_v2 = vsel %vm7827_vm11, %v572_v30, %v872_v50  ;;  %v7886_v6 = vmul.f32 %v6705_v48, %v7785_v11  ;;  %v7892_v18 = vmul.f32 %v6706_v53, %v7785_v11  ;;  %v7977_v40 = vld [vmem:[%s7774_s30 + $0x38] sm:$0xff]  }
  0x36   : > { %v978_v61 = vld [vmem:[#allocation2 + $0xc] sm:$0xf]  ;;  %v581_v1 = vsel %vm7821_vm10, %v573_v54, %v580_v55  ;;  %v877_v7 = vsel %vm7834_vm12, %v582_v56, %v876_v51  ;;  %874 = vst [vmem:[#allocation2 + $0x24] sm:$0xf] %v873_v2  ;;  %v7895_v19 = vmul.f32 %v6709_v14, %v7785_v11  ;;  %v7639_v43 = vmov 0.0  }
  0x37   : > { %v979_v62 = vld [vmem:[#allocation2 + $0x10] sm:$0xf]  ;;  %v1010_v63 = vld [vmem:[#allocation2 + $0x14] sm:$0x1]  ;;  %v1053_v8 = vshrl.u32 %v978_v61, 16  ;;  %v1056_v9 = vshll.u32 %v978_v61, 16 }
  0x38   : > { %v1062_v10 = vshll.u32 %v979_v62, 16  ;;  %v1066_v12 = vshrl.u32 %v979_v62, 16  ;;  %v6230_v13 = vld [vmem:[#allocation2 + $0xc] sm:$0xf]  ;;  %875 = vst.msk [vmem:[#allocation2 + $0x28] sm:$0xf] %vm239_vm1, %v581_v1 }
  0x39   : > { %878 = vst [vmem:[#allocation2 + $0x2c] sm:$0x1] %v877_v7  ;;  %v1072_v15 = vshll.u32 %v1010_v63, 16  ;;  %v7889_v16 = vld [vmem:[#allocation2 + $0x10] sm:$0xf]  ;;  %v2836_v17 = vshrl.u32 %v6230_v13, 16 }
  0x3a   : > { %v1055_v20 = vrot.slane %v1053_v8, 4  ;;  %v1058_v22 = vrot.slane %v1056_v9, 5  ;;  %v1064_v23 = vrot.slane %v1062_v10, 5  ;;  %v1068_v24 = vrot.slane %v1066_v12, 4  ;;  %v7897_v25 = vld [vmem:[#allocation2 + $0x14] sm:$0x1] }
  0x3b   : > { %v1074_v27 = vrot.slane %v1072_v15, 5  ;;  %v2838_v28 = vrot.slane %v2836_v17, 4  ;;  %v2839_v29 = vshll.u32 %v6230_v13, 16  ;;  %v2845_v31 = vshll.u32 %v7889_v16, 16  ;;  %v6233_v36 = vld [vmem:[#allocation2 + $0x18] sm:$0xf] }
  0x3c   : > { %v1059_v32 = vor.u32 %v1058_v22, %v1055_v20  ;;  %v1069_v33 = vor.u32 %v1068_v24, %v1064_v23  ;;  %v2849_v34 = vshrl.u32 %v7889_v16, 16  ;;  %v2855_v35 = vshll.u32 %v7897_v25, 16  ;;  %v7902_v37 = vld [vmem:[#allocation2 + $0x1c] sm:$0xf]  ;;  %v7906_v48 = vld [vmem:[#allocation2 + $0x20] sm:$0x1] }
  0x3d   : > { %v2841_v38 = vrot.slane %v2839_v29, 5  ;;  %v2847_v39 = vrot.slane %v2845_v31, 5  ;;  %v3579_v41 = vrot.slane %v7889_v16, 5  ;;  %v3582_v21 = vrot.slane %v7897_v25, 5  ;;  %v980_v63 = vld [vmem:[#allocation2 + $0x18] sm:$0xf] }
  0x3e   : > { %v1060_v42 = vrot.slane %v1059_v32, 4  ;;  %v1070_v44 = vrot.slane %v1069_v33, 4  ;;  %v2851_v45 = vrot.slane %v2849_v34, 4  ;;  %v2857_v46 = vrot.slane %v2855_v35, 5  ;;  %v981_v15 = vld [vmem:[#allocation2 + $0x1c] sm:$0xf] }
  0x3f   : > { %v2842_v47 = vor.u32 %v2841_v38, %v2838_v28  ;;  %v2860_v50 = vshrl.u32 %v6233_v36, 16  ;;  %v2863_v51 = vshll.u32 %v6233_v36, 16  ;;  %v2869_v52 = vshll.u32 %v7902_v37, 16  ;;  %v983_v38 = vld [vmem:[#allocation2 + $0x28] sm:$0xf] }
  0x40   : > { %v1065_v53 = vsel %vm7807_vm9, %v1060_v42, %v1064_v23  ;;  %v1075_v14 = vsel %vm7807_vm9, %v1070_v44, %v1074_v27  ;;  %v2852_v30 = vor.u32 %v2851_v45, %v2847_v39  ;;  %v2873_v54 = vshrl.u32 %v7902_v37, 16  ;;  %v1011_v23 = vld [vmem:[#allocation2 + $0x20] sm:$0x1]  ;;  %v982_v27 = vld [vmem:[#allocation2 + $0x24] sm:$0xf] }
  0x41   : > { %v6053_v55 = vcombine.low %v1065_v53, %v1075_v14  ;;  %v2843_v56 = vrot.slane %v2842_v47, 4  ;;  %v2862_v61 = vrot.slane %v2860_v50, 4  ;;  %v2865_v62 = vrot.slane %v2863_v51, 5  ;;  %v1012_v44 = vld [vmem:[#allocation2 + $0x2c] sm:$0x1] }
  0x42   : > { %v2853_v1 = vrot.slane %v2852_v30, 4  ;;  %v2871_v2 = vrot.slane %v2869_v52, 5  ;;  %v2875_v7 = vrot.slane %v2873_v54, 4  ;;  %v2879_v8 = vshll.u32 %v7906_v48, 16  ;;  %v6236_v52 = vld [vmem:[#allocation2 + $0x24] sm:$0xf] }
  0x43   : > { %6922 = vmatmul.mubr.msk.bf16.vlgmr.msra.gmra.mrb[0].mxu1 %vm1462_vm8, %v6053_v55  ;;  %v2848_v9 = vsel %vm7807_vm9, %v2843_v56, %v2847_v39  ;;  %v2866_v10 = vor.u32 %v2865_v62, %v2862_v61  ;;  %v3586_v12 = vrot.slane %v7902_v37, 5  ;;  %v3589_v13 = vrot.slane %v7906_v48, 5  ;;  %v7932_v55 = vld [vmem:[#allocation2 + $0x28] sm:$0xf]  ;;  %v7937_v56 = vld [vmem:[%s9652_s1 + $0xc] sm:$0x3] }
  0x44   : > { %v2858_v17 = vsel %vm7807_vm9, %v2853_v1, %v2857_v46  ;;  %6954 = vmatpush3.bf16.msra.mxu1 %v7866_v49  ;;  %v2876_v20 = vor.u32 %v2875_v7, %v2871_v2  ;;  %v2881_v22 = vrot.slane %v2879_v8, 5  ;;  %v1077_v24 = vshrl.u32 %v980_v63, 16 }
  0x45   : > { %v6279_v28 = vcombine.low %v2848_v9, %v2858_v17  ;;  %v2867_v29 = vrot.slane %v2866_v10, 4  ;;  %v7925_v31 = vrot.slane %v3586_v12, 4  ;;  %v1080_v32 = vshll.u32 %v980_v63, 16 }
  0x46   : > { %v2877_v33 = vrot.slane %v2876_v20, 4  ;;  %v1079_v34 = vrot.slane %v1077_v24, 4  ;;  %v1086_v35 = vshll.u32 %v981_v15, 16  ;;  %v1090_v36 = vshrl.u32 %v981_v15, 16 }
  0x47   : > { %7057 = vmatprep.mubr.msk.bf16.mxu0 %vm1462_vm8, %v6279_v28  ;;  %v2872_v49 = vsel %vm7807_vm9, %v2867_v29, %v2871_v2  ;;  %v1082_v39 = vrot.slane %v1080_v32, 5  ;;  %v1096_v42 = vshll.u32 %v1011_v23, 16  ;;  %v1101_v45 = vshrl.u32 %v982_v27, 16  ;;  %v6238_v2 = vld [vmem:[#allocation2 + $0x2c] sm:$0x1] }
  0x48   : > { %v2882_v46 = vsel %vm7807_vm9, %v2877_v33, %v2881_v22  ;;  %v1088_v47 = vrot.slane %v1086_v35, 5  ;;  %v1092_v50 = vrot.slane %v1090_v36, 4  ;;  %v1104_v51 = vshll.u32 %v982_v27, 16 }
  0x49   : > { %v6280_v53 = vcombine.low %v2872_v49, %v2882_v46  ;;  %v1083_v14 = vor.u32 %v1082_v39, %v1079_v34  ;;  %v1098_v30 = vrot.slane %v1096_v42, 5  ;;  %v1103_v54 = vrot.slane %v1101_v45, 4 }
  0x4a   : > { %v1093_v61 = vor.u32 %v1092_v50, %v1088_v47  ;;  %v1106_v62 = vrot.slane %v1104_v51, 5  ;;  %v1110_v63 = vshll.u32 %v983_v38, 16  ;;  %v1114_v1 = vshrl.u32 %v983_v38, 16 }
  0x4b   : > { %7058 = vmatmul.mubr.msk.bf16.vlgmr.msra.gmra.mrb[0].mxu0 %vm1462_vm8, %v6280_v53  ;;  %v1084_v7 = vrot.slane %v1083_v14, 4  ;;  %v1120_v8 = vshll.u32 %v1012_v44, 16  ;;  %v2884_v9 = vshrl.u32 %v6236_v52, 16  ;;  %v2887_v10 = vshll.u32 %v6236_v52, 16 }
  0x4c   : > { %7090 = vmatpush3.bf16.msra.mxu0 %v7872_v57  ;;  %v1094_v15 = vrot.slane %v1093_v61, 4  ;;  %v1107_v17 = vor.u32 %v1106_v62, %v1103_v54  ;;  %v1112_v20 = vrot.slane %v1110_v63, 5  ;;  %v1116_v22 = vrot.slane %v1114_v1, 4  ;;  %v879_v62 = vld [vmem:[#allocation2 + $0x30] sm:$0xf] }
  0x4d   : > { %v1089_v23 = vsel %vm7807_vm9, %v1084_v7, %v1088_v47  ;;  %v1122_v24 = vrot.slane %v1120_v8, 5  ;;  %v2886_v27 = vrot.slane %v2884_v9, 4  ;;  %v2889_v28 = vrot.slane %v2887_v10, 5  ;;  %7490 = vmatprep.subr.msk.bf16.mxu0 %vm1511_vm0, %v7937_v56  ;;  %v883_v8 = vld [vmem:[#allocation2 + $0x38] sm:$0x1] }
  0x4e   : > { %v1099_v29 = vsel %vm7807_vm9, %v1094_v15, %v1098_v30  ;;  %v1108_v32 = vrot.slane %v1107_v17, 4  ;;  %v1117_v33 = vor.u32 %v1116_v22, %v1112_v20  ;;  %v2893_v57 = vshll.u32 %v7932_v55, 16 }
  0x4f   : > { %v6054_v34 = vcombine.low %v1089_v23, %v1099_v29  ;;  %v2890_v35 = vor.u32 %v2889_v28, %v2886_v27  ;;  %v2897_v36 = vshrl.u32 %v7932_v55, 16  ;;  %v2903_v38 = vshll.u32 %v6238_v2, 16  ;;  %v6756_v28 = vld [vmem:[%s7774_s30 + $0x30] sm:$0xff]  }
  0x50   : > { %v1113_v49 = vsel %vm7807_vm9, %v1108_v32, %v1112_v20  ;;  %v1118_v39 = vrot.slane %v1117_v33, 4  ;;  %v2895_v42 = vrot.slane %v2893_v57, 5  ;;  %v584_v44 = vshrl.u32 %v7874_v59, 16 }
  0x51   : > { %6925 = vmatprep.mubr.msk.bf16.mxu1 %vm1462_vm8, %v6054_v34  ;;  %v2891_v45 = vrot.slane %v2890_v35, 4  ;;  %v2899_v46 = vrot.slane %v2897_v36, 4  ;;  %v2905_v47 = vrot.slane %v2903_v38, 5  ;;  %v587_v50 = vshll.u32 %v7874_v59, 16  ;;  %v886_v38 = vld [vmem:[#allocation2 + $0x3c] sm:$0xf] }
  0x52   : > { %v1123_v51 = vsel %vm7807_vm9, %v1118_v39, %v1122_v24  ;;  %v586_v52 = vrot.slane %v584_v44, 7  ;;  %v592_v53 = vshrl.u32 %v7876_v60, 16  ;;  %v595_v14 = vshll.u32 %v7876_v60, 16 }
  0x53   : > { %v6055_v30 = vcombine.low %v1113_v49, %v1123_v51  ;;  %v2896_v54 = vsel %vm7807_vm9, %v2891_v45, %v2895_v42  ;;  %v2900_v61 = vor.u32 %v2899_v46, %v2895_v42  ;;  %v409_v63 = vadd.f32 %v7795_v26, %v7886_v6  ;;  %v890_v46 = vld [vmem:[#allocation2 + $0x44] sm:$0x1] }
  0x54   : > { %v589_v1 = vor.u32 %v587_v50, %v586_v52  ;;  %v590_v2 = vrot.slane %v586_v52, 4  ;;  %v594_v59 = vrot.slane %v592_v53, 7  ;;  %v410_v7 = vadd.f32 %v7795_v26, %v7892_v18 }
  0x55   : > { %6926 = vmatmul.mubr.msk.bf16.gmra.mrb[4].mxu1 %vm1462_vm8, %v6055_v30  ;;  %v2901_v60 = vrot.slane %v2900_v61, 4  ;;  %v6631_v9 = vpack.c.bf16 %v409_v63, %v409_v63  ;;  %v375_v10 = vmul.f32 %v6710_v5, %v7785_v11  ;;  %v411_v6 = vadd.f32 %v7795_v26, %v7895_v19 }
  0x56   : > { %v597_v15 = vor.u32 %v595_v14, %v594_v59  ;;  %v599_v17 = vrot.slane %v594_v59, 4  ;;  %v880_v20 = vsel %vm7827_vm11, %v589_v1, %v879_v62  ;;  %v6632_v18 = vpack.c.bf16 %v410_v7, %v410_v7 }
  0x57   : > { %v2906_v22 = vsel %vm7807_vm9, %v2901_v60, %v2905_v47  ;;  %881 = vst [vmem:[#allocation2 + $0x30] sm:$0xf] %v880_v20  ;;  %v601_v23 = vshrl.u32 %v6631_v9, 16  ;;  %v604_v24 = vshll.u32 %v6631_v9, 16  ;;  %v412_v27 = vadd.f32 %v7795_v26, %v375_v10 }
  0x58   : > { %v6281_v5 = vcombine.low %v2896_v54, %v2906_v22  ;;  %v598_v19 = vsel %vm7821_vm10, %v590_v2, %v597_v15  ;;  %v884_v29 = vsel %vm7834_vm12, %v599_v17, %v883_v8  ;;  %v609_v32 = vshrl.u32 %v6632_v18, 16 }
  0x59   : > { %882 = vst.msk [vmem:[#allocation2 + $0x34] sm:$0xf] %vm239_vm1, %v598_v19  ;;  %885 = vst [vmem:[#allocation2 + $0x38] sm:$0x1] %v884_v29  ;;  %v603_v33 = vrot.slane %v601_v23, 7  ;;  %v612_v57 = vshll.u32 %v6632_v18, 16  ;;  %v6633_v34 = vpack.c.bf16 %v411_v6, %v411_v6  ;;  %v6634_v35 = vpack.c.bf16 %v412_v27, %v412_v27 }
  0x5a   : > { %7061 = vmatprep.mubr.msk.bf16.mxu0 %vm1462_vm8, %v6281_v5  ;;  %v611_v36 = vrot.slane %v609_v32, 7  ;;  %v6713_v49 = vunpack.c.l.bf16 %v6756_v28  ;;  %v6714_v39 = vunpack.c.h.bf16 %v6756_v28  ;;  %v6717_v42 = vunpack.c.l.bf16 %v7977_v40  ;;  %v893_v23 = vld [vmem:[#allocation2 + $0x48] sm:$0xf] }
  0x5b   : > { %v606_v44 = vor.u32 %v604_v24, %v603_v33  ;;  %v607_v45 = vrot.slane %v603_v33, 4  ;;  %v618_v47 = vshrl.u32 %v6633_v34, 16  ;;  %v621_v50 = vshll.u32 %v6633_v34, 16 }
  0x5c   : > { %v614_v51 = vor.u32 %v612_v57, %v611_v36  ;;  %v616_v52 = vrot.slane %v611_v36, 4  ;;  %v626_v53 = vshrl.u32 %v6634_v35, 16  ;;  %v629_v14 = vshll.u32 %v6634_v35, 16 }
  0x5d   : > { %v887_v30 = vsel %vm7827_vm11, %v606_v44, %v886_v38  ;;  %v7988_v54 = vrot.slane %v618_v47, 7  ;;  %v376_v61 = vmul.f32 %v6713_v49, %v7785_v11  ;;  %v377_v62 = vmul.f32 %v6714_v39, %v7785_v11 }
  0x5e   : > { %v6239_v63 = vld [vmem:[#allocation2 + $0x30] sm:$0xf]  ;;  %v615_v2 = vsel %vm7821_vm10, %v607_v45, %v614_v51  ;;  %888 = vst [vmem:[#allocation2 + $0x3c] sm:$0xf] %v887_v30  ;;  %v891_v59 = vsel %vm7834_vm12, %v616_v52, %v890_v46  ;;  %v7996_v7 = vrot.slane %v626_v53, 7  ;;  %v6718_v60 = vunpack.c.h.bf16 %v7977_v40 }
  0x5f   : > { %v984_v1 = vld [vmem:[#allocation2 + $0x30] sm:$0xf]  ;;  %v2908_v8 = vshrl.u32 %v6239_v63, 16  ;;  %v2911_v9 = vshll.u32 %v6239_v63, 16  ;;  %889 = vst.msk [vmem:[#allocation2 + $0x40] sm:$0xf] %vm239_vm1, %v615_v2  ;;  %v623_v18 = vor.u32 %v621_v50, %v7988_v54  ;;  %v413_v24 = vadd.f32 %v7795_v26, %v376_v61 }
  0x60   : > { %v1125_v10 = vshrl.u32 %v984_v1, 16  ;;  %v1128_v6 = vshll.u32 %v984_v1, 16  ;;  %892 = vst [vmem:[#allocation2 + $0x44] sm:$0x1] %v891_v59  ;;  %v8000_v15 = vld [vmem:[#allocation2 + $0x34] sm:$0xf]  ;;  %v8006_v22 = vor.u32 %v629_v14, %v7996_v7  ;;  %v414_v27 = vadd.f32 %v7795_v26, %v377_v62 }
  0x61   : > { %v8002_v17 = vld [vmem:[#allocation2 + $0x38] sm:$0x1]  ;;  %v985_v20 = vld [vmem:[#allocation2 + $0x34] sm:$0xf]  ;;  %v2910_v28 = vrot.slane %v2908_v8, 4  ;;  %v2913_v5 = vrot.slane %v2911_v9, 5  ;;  %v894_v14 = vsel %vm7827_vm11, %v623_v18, %v893_v23  ;;  %v8015_v1 = vpack.c.bf16 %v413_v24, %v413_v24 }
  0x62   : > { %v2917_v19 = vshll.u32 %v8000_v15, 16  ;;  %v2921_v29 = vshrl.u32 %v8000_v15, 16  ;;  %v1013_v32 = vld [vmem:[#allocation2 + $0x38] sm:$0x1]  ;;  %v2927_v33 = vshll.u32 %v8002_v17, 16  ;;  %v1127_v57 = vrot.slane %v1125_v10, 4 }
  0x63   : > { %v1130_v34 = vrot.slane %v1128_v6, 5  ;;  %v1134_v35 = vshll.u32 %v985_v20, 16  ;;  %v2914_v36 = vor.u32 %v2913_v5, %v2910_v28  ;;  %v1138_v39 = vshrl.u32 %v985_v20, 16  ;;  %895 = vst [vmem:[#allocation2 + $0x48] sm:$0xf] %v894_v14 }
  0x64   : > { %v2919_v38 = vrot.slane %v2917_v19, 5  ;;  %v2923_v49 = vrot.slane %v2921_v29, 4  ;;  %v2929_v44 = vrot.slane %v2927_v33, 5  ;;  %v1144_v47 = vshll.u32 %v1013_v32, 16 }
  0x65   : > { %v1131_v45 = vor.u32 %v1130_v34, %v1127_v57  ;;  %v1136_v46 = vrot.slane %v1134_v35, 5  ;;  %v2915_v50 = vrot.slane %v2914_v36, 4  ;;  %v1140_v52 = vrot.slane %v1138_v39, 4  ;;  %v986_v53 = vld [vmem:[#allocation2 + $0x3c] sm:$0xf] }
  0x66   : > { %v2924_v51 = vor.u32 %v2923_v49, %v2919_v38  ;;  %v1146_v61 = vrot.slane %v1144_v47, 5  ;;  %v987_v62 = vld [vmem:[#allocation2 + $0x40] sm:$0xf]  ;;  %v8017_v2 = vpack.c.bf16 %v414_v27, %v414_v27  ;;  %v1149_v10 = vshrl.u32 %v986_v53, 16  ;;  %v6242_v6 = vld [vmem:[#allocation2 + $0x3c] sm:$0xf] }
  0x67   : > { %v1132_v30 = vrot.slane %v1131_v45, 4  ;;  %v1014_v63 = vld [vmem:[#allocation2 + $0x44] sm:$0x1]  ;;  %v2920_v59 = vsel %vm7807_vm9, %v2915_v50, %v2919_v38  ;;  %v1141_v9 = vor.u32 %v1140_v52, %v1136_v46  ;;  %v8021_v20 = vld [vmem:[#allocation2 + $0x40] sm:$0xf]  ;;  %v1152_v23 = vshll.u32 %v986_v53, 16 }
  0x68   : > { %v2925_v8 = vrot.slane %v2924_v51, 4  ;;  %v1158_v28 = vshll.u32 %v987_v62, 16  ;;  %v1162_v5 = vshrl.u32 %v987_v62, 16  ;;  %v8025_v19 = vld [vmem:[#allocation2 + $0x44] sm:$0x1]  ;;  %v1151_v29 = vrot.slane %v1149_v10, 4 }
  0x69   : > { %v1137_v18 = vsel %vm7807_vm9, %v1132_v30, %v1136_v46  ;;  %v1142_v27 = vrot.slane %v1141_v9, 4  ;;  %v1168_v32 = vshll.u32 %v1014_v63, 16  ;;  %v1154_v57 = vrot.slane %v1152_v23, 5 }
  0x6a   : > { %v2930_v24 = vsel %vm7807_vm9, %v2925_v8, %v2929_v44  ;;  %v1160_v34 = vrot.slane %v1158_v28, 5  ;;  %v1164_v35 = vrot.slane %v1162_v5, 4  ;;  %v2932_v49 = vshrl.u32 %v6242_v6, 16  ;;  %v6245_v14 = vld [vmem:[#allocation2 + $0x48] sm:$0xf] }
  0x6b   : > { %v6282_v33 = vcombine.low %v2920_v59, %v2930_v24  ;;  %v1147_v36 = vsel %vm7807_vm9, %v1142_v27, %v1146_v61  ;;  %v1170_v38 = vrot.slane %v1168_v32, 5  ;;  %v2935_v39 = vshll.u32 %v6242_v6, 16  ;;  %v897_v59 = vld [vmem:[#allocation2 + $0x50] sm:$0x1] }
  0x6c   : > { %v6056_v45 = vcombine.low %v1137_v18, %v1147_v36  ;;  %v1155_v46 = vor.u32 %v1154_v57, %v1151_v29  ;;  %v1165_v47 = vor.u32 %v1164_v35, %v1160_v34  ;;  %v2941_v44 = vshll.u32 %v8021_v20, 16  ;;  %v988_v18 = vld [vmem:[#allocation2 + $0x48] sm:$0xf] }
  0x6d   : > { %7062 = vmatmul.mubr.msk.bf16.gmra.mrb[4].mxu0 %vm1462_vm8, %v6282_v33  ;;  %v2934_v50 = vrot.slane %v2932_v49, 4  ;;  %v2937_v51 = vrot.slane %v2935_v39, 5  ;;  %v2945_v52 = vshrl.u32 %v8021_v20, 16  ;;  %v2951_v53 = vshll.u32 %v8025_v19, 16 }
  0x6e   : > { %6929 = vmatprep.mubr.msk.bf16.mxu1 %vm1462_vm8, %v6056_v45  ;;  %v1156_v30 = vrot.slane %v1155_v46, 4  ;;  %v1166_v61 = vrot.slane %v1165_v47, 4  ;;  %v2943_v62 = vrot.slane %v2941_v44, 5  ;;  %v624_v63 = vrot.slane %v7988_v54, 4 }
  0x6f   : > { %v2938_v8 = vor.u32 %v2937_v51, %v2934_v50  ;;  %v2947_v9 = vrot.slane %v2945_v52, 4  ;;  %v2953_v10 = vrot.slane %v2951_v53, 5  ;;  %v633_v6 = vrot.slane %v7996_v7, 4  ;;  %v6758_v52 = vld [vmem:[%s7774_s30 + $0x40] sm:$0xff]  }
  0x70   : > { %v1161_v23 = vsel %vm7807_vm9, %v1156_v30, %v1160_v34  ;;  %v1171_v28 = vsel %vm7807_vm9, %v1166_v61, %v1170_v38  ;;  %v632_v5 = vsel %vm7821_vm10, %v624_v63, %v8006_v22  ;;  %v2956_v24 = vshrl.u32 %v6245_v14, 16  ;;  %v900_v61 = vld [vmem:[#allocation2 + $0x54] sm:$0xf] }
  0x71   : > { %v6057_v27 = vcombine.low %v1161_v23, %v1171_v28  ;;  %v2939_v54 = vrot.slane %v2938_v8, 4  ;;  %v2948_v29 = vor.u32 %v2947_v9, %v2943_v62  ;;  %896 = vst.msk [vmem:[#allocation2 + $0x4c] sm:$0xf] %vm239_vm1, %v632_v5  ;;  %v898_v7 = vsel %vm7834_vm12, %v633_v6, %v897_v59  ;;  %v904_v23 = vld [vmem:[#allocation2 + $0x5c] sm:$0x1] }
  0x72   : > { %899 = vst [vmem:[#allocation2 + $0x50] sm:$0x1] %v898_v7  ;;  %v2958_v32 = vrot.slane %v2956_v24, 4  ;;  %v2959_v33 = vshll.u32 %v6245_v14, 16  ;;  %v1173_v57 = vshrl.u32 %v988_v18, 16  ;;  %v1176_v34 = vshll.u32 %v988_v18, 16 }
  0x73   : > { %6930 = vmatmul.mubr.msk.bf16.gmra.mrb[8].mxu1 %vm1462_vm8, %v6057_v27  ;;  %v2944_v22 = vsel %vm7807_vm9, %v2939_v54, %v2943_v62  ;;  %v2949_v35 = vrot.slane %v2948_v29, 4  ;;  %v635_v36 = vshrl.u32 %v8015_v1, 16  ;;  %v638_v38 = vshll.u32 %v8015_v1, 16  ;;  %v6132_v62 = vld [vmem:[%s9652_s1 + $0x4] sm:$0x3] }
  0x74   : > { %v2961_v49 = vrot.slane %v2959_v33, 5  ;;  %v1175_v39 = vrot.slane %v1173_v57, 4  ;;  %v1178_v45 = vrot.slane %v1176_v34, 5  ;;  %v643_v46 = vshrl.u32 %v8017_v2, 16  ;;  %7485 = vmatprep.subr.msk.bf16.mxu1 %vm1511_vm0, %v6132_v62 }
  0x75   : > { %v2954_v47 = vsel %vm7807_vm9, %v2949_v35, %v2953_v10  ;;  %v637_v44 = vrot.slane %v635_v36, 7  ;;  %v646_v50 = vshll.u32 %v8017_v2, 16  ;;  %v378_v51 = vmul.f32 %v6717_v42, %v7785_v11 }
  0x76   : > { %v6283_v53 = vcombine.low %v2944_v22, %v2954_v47  ;;  %v2962_v14 = vor.u32 %v2961_v49, %v2958_v32  ;;  %v1179_v30 = vor.u32 %v1178_v45, %v1175_v39  ;;  %v645_v1 = vrot.slane %v643_v46, 7 }
  0x77   : > { %v640_v63 = vor.u32 %v638_v38, %v637_v44  ;;  %v641_v59 = vrot.slane %v637_v44, 4  ;;  %v379_v2 = vmul.f32 %v6718_v60, %v7785_v11  ;;  %v415_v8 = vadd.f32 %v7795_v26, %v378_v51 }
  0x78   : > { %7065 = vmatprep.mubr.msk.bf16.mxu0 %vm1462_vm8, %v6283_v53  ;;  %v8070_v42 = vld [vmem:[#allocation2 + $0x4c] sm:$0xf]  ;;  %v2963_v9 = vrot.slane %v2962_v14, 4  ;;  %v1180_v6 = vrot.slane %v1179_v30, 4  ;;  %v648_v18 = vor.u32 %v646_v50, %v645_v1  ;;  %v6721_v28 = vunpack.c.l.bf16 %v6758_v52 }
  0x79   : > { %v989_v10 = vld [vmem:[#allocation2 + $0x4c] sm:$0xf]  ;;  %v8072_v5 = vld [vmem:[#allocation2 + $0x50] sm:$0x1]  ;;  %v2965_v24 = vshll.u32 %v8070_v42, 16  ;;  %v2969_v40 = vshrl.u32 %v8070_v42, 16  ;;  %v901_v27 = vsel %vm7827_vm11, %v640_v63, %v900_v61  ;;  %v416_v54 = vadd.f32 %v7795_v26, %v379_v2 }
  0x7a   : > { %v1015_v60 = vld [vmem:[#allocation2 + $0x50] sm:$0x1]  ;;  %v2975_v29 = vshll.u32 %v8072_v5, 16  ;;  %v1182_v7 = vshll.u32 %v989_v10, 16  ;;  %v1186_v32 = vshrl.u32 %v989_v10, 16  ;;  %v649_v22 = vsel %vm7821_vm10, %v641_v59, %v648_v18 }
  0x7b   : > { %v1192_v33 = vshll.u32 %v1015_v60, 16  ;;  %902 = vst [vmem:[#allocation2 + $0x54] sm:$0xf] %v901_v27  ;;  %v2967_v57 = vrot.slane %v2965_v24, 5  ;;  %v2971_v34 = vrot.slane %v2969_v40, 4  ;;  %v650_v35 = vrot.slane %v645_v1, 4 }
  0x7c   : > { %v2977_v36 = vrot.slane %v2975_v29, 5  ;;  %v1184_v38 = vrot.slane %v1182_v7, 5  ;;  %v1188_v49 = vrot.slane %v1186_v32, 4  ;;  %903 = vst.msk [vmem:[#allocation2 + $0x58] sm:$0xf] %vm239_vm1, %v649_v22  ;;  %v6637_v44 = vpack.c.bf16 %v415_v8, %v415_v8 }
  0x7d   : > { %v1194_v39 = vrot.slane %v1192_v33, 5  ;;  %v2968_v45 = vsel %vm7807_vm9, %v2963_v9, %v2967_v57  ;;  %v2972_v46 = vor.u32 %v2971_v34, %v2967_v57  ;;  %v905_v47 = vsel %vm7834_vm12, %v650_v35, %v904_v23  ;;  %v8097_v8 = vld [vmem:[%s9653_s2] ss:$0 sm:$0xff] }
  0x7e   : > { %v1185_v50 = vsel %vm7807_vm9, %v1180_v6, %v1184_v38  ;;  %v1189_v51 = vor.u32 %v1188_v49, %v1184_v38  ;;  %906 = vst [vmem:[#allocation2 + $0x5c] sm:$0x1] %v905_v47  ;;  %v8089_v53 = vpack.c.bf16 %v416_v54, %v416_v54  ;;  %v6722_v14 = vunpack.c.h.bf16 %v6758_v52  ;;  %v907_v60 = vld [vmem:[#allocation2 + $0x60] sm:$0xf] }
  0x7f   : > { %v2973_v30 = vrot.slane %v2972_v46, 4  ;;  %v652_v1 = vshrl.u32 %v6637_v44, 16  ;;  %v655_v61 = vshll.u32 %v6637_v44, 16  ;;  %v380_v62 = vmul.f32 %v6721_v28, %v7785_v11 }
  0x80   : > { %v1190_v63 = vrot.slane %v1189_v51, 4  ;;  %v660_v59 = vshrl.u32 %v8089_v53, 16  ;;  %v663_v2 = vshll.u32 %v8089_v53, 16  ;;  %v381_v9 = vmul.f32 %v8097_v8, %v6722_v14 }
  0x81   : > { %v2978_v52 = vsel %vm7807_vm9, %v2973_v30, %v2977_v36  ;;  %v8102_v18 = vrot.slane %v652_v1, 7  ;;  %v417_v11 = vadd.f32 %v7795_v26, %v380_v62  ;;  %v8177_v16 = vsel %vm1511_vm0, %v7937_v56, 0 }
  0x82   : > { %v990_v10 = vld [vmem:[#allocation2 + $0x54] sm:$0xf]  ;;  %v6284_v23 = vcombine.low %v2968_v45, %v2978_v52  ;;  %v1195_v28 = vsel %vm7807_vm9, %v1190_v63, %v1194_v39  ;;  %v8119_v45 = vld [vmem:[%s9653_s2 + $0x1] ss:$0 sm:$0xff]  ;;  %vm5702_vm2 = vcmask 64512   ;;  %vm5874_vm3 = vcmask 1040384  }
  0x83   : > { %v6248_v6 = vld [vmem:[#allocation2 + $0x54] sm:$0xf]  ;;  %v1197_v24 = vshrl.u32 %v990_v10, 16  ;;  %v1200_v40 = vshll.u32 %v990_v10, 16  ;;  %v6058_v27 = vcombine.low %v1185_v50, %v1195_v28  ;;  %v991_v54 = vld [vmem:[#allocation2 + $0x58] sm:$0xf]  ;;  %v657_v32 = vor.u32 %v655_v61, %v8102_v18 }
  0x84   : > { %v2980_v29 = vshrl.u32 %v6248_v6, 16  ;;  %v2983_v7 = vshll.u32 %v6248_v6, 16  ;;  %7066 = vmatmul.mubr.msk.bf16.gmra.mrb[8].mxu0 %vm1462_vm8, %v6284_v23  ;;  %v1206_v34 = vshll.u32 %v991_v54, 16  ;;  %v1210_v26 = vshrl.u32 %v991_v54, 16  ;;  %v8109_v22 = vld [vmem:[#allocation2 + $0x58] sm:$0xf] }
  0x85   : > { %v1199_v33 = vrot.slane %v1197_v24, 4  ;;  %v1202_v57 = vrot.slane %v1200_v40, 5  ;;  %6933 = vmatprep.mubr.msk.bf16.mxu1 %vm1462_vm8, %v6058_v27  ;;  %v1016_v35 = vld [vmem:[#allocation2 + $0x5c] sm:$0x1]  ;;  %v908_v39 = vsel %vm7827_vm11, %v657_v32, %v907_v60  ;;  %v418_v46 = vadd.f32 %v8119_v45, %v381_v9 }
  0x86   : > { %v8112_v36 = vld [vmem:[#allocation2 + $0x5c] sm:$0x1]  ;;  %v2982_v38 = vrot.slane %v2980_v29, 4  ;;  %v2985_v49 = vrot.slane %v2983_v7, 5  ;;  %v1208_v44 = vrot.slane %v1206_v34, 5  ;;  %v1212_v50 = vrot.slane %v1210_v26, 4 }
  0x87   : > { %v1203_v47 = vor.u32 %v1202_v57, %v1199_v33  ;;  %v1216_v51 = vshll.u32 %v1016_v35, 16  ;;  %909 = vst [vmem:[#allocation2 + $0x60] sm:$0xf] %v908_v39  ;;  %v2989_v14 = vshll.u32 %v8109_v22, 16  ;;  %v2993_v30 = vshrl.u32 %v8109_v22, 16 }
  0x88   : > { %v2986_v53 = vor.u32 %v2985_v49, %v2982_v38  ;;  %v2999_v1 = vshll.u32 %v8112_v36, 16  ;;  %v1213_v62 = vor.u32 %v1212_v50, %v1208_v44  ;;  %v658_v52 = vrot.slane %v8102_v18, 4  ;;  %v911_v29 = vld [vmem:[#allocation2 + $0x68] sm:$0x1]  ;;  %v6311_v50 = vld [vmem:[#allocation2 + $0xc] sm:$0xe] }
  0x89   : > { %v1204_v61 = vrot.slane %v1203_v47, 4  ;;  %v1218_v63 = vrot.slane %v1216_v51, 5  ;;  %v2991_v6 = vrot.slane %v2989_v14, 5  ;;  %v2995_v9 = vrot.slane %v2993_v30, 4 }
  0x8a   : > { %v2987_v10 = vrot.slane %v2986_v53, 4  ;;  %v3001_v23 = vrot.slane %v2999_v1, 5  ;;  %v1214_v24 = vrot.slane %v1213_v62, 4  ;;  %v662_v40 = vrot.slane %v660_v59, 7 }
  0x8b   : > { %v1209_v28 = vsel %vm7807_vm9, %v1204_v61, %v1208_v44  ;;  %v6639_v60 = vpack.c.bf16 %v417_v11, %v417_v11  ;;  %v2996_v54 = vor.u32 %v2995_v9, %v2991_v6  ;;  %v6640_v7 = vpack.c.bf16 %v418_v46, %v418_v46  ;;  %v914_v44 = vld [vmem:[#allocation2 + $0x6c] sm:$0xf]  ;;  %v6312_v61 = vld [vmem:[#allocation2 + $0x18] sm:$0xe] }
  0x8c   : > { %v2992_v27 = vsel %vm7807_vm9, %v2987_v10, %v2991_v6  ;;  %v1219_v18 = vsel %vm7807_vm9, %v1214_v24, %v1218_v63  ;;  %v665_v32 = vor.u32 %v663_v2, %v662_v40  ;;  %v667_v33 = vrot.slane %v662_v40, 4 }
  0x8d   : > { %v669_v57 = vshrl.u32 %v6639_v60, 16  ;;  %v6059_v59 = vcombine.low %v1209_v28, %v1219_v18  ;;  %v2997_v11 = vrot.slane %v2996_v54, 4  ;;  %v672_v38 = vshll.u32 %v6639_v60, 16  ;;  %v918_v60 = vld [vmem:[#allocation2 + $0x74] sm:$0x1] }
  0x8e   : > { %v6251_v26 = vld [vmem:[#allocation2 + $0x60] sm:$0xf]  ;;  %v8142_v49 = vsel %vm8133_vm15, %v7925_v31, %v3589_v13  ;;  %v666_v2 = vsel %vm7821_vm10, %v658_v52, %v665_v32  ;;  %v912_v39 = vsel %vm7834_vm12, %v667_v33, %v911_v29  ;;  %v677_v1 = vshrl.u32 %v6640_v7, 16 }
  0x8f   : > { %v992_v35 = vld [vmem:[#allocation2 + $0x60] sm:$0xf]  ;;  %v3004_v46 = vshrl.u32 %v6251_v26, 16  ;;  %v3007_v47 = vshll.u32 %v6251_v26, 16  ;;  %6934 = vmatmul.mubr.msk.bf16.gmra.mrb[12].mxu1 %vm1462_vm8, %v6059_v59  ;;  %v3002_v48 = vsel %vm7807_vm9, %v2997_v11, %v3001_v23  ;;  %910 = vst.msk [vmem:[#allocation2 + $0x64] sm:$0xf] %vm239_vm1, %v666_v2 }
  0x90   : > { %913 = vst [vmem:[#allocation2 + $0x68] sm:$0x1] %v912_v39  ;;  %v1221_v13 = vshrl.u32 %v992_v35, 16  ;;  %v1224_v31 = vshll.u32 %v992_v35, 16  ;;  %v671_v51 = vrot.slane %v669_v57, 7  ;;  %v6285_v53 = vcombine.low %v2992_v27, %v3002_v48  ;;  %v6759_v11 = vld [vmem:[%s7774_s30 + $0x48] sm:$0xff]  }
  0x91   : > { %v3006_v14 = vrot.slane %v3004_v46, 4  ;;  %v3009_v30 = vrot.slane %v3007_v47, 5  ;;  %v679_v9 = vrot.slane %v677_v1, 7  ;;  %v680_v23 = vshll.u32 %v6640_v7, 16 }
  0x92   : > { %v1223_v62 = vrot.slane %v1221_v13, 4  ;;  %v1226_v63 = vrot.slane %v1224_v31, 5  ;;  %v674_v52 = vor.u32 %v672_v38, %v671_v51  ;;  %v675_v10 = vrot.slane %v671_v51, 4  ;;  %7069 = vmatprep.mubr.msk.bf16.mxu0 %vm1462_vm8, %v6285_v53  ;;  %v6760_v13 = vld [vmem:[%s7774_s30 + $0x50] sm:$0xff]  }
  0x93   : > { %v3010_v6 = vor.u32 %v3009_v30, %v3006_v14  ;;  %v6327_v28 = vrot.slane %v6311_v50, 9  ;;  %v3581_v27 = vrot.slane %v3579_v41, 4  ;;  %v6328_v54 = vrot.slane %v6312_v61, 9 }
  0x94   : > { %v1227_v24 = vor.u32 %v1226_v63, %v1223_v62  ;;  %v915_v40 = vsel %vm7827_vm11, %v674_v52, %v914_v44  ;;  %v682_v18 = vor.u32 %v680_v23, %v679_v9  ;;  %v684_v32 = vrot.slane %v679_v9, 4  ;;  %v8204_v23 = vld [vmem:[%s7774_s30 + $0x58] sm:$0xff]  }
  0x95   : > { %v3011_v29 = vrot.slane %v3010_v6, 4  ;;  %916 = vst [vmem:[#allocation2 + $0x6c] sm:$0xf] %v915_v40  ;;  %v8161_v7 = vsel %vm8133_vm15, %v6327_v28, %v3579_v41  ;;  %v8167_v57 = vsel %vm8133_vm15, %v3581_v27, %v3582_v21  ;;  %v8173_v59 = vsel %vm8133_vm15, %v6328_v54, %v3586_v12 }
  0x96   : > { %v1228_v33 = vrot.slane %v1227_v24, 4  ;;  %v8180_v41 = vld [vmem:[#allocation2 + $0x64] sm:$0xf]  ;;  %v683_v21 = vsel %vm7821_vm10, %v675_v10, %v682_v18  ;;  %v919_v37 = vsel %vm7834_vm12, %v684_v32, %v918_v60  ;;  %v6344_v12 = vcombine.low %v8161_v7, %v8167_v57 }
  0x97   : > { %v8182_v26 = vld [vmem:[#allocation2 + $0x68] sm:$0x1]  ;;  %v993_v25 = vld [vmem:[#allocation2 + $0x64] sm:$0xf]  ;;  %v6345_v56 = vcombine.low %v8173_v59, %v8142_v49  ;;  %v3013_v35 = vshll.u32 %v8180_v41, 16  ;;  %v3017_v38 = vshrl.u32 %v8180_v41, 16  ;;  %v6725_v50 = vunpack.c.l.bf16 %v6759_v11 }
  0x98   : > { %v3023_v2 = vshll.u32 %v8182_v26, 16  ;;  %v1017_v39 = vld [vmem:[#allocation2 + $0x68] sm:$0x1]  ;;  %v1230_v46 = vshll.u32 %v993_v25, 16  ;;  %917 = vst.msk [vmem:[#allocation2 + $0x70] sm:$0xf] %vm239_vm1, %v683_v21  ;;  %v6726_v48 = vunpack.c.h.bf16 %v6759_v11  ;;  %v6729_v9 = vunpack.c.l.bf16 %v6760_v13 }
  0x99   : > { %920 = vst [vmem:[#allocation2 + $0x74] sm:$0x1] %v919_v37  ;;  %v1234_v47 = vshrl.u32 %v993_v25, 16  ;;  %v1240_v44 = vshll.u32 %v1017_v39, 16  ;;  %v3015_v31 = vrot.slane %v3013_v35, 5  ;;  %v3019_v51 = vrot.slane %v3017_v38, 4 }
  0x9a   : > { %v3025_v53 = vrot.slane %v3023_v2, 5  ;;  %v1232_v14 = vrot.slane %v1230_v46, 5  ;;  %v382_v61 = vmul.f32 %v8097_v8, %v6725_v50  ;;  %v383_v62 = vmul.f32 %v8097_v8, %v6726_v48 }
  0x9b   : > { %v1236_v30 = vrot.slane %v1234_v47, 4  ;;  %v1242_v1 = vrot.slane %v1240_v44, 5  ;;  %v3016_v63 = vsel %vm7807_vm9, %v3011_v29, %v3015_v31  ;;  %v3020_v52 = vor.u32 %v3019_v51, %v3015_v31 }
  0x9c   : > { %v1233_v10 = vsel %vm7807_vm9, %v1228_v33, %v1232_v14  ;;  %v994_v6 = vld [vmem:[#allocation2 + $0x6c] sm:$0xf]  ;;  %v419_v60 = vadd.f32 %v8119_v45, %v382_v61  ;;  %v420_v54 = vadd.f32 %v8119_v45, %v383_v62  ;;  %v6730_v18 = vunpack.c.h.bf16 %v6760_v13 }
  0x9d   : > { %v1237_v28 = vor.u32 %v1236_v30, %v1232_v14  ;;  %v1245_v24 = vshrl.u32 %v994_v6, 16  ;;  %v1248_v40 = vshll.u32 %v994_v6, 16  ;;  %v3021_v27 = vrot.slane %v3020_v52, 4  ;;  %v6313_v14 = vld [vmem:[#allocation2 + $0x24] sm:$0xe] }
  0x9e   : > { %v384_v32 = vmul.f32 %v8097_v8, %v6729_v9  ;;  %v6641_v33 = vpack.c.bf16 %v419_v60, %v419_v60  ;;  %v6733_v37 = vunpack.c.l.bf16 %v8204_v23  ;;  %v6642_v50 = vpack.c.bf16 %v420_v54, %v420_v54  ;;  %v925_v54 = vld [vmem:[#allocation2 + $0x80] sm:$0x1] }
  0x9f   : > { %v1238_v29 = vrot.slane %v1237_v28, 4  ;;  %v995_v11 = vld [vmem:[#allocation2 + $0x70] sm:$0xf]  ;;  %v1247_v21 = vrot.slane %v1245_v24, 4  ;;  %v3026_v35 = vsel %vm7807_vm9, %v3021_v27, %v3025_v53  ;;  %v1250_v38 = vrot.slane %v1248_v40, 5 }
  0xa0   : > { %v1018_v25 = vld [vmem:[#allocation2 + $0x74] sm:$0x1]  ;;  %v1254_v2 = vshll.u32 %v995_v11, 16  ;;  %v1258_v39 = vshrl.u32 %v995_v11, 16  ;;  %v6286_v46 = vcombine.low %v3016_v63, %v3026_v35  ;;  %v686_v61 = vshrl.u32 %v6641_v33, 16 }
  0xa1   : > { %v1243_v47 = vsel %vm7807_vm9, %v1238_v29, %v1242_v1  ;;  %v1264_v44 = vshll.u32 %v1018_v25, 16  ;;  %v1251_v13 = vor.u32 %v1250_v38, %v1247_v21  ;;  %v689_v62 = vshll.u32 %v6641_v33, 16  ;;  %v921_v27 = vld [vmem:[#allocation2 + $0x78] sm:$0xf]  ;;  %v6314_v35 = vld [vmem:[#allocation2 + $0x30] sm:$0xe] }
  0xa2   : > { %v6060_v48 = vcombine.low %v1233_v10, %v1243_v47  ;;  %v1256_v31 = vrot.slane %v1254_v2, 5  ;;  %v1260_v51 = vrot.slane %v1258_v39, 4  ;;  %7070 = vmatmul.mubr.msk.bf16.gmra.mrb[12].mxu0 %vm1462_vm8, %v6286_v46  ;;  %v694_v53 = vshrl.u32 %v6642_v50, 16 }
  0xa3   : > { %v1266_v30 = vrot.slane %v1264_v44, 5  ;;  %v1252_v52 = vrot.slane %v1251_v13, 4  ;;  %7091 = vmatprep.mubr.msk.bf16.mxu0 %vm1462_vm8, %v6344_v12  ;;  %v697_v1 = vshll.u32 %v6642_v50, 16  ;;  %v385_v10 = vmul.f32 %v8097_v8, %v6730_v18 }
  0xa4   : > { %6937 = vmatprep.mubr.msk.bf16.mxu1 %vm1462_vm8, %v6060_v48  ;;  %v1261_v63 = vor.u32 %v1260_v51, %v1256_v31  ;;  %v688_v6 = vrot.slane %v686_v61, 7  ;;  %v696_v9 = vrot.slane %v694_v53, 7  ;;  %v421_v28 = vadd.f32 %v8119_v45, %v384_v32  ;;  %v8240_v48 = vld [vmem:[%s9652_s1 + $0xe] sm:$0x3] }
  0xa5   : > { %v6329_v24 = vrot.slane %v6313_v14, 9  ;;  %v1257_v40 = vsel %vm7807_vm9, %v1252_v52, %v1256_v31  ;;  %v422_v29 = vadd.f32 %v8119_v45, %v385_v10  ;;  %v3593_v7 = vrot.slane %v7932_v55, 5  ;;  %v7553_v31 = vld [vmem:[#allocation2 + $0x2c] sm:$0x1] }
  0xa6   : > { %v1262_v60 = vrot.slane %v1261_v63, 4  ;;  %v691_v57 = vor.u32 %v689_v62, %v688_v6  ;;  %v692_v12 = vrot.slane %v688_v6, 4  ;;  %v699_v11 = vor.u32 %v697_v1, %v696_v9  ;;  %v928_v63 = vld [vmem:[#allocation2 + $0x84] sm:$0xf]  ;;  %v932_v1 = vld [vmem:[#allocation2 + $0x8c] sm:$0x1] }
  0xa7   : > { %v701_v25 = vrot.slane %v696_v9, 4  ;;  %v6643_v21 = vpack.c.bf16 %v421_v28, %v421_v28  ;;  %v6644_v32 = vpack.c.bf16 %v422_v29, %v422_v29  ;;  %v3594_v33 = vsel %vm8133_vm15, %v6329_v24, %v3593_v7  ;;  %v6762_v9 = vld [vmem:[%s7774_s30 + $0x60] sm:$0xff]  }
  0xa8   : > { %v1267_v18 = vsel %vm7807_vm9, %v1262_v60, %v1266_v30  ;;  %v700_v2 = vsel %vm7821_vm10, %v692_v12, %v699_v11  ;;  %v922_v55 = vsel %vm7827_vm11, %v691_v57, %v921_v27  ;;  %v3595_v13 = vrot.slane %v3593_v7, 4 }
  0xa9   : > { %v6061_v38 = vcombine.low %v1257_v40, %v1267_v18  ;;  %v926_v39 = vsel %vm7834_vm12, %v701_v25, %v925_v54  ;;  %923 = vst [vmem:[#allocation2 + $0x78] sm:$0xf] %v922_v55  ;;  %924 = vst.msk [vmem:[#allocation2 + $0x7c] sm:$0xf] %vm239_vm1, %v700_v2  ;;  %v703_v46 = vshrl.u32 %v6643_v21, 16  ;;  %v706_v47 = vshll.u32 %v6643_v21, 16 }
  0xaa   : > { %927 = vst [vmem:[#allocation2 + $0x80] sm:$0x1] %v926_v39  ;;  %v711_v44 = vshrl.u32 %v6644_v32, 16  ;;  %v714_v50 = vshll.u32 %v6644_v32, 16  ;;  %7092 = vmatmul.mubr.msk.bf16.vlgmr.msra.gmra.mrb[0].mxu0 %vm1462_vm8, %v6345_v56  ;;  %v3596_v51 = vrot.slane %v7553_v31, 5  ;;  %v6330_v14 = vrot.slane %v6314_v35, 9 }
  0xab   : > { %6938 = vmatmul.mubr.msk.bf16.gmra.mrb[16].mxu1 %vm1462_vm8, %v6061_v38  ;;  %v3600_v30 = vrot.slane %v8000_v15, 5  ;;  %7124 = vmatpush3.bf16.msra.mxu0 %v8177_v16  ;;  %v705_v61 = vrot.slane %v703_v46, 7  ;;  %v3603_v53 = vrot.slane %v8002_v17, 5  ;;  %v6734_v52 = vunpack.c.h.bf16 %v8204_v23 }
  0xac   : > { %v713_v62 = vrot.slane %v711_v44, 7  ;;  %v3597_v49 = vsel %vm8133_vm15, %v3595_v13, %v3596_v51  ;;  %v386_v15 = vmul.f32 %v8097_v8, %v6733_v37  ;;  %7491 = vmatprep.subr.msk.bf16.mxu0 %vm1511_vm0, %v8240_v48  ;;  %v6737_v25 = vunpack.c.l.bf16 %v6762_v9  ;;  %v6315_v13 = vld [vmem:[#allocation2 + $0x3c] sm:$0xe] }
  0xad   : > { %v3601_v59 = vsel %vm8133_vm15, %v6330_v14, %v3600_v30  ;;  %v3602_v56 = vrot.slane %v3600_v30, 4  ;;  %v708_v16 = vor.u32 %v706_v47, %v705_v61  ;;  %v709_v17 = vrot.slane %v705_v61, 4 }
  0xae   : > { %v716_v10 = vor.u32 %v714_v50, %v713_v62  ;;  %v718_v6 = vrot.slane %v713_v62, 4  ;;  %v6346_v28 = vcombine.low %v3594_v33, %v3597_v49  ;;  %v387_v40 = vmul.f32 %v8097_v8, %v6734_v52 }
  0xaf   : > { %v3604_v24 = vsel %vm8133_vm15, %v3602_v56, %v3603_v53  ;;  %v423_v60 = vadd.f32 %v8119_v45, %v386_v15  ;;  %v929_v37 = vsel %vm7827_vm11, %v708_v16, %v928_v63  ;;  %v6738_v18 = vunpack.c.h.bf16 %v6762_v9 }
  0xb0   : > { %v717_v23 = vsel %vm7821_vm10, %v709_v17, %v716_v10  ;;  %v933_v27 = vsel %vm7834_vm12, %v718_v6, %v932_v1  ;;  %v6347_v54 = vcombine.low %v3601_v59, %v3604_v24  ;;  %v8271_v29 = vld [vmem:[#allocation2 + $0x78] sm:$0xf]  ;;  %v8273_v7 = vld [vmem:[#allocation2 + $0x7c] sm:$0xf]  ;;  %930 = vst [vmem:[#allocation2 + $0x84] sm:$0xf] %v929_v37  ;;  %7095 = vmatprep.mubr.msk.bf16.mxu0 %vm1462_vm8, %v6346_v28 }
  0xb1   : > { %v1019_v57 = vld [vmem:[#allocation2 + $0x80] sm:$0x1]  ;;  %931 = vst.msk [vmem:[#allocation2 + $0x88] sm:$0xf] %vm239_vm1, %v717_v23  ;;  %934 = vst [vmem:[#allocation2 + $0x8c] sm:$0x1] %v933_v27  ;;  %v424_v12 = vadd.f32 %v8119_v45, %v387_v40  ;;  %v6645_v11 = vpack.c.bf16 %v423_v60, %v423_v60  ;;  %v388_v53 = vmul.f32 %v8097_v8, %v6737_v25 }
  0xb2   : > { %v1269_v21 = vshrl.u32 %v8271_v29, 16  ;;  %v1272_v32 = vshll.u32 %v8271_v29, 16  ;;  %v1278_v33 = vshll.u32 %v8273_v7, 16  ;;  %v1282_v35 = vshrl.u32 %v8273_v7, 16  ;;  %7096 = vmatmul.mubr.msk.bf16.gmra.mrb[4].mxu0 %vm1462_vm8, %v6347_v54 }
  0xb3   : > { %v1288_v38 = vshll.u32 %v1019_v57, 16  ;;  %v6646_v2 = vpack.c.bf16 %v424_v12, %v424_v12  ;;  %v720_v55 = vshrl.u32 %v6645_v11, 16  ;;  %v723_v39 = vshll.u32 %v6645_v11, 16  ;;  %v935_v57 = vld [vmem:[#allocation2 + $0x90] sm:$0xf] }
  0xb4   : > { %v1271_v46 = vrot.slane %v1269_v21, 4  ;;  %v1274_v47 = vrot.slane %v1272_v32, 5  ;;  %v1280_v44 = vrot.slane %v1278_v33, 5  ;;  %v1284_v50 = vrot.slane %v1282_v35, 4  ;;  %v939_v21 = vld [vmem:[#allocation2 + $0x98] sm:$0x1] }
  0xb5   : > { %v1290_v31 = vrot.slane %v1288_v38, 5  ;;  %v722_v51 = vrot.slane %v720_v55, 7  ;;  %v728_v14 = vshrl.u32 %v6646_v2, 16  ;;  %v731_v30 = vshll.u32 %v6646_v2, 16 }
  0xb6   : > { %v1275_v61 = vor.u32 %v1274_v47, %v1271_v46  ;;  %v1285_v62 = vor.u32 %v1284_v50, %v1280_v44  ;;  %v389_v52 = vmul.f32 %v8097_v8, %v6738_v18  ;;  %v6331_v59 = vrot.slane %v6315_v13, 9  ;;  %v6316_v47 = vld [vmem:[#allocation2 + $0x48] sm:$0xe] }
  0xb7   : > { %v725_v63 = vor.u32 %v723_v39, %v722_v51  ;;  %v726_v1 = vrot.slane %v722_v51, 4  ;;  %v730_v49 = vrot.slane %v728_v14, 7  ;;  %v8285_v16 = vld [vmem:[#allocation2 + $0x84] sm:$0xf]  ;;  %v425_v10 = vadd.f32 %v8119_v45, %v388_v53 }
  0xb8   : > { %v1276_v56 = vrot.slane %v1275_v61, 4  ;;  %v1286_v15 = vrot.slane %v1285_v62, 4  ;;  %v8287_v17 = vld [vmem:[#allocation2 + $0x88] sm:$0xf]  ;;  %v426_v6 = vadd.f32 %v8119_v45, %v389_v52  ;;  %v1020_v9 = vld [vmem:[#allocation2 + $0x8c] sm:$0x1] }
  0xb9   : > { %v1293_v28 = vshrl.u32 %v8285_v16, 16  ;;  %v1296_v24 = vshll.u32 %v8285_v16, 16  ;;  %v1302_v40 = vshll.u32 %v8287_v17, 16  ;;  %v1306_v60 = vshrl.u32 %v8287_v17, 16 }
  0xba   : > { %v1281_v23 = vsel %vm7807_vm9, %v1276_v56, %v1280_v44  ;;  %v1291_v37 = vsel %vm7807_vm9, %v1286_v15, %v1290_v31  ;;  %v1312_v27 = vshll.u32 %v1020_v9, 16  ;;  %v733_v54 = vor.u32 %v731_v30, %v730_v49 }
  0xbb   : > { %v6062_v12 = vcombine.low %v1281_v23, %v1291_v37  ;;  %v1295_v11 = vrot.slane %v1293_v28, 4  ;;  %v1298_v25 = vrot.slane %v1296_v24, 5  ;;  %v1304_v18 = vrot.slane %v1302_v40, 5 }
  0xbc   : > { %v1308_v32 = vrot.slane %v1306_v60, 4  ;;  %v1314_v33 = vrot.slane %v1312_v27, 5  ;;  %v734_v35 = vsel %vm7821_vm10, %v726_v1, %v733_v54  ;;  %v735_v38 = vrot.slane %v730_v49, 4  ;;  %v946_v60 = vld [vmem:[#allocation2 + $0xa4] sm:$0x1] }
  0xbd   : > { %6941 = vmatprep.mubr.msk.bf16.mxu1 %vm1462_vm8, %v6062_v12  ;;  %v1299_v2 = vor.u32 %v1298_v25, %v1295_v11  ;;  %v936_v55 = vsel %vm7827_vm11, %v725_v63, %v935_v57  ;;  %938 = vst.msk [vmem:[#allocation2 + $0x94] sm:$0xf] %vm239_vm1, %v734_v35  ;;  %v6647_v39 = vpack.c.bf16 %v425_v10, %v425_v10  ;;  %v3607_v13 = vrot.slane %v8021_v20, 5 }
  0xbe   : > { %v6648_v46 = vpack.c.bf16 %v426_v6, %v426_v6  ;;  %v1309_v44 = vor.u32 %v1308_v32, %v1304_v18  ;;  %937 = vst [vmem:[#allocation2 + $0x90] sm:$0xf] %v936_v55  ;;  %v940_v50 = vsel %vm7834_vm12, %v735_v38, %v939_v21  ;;  %v3610_v31 = vrot.slane %v8025_v19, 5  ;;  %v942_v19 = vld [vmem:[#allocation2 + $0x9c] sm:$0xf]  ;;  %v6764_v21 = vld [vmem:[%s7774_s30 + $0x70] sm:$0xff]  }
  0xbf   : > { %v1300_v51 = vrot.slane %v1299_v2, 4  ;;  %941 = vst [vmem:[#allocation2 + $0x98] sm:$0x1] %v940_v50  ;;  %v737_v14 = vshrl.u32 %v6647_v39, 16  ;;  %v740_v30 = vshll.u32 %v6647_v39, 16  ;;  %v3608_v52 = vsel %vm8133_vm15, %v6331_v59, %v3607_v13 }
  0xc0   : > { %v745_v61 = vshrl.u32 %v6648_v46, 16  ;;  %v1310_v62 = vrot.slane %v1309_v44, 4  ;;  %v748_v53 = vshll.u32 %v6648_v46, 16  ;;  %v3609_v63 = vrot.slane %v3607_v13, 4  ;;  %v6317_v55 = vld [vmem:[#allocation2 + $0x54] sm:$0xe] }
  0xc1   : > { %v1305_v1 = vsel %vm7807_vm9, %v1300_v51, %v1304_v18  ;;  %v739_v49 = vrot.slane %v737_v14, 7  ;;  %v6332_v15 = vrot.slane %v6316_v47, 9  ;;  %v3614_v6 = vrot.slane %v8070_v42, 5  ;;  %v6763_v18 = vld [vmem:[%s7774_s30 + $0x68] sm:$0xff]  }
  0xc2   : > { %v747_v56 = vrot.slane %v745_v61, 7  ;;  %v1315_v20 = vsel %vm7807_vm9, %v1310_v62, %v1314_v33  ;;  %v3611_v10 = vsel %vm8133_vm15, %v3609_v63, %v3610_v31  ;;  %v3617_v9 = vrot.slane %v8072_v5, 5 }
  0xc3   : > { %v6063_v28 = vcombine.low %v1305_v1, %v1315_v20  ;;  %v742_v59 = vor.u32 %v740_v30, %v739_v49  ;;  %v743_v24 = vrot.slane %v739_v49, 4  ;;  %v6348_v27 = vcombine.low %v3608_v52, %v3611_v10 }
  0xc4   : > { %v750_v40 = vor.u32 %v748_v53, %v747_v56  ;;  %v8319_v23 = vld [vmem:[#allocation2 + $0x94] sm:$0xf]  ;;  %v752_v37 = vrot.slane %v747_v56, 4  ;;  %v3615_v54 = vsel %vm8133_vm15, %v6332_v15, %v3614_v6  ;;  %v3616_v57 = vrot.slane %v3614_v6, 4 }
  0xc5   : > { %6942 = vmatmul.mubr.msk.bf16.gmra.mrb[20].mxu1 %vm1462_vm8, %v6063_v28  ;;  %v8324_v42 = vld [vmem:[#allocation2 + $0x90] sm:$0xf]  ;;  %v1326_v5 = vshll.u32 %v8319_v23, 16  ;;  %v1330_v12 = vshrl.u32 %v8319_v23, 16  ;;  %v943_v25 = vsel %vm7827_vm11, %v742_v59, %v942_v19  ;;  %7099 = vmatprep.mubr.msk.bf16.mxu0 %vm1462_vm8, %v6348_v27  ;;  %v6741_v31 = vunpack.c.l.bf16 %v6763_v18 }
  0xc6   : > { %v751_v11 = vsel %vm7821_vm10, %v743_v24, %v750_v40  ;;  %v1021_v32 = vld [vmem:[#allocation2 + $0x98] sm:$0x1]  ;;  %v1317_v33 = vshrl.u32 %v8324_v42, 16  ;;  %v1320_v35 = vshll.u32 %v8324_v42, 16  ;;  %944 = vst [vmem:[#allocation2 + $0x9c] sm:$0xf] %v943_v25  ;;  %v947_v38 = vsel %vm7834_vm12, %v752_v37, %v946_v60 }
  0xc7   : > { %945 = vst.msk [vmem:[#allocation2 + $0xa0] sm:$0xf] %vm239_vm1, %v751_v11  ;;  %v3618_v2 = vsel %vm8133_vm15, %v3616_v57, %v3617_v9  ;;  %v1328_v39 = vrot.slane %v1326_v5, 5  ;;  %v1332_v46 = vrot.slane %v1330_v12, 4  ;;  %v1336_v47 = vshll.u32 %v1021_v32, 16 }
  0xc8   : > { %948 = vst [vmem:[#allocation2 + $0xa4] sm:$0x1] %v947_v38  ;;  %v6349_v44 = vcombine.low %v3615_v54, %v3618_v2  ;;  %v1319_v50 = vrot.slane %v1317_v33, 4  ;;  %v1322_v13 = vrot.slane %v1320_v35, 5  ;;  %v6742_v51 = vunpack.c.h.bf16 %v6763_v18  ;;  %v7593_v3 = vld [vmem:[#allocation2 + $0x98] sm:$0x1] }
  0xc9   : > { %v1333_v14 = vor.u32 %v1332_v46, %v1328_v39  ;;  %v1338_v30 = vrot.slane %v1336_v47, 5  ;;  %v6745_v61 = vunpack.c.l.bf16 %v6764_v21  ;;  %v6746_v62 = vunpack.c.h.bf16 %v6764_v21 }
  0xca   : > { %7100 = vmatmul.mubr.msk.bf16.gmra.mrb[8].mxu0 %vm1462_vm8, %v6349_v44  ;;  %v1323_v53 = vor.u32 %v1322_v13, %v1319_v50  ;;  %v390_v52 = vmul.f32 %v8097_v8, %v6741_v31  ;;  %v391_v63 = vmul.f32 %v8097_v8, %v6742_v51  ;;  %v6333_v1 = vrot.slane %v6317_v55, 9 }
  0xcb   : > { %v1334_v49 = vrot.slane %v1333_v14, 4  ;;  %v392_v56 = vmul.f32 %v8097_v8, %v6745_v61  ;;  %v393_v15 = vmul.f32 %v8097_v8, %v6746_v62  ;;  %v3621_v20 = vrot.slane %v8109_v22, 5 }
  0xcc   : > { %v1324_v19 = vrot.slane %v1323_v53, 4  ;;  %v427_v10 = vadd.f32 %v8119_v45, %v390_v52  ;;  %v428_v6 = vadd.f32 %v8119_v45, %v391_v63  ;;  %v3624_v9 = vrot.slane %v8112_v36, 5 }
  0xcd   : > { %v1339_v28 = vsel %vm7807_vm9, %v1334_v49, %v1338_v30  ;;  %v8353_v59 = vld [vmem:[#allocation2 + $0x9c] sm:$0xf]  ;;  %v429_v40 = vadd.f32 %v8119_v45, %v392_v56  ;;  %v430_v8 = vadd.f32 %v8119_v45, %v393_v15  ;;  %v8361_v22 = vsel %vm8133_vm15, %v6333_v1, %v3621_v20  ;;  %v949_v30 = vld [vmem:[#allocation2 + $0xa8] sm:$0xf]  ;;  %v953_v1 = vld [vmem:[#allocation2 + $0xb0] sm:$0x1] }
  0xce   : > { %v8355_v24 = vld [vmem:[#allocation2 + $0xa0] sm:$0xf]  ;;  %v1329_v60 = vsel %vm7807_vm9, %v1324_v19, %v1328_v39  ;;  %v1341_v27 = vshrl.u32 %v8353_v59, 16  ;;  %v1344_v54 = vshll.u32 %v8353_v59, 16  ;;  %v6649_v25 = vpack.c.bf16 %v427_v10, %v427_v10 }
  0xcf   : > { %v1022_v37 = vld [vmem:[#allocation2 + $0xa4] sm:$0x1]  ;;  %v1350_v57 = vshll.u32 %v8355_v24, 16  ;;  %v6064_v5 = vcombine.low %v1329_v60, %v1339_v28  ;;  %v1354_v12 = vshrl.u32 %v8355_v24, 16  ;;  %v6650_v32 = vpack.c.bf16 %v428_v6, %v428_v6  ;;  %v6318_v60 = vld [vmem:[#allocation2 + $0x60] sm:$0xe] }
  0xd0   : > { %v1360_v11 = vshll.u32 %v1022_v37, 16  ;;  %v1343_v45 = vrot.slane %v1341_v27, 4  ;;  %v1346_v18 = vrot.slane %v1344_v54, 5  ;;  %v754_v38 = vshrl.u32 %v6649_v25, 16 }
  0xd1   : > { %v1352_v21 = vrot.slane %v1350_v57, 5  ;;  %6945 = vmatprep.mubr.msk.bf16.mxu1 %vm1462_vm8, %v6064_v5  ;;  %v1356_v33 = vrot.slane %v1354_v12, 4  ;;  %v757_v2 = vshll.u32 %v6649_v25, 16  ;;  %v762_v39 = vshrl.u32 %v6650_v32, 16  ;;  %v960_v5 = vld [vmem:[#allocation2 + $0xbc] sm:$0x1] }
  0xd2   : > { %v1362_v35 = vrot.slane %v1360_v11, 5  ;;  %v1347_v55 = vor.u32 %v1346_v18, %v1343_v45  ;;  %v765_v46 = vshll.u32 %v6650_v32, 16  ;;  %v6651_v47 = vpack.c.bf16 %v429_v40, %v429_v40  ;;  %v6319_v18 = vld [vmem:[#allocation2 + $0x6c] sm:$0xe] }
  0xd3   : > { %v1357_v44 = vor.u32 %v1356_v33, %v1352_v21  ;;  %v756_v50 = vrot.slane %v754_v38, 7  ;;  %v6652_v13 = vpack.c.bf16 %v430_v8, %v430_v8  ;;  %v3623_v31 = vrot.slane %v3621_v20, 4  ;;  %v956_v8 = vld [vmem:[#allocation2 + $0xb4] sm:$0xf]  ;;  %v6255_v38 = vld [vmem:[#allocation2 + $0x70] sm:$0xf] }
  0xd4   : > { %v1348_v51 = vrot.slane %v1347_v55, 4  ;;  %v764_v14 = vrot.slane %v762_v39, 7  ;;  %v771_v61 = vshrl.u32 %v6651_v47, 16  ;;  %v774_v62 = vshll.u32 %v6651_v47, 16 }
  0xd5   : > { %v1358_v53 = vrot.slane %v1357_v44, 4  ;;  %v759_v52 = vor.u32 %v757_v2, %v756_v50  ;;  %v760_v63 = vrot.slane %v756_v50, 4  ;;  %v779_v49 = vshrl.u32 %v6652_v13, 16  ;;  %v6256_v2 = vld [vmem:[#allocation2 + $0x74] sm:$0x1] }
  0xd6   : > { %v1353_v56 = vsel %vm7807_vm9, %v1348_v51, %v1352_v21  ;;  %v767_v15 = vor.u32 %v765_v46, %v764_v14  ;;  %v769_v19 = vrot.slane %v764_v14, 4  ;;  %v773_v10 = vrot.slane %v771_v61, 7  ;;  %v6320_v51 = vld [vmem:[#allocation2 + $0x78] sm:$0xe] }
  0xd7   : > { %v1363_v6 = vsel %vm7807_vm9, %v1358_v53, %v1362_v35  ;;  %v950_v20 = vsel %vm7827_vm11, %v759_v52, %v949_v30  ;;  %v781_v28 = vrot.slane %v779_v49, 7  ;;  %v782_v40 = vshll.u32 %v6652_v13, 16 }
  0xd8   : > { %v6065_v37 = vcombine.low %v1353_v56, %v1363_v6  ;;  %v768_v27 = vsel %vm7821_vm10, %v760_v63, %v767_v15  ;;  %951 = vst [vmem:[#allocation2 + $0xa8] sm:$0xf] %v950_v20  ;;  %v954_v54 = vsel %vm7834_vm12, %v769_v19, %v953_v1  ;;  %v776_v57 = vor.u32 %v774_v62, %v773_v10 }
  0xd9   : > { %952 = vst.msk [vmem:[#allocation2 + $0xac] sm:$0xf] %vm239_vm1, %v768_v27  ;;  %955 = vst [vmem:[#allocation2 + $0xb0] sm:$0x1] %v954_v54  ;;  %v777_v12 = vrot.slane %v773_v10, 4  ;;  %v784_v11 = vor.u32 %v782_v40, %v781_v28  ;;  %v786_v25 = vrot.slane %v781_v28, 4  ;;  %v3625_v45 = vsel %vm8133_vm15, %v3623_v31, %v3624_v9 }
  0xda   : > { %6946 = vmatmul.mubr.msk.bf16.gmra.mrb[24].mxu1 %vm1462_vm8, %v6065_v37  ;;  %v957_v21 = vsel %vm7827_vm11, %v776_v57, %v956_v8  ;;  %v6350_v32 = vcombine.low %v8361_v22, %v3625_v45  ;;  %v6334_v33 = vrot.slane %v6318_v60, 9  ;;  %v3628_v35 = vrot.slane %v8180_v41, 5  ;;  %v8422_v40 = vld [vmem:[#allocation2 + $0x7c] sm:$0xf] }
  0xdb   : > { %v785_v55 = vsel %vm7821_vm10, %v777_v12, %v784_v11  ;;  %958 = vst [vmem:[#allocation2 + $0xb4] sm:$0xf] %v957_v21  ;;  %v961_v36 = vsel %vm7834_vm12, %v786_v25, %v960_v5  ;;  %v3631_v9 = vrot.slane %v8182_v26, 5  ;;  %v6335_v39 = vrot.slane %v6319_v18, 9  ;;  %v8430_v5 = vld [vmem:[#allocation2 + $0x80] sm:$0x1] }
  0xdc   : > { %959 = vst.msk [vmem:[#allocation2 + $0xb8] sm:$0xf] %vm239_vm1, %v785_v55  ;;  %962 = vst [vmem:[#allocation2 + $0xbc] sm:$0x1] %v961_v36  ;;  %7103 = vmatprep.mubr.msk.bf16.mxu0 %vm1462_vm8, %v6350_v32  ;;  %v3629_v22 = vsel %vm8133_vm15, %v6334_v33, %v3628_v35  ;;  %v3630_v41 = vrot.slane %v3628_v35, 4  ;;  %v3635_v46 = vrot.slane %v6255_v38, 5 }
  0xdd   : > { %v3638_v47 = vrot.slane %v6256_v2, 5  ;;  %v6336_v8 = vrot.slane %v6320_v51, 9  ;;  %v6261_v18 = vld [vmem:[#allocation2 + $0x88] sm:$0xf]  ;;  %v6321_v38 = vld [vmem:[#allocation2 + $0x84] sm:$0xe] }
  0xde   : > { %v3632_v44 = vsel %vm8133_vm15, %v3630_v41, %v3631_v9  ;;  %v3636_v26 = vsel %vm8133_vm15, %v6335_v39, %v3635_v46  ;;  %v3637_v31 = vrot.slane %v3635_v46, 4  ;;  %v6262_v36 = vld [vmem:[#allocation2 + $0x8c] sm:$0x1]  ;;  %v6264_v9 = vld [vmem:[#allocation2 + $0x94] sm:$0xf]  ;;  %v3642_v46 = vrot.slane %v8422_v40, 5 }
  0xdf   : > { %v8401_v50 = vld [vmem:[#allocation2 + $0xa8] sm:$0xf]  ;;  %v6351_v13 = vcombine.low %v3629_v22, %v3632_v44  ;;  %v3645_v44 = vrot.slane %v8430_v5, 5  ;;  %v3061_v0 = vshll.u32 %v8422_v40, 16  ;;  %v3065_v4 = vshrl.u32 %v8422_v40, 16 }
  0xe0   : > { %v8405_v14 = vld [vmem:[#allocation2 + $0xac] sm:$0xf]  ;;  %v8407_v30 = vld [vmem:[#allocation2 + $0xb0] sm:$0x1]  ;;  %v1365_v61 = vshrl.u32 %v8401_v50, 16  ;;  %v1368_v62 = vshll.u32 %v8401_v50, 16  ;;  %v3639_v1 = vsel %vm8133_vm15, %v3637_v31, %v3638_v47 }
  0xe1   : > { %v1374_v53 = vshll.u32 %v8405_v14, 16  ;;  %v1378_v52 = vshrl.u32 %v8405_v14, 16  ;;  %v1384_v63 = vshll.u32 %v8407_v30, 16  ;;  %7104 = vmatmul.mubr.msk.bf16.gmra.mrb[12].mxu0 %vm1462_vm8, %v6351_v13  ;;  %v6352_v19 = vcombine.low %v3636_v26, %v3639_v1 }
  0xe2   : > { %v1367_v49 = vrot.slane %v1365_v61, 4  ;;  %v1370_v56 = vrot.slane %v1368_v62, 5  ;;  %v8417_v15 = vld [vmem:[#allocation2 + $0xb4] sm:$0xf]  ;;  %v6337_v13 = vrot.slane %v6321_v38, 9  ;;  %v3649_v26 = vrot.slane %v6261_v18, 5 }
  0xe3   : > { %v1376_v10 = vrot.slane %v1374_v53, 5  ;;  %v1380_v6 = vrot.slane %v1378_v52, 4  ;;  %v8419_v20 = vld [vmem:[#allocation2 + $0xb8] sm:$0xf]  ;;  %v1389_v28 = vshrl.u32 %v8417_v15, 16  ;;  %v1392_v27 = vshll.u32 %v8417_v15, 16  ;;  %7107 = vmatprep.mubr.msk.bf16.mxu0 %vm1462_vm8, %v6352_v19 }
  0xe4   : > { %v1371_v60 = vor.u32 %v1370_v56, %v1367_v49  ;;  %v8424_v37 = vld [vmem:[#allocation2 + $0xbc] sm:$0x1]  ;;  %v1398_v54 = vshll.u32 %v8419_v20, 16  ;;  %v1402_v57 = vshrl.u32 %v8419_v20, 16  ;;  %v1386_v11 = vrot.slane %v1384_v63, 5 }
  0xe5   : > { %v1381_v12 = vor.u32 %v1380_v6, %v1376_v10  ;;  %v1391_v25 = vrot.slane %v1389_v28, 4  ;;  %v1408_v45 = vshll.u32 %v8424_v37, 16  ;;  %v1394_v32 = vrot.slane %v1392_v27, 5  ;;  %v6322_v53 = vld [vmem:[#allocation2 + $0x90] sm:$0xe] }
  0xe6   : > { %v1372_v21 = vrot.slane %v1371_v60, 4  ;;  %v1400_v33 = vrot.slane %v1398_v54, 5  ;;  %v1404_v35 = vrot.slane %v1402_v57, 4  ;;  %v3643_v62 = vsel %vm8133_vm15, %v6336_v8, %v3642_v46  ;;  %v6265_v56 = vld [vmem:[#allocation2 + $0x98] sm:$0x1] }
  0xe7   : > { %v1382_v2 = vrot.slane %v1381_v12, 4  ;;  %v1410_v55 = vrot.slane %v1408_v45, 5  ;;  %v1395_v41 = vor.u32 %v1394_v32, %v1391_v25  ;;  %v3644_v52 = vrot.slane %v3642_v46, 4  ;;  %v7554_v6 = vld [vmem:[#allocation2] sm:$0xf] }
  0xe8   : > { %v1377_v22 = vsel %vm7807_vm9, %v1372_v21, %v1376_v10  ;;  %v1405_v39 = vor.u32 %v1404_v35, %v1400_v33  ;;  %v3650_v63 = vsel %vm8133_vm15, %v6337_v13, %v3649_v26  ;;  %v3651_v1 = vrot.slane %v3649_v26, 4  ;;  %v8448_v28 = vld [vmem:[#allocation2 + $0x4] sm:$0xf]  ;;  %v6267_v27 = vld [vmem:[#allocation2 + $0xa0] sm:$0xf] }
  0xe9   : > { %v1387_v47 = vsel %vm7807_vm9, %v1382_v2, %v1386_v11  ;;  %v1396_v51 = vrot.slane %v1395_v41, 4  ;;  %v3652_v49 = vrot.slane %v6262_v36, 5  ;;  %v6084_v8 = vcombine.low %v7554_v6, %v8448_v28  ;;  %v6323_v54 = vld [vmem:[#allocation2 + $0x9c] sm:$0xe]  ;;  %v6268_v45 = vld [vmem:[#allocation2 + $0xa4] sm:$0x1] }
  0xea   : > { %v6066_v31 = vcombine.low %v1377_v22, %v1387_v47  ;;  %v1406_v61 = vrot.slane %v1405_v39, 4  ;;  %v3656_v60 = vrot.slane %v6264_v9, 5  ;;  %v3646_v12 = vsel %vm8133_vm15, %v3644_v52, %v3645_v44  ;;  %v6270_v2 = vld [vmem:[#allocation2 + $0xac] sm:$0xf]  ;;  %v6273_v36 = vld [vmem:[#allocation2 + $0xb8] sm:$0xf] }
  0xeb   : > { %v1401_v19 = vsel %vm7807_vm9, %v1396_v51, %v1400_v33  ;;  %v3653_v11 = vsel %vm8133_vm15, %v3651_v1, %v3652_v49  ;;  %v6338_v25 = vrot.slane %v6322_v53, 9  ;;  %v6353_v18 = vcombine.low %v3643_v62, %v3646_v12  ;;  %v6765_v22 = vld [vmem:[%s7774_s30 + $0x78] sm:$0xff]   ;;  %v6271_v46 = vld [vmem:[#allocation2 + $0xb0] sm:$0x1]  ;;  %v6324_v47 = vld [vmem:[#allocation2 + $0xa8] sm:$0xe] }
  0xec   : > { %6949 = vmatprep.mubr.msk.bf16.mxu1 %vm1462_vm8, %v6066_v31  ;;  %v1411_v10 = vsel %vm7807_vm9, %v1406_v61, %v1410_v55  ;;  %v6354_v21 = vcombine.low %v3650_v63, %v3653_v11  ;;  %v3658_v32 = vrot.slane %v3656_v60, 4  ;;  %v3659_v33 = vrot.slane %v6265_v56, 5  ;;  %v7556_v13 = vld [vmem:[#allocation2 + $0xc] sm:$0xf]  ;;  %v8464_v26 = vld [vmem:[#allocation2 + $0x10] sm:$0xf] }
  0xed   : > { %v6067_v57 = vcombine.low %v1401_v19, %v1411_v10  ;;  %v6339_v35 = vrot.slane %v6323_v54, 9  ;;  %v3663_v38 = vrot.slane %v6267_v27, 5  ;;  %7108 = vmatmul.mubr.msk.bf16.gmra.mrb[16].mxu0 %vm1462_vm8, %v6353_v18  ;;  %v3666_v55 = vrot.slane %v6268_v45, 5  ;;  %v7558_v53 = vld [vmem:[#allocation2 + $0x18] sm:$0xf] }
  0xee   : > { %7111 = vmatprep.mubr.msk.bf16.mxu0 %vm1462_vm8, %v6354_v21  ;;  %v3657_v41 = vsel %vm8133_vm15, %v6338_v25, %v3656_v60  ;;  %v3660_v39 = vsel %vm8133_vm15, %v3658_v32, %v3659_v33  ;;  %v3670_v44 = vrot.slane %v6270_v2, 5  ;;  %v6085_v31 = vcombine.low %v7556_v13, %v8464_v26  ;;  %v8471_v52 = vld [vmem:[#allocation2 + $0x1c] sm:$0xf]  ;;  %v6325_v49 = vld [vmem:[#allocation2 + $0xb4] sm:$0xe] }
  0xef   : > { %6950 = vmatmul.mubr.msk.bf16.gmra.mrb[28].mxu1 %vm1462_vm8, %v6067_v57  ;;  %v3665_v9 = vrot.slane %v3663_v38, 4  ;;  %v3664_v51 = vsel %vm8133_vm15, %v6339_v35, %v3663_v38  ;;  %v3677_v62 = vrot.slane %v6273_v36, 5  ;;  %v6086_v63 = vcombine.low %v7558_v53, %v8471_v52  ;;  %v6274_v1 = vld [vmem:[#allocation2 + $0xbc] sm:$0x1]  ;;  %v7560_v10 = vld [vmem:[%s9652_s1 + $0x4] sm:$0x3] }
  0xf0   : > { %6955 = vmatprep.mubr.msk.bf16.mxu1 %vm1462_vm8, %v6084_v8  ;;  %v6749_v56 = vunpack.c.l.bf16 %v6765_v22  ;;  %v6750_v19 = vunpack.c.h.bf16 %v6765_v22  ;;  %v2230_v6 = vsel %vm1511_vm0, %v7560_v10, 0  ;;  %v6355_v8 = vcombine.low %v3657_v41, %v3660_v39  ;;  %v7561_v12 = vld [vmem:[%s9653_s2] ss:$0 sm:$0xff]  ;;  %v8484_v45 = vld [vmem:[%s9652_s1 + $0x6] sm:$0x3] }
  0xf1   : > { %v3667_v61 = vsel %vm8133_vm15, %v3665_v9, %v3666_v55  ;;  %v6340_v60 = vrot.slane %v6324_v47, 9  ;;  %v3673_v27 = vrot.slane %v6271_v46, 5  ;;  %v3672_v57 = vrot.slane %v3670_v44, 4  ;;  %v7562_v33 = vld [vmem:[%s9653_s2 + $0x1] ss:$0 sm:$0xff] }
  0xf2   : > { %v6356_v54 = vcombine.low %v3664_v51, %v3667_v61  ;;  %v394_v11 = vmul.f32 %v7561_v12, %v6749_v56  ;;  %v395_v25 = vmul.f32 %v7561_v12, %v6750_v19  ;;  %v6341_v18 = vrot.slane %v6325_v49, 9  ;;  %v7563_v22 = vld [vmem:[#allocation2 + $0x24] sm:$0xf]  ;;  %v8499_v41 = vld [vmem:[#allocation2 + $0x28] sm:$0xf] }
  0xf3   : > { %v3679_v21 = vrot.slane %v3677_v62, 4  ;;  %v3680_v32 = vrot.slane %v6274_v1, 5  ;;  %v3671_v2 = vsel %vm8133_vm15, %v6340_v60, %v3670_v44  ;;  %v3674_v55 = vsel %vm8133_vm15, %v3672_v57, %v3673_v27  ;;  %v7565_v46 = vld [vmem:[#allocation2 + $0x30] sm:$0xf]  ;;  %v8502_v47 = vld [vmem:[#allocation2 + $0x34] sm:$0xf] }
  0xf4   : > { %v431_v35 = vadd.f32 %v7562_v33, %v394_v11  ;;  %v432_v38 = vadd.f32 %v7562_v33, %v395_v25  ;;  %v6087_v39 = vcombine.low %v7563_v22, %v8499_v41  ;;  %v6088_v13 = vcombine.low %v7565_v46, %v8502_v47  ;;  %v963_v10 = vld [vmem:[#allocation2 + $0xc0] sm:$0xf]  ;;  %v7567_v11 = vld [vmem:[#allocation2 + $0x3c] sm:$0xf] }
  0xf5   : > { %7112 = vmatmul.mubr.msk.bf16.gmra.mrb[20].mxu0 %vm1462_vm8, %v6355_v8  ;;  %v3681_v44 = vsel %vm8133_vm15, %v3679_v21, %v3680_v32  ;;  %v6357_v1 = vcombine.low %v3671_v2, %v3674_v55  ;;  %v8519_v25 = vld [vmem:[#allocation2 + $0x40] sm:$0xf]  ;;  %v7569_v21 = vld [vmem:[#allocation2 + $0x48] sm:$0xf]  ;;  %v8523_v32 = vld [vmem:[#allocation2 + $0x4c] sm:$0xf] }
  0xf6   : > { %7115 = vmatprep.mubr.msk.bf16.mxu0 %vm1462_vm8, %v6356_v54  ;;  %v6653_v36 = vpack.c.bf16 %v431_v35, %v431_v35  ;;  %v6654_v9 = vpack.c.bf16 %v432_v38, %v432_v38  ;;  %v6090_v58 = vcombine.low %v7569_v21, %v8523_v32  ;;  %v7571_v2 = vld [vmem:[#allocation2 + $0x54] sm:$0xf]  ;;  %v8530_v55 = vld [vmem:[#allocation2 + $0x58] sm:$0xf]  ;;  %v8533_v46 = vrot.slane %v3061_v0, 5 }
  0xf7   : > { %6956 = vmatmul.mubr.msk.bf16.vlgmr.msra.gmra.mrb[0].mxu1 %vm1462_vm8, %v6085_v31  ;;  %v3678_v31 = vsel %vm8133_vm15, %v6341_v18, %v3677_v62  ;;  %v6089_v18 = vcombine.low %v7567_v11, %v8519_v25  ;;  %v7578_v11 = vld [vmem:[#allocation2 + $0x14] sm:$0x1]  ;;  %v1971_v21 = vld [vmem:[#allocation2 + $0x24] sm:$0xe] }
  0xf8   : > { %6988 = vmatpush3.bf16.msra.mxu1 %v2230_v6  ;;  %6959 = vmatprep.mubr.msk.bf16.mxu1 %vm1462_vm8, %v6086_v63  ;;  %v788_v51 = vshrl.u32 %v6653_v36, 16  ;;  %v791_v61 = vshll.u32 %v6653_v36, 16  ;;  %v796_v53 = vshrl.u32 %v6654_v9, 16  ;;  %v799_v63 = vshll.u32 %v6654_v9, 16  ;;  %v967_v6 = vld [vmem:[#allocation2 + $0xc8] sm:$0x1] }
  0xf9   : > { %7486 = vmatprep.subr.msk.bf16.mxu1 %vm1511_vm0, %v8484_v45  ;;  %v6358_v49 = vcombine.low %v3678_v31, %v3681_v44  ;;  %v6091_v36 = vcombine.low %v7571_v2, %v8530_v55  ;;  %9684 = vst [vmem:[#allocation4_spill] sm:$0xff] %v8533_v46  ;;  %v7573_v31 = vld [vmem:[#allocation2 + $0x60] sm:$0xf]  ;;  %v8535_v44 = vld [vmem:[#allocation2 + $0x64] sm:$0xf] }
  0xfa   : > { %v790_v56 = vrot.slane %v788_v51, 7  ;;  %v798_v19 = vrot.slane %v796_v53, 7  ;;  %v6092_v40 = vcombine.low %v7573_v31, %v8535_v44  ;;  %v1972_v31 = vld [vmem:[#allocation2 + $0x30] sm:$0xe] }
  0xfc   : > { %v793_v8 = vor.u32 %v791_v61, %v790_v56  ;;  %v794_v60 = vrot.slane %v790_v56, 4  ;;  %v801_v62 = vor.u32 %v799_v63, %v798_v19  ;;  %v803_v27 = vrot.slane %v798_v19, 4  ;;  %v7519_v63 = vld [vmem:[#allocation2 + $0x18] sm:$0xff]  }
  0xfd   : > { %7116 = vmatmul.mubr.msk.bf16.gmra.mrb[24].mxu0 %vm1462_vm8, %v6357_v1  ;;  %v3071_v56 = vshll.u32 %v8430_v5, 16  ;;  %v2021_v19 = vrot.slane %v8448_v28, 5  ;;  %v1970_v5 = vld [vmem:[#allocation2 + $0x18] sm:$0xe]  ;;  %v2031_v28 = vrot.slane %v7578_v11, 5  ;;  %v6099_v11 = vcombine.low %v8417_v15, %v8419_v20 }
  0xfe   : > { %7119 = vmatprep.mubr.msk.bf16.mxu0 %vm1462_vm8, %v6358_v49  ;;  %v802_v54 = vsel %vm7821_vm10, %v794_v60, %v801_v62  ;;  %v964_v57 = vsel %vm7827_vm11, %v793_v8, %v963_v10  ;;  %v968_v12 = vsel %vm7834_vm12, %v803_v27, %v967_v6  ;;  %v2028_v10 = vrot.slane %v8464_v26, 5  ;;  %v1968_v6 = vld [vmem:[#allocation2] sm:$0xe]  ;;  %v1969_v8 = vld [vmem:[#allocation2 + $0xc] sm:$0xe] }
  0xff   : > { %6960 = vmatmul.mubr.msk.bf16.gmra.mrb[4].mxu1 %vm1462_vm8, %v6087_v39  ;;  %965 = vst [vmem:[#allocation2 + $0xc0] sm:$0xf] %v964_v57  ;;  %966 = vst.msk [vmem:[#allocation2 + $0xc4] sm:$0xf] %vm239_vm1, %v802_v54  ;;  %v2035_v60 = vrot.slane %v8471_v52, 5  ;;  %v6094_v26 = vcombine.low %v8271_v29, %v8273_v7  ;;  %v2042_v52 = vrot.slane %v8499_v41, 5  ;;  %v6095_v29 = vcombine.low %v8285_v16, %v8287_v17 }
 0x100   : > { %6963 = vmatprep.mubr.msk.bf16.mxu1 %vm1462_vm8, %v6088_v13  ;;  %969 = vst [vmem:[#allocation2 + $0xc8] sm:$0x1] %v968_v12  ;;  %v3067_v13 = vrot.slane %v3065_v4, 4  ;;  %v7575_v62 = vld [vmem:[#allocation2 + $0x8] sm:$0x1]  ;;  %v6116_v0 = vrot.slane %v1968_v6, 9  ;;  %v6096_v41 = vcombine.low %v8324_v42, %v8319_v23  ;;  %v6098_v16 = vcombine.low %v8401_v50, %v8405_v14 }
 0x101   : > { %v2024_v27 = vrot.slane %v7575_v62, 5  ;;  %v7576_v54 = vld [vmem:[#allocation2 + $0x6c] sm:$0xf]  ;;  %v8550_v57 = vld [vmem:[#allocation2 + $0x70] sm:$0xf]  ;;  %v2023_v4 = vrot.slane %v2021_v19, 4 }
 0x102   : > { %v3068_v1 = vor.u32 %v3067_v13, %v8533_v46  ;;  %v6093_v12 = vcombine.low %v7576_v54, %v8550_v57  ;;  %v6118_v2 = vrot.slane %v1970_v5, 9  ;;  %v7521_v7 = vld [vmem:[#allocation2 + $0x30] sm:$0xff]   ;;  %v6119_v13 = vrot.slane %v1971_v21, 9 }
 0x103   : > { %v8576_v17 = vsel %vm8133_vm15, %v6116_v0, %v2021_v19  ;;  %v8580_v23 = vsel %vm8133_vm15, %v2023_v4, %v2024_v27  ;;  %v2056_v42 = vrot.slane %v8519_v25, 5  ;;  %v2063_v27 = vrot.slane %v8523_v32, 5  ;;  %v7522_v32 = vld [vmem:[#allocation2 + $0x3c] sm:$0xff]   ;;  %v7523_v4 = vld [vmem:[#allocation2 + $0x48] sm:$0xff]  }
 0x104   : > { %v8599_v19 = vsel %vm8133_vm15, %v6118_v2, %v2035_v60  ;;  %v8608_v6 = vsel %vm8133_vm15, %v6119_v13, %v2042_v52  ;;  %v2070_v0 = vrot.slane %v8530_v55, 5  ;;  %v6442_v13 = vld [vmem:[#allocation2 + $0x1c] sm:$0xf]  ;;  %v2108_v46 = vrot.slane %v7593_v3, 5 }
 0x105   : > { %vm5669_vm1 = vcmask 60416  }
 0x106   : > { %v6276_v33 = vld [vmem:[#allocation2 + $0xc4] sm:$0xf]  ;;  %v6326_v38 = vld [vmem:[#allocation2 + $0xc0] sm:$0xe] }
 0x107   : > { %6964 = vmatmul.mubr.msk.bf16.gmra.mrb[8].mxu1 %vm1462_vm8, %v6089_v18  ;;  %v6277_v35 = vld [vmem:[#allocation2 + $0xc8] sm:$0x1]  ;;  %v6342_v9 = vrot.slane %v6326_v38, 9  ;;  %v3684_v22 = vrot.slane %v6276_v33, 5  ;;  %v8554_v18 = vrot.slane %v3068_v1, 4  ;;  %v6117_v33 = vrot.slane %v1969_v8, 9 }
 0x108   : > { %6967 = vmatprep.mubr.msk.bf16.mxu1 %vm1462_vm8, %v6090_v58  ;;  %v3687_v39 = vrot.slane %v6277_v35, 5  ;;  %v8559_v58 = vrot.slane %v3071_v56, 5  ;;  %v7520_v35 = vld [vmem:[#allocation2 + $0x24] sm:$0xff]   ;;  %v2030_v38 = vrot.slane %v2028_v10, 4  ;;  %v7581_v8 = vld [vmem:[#allocation2 + $0x38] sm:$0x1] }
 0x109   : > { %v3685_v51 = vsel %vm8133_vm15, %v6342_v9, %v3684_v22  ;;  %v3686_v61 = vrot.slane %v3684_v22, 4  ;;  %9685 = vst [vmem:[#allocation5_spill] sm:$0xff] %v8554_v18  ;;  %v7579_v9 = vld [vmem:[#allocation2 + $0x20] sm:$0x1]  ;;  %v1974_v1 = vld [vmem:[#allocation2 + $0x48] sm:$0xe] }
 0x10a   : > { %9686 = vst [vmem:[#allocation6_spill] sm:$0xff] %v8559_v58  ;;  %v2038_v22 = vrot.slane %v7579_v9, 5  ;;  %v8595_v56 = vsel %vm8133_vm15, %v2030_v38, %v2031_v28  ;;  %v2052_v62 = vrot.slane %v7581_v8, 5  ;;  %v6122_v5 = vrot.slane %v1974_v1, 9  ;;  %v6445_v8 = vld [vmem:[#allocation2 + $0x28] sm:$0xf] }
 0x10b   : > { %v3688_v53 = vsel %vm8133_vm15, %v3686_v61, %v3687_v39  ;;  %v4876_v39 = vsel %vm1511_vm0, %v8240_v48, 0  ;;  %v7580_v61 = vld [vmem:[#allocation2 + $0x2c] sm:$0x1]  ;;  %v1973_v48 = vld [vmem:[#allocation2 + $0x3c] sm:$0xe]  ;;  %v2058_v28 = vrot.slane %v2056_v42, 4 }
 0x10c   : > { %v6359_v49 = vcombine.low %v3685_v51, %v3688_v53  ;;  %v2044_v51 = vrot.slane %v2042_v52, 4  ;;  %v2045_v53 = vrot.slane %v7580_v61, 5  ;;  %v1975_v52 = vld [vmem:[#allocation2 + $0x54] sm:$0xe]  ;;  %v8626_v38 = vsel %vm1511_vm0, %v8484_v45, 0 }
 0x10d   : > { %v2065_v9 = vrot.slane %v2063_v27, 4  ;;  %v1976_v61 = vld [vmem:[#allocation2 + $0x60] sm:$0xe] }
 0x10e   : > { %7120 = vmatmul.mubr.msk.bf16.gmra.mrb[28].mxu0 %vm1462_vm8, %v6359_v49  ;;  %v8586_v49 = vld [vmem:[%s9652_s1 + $0x10] sm:$0x3]  ;;  %v7594_v18 = vld [vmem:[#allocation2 + $0xa0] sm:$0xf] }
 0x10f   : > { %6968 = vmatmul.mubr.msk.bf16.gmra.mrb[12].mxu1 %vm1462_vm8, %v6091_v36  ;;  %7125 = vmatprep.mubr.msk.bf16.mxu0 %vm1462_vm8, %v7519_v63  ;;  %v2037_v36 = vrot.slane %v2035_v60, 4  ;;  %v2049_v63 = vrot.slane %v8502_v47, 5  ;;  %v8591_v47 = vsel %vm8133_vm15, %v6117_v33, %v2028_v10  ;;  %v6120_v10 = vrot.slane %v1972_v31, 9 }
 0x110   : > { %6971 = vmatprep.mubr.msk.bf16.mxu1 %vm1462_vm8, %v6092_v40  ;;  %v6097_v40 = vcombine.low %v8353_v59, %v8355_v24  ;;  %v8613_v60 = vsel %vm8133_vm15, %v2044_v51, %v2045_v53  ;;  %v8648_v31 = vsel %vm8133_vm15, %v6122_v5, %v2063_v27  ;;  %v6123_v51 = vrot.slane %v1975_v52, 9  ;;  %v6444_v53 = vld [vmem:[#allocation2 + $0x24] sm:$0xf] }
 0x111   : > { %v8603_v25 = vsel %vm8133_vm15, %v2037_v36, %v2038_v22  ;;  %v2051_v54 = vrot.slane %v2049_v63, 4  ;;  %v8635_v36 = vsel %vm8133_vm15, %v6120_v10, %v2049_v63  ;;  %v7583_v22 = vld [vmem:[#allocation2 + $0x50] sm:$0x1]  ;;  %v2077_v10 = vrot.slane %v8535_v44, 5 }
 0x112   : > { %v4403_v27 = vshll.u32 %v6442_v13, 16  ;;  %v8663_v44 = vsel %vm8133_vm15, %v6123_v51, %v2070_v0  ;;  %v2084_v52 = vrot.slane %v8550_v57, 5  ;;  %v7525_v57 = vld [vmem:[#allocation2 + $0x60] sm:$0xff]   ;;  %v2112_v58 = vrot.slane %v7594_v18, 5 }
 0x113   : > { %v8640_v45 = vsel %vm8133_vm15, %v2051_v54, %v2052_v62 }
 0x114   : > { %v8670_v2 = vrot.slane %v4403_v27, 5  ;;  %v9696_v3 = vcombine.low %v8635_v36, %v8640_v45  ;;  %v2114_v36 = vrot.slane %v2112_v58, 4  ;;  %v7595_v45 = vld [vmem:[#allocation2 + $0xa4] sm:$0x1] }
 0x116   : > { %7126 = vmatmul.mubr.msk.bf16.vlgmr.msra.gmra.mrb[0].mxu0 %vm1462_vm8, %v7520_v35  ;;  %v7589_v35 = vld [vmem:[#allocation2 + $0x80] sm:$0x1] }
 0x117   : > { %6972 = vmatmul.mubr.msk.bf16.gmra.mrb[16].mxu1 %vm1462_vm8, %v6093_v12  ;;  %7158 = vmatpush3.bf16.msra.mxu0 %v4876_v39  ;;  %v6121_v12 = vrot.slane %v1973_v48, 9  ;;  %v2066_v39 = vrot.slane %v7583_v22, 5  ;;  %v7584_v48 = vld [vmem:[#allocation2 + $0x5c] sm:$0x1]  ;;  %v4431_v22 = vshrl.u32 %v6445_v8, 16 }
 0x118   : > { %6975 = vmatprep.mubr.msk.bf16.mxu1 %vm1462_vm8, %v6094_v26  ;;  %7129 = vmatprep.mubr.msk.bf16.mxu0 %vm1462_vm8, %v7521_v7  ;;  %v7582_v26 = vld [vmem:[#allocation2 + $0x44] sm:$0x1]  ;;  %v6441_v7 = vld [vmem:[#allocation2 + $0x18] sm:$0xf]  ;;  %v2073_v1 = vrot.slane %v7584_v48, 5 }
 0x119   : > { %7492 = vmatprep.subr.msk.bf16.mxu0 %vm1511_vm0, %v8586_v49  ;;  %v2059_v21 = vrot.slane %v7582_v26, 5  ;;  %v4394_v62 = vshrl.u32 %v6441_v7, 16  ;;  %v4397_v54 = vshll.u32 %v6441_v7, 16  ;;  %v8659_v5 = vsel %vm8133_vm15, %v2065_v9, %v2066_v39  ;;  %v7524_v7 = vld [vmem:[#allocation2 + $0x54] sm:$0xff]   ;;  %v7585_v48 = vld [vmem:[#allocation2 + $0x68] sm:$0x1] }
 0x11a   : > { %v4418_v26 = vshrl.u32 %v6444_v53, 16  ;;  %v2080_v9 = vrot.slane %v7585_v48, 5  ;;  %v4433_v24 = vrot.slane %v4431_v22, 4 }
 0x11b   : > { %v8652_v63 = vsel %vm8133_vm15, %v2058_v28, %v2059_v21  ;;  %v6124_v28 = vrot.slane %v1976_v61, 9  ;;  %v4421_v21 = vshll.u32 %v6444_v53, 16  ;;  %v6443_v61 = vld [vmem:[#allocation2 + $0x20] sm:$0x1]  ;;  %v4396_v55 = vrot.slane %v4394_v62, 4 }
 0x11c   : > { %v4399_v53 = vrot.slane %v4397_v54, 5  ;;  %v7586_v62 = vld [vmem:[#allocation2 + $0x74] sm:$0x1]  ;;  %v4413_v50 = vshll.u32 %v6443_v61, 16 }
 0x11d   : > { %v2087_v54 = vrot.slane %v7586_v62, 5  ;;  %v1978_v62 = vld [vmem:[#allocation2 + $0x78] sm:$0xe] }
 0x11e   : > { %7130 = vmatmul.mubr.msk.bf16.gmra.mrb[4].mxu0 %vm1462_vm8, %v7522_v32  ;;  %v4427_v32 = vshll.u32 %v6445_v8, 16  ;;  %v4423_v8 = vrot.slane %v4421_v21, 5  ;;  %v6446_v21 = vld [vmem:[#allocation2 + $0x2c] sm:$0x1]  ;;  %v4400_v22 = vor.u32 %v4399_v53, %v4396_v55  ;;  %v4415_v53 = vrot.slane %v4413_v50, 5 }
 0x11f   : > { %6976 = vmatmul.mubr.msk.bf16.gmra.mrb[20].mxu1 %vm1462_vm8, %v6095_v29  ;;  %v8644_v29 = vsel %vm8133_vm15, %v6121_v12, %v2056_v42  ;;  %v1977_v42 = vld [vmem:[#allocation2 + $0x6c] sm:$0xe]  ;;  %v4407_v12 = vshrl.u32 %v6442_v13, 16  ;;  %7133 = vmatprep.mubr.msk.bf16.mxu0 %vm1462_vm8, %v7523_v4  ;;  %v2079_v4 = vrot.slane %v2077_v10, 4  ;;  %v4437_v55 = vshll.u32 %v6446_v21, 16 }
 0x120   : > { %6979 = vmatprep.mubr.msk.bf16.mxu1 %vm1462_vm8, %v6096_v41  ;;  %v2072_v41 = vrot.slane %v2070_v0, 4  ;;  %v6125_v39 = vrot.slane %v1977_v42, 9  ;;  %v2086_v42 = vrot.slane %v2084_v52, 4  ;;  %v8684_v59 = vrot.slane %v4427_v32, 5 }
 0x121   : > { %v4409_v0 = vrot.slane %v4407_v12, 4  ;;  %v8704_v12 = vld [vmem:[#allocation2 + $0x34] sm:$0xf] }
 0x122   : > { %v8668_v13 = vsel %vm8133_vm15, %v2072_v41, %v2073_v1  ;;  %v4420_v1 = vrot.slane %v4418_v26, 4  ;;  %v8692_v26 = vsel %vm8133_vm15, %v6124_v28, %v2077_v10  ;;  %v8701_v32 = vsel %vm8133_vm15, %v6125_v39, %v2084_v52  ;;  %9687 = vst [vmem:[#allocation7_spill] sm:$0xff] %v8704_v12  ;;  %v7587_v28 = vld [vmem:[#allocation2 + $0x7c] sm:$0xf] }
 0x123   : > { %v4410_v48 = vor.u32 %v4409_v0, %v8670_v2  ;;  %v2091_v61 = vrot.slane %v7587_v28, 5  ;;  %v4434_v52 = vor.u32 %v4433_v24, %v8684_v59  ;;  %v6126_v0 = vrot.slane %v1978_v62, 9 }
 0x124   : > { %v4424_v10 = vor.u32 %v4423_v8, %v4420_v1  ;;  %v4451_v51 = vshll.u32 %v8704_v12, 16  ;;  %v7526_v1 = vld [vmem:[#allocation2 + $0x6c] sm:$0xff]   ;;  %v4401_v8 = vrot.slane %v4400_v22, 4  ;;  %v9688_v62 = vcombine.low %v8576_v17, %v8580_v23 }
 0x125   : > { %v4411_v28 = vrot.slane %v4410_v48, 4  ;;  %v2093_v24 = vrot.slane %v2091_v61, 4  ;;  %v4435_v22 = vrot.slane %v4434_v52, 4  ;;  %v4439_v48 = vrot.slane %v4437_v55, 5 }
 0x126   : > { %7134 = vmatmul.mubr.msk.bf16.gmra.mrb[8].mxu0 %vm1462_vm8, %v7524_v7  ;;  %v1979_v7 = vld [vmem:[#allocation2 + $0x84] sm:$0xe]  ;;  %v4406_v17 = vsel %vm7807_vm9, %v4401_v8, %v8670_v2  ;;  %v8736_v52 = vsel %vm1511_vm0, %v8586_v49, 0  ;;  %v8740_v55 = vsel %vm8133_vm15, %v6126_v0, %v2091_v61  ;;  %v8758_v0 = vld [vmem:[#allocation2 + $0x44] sm:$0x1] }
 0x127   : > { %6980 = vmatmul.mubr.msk.bf16.gmra.mrb[24].mxu1 %vm1462_vm8, %v6097_v40  ;;  %v6447_v40 = vld [vmem:[#allocation2 + $0x30] sm:$0xf]  ;;  %7137 = vmatprep.mubr.msk.bf16.mxu0 %vm1462_vm8, %v7525_v57  ;;  %v4455_v57 = vshrl.u32 %v8704_v12, 16  ;;  %v6127_v33 = vrot.slane %v1979_v7, 9  ;;  %v4416_v23 = vsel %vm7807_vm9, %v4411_v28, %v4415_v53  ;;  %9691 = vst [vmem:[#allocation10_spill] sm:$0xff] %v8758_v0  ;;  %v4440_v8 = vsel %vm7807_vm9, %v4435_v22, %v4439_v48  ;;  %v7531_v12 = vld [vmem:[#allocation2 + $0xa8] sm:$0xff]  }
 0x128   : > { %6983 = vmatprep.mubr.msk.bf16.mxu1 %vm1462_vm8, %v6098_v16  ;;  %v8697_v16 = vsel %vm8133_vm15, %v2079_v4, %v2080_v9  ;;  %v4442_v27 = vshrl.u32 %v6447_v40, 16  ;;  %v4445_v41 = vshll.u32 %v6447_v40, 16  ;;  %v8709_v4 = vsel %vm8133_vm15, %v2086_v42, %v2087_v54  ;;  %v7588_v9 = vld [vmem:[#allocation2 + $0x88] sm:$0xf]  ;;  %v7527_v42 = vld [vmem:[#allocation2 + $0x78] sm:$0xff]  }
 0x129   : > { %v2098_v39 = vrot.slane %v7588_v9, 5  ;;  %v2094_v40 = vrot.slane %v7589_v35, 5  ;;  %v4425_v54 = vrot.slane %v4424_v10, 4  ;;  %v7590_v35 = vld [vmem:[#allocation2 + $0x8c] sm:$0x1]  ;;  %v8726_v10 = vrot.slane %v4451_v51, 5 }
 0x12a   : > { %v4444_v50 = vrot.slane %v4442_v27, 4  ;;  %v4447_v21 = vrot.slane %v4445_v41, 5  ;;  %v2101_v7 = vrot.slane %v7590_v35, 5  ;;  %v4457_v27 = vrot.slane %v4455_v57, 4  ;;  %v6450_v41 = vld [vmem:[#allocation2 + $0x3c] sm:$0xf] }
 0x12b   : > { %v2100_v9 = vrot.slane %v2098_v39, 4  ;;  %v8742_v51 = vld [vmem:[#allocation2 + $0x38] sm:$0x1]  ;;  %v8744_v57 = vld [vmem:[#allocation2 + $0x40] sm:$0xf]  ;;  %v4430_v2 = vsel %vm7807_vm9, %v4425_v54, %v8684_v59  ;;  %v8752_v53 = vsel %vm8133_vm15, %v2093_v24, %v2094_v40  ;;  %v8756_v49 = vsel %vm8133_vm15, %v6127_v33, %v2098_v39  ;;  %v7529_v35 = vld [vmem:[#allocation2 + $0x90] sm:$0xff]  }
 0x12c   : > { %9689 = vst [vmem:[#allocation8_spill] sm:$0xff] %v8742_v51  ;;  %9690 = vst [vmem:[#allocation9_spill] sm:$0xff] %v8744_v57  ;;  %v4448_v61 = vor.u32 %v4447_v21, %v4444_v50  ;;  %v4466_v59 = vshrl.u32 %v6450_v41, 16  ;;  %v4458_v40 = vor.u32 %v4457_v27, %v8726_v10  ;;  %v4461_v54 = vshll.u32 %v8742_v51, 16  ;;  %v8770_v24 = vld [vmem:[#allocation2 + $0x4c] sm:$0xf] }
 0x12d   : > { %v8764_v28 = vsel %vm8133_vm15, %v2100_v9, %v2101_v7  ;;  %v4475_v33 = vshll.u32 %v8744_v57, 16  ;;  %v4479_v39 = vshrl.u32 %v8744_v57, 16  ;;  %v7528_v50 = vld [vmem:[#allocation2 + $0x84] sm:$0xff]   ;;  %v8772_v21 = vcombine.low %v4406_v17, %v4416_v23  ;;  %v1980_v23 = vld [vmem:[#allocation2 + $0x90] sm:$0xe]  ;;  %v7530_v51 = vld [vmem:[#allocation2 + $0x9c] sm:$0xff]  }
 0x12e   : > { %7138 = vmatmul.mubr.msk.bf16.gmra.mrb[12].mxu0 %vm1462_vm8, %v7526_v1  ;;  %v6453_v1 = vld [vmem:[#allocation2 + $0x48] sm:$0xf]  ;;  %v9692_v9 = vcombine.low %v8591_v47, %v8595_v56  ;;  %v8779_v7 = vcombine.low %v4430_v2, %v4440_v8  ;;  %v4449_v17 = vrot.slane %v4448_v61, 4  ;;  %v4468_v47 = vrot.slane %v4466_v59, 4  ;;  %v1981_v59 = vld [vmem:[#allocation2 + $0x9c] sm:$0xe] }
 0x12f   : > { %6984 = vmatmul.mubr.msk.bf16.gmra.mrb[28].mxu1 %vm1462_vm8, %v6099_v11  ;;  %7141 = vmatprep.mubr.msk.bf16.mxu0 %vm1462_vm8, %v7527_v42  ;;  %v4469_v42 = vshll.u32 %v6450_v41, 16  ;;  %v4490_v22 = vshrl.u32 %v6453_v1, 16  ;;  %v4493_v48 = vshll.u32 %v6453_v1, 16  ;;  %v6456_v11 = vld [vmem:[#allocation2 + $0x54] sm:$0xf]  ;;  %v9693_v1 = vcombine.low %v8599_v19, %v8603_v25 }
 0x130   : > { %6989 = vmatprep.mubr.msk.bf16.mxu1 %vm1462_vm8, %v9688_v62  ;;  %v4485_v62 = vshll.u32 %v8758_v0, 16  ;;  %v4499_v2 = vshll.u32 %v8770_v24, 16  ;;  %v4503_v8 = vshrl.u32 %v8770_v24, 16  ;;  %v4459_v27 = vrot.slane %v4458_v40, 4  ;;  %v8804_v40 = vld [vmem:[#allocation2 + $0x50] sm:$0x1] }
 0x131   : > { %v4471_v56 = vrot.slane %v4469_v42, 5  ;;  %v4463_v41 = vrot.slane %v4461_v54, 5  ;;  %v8794_v61 = vrot.slane %v4475_v33, 5  ;;  %v4481_v15 = vrot.slane %v4479_v39, 4 }
 0x132   : > { %v8801_v19 = vrot.slane %v4485_v62, 5  ;;  %v6128_v25 = vrot.slane %v1980_v23, 9  ;;  %v4492_v42 = vrot.slane %v4490_v22, 4  ;;  %v4514_v54 = vshrl.u32 %v6456_v11, 16 }
 0x133   : > { %v4517_v33 = vshll.u32 %v6456_v11, 16  ;;  %v4472_v62 = vor.u32 %v4471_v56, %v4468_v47  ;;  %v4505_v23 = vrot.slane %v4503_v8, 4  ;;  %v4464_v22 = vsel %vm7807_vm9, %v4459_v27, %v4463_v41  ;;  %v8821_v27 = vld [vmem:[#allocation2 + $0x5c] sm:$0x1] }
 0x134   : > { %v6129_v11 = vrot.slane %v1981_v59, 9 }
 0x135   : > { %v4519_v41 = vrot.slane %v4517_v33, 5 }
 0x136   : > { %7142 = vmatmul.mubr.msk.bf16.gmra.mrb[16].mxu0 %vm1462_vm8, %v7528_v50  ;;  %v4454_v50 = vsel %vm7807_vm9, %v4449_v17, %v8726_v10  ;;  %v4509_v10 = vshll.u32 %v8804_v40, 16  ;;  %v9695_v17 = vcombine.low %v8608_v6, %v8613_v60  ;;  %v1982_v6 = vld [vmem:[#allocation2 + $0xa8] sm:$0xe]  ;;  %v2119_v60 = vrot.slane %v8405_v14, 5 }
 0x137   : > { %6990 = vmatmul.mubr.msk.bf16.vlgmr.msra.gmra.mrb[0].mxu1 %vm1462_vm8, %v9692_v9  ;;  %v8792_v9 = vld [vmem:[#allocation2 + $0x58] sm:$0xf]  ;;  %7145 = vmatprep.mubr.msk.bf16.mxu0 %vm1462_vm8, %v7529_v35  ;;  %v7592_v35 = vld [vmem:[#allocation2 + $0x94] sm:$0xf]  ;;  %v8829_v18 = vcombine.low %v4454_v50, %v4464_v22  ;;  %v6459_v50 = vld [vmem:[#allocation2 + $0x60] sm:$0xf] }
 0x138   : > { %7022 = vmatpush3.bf16.msra.mxu1 %v8626_v38  ;;  %6993 = vmatprep.mubr.msk.bf16.mxu1 %vm1462_vm8, %v9693_v1  ;;  %9694 = vst [vmem:[#allocation11_spill] sm:$0xff] %v8792_v9  ;;  %v7591_v38 = vld [vmem:[%s9652_s1 + $0x8] sm:$0x3]  ;;  %v4495_v1 = vrot.slane %v4493_v48, 5  ;;  %v4523_v39 = vshll.u32 %v8792_v9, 16  ;;  %v4527_v0 = vshrl.u32 %v8792_v9, 16  ;;  %v4482_v48 = vor.u32 %v4481_v15, %v8794_v61 }
 0x139   : > { %7488 = vmatprep.subr.msk.bf16.mxu1 %vm1511_vm0, %v7591_v38  ;;  %v8811_v38 = vrot.slane %v4499_v2, 5  ;;  %v2105_v57 = vrot.slane %v7592_v35, 5  ;;  %v4516_v15 = vrot.slane %v4514_v54, 4  ;;  %v4473_v2 = vrot.slane %v4472_v62, 4  ;;  %v1983_v35 = vld [vmem:[#allocation2 + $0xb4] sm:$0xe] }
 0x13a   : > { %v4496_v9 = vor.u32 %v4495_v1, %v4492_v42  ;;  %v8823_v47 = vrot.slane %v4523_v39, 5  ;;  %v4529_v56 = vrot.slane %v4527_v0, 4  ;;  %v4483_v59 = vrot.slane %v4482_v48, 4 }
 0x13b   : > { %v4506_v8 = vor.u32 %v4505_v23, %v8811_v38  ;;  %v8835_v42 = vsel %vm8133_vm15, %v6128_v25, %v2105_v57  ;;  %v2107_v1 = vrot.slane %v2105_v57, 4  ;;  %v8839_v0 = vsel %vm8133_vm15, %v6129_v11, %v2112_v58 }
 0x13c   : > { %v2115_v54 = vrot.slane %v7595_v45, 5  ;;  %v4497_v33 = vrot.slane %v4496_v9, 4  ;;  %v4533_v39 = vshll.u32 %v8821_v27, 16  ;;  %v4511_v14 = vrot.slane %v4509_v10, 5  ;;  %v7532_v10 = vld [vmem:[#allocation2 + $0xb4] sm:$0xff]  }
 0x13d   : > { %v4520_v62 = vor.u32 %v4519_v41, %v4516_v15  ;;  %v4530_v25 = vor.u32 %v4529_v56, %v8823_v47  ;;  %v6130_v57 = vrot.slane %v1982_v6, 9  ;;  %v4507_v23 = vrot.slane %v4506_v8, 4  ;;  %v8866_v15 = vld [vmem:[#allocation2 + $0x64] sm:$0xf]  ;;  %v6462_v8 = vld [vmem:[#allocation2 + $0x6c] sm:$0xf] }
 0x13e   : > { %7146 = vmatmul.mubr.msk.bf16.gmra.mrb[20].mxu0 %vm1462_vm8, %v7530_v51  ;;  %v2121_v22 = vrot.slane %v2119_v60, 4  ;;  %v2122_v48 = vrot.slane %v8407_v30, 5  ;;  %v2126_v58 = vrot.slane %v8419_v20, 5  ;;  %v4478_v51 = vsel %vm7807_vm9, %v4473_v2, %v8794_v61  ;;  %9697 = vst [vmem:[#allocation12_spill] sm:$0xff] %v8866_v15 }
 0x13f   : > { %6994 = vmatmul.mubr.msk.bf16.gmra.mrb[4].mxu1 %vm1462_vm8, %v9695_v17  ;;  %7149 = vmatprep.mubr.msk.bf16.mxu0 %vm1462_vm8, %v7531_v12  ;;  %v8852_v9 = vsel %vm8133_vm15, %v2107_v1, %v2108_v46  ;;  %v4538_v12 = vshrl.u32 %v6459_v50, 16  ;;  %v4541_v11 = vshll.u32 %v6459_v50, 16  ;;  %v4488_v17 = vsel %vm7807_vm9, %v4483_v59, %v8801_v19  ;;  %v8868_v46 = vld [vmem:[#allocation2 + $0x68] sm:$0x1]  ;;  %v7533_v19 = vld [vmem:[#allocation2 + $0xc0] sm:$0xff]  }
 0x140   : > { %6997 = vmatprep.mubr.msk.bf16.mxu1 %vm1462_vm8, %v9696_v3  ;;  %v8859_v30 = vsel %vm8133_vm15, %v2114_v36, %v2115_v54  ;;  %v4502_v20 = vsel %vm7807_vm9, %v4497_v33, %v8811_v38  ;;  %v8864_v61 = vrot.slane %v4533_v39, 5  ;;  %9698 = vst [vmem:[#allocation13_spill] sm:$0xff] %v8868_v46  ;;  %v9699_v41 = vcombine.low %v8644_v29, %v8652_v63  ;;  %v8899_v33 = vld [vmem:[#allocation2 + $0x70] sm:$0xf] }
 0x141   : > { %v8874_v56 = vrot.slane %v4520_v62, 4  ;;  %v8876_v3 = vrot.slane %v4530_v25, 4  ;;  %v8880_v2 = vsel %vm8133_vm15, %v6130_v57, %v2119_v60  ;;  %v6131_v38 = vrot.slane %v1983_v35, 9  ;;  %9701 = vst [vmem:[#allocation14_spill] sm:$0xff] %v8899_v33  ;;  %v6465_v57 = vld [vmem:[#allocation2 + $0x78] sm:$0xf] }
 0x142   : > { %v9700_v6 = vcombine.low %v8648_v31, %v8659_v5  ;;  %v4512_v29 = vsel %vm7807_vm9, %v4507_v23, %v4511_v14  ;;  %v8890_v63 = vsel %vm8133_vm15, %v2121_v22, %v2122_v48  ;;  %v2128_v59 = vrot.slane %v2126_v58, 4  ;;  %v8962_v23 = vld [vmem:[#allocation2 + $0x80] sm:$0x1] }
 0x143   : > { %v2129_v1 = vrot.slane %v8424_v37, 5  ;;  %v4540_v36 = vrot.slane %v4538_v12, 4  ;;  %v4543_v60 = vrot.slane %v4541_v11, 5  ;;  %v4547_v45 = vshll.u32 %v8866_v15, 16  ;;  %v6468_v12 = vld [vmem:[#allocation2 + $0x84] sm:$0xf] }
 0x144   : > { %v4551_v54 = vshrl.u32 %v8866_v15, 16  ;;  %v4557_v5 = vshll.u32 %v8868_v46, 16  ;;  %v4562_v39 = vshrl.u32 %v6462_v8, 16  ;;  %v4565_v50 = vshll.u32 %v6462_v8, 16  ;;  %v8928_v11 = vld [vmem:[#allocation2 + $0x88] sm:$0xf] }
 0x145   : > { %v8902_v37 = vcombine.low %v4478_v51, %v4488_v17  ;;  %v8906_v62 = vcombine.low %v4502_v20, %v4512_v29  ;;  %v8920_v48 = vsel %vm8133_vm15, %v6131_v38, %v2126_v58  ;;  %v8924_v35 = vsel %vm8133_vm15, %v2128_v59, %v2129_v1  ;;  %v8926_v51 = vld [vmem:[#allocation2 + $0x7c] sm:$0xf]  ;;  %9703 = vst [vmem:[#allocation16_spill] sm:$0xff] %v8928_v11  ;;  %v6471_v8 = vld [vmem:[#allocation2 + $0x90] sm:$0xf] }
 0x146   : > { %7150 = vmatmul.mubr.msk.bf16.gmra.mrb[24].mxu0 %vm1462_vm8, %v7532_v10  ;;  %9702 = vst [vmem:[#allocation15_spill] sm:$0xff] %v8926_v51  ;;  %v7534_v10 = vld [vmem:[#allocation2 + $0xcc] sm:$0xff]   ;;  %v4544_v17 = vor.u32 %v4543_v60, %v4540_v36  ;;  %v8930_v20 = vrot.slane %v4547_v45, 5  ;;  %v4564_v58 = vrot.slane %v4562_v39, 4  ;;  %v4567_v38 = vrot.slane %v4565_v50, 5  ;;  %9707 = vst [vmem:[#allocation18_spill] sm:$0xff] %v8962_v23 }
 0x147   : > { %6998 = vmatmul.mubr.msk.bf16.gmra.mrb[8].mxu1 %vm1462_vm8, %v9699_v41  ;;  %7153 = vmatprep.mubr.msk.bf16.mxu0 %vm1462_vm8, %v7533_v19  ;;  %v4553_v41 = vrot.slane %v4551_v54, 4  ;;  %v4571_v19 = vshll.u32 %v8899_v33, 16  ;;  %v4575_v29 = vshrl.u32 %v8899_v33, 16  ;;  %v8936_v59 = vld [vmem:[#allocation2 + $0x94] sm:$0xf]  ;;  %v9705_v1 = vcombine.low %v8663_v44, %v8668_v13 }
 0x148   : > { %7001 = vmatprep.mubr.msk.bf16.mxu1 %vm1462_vm8, %v9700_v6  ;;  %v8933_v6 = vrot.slane %v4557_v5, 5  ;;  %9704 = vst [vmem:[#allocation17_spill] sm:$0xff] %v8936_v59  ;;  %v4586_v36 = vshrl.u32 %v6465_v57, 16  ;;  %v4589_v60 = vshll.u32 %v6465_v57, 16  ;;  %v4595_v45 = vshll.u32 %v8926_v51, 16 }
 0x149   : > { %v4599_v54 = vshrl.u32 %v8926_v51, 16  ;;  %v9706_v5 = vcombine.low %v8692_v26, %v8697_v16  ;;  %v4610_v39 = vshrl.u32 %v6468_v12, 16  ;;  %v4613_v50 = vshll.u32 %v6468_v12, 16  ;;  %v8956_v16 = vld [vmem:[#allocation2 + $0x74] sm:$0x1] }
 0x14a   : > { %v4619_v22 = vshll.u32 %v8928_v11, 16  ;;  %v4623_v14 = vshrl.u32 %v8928_v11, 16  ;;  %v4634_v44 = vshrl.u32 %v6471_v8, 16  ;;  %v4637_v13 = vshll.u32 %v6471_v8, 16 }
 0x14b   : > { %v4647_v57 = vshrl.u32 %v8936_v59, 16  ;;  %v8953_v25 = vrot.slane %v4544_v17, 4  ;;  %v4554_v26 = vor.u32 %v4553_v41, %v8930_v20  ;;  %v4577_v12 = vrot.slane %v4575_v29, 4 }
 0x14c   : > { %v4588_v8 = vrot.slane %v4586_v36, 4  ;;  %v4591_v31 = vrot.slane %v4589_v60, 5  ;;  %v8964_v11 = vrot.slane %v4595_v45, 5  ;;  %v4612_v17 = vrot.slane %v4610_v39, 4  ;;  %v9005_v36 = vld [vmem:[#allocation2 + $0xa4] sm:$0x1] }
 0x14d   : > { %v4615_v51 = vrot.slane %v4613_v50, 5  ;;  %v8968_v41 = vrot.slane %v4619_v22, 5  ;;  %v4625_v33 = vrot.slane %v4623_v14, 4  ;;  %v4636_v29 = vrot.slane %v4634_v44, 4  ;;  %v6474_v22 = vld [vmem:[#allocation2 + $0x9c] sm:$0xf] }
 0x14e   : > { %7154 = vmatmul.mubr.msk.bf16.gmra.mrb[28].mxu0 %vm1462_vm8, %v7534_v10  ;;  %v8966_v10 = vld [vmem:[#allocation2 + $0x8c] sm:$0x1]  ;;  %v4639_v46 = vrot.slane %v4637_v13, 5  ;;  %v8978_v60 = vrot.slane %v4554_v26, 4  ;;  %v4568_v45 = vor.u32 %v4567_v38, %v4564_v58  ;;  %v9710_v14 = vcombine.low %v8701_v32, %v8709_v4 }
 0x14f   : > { %7002 = vmatmul.mubr.msk.bf16.gmra.mrb[12].mxu1 %vm1462_vm8, %v9705_v1  ;;  %v4643_v1 = vshll.u32 %v8936_v59, 16  ;;  %7159 = vmatprep.mubr.msk.bf16.mxu0 %vm1462_vm8, %v8772_v21  ;;  %v4601_v59 = vrot.slane %v4599_v54, 4  ;;  %9708 = vst [vmem:[#allocation19_spill] sm:$0xff] %v8966_v10  ;;  %v4649_v21 = vrot.slane %v4647_v57, 4  ;;  %v4581_v54 = vshll.u32 %v8956_v16, 16 }
 0x150   : > { %7005 = vmatprep.mubr.msk.bf16.mxu1 %vm1462_vm8, %v9706_v5  ;;  %v8958_v5 = vrot.slane %v4571_v19, 5  ;;  %v8970_v19 = vld [vmem:[#allocation2 + $0x98] sm:$0x1]  ;;  %v4592_v50 = vor.u32 %v4591_v31, %v4588_v8  ;;  %v4605_v13 = vshll.u32 %v8962_v23, 16  ;;  %v9712_v58 = vcombine.low %v8740_v55, %v8752_v53 }
 0x151   : > { %9709 = vst [vmem:[#allocation20_spill] sm:$0xff] %v8970_v19  ;;  %v8972_v15 = vrot.slane %v4643_v1, 5  ;;  %v4602_v44 = vor.u32 %v4601_v59, %v8964_v11  ;;  %v8988_v1 = vld [vmem:[#allocation2 + $0xa0] sm:$0xf]  ;;  %v4616_v38 = vor.u32 %v4615_v51, %v4612_v17  ;;  %v4626_v57 = vor.u32 %v4625_v33, %v8968_v41 }
 0x152   : > { %v4578_v39 = vor.u32 %v4577_v12, %v8958_v5  ;;  %9711 = vst [vmem:[#allocation21_spill] sm:$0xff] %v8988_v1  ;;  %v4629_v32 = vshll.u32 %v8966_v10, 16  ;;  %v4653_v4 = vshll.u32 %v8970_v19, 16  ;;  %v4640_v26 = vor.u32 %v4639_v46, %v4636_v29  ;;  %v6477_v29 = vld [vmem:[#allocation2 + $0xa8] sm:$0xf] }
 0x153   : > { %v4650_v31 = vor.u32 %v4649_v21, %v8972_v15  ;;  %v4658_v59 = vshrl.u32 %v6474_v22, 16  ;;  %v4661_v12 = vshll.u32 %v6474_v22, 16  ;;  %v4569_v8 = vrot.slane %v4568_v45, 4 }
 0x154   : > { %v4667_v55 = vshll.u32 %v8988_v1, 16  ;;  %v4671_v53 = vshrl.u32 %v8988_v1, 16  ;;  %v4579_v33 = vrot.slane %v4578_v39, 4  ;;  %v4593_v46 = vrot.slane %v4592_v50, 4 }
 0x155   : > { %v4603_v51 = vrot.slane %v4602_v44, 4  ;;  %v4607_v17 = vrot.slane %v4605_v13, 5  ;;  %v4617_v21 = vrot.slane %v4616_v38, 4  ;;  %v4627_v22 = vrot.slane %v4626_v57, 4 }
 0x156   : > { %7160 = vmatmul.mubr.msk.bf16.vlgmr.msra.gmra.mrb[0].mxu0 %vm1462_vm8, %v8779_v7  ;;  %v4655_v7 = vrot.slane %v4653_v4, 5  ;;  %v4641_v45 = vrot.slane %v4640_v26, 4  ;;  %v4660_v19 = vrot.slane %v4658_v59, 4  ;;  %v4663_v1 = vrot.slane %v4661_v12, 5  ;;  %v9052_v4 = vld [vmem:[#allocation2 + $0xac] sm:$0xf] }
 0x157   : > { %7006 = vmatmul.mubr.msk.bf16.gmra.mrb[16].mxu1 %vm1462_vm8, %v9710_v14  ;;  %v4583_v14 = vrot.slane %v4581_v54, 5  ;;  %7192 = vmatpush3.bf16.msra.mxu0 %v8736_v52  ;;  %v4651_v54 = vrot.slane %v4650_v31, 4  ;;  %v9007_v10 = vrot.slane %v4667_v55, 5  ;;  %v4673_v52 = vrot.slane %v4671_v53, 4  ;;  %v6526_v26 = vld [vmem:[#allocation2 + $0x48] sm:$0xe] }
 0x158   : > { %7009 = vmatprep.mubr.msk.bf16.mxu1 %vm1462_vm8, %v9712_v58  ;;  %7163 = vmatprep.mubr.msk.bf16.mxu0 %vm1462_vm8, %v8829_v18  ;;  %v4631_v58 = vrot.slane %v4629_v32, 5  ;;  %v4682_v23 = vshrl.u32 %v6477_v29, 16  ;;  %v4685_v18 = vshll.u32 %v6477_v29, 16  ;;  %v9713_v39 = vcombine.low %v8756_v49, %v8764_v28  ;;  %v6527_v31 = vld [vmem:[#allocation2 + $0x54] sm:$0xe] }
 0x159   : > { %v4560_v50 = vsel %vm7807_vm9, %v8978_v60, %v8933_v6  ;;  %v4574_v44 = vsel %vm7807_vm9, %v4569_v8, %v8958_v5  ;;  %v4584_v13 = vsel %vm7807_vm9, %v4579_v33, %v4583_v14  ;;  %v4598_v38 = vsel %vm7807_vm9, %v4593_v46, %v8964_v11  ;;  %v6480_v14 = vld [vmem:[#allocation2 + $0xb4] sm:$0xf]  ;;  %v6528_v55 = vld [vmem:[#allocation2 + $0x60] sm:$0xe]  ;;  %v9079_v33 = vld [vmem:[#allocation2 + $0xb0] sm:$0x1] }
 0x15a   : > { %v9714_v49 = vcombine.low %v8835_v42, %v8852_v9  ;;  %v4608_v28 = vsel %vm7807_vm9, %v4603_v51, %v4607_v17  ;;  %v4622_v6 = vsel %vm7807_vm9, %v4617_v21, %v8968_v41  ;;  %v4632_v5 = vsel %vm7807_vm9, %v4627_v22, %v4631_v58  ;;  %v9718_v21 = vld [vmem:[#allocation11_spill] sm:$0xff]  ;;  %v6529_v58 = vld [vmem:[#allocation2 + $0x6c] sm:$0xe] }
 0x15b   : > { %v4677_v60 = vshll.u32 %v9005_v36, 16  ;;  %v9715_v11 = vsel %vm7807_vm9, %v8876_v3, %v8864_v61  ;;  %v9716_v42 = vsel %vm7807_vm9, %v8874_v56, %v8823_v47  ;;  %v4646_v41 = vsel %vm7807_vm9, %v4641_v45, %v8972_v15 }
 0x15c   : > { %v6495_v9 = vcombine.low %v9716_v42, %v9715_v11  ;;  %v4656_v57 = vsel %vm7807_vm9, %v4651_v54, %v4655_v7  ;;  %v4664_v32 = vor.u32 %v4663_v1, %v4660_v19  ;;  %v6148_v61 = vcombine.low %v8920_v48, %v8924_v35  ;;  %v9723_v42 = vld [vmem:[#allocation14_spill] sm:$0xff] }
 0x15d   : > { %v4674_v47 = vor.u32 %v4673_v52, %v9007_v10  ;;  %v4684_v56 = vrot.slane %v4682_v23, 4  ;;  %v4687_v3 = vrot.slane %v4685_v18, 5  ;;  %v9717_v15 = vsel %vm7807_vm9, %v8953_v25, %v8930_v20 }
 0x15e   : > { %7164 = vmatmul.mubr.msk.bf16.gmra.mrb[4].mxu0 %vm1462_vm8, %v8902_v37  ;;  %v6496_v19 = vcombine.low %v9717_v15, %v4560_v50  ;;  %v9066_v1 = vcombine.low %v4574_v44, %v4584_v13  ;;  %v9068_v37 = vcombine.low %v4598_v38, %v4608_v28  ;;  %v9070_v59 = vcombine.low %v4622_v6, %v4632_v5 }
 0x15f   : > { %7010 = vmatmul.mubr.msk.bf16.gmra.mrb[20].mxu1 %vm1462_vm8, %v9713_v39  ;;  %7167 = vmatprep.mubr.msk.bf16.mxu0 %vm1462_vm8, %v8906_v62  ;;  %v9072_v12 = vcombine.low %v4646_v41, %v4656_v57  ;;  %v9074_v23 = vrot.slane %v4677_v60, 5  ;;  %v4691_v8 = vshll.u32 %v9052_v4, 16  ;;  %v6542_v62 = vrot.slane %v6526_v26, 9  ;;  %v9721_v39 = vld [vmem:[#allocation12_spill] sm:$0xff]  ;;  %v7535_v57 = vld [vmem:[#allocation2 + $0xc] sm:$0xff]  }
 0x160   : > { %7013 = vmatprep.mubr.msk.bf16.mxu1 %vm1462_vm8, %v9714_v49  ;;  %v9077_v53 = vrot.slane %v4664_v32, 4  ;;  %v5165_v25 = vrot.slane %v8770_v24, 5  ;;  %v5168_v20 = vrot.slane %v8804_v40, 5  ;;  %v6543_v46 = vrot.slane %v6527_v31, 9 }
 0x161   : > { %v9083_v51 = vrot.slane %v4674_v47, 4  ;;  %v4688_v17 = vor.u32 %v4687_v3, %v4684_v56  ;;  %v4695_v29 = vshrl.u32 %v9052_v4, 16  ;;  %v5172_v22 = vrot.slane %v9718_v21, 5  ;;  %v6257_v3 = vld [vmem:[#allocation2 + $0x78] sm:$0xf] }
 0x162   : > { %v9719_v7 = vcombine.low %v8839_v0, %v8859_v30  ;;  %v9093_v45 = vsel %vm8133_vm15, %v6542_v62, %v5165_v25  ;;  %v5167_v24 = vrot.slane %v5165_v25, 4  ;;  %v5175_v40 = vrot.slane %v8821_v27, 5  ;;  %v9722_v27 = vld [vmem:[#allocation13_spill] sm:$0xff]  ;;  %v6530_v25 = vld [vmem:[#allocation2 + $0x78] sm:$0xe] }
 0x163   : > { %v6544_v54 = vrot.slane %v6528_v55, 9  ;;  %v9720_v52 = vcombine.low %v8880_v2, %v8890_v63  ;;  %v4701_v18 = vshll.u32 %v9079_v33, 16  ;;  %v9103_v0 = vsel %vm8133_vm15, %v6543_v46, %v5172_v22  ;;  %v9112_v2 = vld [vmem:[#allocation2 + $0xb8] sm:$0xf] }
 0x164   : > { %v5174_v30 = vrot.slane %v5172_v22, 4  ;;  %v5179_v50 = vrot.slane %v9721_v39, 5  ;;  %v4706_v44 = vshrl.u32 %v6480_v14, 16  ;;  %v9108_v13 = vsel %vm8133_vm15, %v5167_v24, %v5168_v20  ;;  %v6483_v20 = vld [vmem:[#allocation2 + $0xc0] sm:$0xf] }
 0x165   : > { %v5182_v38 = vrot.slane %v9722_v27, 5  ;;  %v6545_v49 = vrot.slane %v6529_v58, 9  ;;  %v6559_v63 = vcombine.low %v9093_v45, %v9108_v13  ;;  %v9125_v60 = vrot.slane %v4691_v8, 5  ;;  %v6531_v22 = vld [vmem:[#allocation2 + $0x84] sm:$0xe] }
 0x166   : > { %7168 = vmatmul.mubr.msk.bf16.gmra.mrb[8].mxu0 %vm1462_vm8, %v6495_v9  ;;  %v9118_v28 = vsel %vm8133_vm15, %v5174_v30, %v5175_v40  ;;  %v9122_v6 = vsel %vm8133_vm15, %v6544_v54, %v5179_v50  ;;  %v5181_v5 = vrot.slane %v5179_v50, 4  ;;  %v5186_v9 = vrot.slane %v9723_v42, 5  ;;  %v9180_v30 = vld [vmem:[#allocation2 + $0xbc] sm:$0x1] }
 0x167   : > { %7014 = vmatmul.mubr.msk.bf16.gmra.mrb[24].mxu1 %vm1462_vm8, %v9719_v7  ;;  %7171 = vmatprep.mubr.msk.bf16.mxu0 %vm1462_vm8, %v6496_v19  ;;  %v6560_v11 = vcombine.low %v9103_v0, %v9118_v28  ;;  %v5189_v41 = vrot.slane %v8956_v16, 5  ;;  %v4670_v32 = vsel %vm7807_vm9, %v9077_v53, %v9007_v10  ;;  %v4697_v26 = vrot.slane %v4695_v29, 4  ;;  %v9175_v7 = vld [vmem:[#allocation2 + $0xc4] sm:$0xf]  ;;  %v6269_v28 = vld [vmem:[#allocation2 + $0xa8] sm:$0xf] }
 0x168   : > { %7017 = vmatprep.mubr.msk.bf16.mxu1 %vm1462_vm8, %v9720_v52  ;;  %v4709_v47 = vshll.u32 %v6480_v14, 16  ;;  %v9137_v56 = vsel %vm8133_vm15, %v5181_v5, %v5182_v38  ;;  %v4715_v31 = vshll.u32 %v9112_v2, 16  ;;  %v9144_v16 = vsel %vm8133_vm15, %v6545_v49, %v5186_v9  ;;  %v9726_v52 = vld [vmem:[#allocation15_spill] sm:$0xff] }
 0x169   : > { %v6561_v15 = vcombine.low %v9122_v6, %v9137_v56  ;;  %v5188_v19 = vrot.slane %v5186_v9, 4  ;;  %v4680_v8 = vsel %vm7807_vm9, %v9083_v51, %v9074_v23  ;;  %v9150_v14 = vrot.slane %v4688_v17, 4  ;;  %v9724_v23 = vld [vmem:[#allocation6_spill] sm:$0xff]  ;;  %v9725_v51 = vld [vmem:[#allocation5_spill] sm:$0xff]  ;;  %v7536_v49 = vld [vmem:[#allocation2 + $0x18] sm:$0xff]  }
 0x16a   : > { %v9152_v62 = vrot.slane %v4701_v18, 5  ;;  %v9154_v55 = vrot.slane %v4706_v44, 4  ;;  %v3052_v29 = vshrl.u32 %v6257_v3, 16  ;;  %v3055_v21 = vshll.u32 %v6257_v3, 16  ;;  %v9727_v44 = vld [vmem:[#allocation18_spill] sm:$0xff] }
 0x16b   : > { %v9162_v46 = vsel %vm8133_vm15, %v5188_v19, %v5189_v41  ;;  %v3074_v17 = vsel %vm7807_vm9, %v9725_v51, %v9724_v23  ;;  %v4698_v58 = vor.u32 %v4697_v26, %v9125_v60  ;;  %v9170_v48 = vrot.slane %v4709_v47, 5  ;;  %v9728_v41 = vld [vmem:[#allocation16_spill] sm:$0xff]  ;;  %v9729_v19 = vld [vmem:[#allocation19_spill] sm:$0xff]  ;;  %v9200_v51 = vld [vmem:[#allocation2 + $0xc8] sm:$0x1] }
 0x16c   : > { %v4719_v35 = vshrl.u32 %v9112_v2, 16  ;;  %v3054_v24 = vrot.slane %v3052_v29, 4  ;;  %v3057_v40 = vrot.slane %v3055_v21, 5  ;;  %v6546_v54 = vrot.slane %v6530_v25, 9  ;;  %v6272_v56 = vld [vmem:[#allocation2 + $0xb4] sm:$0xf] }
 0x16d   : > { %v5193_v18 = vrot.slane %v9726_v52, 5  ;;  %v4730_v39 = vshrl.u32 %v6483_v20, 16  ;;  %v4733_v50 = vshll.u32 %v6483_v20, 16  ;;  %v5196_v27 = vrot.slane %v9727_v44, 5  ;;  %v6486_v52 = vld [vmem:[#allocation2 + $0xcc] sm:$0xf] }
 0x16e   : > { %7172 = vmatmul.mubr.msk.bf16.gmra.mrb[12].mxu0 %vm1462_vm8, %v9066_v1  ;;  %v6547_v38 = vrot.slane %v6531_v22, 9  ;;  %v3058_v5 = vor.u32 %v3057_v40, %v3054_v24  ;;  %v7537_v1 = vld [vmem:[#allocation2 + $0x24] sm:$0xff]   ;;  %v9190_v26 = vrot.slane %v4715_v31, 5  ;;  %v4739_v47 = vshll.u32 %v9175_v7, 16  ;;  %v9731_v44 = vld [vmem:[#allocation3_spill] sm:$0xff] }
 0x16f   : > { %7018 = vmatmul.mubr.msk.bf16.gmra.mrb[28].mxu1 %vm1462_vm8, %v6148_v61  ;;  %v6562_v61 = vcombine.low %v9144_v16, %v9162_v46  ;;  %7175 = vmatprep.mubr.msk.bf16.mxu0 %vm1462_vm8, %v9068_v37  ;;  %v9187_v42 = vsel %vm8133_vm15, %v6546_v54, %v5193_v18  ;;  %v5195_v9 = vrot.slane %v5193_v18, 4  ;;  %v4743_v3 = vshrl.u32 %v9175_v7, 16  ;;  %v9730_v18 = vld [vmem:[#allocation4_spill] sm:$0xff] }
 0x170   : > { %7023 = vmatprep.mubr.msk.bf16.mxu1 %vm1462_vm8, %v7535_v57  ;;  %v5200_v57 = vrot.slane %v9728_v41, 5  ;;  %v5203_v25 = vrot.slane %v9729_v19, 5  ;;  %v4721_v20 = vrot.slane %v4719_v35, 4  ;;  %v4725_v37 = vshll.u32 %v9180_v30, 16 }
 0x171   : > { %v3059_v29 = vrot.slane %v3058_v5, 4  ;;  %v9198_v21 = vsel %vm8133_vm15, %v5195_v9, %v5196_v27  ;;  %v4699_v23 = vrot.slane %v4698_v58, 4  ;;  %v4712_v35 = vor.u32 %v9170_v48, %v9154_v55  ;;  %v9218_v5 = vld [vmem:[#allocation2 + $0xd0] sm:$0xf] }
 0x172   : > { %v6563_v31 = vcombine.low %v9187_v42, %v9198_v21  ;;  %v9206_v22 = vsel %vm8133_vm15, %v6547_v38, %v5200_v57  ;;  %v5202_v24 = vrot.slane %v5200_v57, 4  ;;  %v4732_v40 = vrot.slane %v4730_v39, 4  ;;  %v6532_v48 = vld [vmem:[#allocation2 + $0x90] sm:$0xe]  ;;  %v7610_v21 = vld [vmem:[#allocation2 + $0xb0] sm:$0x1] }
 0x173   : > { %v4735_v54 = vrot.slane %v4733_v50, 5  ;;  %v3064_v58 = vsel %vm7807_vm9, %v3059_v29, %v9730_v18  ;;  %v9216_v27 = vrot.slane %v4739_v47, 5  ;;  %v4745_v38 = vrot.slane %v4743_v3, 4  ;;  %v7539_v3 = vld [vmem:[#allocation2 + $0x3c] sm:$0xff]  }
 0x174   : > { %v9224_v55 = vsel %vm8133_vm15, %v5202_v24, %v5203_v25  ;;  %v6501_v39 = vcombine.low %v4670_v32, %v4680_v8  ;;  %v4722_v50 = vor.u32 %v4721_v20, %v9190_v26  ;;  %v4749_v9 = vshll.u32 %v9200_v51, 16  ;;  %v7538_v8 = vld [vmem:[#allocation2 + $0x30] sm:$0xff]  }
 0x175   : > { %v6564_v41 = vcombine.low %v9206_v22, %v9224_v55  ;;  %v4704_v10 = vsel %vm7807_vm9, %v4699_v23, %v9152_v62  ;;  %v4754_v53 = vshrl.u32 %v6486_v52, 16  ;;  %v4757_v32 = vshll.u32 %v6486_v52, 16  ;;  %v6533_v62 = vld [vmem:[#allocation2 + $0x9c] sm:$0xe]  ;;  %v9733_v52 = vld [vmem:[#allocation20_spill] sm:$0xff] }
 0x176   : > { %7176 = vmatmul.mubr.msk.bf16.gmra.mrb[16].mxu0 %vm1462_vm8, %v9070_v59  ;;  %v4727_v57 = vrot.slane %v4725_v37, 5  ;;  %v4767_v59 = vshrl.u32 %v9218_v5, 16  ;;  %v6548_v47 = vrot.slane %v6532_v48, 9  ;;  %v4713_v19 = vrot.slane %v4712_v35, 4 }
 0x177   : > { %7024 = vmatmul.mubr.msk.bf16.vlgmr.msra.gmra.mrb[0].mxu1 %vm1462_vm8, %v7536_v49  ;;  %v9220_v49 = vcombine.low %v3064_v58, %v3074_v17  ;;  %v4694_v17 = vsel %vm7807_vm9, %v9150_v14, %v9125_v60  ;;  %7179 = vmatprep.mubr.msk.bf16.mxu0 %vm1462_vm8, %v9072_v12  ;;  %v4736_v25 = vor.u32 %v4735_v54, %v4732_v40  ;;  %v9732_v14 = vld [vmem:[#allocation17_spill] sm:$0xff]  ;;  %v4723_v23 = vrot.slane %v4722_v50, 4 }
 0x178   : > { %7226 = vmatpush3.bf16.msra.mxu1 %v9731_v44  ;;  %7027 = vmatprep.mubr.msk.bf16.mxu1 %vm1462_vm8, %v7537_v1  ;;  %v4763_v1 = vshll.u32 %v9218_v5, 16  ;;  %v4746_v60 = vor.u32 %v4745_v38, %v9216_v27  ;;  %v5207_v20 = vrot.slane %v9732_v14, 5  ;;  %v6502_v29 = vcombine.low %v4694_v17, %v4704_v10  ;;  %v9734_v38 = vld [vmem:[#allocation21_spill] sm:$0xff]  ;;  %v9260_v17 = vld [vmem:[#allocation2 + $0xd4] sm:$0x1] }
 0x179   : > { %v4751_v24 = vrot.slane %v4749_v9, 5  ;;  %v5210_v18 = vrot.slane %v9733_v52, 5  ;;  %v4756_v12 = vrot.slane %v4754_v53, 4  ;;  %v4759_v37 = vrot.slane %v4757_v32, 5 }
 0x17a   : > { %v9253_v58 = vsel %vm8133_vm15, %v6548_v47, %v5207_v20  ;;  %v5209_v44 = vrot.slane %v5207_v20, 4  ;;  %v9256_v35 = vrot.slane %v4763_v1, 5  ;;  %v4769_v40 = vrot.slane %v4767_v59, 4  ;;  %v7596_v20 = vld [vmem:[#allocation2 + $0x1c] sm:$0xf] }
 0x17b   : > { %v6549_v54 = vrot.slane %v6533_v62, 9  ;;  %v5214_v48 = vrot.slane %v9734_v38, 5  ;;  %v4737_v50 = vrot.slane %v4736_v25, 4  ;;  %v4747_v9 = vrot.slane %v4746_v60, 4  ;;  %v7597_v38 = vld [vmem:[#allocation2 + $0x20] sm:$0x1] }
 0x17c   : > { %v9264_v10 = vsel %vm8133_vm15, %v5209_v44, %v5210_v18  ;;  %v5217_v53 = vrot.slane %v9005_v36, 5  ;;  %v4718_v59 = vsel %vm7807_vm9, %v4713_v19, %v9190_v26  ;;  %v4760_v47 = vor.u32 %v4759_v37, %v4756_v12 }
 0x17d   : > { %v6565_v32 = vcombine.low %v9253_v58, %v9264_v10  ;;  %v5216_v1 = vrot.slane %v5214_v48, 4  ;;  %v4728_v36 = vsel %vm7807_vm9, %v4723_v23, %v4727_v57  ;;  %v4770_v25 = vor.u32 %v4769_v40, %v9256_v35  ;;  %v6522_v23 = vld [vmem:[#allocation2 + $0x18] sm:$0xe] }
 0x17e   : > { %7180 = vmatmul.mubr.msk.bf16.gmra.mrb[20].mxu0 %vm1462_vm8, %v6501_v39  ;;  %v4773_v60 = vshll.u32 %v9260_v17, 16  ;;  %v7541_v39 = vld [vmem:[#allocation2 + $0x54] sm:$0xff]   ;;  %v4742_v26 = vsel %vm7807_vm9, %v4737_v50, %v9216_v27  ;;  %v4752_v19 = vsel %vm7807_vm9, %v4747_v9, %v4751_v24  ;;  %v5137_v62 = vrot.slane %v7596_v20, 5  ;;  %v6523_v50 = vld [vmem:[#allocation2 + $0x24] sm:$0xe] }
 0x17f   : > { %7028 = vmatmul.mubr.msk.bf16.gmra.mrb[4].mxu1 %vm1462_vm8, %v7538_v8  ;;  %v9271_v8 = vsel %vm8133_vm15, %v6549_v54, %v5214_v48  ;;  %7183 = vmatprep.mubr.msk.bf16.mxu0 %vm1462_vm8, %v6502_v29  ;;  %v9284_v14 = vsel %vm8133_vm15, %v5216_v1, %v5217_v53  ;;  %v6534_v29 = vld [vmem:[#allocation2 + $0xa8] sm:$0xe]  ;;  %v6503_v52 = vcombine.low %v4718_v59, %v4728_v36  ;;  %v4761_v18 = vrot.slane %v4760_v47, 4  ;;  %v6535_v54 = vld [vmem:[#allocation2 + $0xb4] sm:$0xe] }
 0x180   : > { %7031 = vmatprep.mubr.msk.bf16.mxu1 %vm1462_vm8, %v7539_v3  ;;  %v7540_v3 = vld [vmem:[#allocation2 + $0x48] sm:$0xff]   ;;  %v6566_v57 = vcombine.low %v9271_v8, %v9284_v14  ;;  %v6504_v12 = vcombine.low %v4742_v26, %v4752_v19  ;;  %v4771_v37 = vrot.slane %v4770_v25, 4  ;;  %v4775_v44 = vrot.slane %v4773_v60, 5  ;;  %v7542_v60 = vld [vmem:[#allocation2 + $0x60] sm:$0xff]  }
 0x181   : > { %v6550_v40 = vrot.slane %v6534_v29, 9  ;;  %v6538_v27 = vrot.slane %v6522_v23, 9  ;;  %v5139_v24 = vrot.slane %v5137_v62, 4  ;;  %v5140_v48 = vrot.slane %v7597_v38, 5  ;;  %v7598_v59 = vld [vmem:[#allocation2 + $0x28] sm:$0xf] }
 0x182   : > { %v5221_v9 = vrot.slane %v9052_v4, 5  ;;  %v5224_v53 = vrot.slane %v9079_v33, 5  ;;  %v4766_v1 = vsel %vm7807_vm9, %v4761_v18, %v9256_v35  ;;  %v5144_v47 = vrot.slane %v7598_v59, 5  ;;  %v6524_v4 = vld [vmem:[#allocation2 + $0x30] sm:$0xe]  ;;  %v9736_v38 = vld [vmem:[#allocation8_spill] sm:$0xff] }
 0x183   : > { %v6551_v25 = vrot.slane %v6535_v54, 9  ;;  %v5228_v19 = vrot.slane %v9112_v2, 5  ;;  %v7543_v35 = vld [vmem:[#allocation2 + $0x6c] sm:$0xff]   ;;  %v5138_v20 = vsel %vm8133_vm15, %v6538_v27, %v5137_v62  ;;  %v5141_v29 = vsel %vm8133_vm15, %v5139_v24, %v5140_v48  ;;  %v6525_v59 = vld [vmem:[#allocation2 + $0x3c] sm:$0xe] }
 0x184   : > { %v9307_v33 = vsel %vm8133_vm15, %v6550_v40, %v5221_v9  ;;  %v5223_v26 = vrot.slane %v5221_v9, 4  ;;  %v6539_v23 = vrot.slane %v6523_v50, 9  ;;  %v7599_v18 = vld [vmem:[#allocation2 + $0x2c] sm:$0x1]  ;;  %v5146_v54 = vrot.slane %v5144_v47, 4 }
 0x185   : > { %v5230_v2 = vrot.slane %v5228_v19, 4  ;;  %v6540_v62 = vrot.slane %v6524_v4, 9  ;;  %v5154_v48 = vrot.slane %v9736_v38, 5  ;;  %v7546_v38 = vld [vmem:[#allocation2 + $0x90] sm:$0xff]   ;;  %vm970_vm0 = vcmask 58368  }
 0x186   : > { %7184 = vmatmul.mubr.msk.bf16.gmra.mrb[24].mxu0 %vm1462_vm8, %v6503_v52  ;;  %v5231_v52 = vrot.slane %v9180_v30, 5  ;;  %v6555_v30 = vcombine.low %v5138_v20, %v5141_v29  ;;  %v9738_v29 = vld [vmem:[#allocation10_spill] sm:$0xff]  ;;  %971 = vst.msk [vmem:[%s9476_s13] sm:$0x3] %vm970_vm0, %v7639_v43 }
 0x187   : > { %7032 = vmatmul.mubr.msk.bf16.gmra.mrb[8].mxu1 %vm1462_vm8, %v7540_v3  ;;  %v9735_v3 = vld [vmem:[#allocation7_spill] sm:$0xff]  ;;  %7187 = vmatprep.mubr.msk.bf16.mxu0 %vm1462_vm8, %v6504_v12  ;;  %v5147_v12 = vrot.slane %v7599_v18, 5 }
 0x188   : > { %7035 = vmatprep.mubr.msk.bf16.mxu1 %vm1462_vm8, %v7541_v39  ;;  %v5151_v36 = vrot.slane %v9735_v3, 5  ;;  %v4776_v39 = vsel %vm7807_vm9, %v4771_v37, %v4775_v44  ;;  %v9317_v37 = vsel %vm8133_vm15, %v5223_v26, %v5224_v53  ;;  %v9321_v44 = vsel %vm8133_vm15, %v6551_v25, %v5228_v19  ;;  %v9737_v3 = vld [vmem:[#allocation9_spill] sm:$0xff] }
 0x189   : > { %v6505_v40 = vcombine.low %v4766_v1, %v4776_v39  ;;  %v6567_v27 = vcombine.low %v9307_v33, %v9317_v37  ;;  %v9329_v50 = vsel %vm8133_vm15, %v5230_v2, %v5231_v52  ;;  %v5145_v53 = vsel %vm8133_vm15, %v6539_v23, %v5144_v47  ;;  %v6254_v26 = vld [vmem:[#allocation2 + $0x6c] sm:$0xf] }
 0x18a   : > { %v5153_v24 = vrot.slane %v5151_v36, 4  ;;  %v6568_v9 = vcombine.low %v9321_v44, %v9329_v50  ;;  %v5148_v1 = vsel %vm8133_vm15, %v5146_v54, %v5147_v12  ;;  %v5158_v25 = vrot.slane %v9737_v3, 5  ;;  %v6537_v19 = vld [vmem:[#allocation2 + $0xcc] sm:$0xe]  ;;  %v7600_v54 = vld [vmem:[#allocation2 + $0x70] sm:$0xf] }
 0x18b   : > { %v5152_v39 = vsel %vm8133_vm15, %v6540_v62, %v5151_v36  ;;  %v6556_v20 = vcombine.low %v5145_v53, %v5148_v1  ;;  %v6541_v47 = vrot.slane %v6525_v59, 9  ;;  %v5161_v23 = vrot.slane %v9738_v29, 5 }
 0x18c   : > { %v5155_v4 = vsel %vm8133_vm15, %v5153_v24, %v5154_v48  ;;  %v5160_v18 = vrot.slane %v5158_v25, 4  ;;  %v3028_v12 = vshrl.u32 %v6254_v26, 16  ;;  %v6553_v2 = vrot.slane %v6537_v19, 9 }
 0x18d   : > { %v6557_v52 = vcombine.low %v5152_v39, %v5155_v4  ;;  %v3041_v36 = vshrl.u32 %v7600_v54, 16  ;;  %v5242_v62 = vrot.slane %v9218_v5, 5  ;;  %v5245_v24 = vrot.slane %v9260_v17, 5  ;;  %v6260_v39 = vld [vmem:[#allocation2 + $0x84] sm:$0xf]  ;;  %v7547_v4 = vld [vmem:[#allocation2 + $0x9c] sm:$0xff]  }
 0x18e   : > { %7188 = vmatmul.mubr.msk.bf16.gmra.mrb[28].mxu0 %vm1462_vm8, %v6505_v40  ;;  %v3031_v40 = vshll.u32 %v6254_v26, 16  ;;  %v5159_v48 = vsel %vm8133_vm15, %v6541_v47, %v5158_v25  ;;  %v5162_v53 = vsel %vm8133_vm15, %v5160_v18, %v5161_v23  ;;  %v3030_v5 = vrot.slane %v3028_v12, 4  ;;  %v7602_v18 = vld [vmem:[#allocation2 + $0x88] sm:$0xf] }
 0x18f   : > { %7036 = vmatmul.mubr.msk.bf16.gmra.mrb[12].mxu1 %vm1462_vm8, %v7542_v60  ;;  %v7544_v60 = vld [vmem:[#allocation2 + $0x78] sm:$0xff]   ;;  %7193 = vmatprep.mubr.msk.bf16.mxu0 %vm1462_vm8, %v6555_v30  ;;  %v3037_v30 = vshll.u32 %v7600_v54, 16  ;;  %v9357_v1 = vsel %vm8133_vm15, %v6553_v2, %v5242_v62  ;;  %v5244_v59 = vrot.slane %v5242_v62, 4  ;;  %v3043_v17 = vrot.slane %v3041_v36, 4  ;;  %v6263_v36 = vld [vmem:[#allocation2 + $0x90] sm:$0xf] }
 0x190   : > { %7039 = vmatprep.mubr.msk.bf16.mxu1 %vm1462_vm8, %v7543_v35  ;;  %v7545_v35 = vld [vmem:[#allocation2 + $0x84] sm:$0xff]   ;;  %v3033_v3 = vrot.slane %v3031_v40, 5  ;;  %v6558_v19 = vcombine.low %v5159_v48, %v5162_v53  ;;  %v3076_v47 = vshrl.u32 %v6260_v39, 16  ;;  %v3079_v29 = vshll.u32 %v6260_v39, 16 }
 0x191   : > { %v9362_v26 = vsel %vm8133_vm15, %v5244_v59, %v5245_v24  ;;  %v3085_v12 = vshll.u32 %v7602_v18, 16  ;;  %v3089_v2 = vshrl.u32 %v7602_v18, 16  ;;  %v7548_v62 = vld [vmem:[#allocation2 + $0xa8] sm:$0xff]   ;;  %v7549_v59 = vld [vmem:[#allocation2 + $0xb4] sm:$0xff]   ;;  %v3103_v39 = vshll.u32 %v6263_v36, 16 }
 0x192   : > { %v6570_v25 = vcombine.low %v9357_v1, %v9362_v26  ;;  %v3034_v23 = vor.u32 %v3033_v3, %v3030_v5  ;;  %v3078_v54 = vrot.slane %v3076_v47, 4  ;;  %v3100_v5 = vshrl.u32 %v6263_v36, 16  ;;  %v6266_v3 = vld [vmem:[#allocation2 + $0x9c] sm:$0xf]  ;;  %v7550_v36 = vld [vmem:[#allocation2 + $0xc0] sm:$0xff]  }
 0x193   : > { %v9373_v48 = vrot.slane %v3085_v12, 5  ;;  %v3091_v53 = vrot.slane %v3089_v2, 4 }
 0x194   : > { %v3035_v24 = vrot.slane %v3034_v23, 4  ;;  %v3127_v23 = vshll.u32 %v6266_v3, 16  ;;  %v3102_v2 = vrot.slane %v3100_v5, 4 }
 0x196   : > { %7194 = vmatmul.mubr.msk.bf16.vlgmr.msra.gmra.mrb[0].mxu0 %vm1462_vm8, %v6556_v20 }
 0x197   : > { %7040 = vmatmul.mubr.msk.bf16.gmra.mrb[16].mxu1 %vm1462_vm8, %v7544_v60  ;;  %7197 = vmatprep.mubr.msk.bf16.mxu0 %vm1462_vm8, %v6557_v52  ;;  %v3039_v60 = vrot.slane %v3037_v30, 5  ;;  %v3081_v30 = vrot.slane %v3079_v29, 5  ;;  %v3124_v29 = vshrl.u32 %v6266_v3, 16 }
 0x198   : > { %7043 = vmatprep.mubr.msk.bf16.mxu1 %vm1462_vm8, %v7545_v35  ;;  %v7601_v35 = vld [vmem:[#allocation2 + $0x74] sm:$0x1] }
 0x199   : > { %v3047_v20 = vshll.u32 %v7601_v35, 16  ;;  %v3044_v52 = vor.u32 %v3043_v17, %v3039_v60  ;;  %v3082_v17 = vor.u32 %v3081_v30, %v3078_v54  ;;  %v3040_v45 = vsel %vm7807_vm9, %v3035_v24, %v3039_v60 }
 0x19a   : > { %v3105_v54 = vrot.slane %v3103_v39, 5  ;;  %v7606_v39 = vld [vmem:[#allocation2 + $0x98] sm:$0x1] }
 0x19b   : > { %v3049_v40 = vrot.slane %v3047_v20, 5  ;;  %v7604_v20 = vld [vmem:[#allocation2 + $0x8c] sm:$0x1]  ;;  %v3083_v60 = vrot.slane %v3082_v17, 4  ;;  %v3119_v6 = vshll.u32 %v7606_v39, 16 }
 0x19c   : > { %v3095_v47 = vshll.u32 %v7604_v20, 16  ;;  %v3106_v3 = vor.u32 %v3105_v54, %v3102_v2  ;;  %v7608_v20 = vld [vmem:[#allocation2 + $0xa4] sm:$0x1] }
 0x19d   : > { %v3121_v54 = vrot.slane %v3119_v6, 5 }
 0x19e   : > { %7198 = vmatmul.mubr.msk.bf16.gmra.mrb[4].mxu0 %vm1462_vm8, %v6558_v19  ;;  %v3107_v2 = vrot.slane %v3106_v3, 4 }
 0x19f   : > { %7044 = vmatmul.mubr.msk.bf16.gmra.mrb[20].mxu1 %vm1462_vm8, %v7546_v38  ;;  %7201 = vmatprep.mubr.msk.bf16.mxu0 %vm1462_vm8, %v6559_v63  ;;  %v3045_v38 = vrot.slane %v3044_v52, 4  ;;  %v3092_v63 = vor.u32 %v3091_v53, %v9373_v48  ;;  %v7605_v52 = vld [vmem:[#allocation2 + $0xa0] sm:$0xf]  ;;  %v3126_v53 = vrot.slane %v3124_v29, 4  ;;  %v3172_v29 = vshrl.u32 %v6272_v56, 16 }
 0x1a0   : > { %7047 = vmatprep.mubr.msk.bf16.mxu1 %vm1462_vm8, %v7547_v4  ;;  %v7603_v4 = vld [vmem:[#allocation2 + $0x94] sm:$0xf]  ;;  %v3133_v18 = vshll.u32 %v7605_v52, 16  ;;  %v3137_v12 = vshrl.u32 %v7605_v52, 16  ;;  %v7609_v52 = vld [vmem:[#allocation2 + $0xb8] sm:$0xf] }
 0x1a1   : > { %v3109_v19 = vshll.u32 %v7603_v4, 16  ;;  %v3113_v35 = vshrl.u32 %v7603_v4, 16  ;;  %v3050_v13 = vsel %vm7807_vm9, %v3045_v38, %v3049_v40  ;;  %v3093_v24 = vrot.slane %v3092_v63, 4 }
 0x1a2   : > { %v3097_v38 = vrot.slane %v3095_v47, 5  ;;  %v9392_v5 = vrot.slane %v3133_v18, 5  ;;  %v3139_v0 = vrot.slane %v3137_v12, 4  ;;  %v3151_v4 = vshll.u32 %v6269_v28, 16 }
 0x1a3   : > { %v9386_v40 = vrot.slane %v3109_v19, 5  ;;  %v3115_v30 = vrot.slane %v3113_v35, 4  ;;  %v7607_v19 = vld [vmem:[#allocation2 + $0xac] sm:$0xf]  ;;  %v3143_v47 = vshll.u32 %v7608_v20, 16  ;;  %v3181_v18 = vshll.u32 %v7609_v52, 16 }
 0x1a4   : > { %v3157_v35 = vshll.u32 %v7607_v19, 16  ;;  %v3185_v12 = vshrl.u32 %v7609_v52, 16  ;;  %v3174_v16 = vrot.slane %v3172_v29, 4 }
 0x1a5   : > { %v3116_v17 = vor.u32 %v3115_v30, %v9386_v40 }
 0x1a6   : > { %7202 = vmatmul.mubr.msk.bf16.gmra.mrb[8].mxu0 %vm1462_vm8, %v6560_v11  ;;  %v3088_v11 = vsel %vm7807_vm9, %v3083_v60, %v9373_v48  ;;  %v3140_v48 = vor.u32 %v3139_v0, %v9392_v5  ;;  %v3145_v0 = vrot.slane %v3143_v47, 5  ;;  %v3187_v3 = vrot.slane %v3185_v12, 4 }
 0x1a7   : > { %7048 = vmatmul.mubr.msk.bf16.gmra.mrb[24].mxu1 %vm1462_vm8, %v7548_v62  ;;  %7205 = vmatprep.mubr.msk.bf16.mxu0 %vm1462_vm8, %v6561_v15  ;;  %v6287_v62 = vcombine.low %v3040_v45, %v3050_v13  ;;  %v3148_v15 = vshrl.u32 %v6269_v28, 16  ;;  %v3161_v45 = vshrl.u32 %v7607_v19, 16  ;;  %v3098_v13 = vsel %vm7807_vm9, %v3093_v24, %v3097_v38  ;;  %v6275_v28 = vld [vmem:[#allocation2 + $0xc0] sm:$0xf] }
 0x1a8   : > { %7051 = vmatprep.mubr.msk.bf16.mxu1 %vm1462_vm8, %v7549_v59  ;;  %v3129_v59 = vrot.slane %v3127_v23, 5  ;;  %v3175_v23 = vshll.u32 %v6272_v56, 16  ;;  %v3117_v60 = vrot.slane %v3116_v17, 4  ;;  %v6289_v38 = vcombine.low %v3088_v11, %v3098_v13 }
 0x1a9   : > { %v3150_v30 = vrot.slane %v3148_v15, 4  ;;  %v3163_v24 = vrot.slane %v3161_v45, 4  ;;  %v3112_v17 = vsel %vm7807_vm9, %v3107_v2, %v9386_v40  ;;  %v3196_v6 = vshrl.u32 %v6275_v28, 16 }
 0x1aa   : > { %v3130_v63 = vor.u32 %v3129_v59, %v3126_v53  ;;  %v3141_v59 = vrot.slane %v3140_v48, 4  ;;  %v3177_v46 = vrot.slane %v3175_v23, 5  ;;  %v3122_v42 = vsel %vm7807_vm9, %v3117_v60, %v3121_v54  ;;  %v7613_v54 = vld [vmem:[#allocation2 + $0xc8] sm:$0x1] }
 0x1ab   : > { %v3199_v56 = vshll.u32 %v6275_v28, 16  ;;  %v6290_v48 = vcombine.low %v3112_v17, %v3122_v42  ;;  %v3198_v29 = vrot.slane %v3196_v6, 4  ;;  %v5235_v2 = vrot.slane %v9175_v7, 5 }
 0x1ac   : > { %v3131_v53 = vrot.slane %v3130_v63, 4  ;;  %v3178_v45 = vor.u32 %v3177_v46, %v3174_v16  ;;  %v7612_v63 = vld [vmem:[#allocation2 + $0xbc] sm:$0x1] }
 0x1ad   : > { %v3201_v23 = vrot.slane %v3199_v56, 5  ;;  %v5237_v7 = vrot.slane %v5235_v2, 4 }
 0x1ae   : > { %7206 = vmatmul.mubr.msk.bf16.gmra.mrb[12].mxu0 %vm1462_vm8, %v6562_v61  ;;  %v3183_v61 = vrot.slane %v3181_v18, 5  ;;  %v3136_v15 = vsel %vm7807_vm9, %v3131_v53, %v9392_v5  ;;  %v3179_v60 = vrot.slane %v3178_v45, 4 }
 0x1af   : > { %7052 = vmatmul.mubr.msk.bf16.gmra.mrb[28].mxu1 %vm1462_vm8, %v7550_v36  ;;  %7209 = vmatprep.mubr.msk.bf16.mxu0 %vm1462_vm8, %v6563_v31  ;;  %v3153_v36 = vrot.slane %v3151_v4, 5  ;;  %v3167_v31 = vshll.u32 %v7610_v21, 16  ;;  %v7611_v4 = vld [vmem:[#allocation2 + $0xc4] sm:$0xf] }
 0x1b0   : > { %7073 = vmatprep.mubr.msk.bf16.mxu1 %vm1462_vm8, %v6287_v62  ;;  %v3159_v62 = vrot.slane %v3157_v35, 5  ;;  %v3205_v40 = vshll.u32 %v7611_v4, 16  ;;  %v3209_v19 = vshrl.u32 %v7611_v4, 16  ;;  %v3146_v35 = vsel %vm7807_vm9, %v3141_v59, %v3145_v0 }
 0x1b1   : > { %v3154_v11 = vor.u32 %v3153_v36, %v3150_v30  ;;  %v3188_v13 = vor.u32 %v3187_v3, %v3183_v61  ;;  %v3169_v20 = vrot.slane %v3167_v31, 5  ;;  %v6291_v52 = vcombine.low %v3136_v15, %v3146_v35 }
 0x1b2   : > { %v3164_v39 = vor.u32 %v3163_v24, %v3159_v62  ;;  %v3207_v18 = vrot.slane %v3205_v40, 5  ;;  %v3211_v12 = vrot.slane %v3209_v19, 4  ;;  %v3215_v30 = vshll.u32 %v7613_v54, 16 }
 0x1b3   : > { %v3155_v5 = vrot.slane %v3154_v11, 4  ;;  %v3189_v22 = vrot.slane %v3188_v13, 4  ;;  %v3184_v53 = vsel %vm7807_vm9, %v3179_v60, %v3183_v61 }
 0x1b4   : > { %v3165_v47 = vrot.slane %v3164_v39, 4  ;;  %v3212_v36 = vor.u32 %v3211_v12, %v3207_v18 }
 0x1b5   : > { %v3160_v58 = vsel %vm7807_vm9, %v3155_v5, %v3159_v62 }
 0x1b6   : > { %7210 = vmatmul.mubr.msk.bf16.gmra.mrb[16].mxu0 %vm1462_vm8, %v6564_v41  ;;  %v6536_v41 = vld [vmem:[#allocation2 + $0xc0] sm:$0xe]  ;;  %v3170_v10 = vsel %vm7807_vm9, %v3165_v47, %v3169_v20  ;;  %v3213_v16 = vrot.slane %v3212_v36, 4 }
 0x1b7   : > { %7074 = vmatmul.mubr.msk.bf16.vlgmr.msra.gmra.mrb[16].mxu1 %vm1462_vm8, %v9220_v49  ;;  %v3191_v49 = vshll.u32 %v7612_v63, 16  ;;  %7213 = vmatprep.mubr.msk.bf16.mxu0 %vm1462_vm8, %v6565_v32  ;;  %v3202_v32 = vor.u32 %v3201_v23, %v3198_v29  ;;  %v6552_v24 = vrot.slane %v6536_v41, 9  ;;  %v6292_v62 = vcombine.low %v3160_v58, %v3170_v10 }
 0x1b8   : > { %7077 = vmatprep.mubr.msk.bf16.mxu1 %vm1462_vm8, %v6289_v38  ;;  %v5238_v38 = vrot.slane %v9200_v51, 5  ;;  %v3217_v51 = vrot.slane %v3215_v30, 5 }
 0x1b9   : > { %v3193_v55 = vrot.slane %v3191_v49, 5  ;;  %v3203_v0 = vrot.slane %v3202_v32, 4  ;;  %v5236_v46 = vsel %vm8133_vm15, %v6552_v24, %v5235_v2 }
 0x1ba   : > { %v5239_v61 = vsel %vm8133_vm15, %v5237_v7, %v5238_v38 }
 0x1bb   : > { %v3194_v59 = vsel %vm7807_vm9, %v3189_v22, %v3193_v55  ;;  %v6569_v8 = vcombine.low %v5236_v46, %v5239_v61  ;;  %v3208_v14 = vsel %vm7807_vm9, %v3203_v0, %v3207_v18 }
 0x1bc   : > { %v6293_v28 = vcombine.low %v3184_v53, %v3194_v59 }
 0x1be   : > { %7214 = vmatmul.mubr.msk.bf16.gmra.mrb[20].mxu0 %vm1462_vm8, %v6566_v57  ;;  %v3218_v57 = vsel %vm7807_vm9, %v3213_v16, %v3217_v51 }
 0x1bf   : > { %7078 = vmatmul.mubr.msk.bf16.gmra.mrb[20].mxu1 %vm1462_vm8, %v6290_v48  ;;  %7217 = vmatprep.mubr.msk.bf16.mxu0 %vm1462_vm8, %v6567_v27  ;;  %v6294_v33 = vcombine.low %v3208_v14, %v3218_v57 }
 0x1c0   : > { %7081 = vmatprep.mubr.msk.bf16.mxu1 %vm1462_vm8, %v6291_v52 }
 0x1c6   : > { %7218 = vmatmul.mubr.msk.bf16.gmra.mrb[24].mxu0 %vm1462_vm8, %v6568_v9 }
 0x1c7   : > { %7082 = vmatmul.mubr.msk.bf16.gmra.mrb[24].mxu1 %vm1462_vm8, %v6292_v62  ;;  %7221 = vmatprep.mubr.msk.bf16.mxu0 %vm1462_vm8, %v6569_v8 }
 0x1c8   : > { %7085 = vmatprep.mubr.msk.bf16.mxu1 %vm1462_vm8, %v6293_v28 }
 0x1ce   : > { %7222 = vmatmul.mubr.msk.bf16.gmra.mrb[28].mxu0 %vm1462_vm8, %v6570_v25 }
 0x1cf   : > { %7086 = vmatmul.mubr.msk.bf16.gmra.mrb[28].mxu1 %vm1462_vm8, %v6294_v33 }
 0x24a   : > { %v7025_v34 = vpop.f32.mrb[0].mxu1 }
 0x24b   : > { %v2628_v37 = vpop.f32.mrb[1].mxu1 }
 0x24c   : > { %v7026_v44 = vpop.f32.mrb[2].mxu1 }
 0x24d   : > { %v2631_v27 = vpop.f32.mrb[3].mxu1 }
 0x252   : > { %v7029_v50 = vpop.f32.mrb[4].mxu1 }
 0x253   : > { %v2644_v9 = vpop.f32.mrb[5].mxu1 }
 0x254   : > { %v7030_v1 = vpop.f32.mrb[6].mxu1 }
 0x255   : > { %v2647_v26 = vpop.f32.mrb[7].mxu1 }
 0x25a   : > { %v9480_v25 = vpop.f32.mrb[8].mxu1 }
 0x25b   : > { %v9482_v3 = vpop.f32.mrb[9].mxu1 }
 0x25c   : > { %v9484_v17 = vpop.f32.mrb[10].mxu1 }
 0x25d   : > { %v9486_v42 = vpop.f32.mrb[11].mxu1 }
 0x262   : > { %v9488_v21 = vpop.f32.mrb[12].mxu1 }
 0x263   : > { %v9490_v31 = vpop.f32.mrb[13].mxu1 }
 0x264   : > { %v9492_v11 = vpop.f32.mrb[14].mxu1 }
 0x265   : > { %v9494_v39 = vpop.f32.mrb[15].mxu1 }
 0x269   : > { %v7195_v6 = vpop.f32.mrb[0].mxu0 }
 0x26a   : > { %v7227_v56 = vadd.f32 %v7195_v6, %v7025_v34  ;;  %v5382_v15 = vpop.f32.mrb[1].mxu0 }
 0x26b   : > { %v7228_v4 = vadd.f32 %v5382_v15, %v2628_v37  ;;  %v7196_v40 = vpop.f32.mrb[2].mxu0 }
 0x26c   : > { %v6657_v19 = vpack.c.bf16 %v7227_v56, %v7227_v56  ;;  %v7229_v35 = vadd.f32 %v7196_v40, %v7026_v44  ;;  %v5385_v45 = vpop.f32.mrb[3].mxu0  ;;  %v5774_v48 = vmul.f32 %v7227_v56, %v7227_v56  ;;  %v5706_v12 = vsel %vm5702_vm2, %v7227_v56, 0.0 }
 0x26d   : > { %v6655_v13 = vpack.c.bf16 %v7228_v4, %v7228_v4  ;;  %v5772_v63 = vmul.f32 %v7228_v4, %v7228_v4  ;;  %v7230_v49 = vadd.f32 %v5385_v45, %v2631_v27  ;;  %v5703_v5 = vsel %vm5702_vm2, %v7228_v4, 0.0 }
 0x26e   : > { %5672 = vst.msk [vmem:[%s9501_s20 + $0x8] sm:$0xf] %vm5669_vm1, %v6657_v19  ;;  %v6658_v20 = vpack.c.bf16 %v7229_v35, %v7229_v35  ;;  %v5775_v52 = vmul.f32 %v7229_v35, %v7229_v35  ;;  %v5807_v32 = vsel %vm5702_vm2, %v5774_v48, 0.0  ;;  %v5708_v36 = vsel %vm5702_vm2, %v7229_v35, 0.0 }
 0x26f   : > { %5670 = vst.msk [vmem:[%s9501_s20] sm:$0xf] %vm5669_vm1, %v6655_v13  ;;  %v6656_v47 = vpack.c.bf16 %v7230_v49, %v7230_v49  ;;  %v5704_v29 = vsel %vm5702_vm2, %v7230_v49, 0.0  ;;  %v5773_v23 = vmul.f32 %v7230_v49, %v7230_v49  ;;  %v5804_v2 = vsel %vm5702_vm2, %v5772_v63, 0.0 }
 0x270   : > { %5673 = vst.msk [vmem:[%s9501_s20 + $0xc] sm:$0xf] %vm5669_vm1, %v6658_v20  ;;  %v5705_v18 = vadd.f32 %v5704_v29, %v5703_v5  ;;  %v5809_v24 = vsel %vm5702_vm2, %v5775_v52, 0.0 }
 0x271   : > { %5671 = vst.msk [vmem:[%s9501_s20 + $0x4] sm:$0xf] %vm5669_vm1, %v6656_v47  ;;  %v5805_v60 = vsel %vm5702_vm2, %v5773_v23, 0.0  ;;  %v7199_v22 = vpop.f32.mrb[4].mxu0 }
 0x272   : > { %v5707_v55 = vadd.f32 %v5706_v12, %v5705_v18  ;;  %v5806_v41 = vadd.f32 %v5805_v60, %v5804_v2  ;;  %v7231_v58 = vadd.f32 %v7199_v22, %v7029_v50  ;;  %v5398_v10 = vpop.f32.mrb[5].mxu0 }
 0x273   : > { %v7232_v54 = vadd.f32 %v5398_v10, %v2644_v9  ;;  %v7200_v30 = vpop.f32.mrb[6].mxu0 }
 0x274   : > { %v5808_v7 = vadd.f32 %v5807_v32, %v5806_v41  ;;  %v6661_v38 = vpack.c.bf16 %v7231_v58, %v7231_v58  ;;  %v5401_v53 = vpop.f32.mrb[7].mxu0  ;;  %v5709_v62 = vadd.f32 %v5708_v36, %v5707_v55  ;;  %v7233_v16 = vadd.f32 %v7200_v30, %v7030_v1 }
 0x275   : > { %v6659_v59 = vpack.c.bf16 %v7232_v54, %v7232_v54  ;;  %v5710_v0 = vsel %vm5702_vm2, %v7232_v54, 0.0  ;;  %v5776_v51 = vmul.f32 %v7232_v54, %v7232_v54  ;;  %v7234_v46 = vadd.f32 %v5401_v53, %v2647_v26 }
 0x276   : > { %5676 = vst.msk [vmem:[%s9501_s20 + $0x18] sm:$0xf] %vm5669_vm1, %v6661_v38  ;;  %v5810_v28 = vadd.f32 %v5809_v24, %v5808_v7  ;;  %v5711_v61 = vadd.f32 %v5710_v0, %v5709_v62  ;;  %v5778_v14 = vmul.f32 %v7231_v58, %v7231_v58  ;;  %v6662_v33 = vpack.c.bf16 %v7233_v16, %v7233_v16 }
 0x277   : > { %5674 = vst.msk [vmem:[%s9501_s20 + $0x10] sm:$0xf] %vm5669_vm1, %v6659_v59  ;;  %v5811_v8 = vsel %vm5702_vm2, %v5776_v51, 0.0  ;;  %v6660_v43 = vpack.c.bf16 %v7234_v46, %v7234_v46  ;;  %v5712_v34 = vsel %vm5702_vm2, %v7234_v46, 0.0  ;;  %v5777_v37 = vmul.f32 %v7234_v46, %v7234_v46 }
 0x278   : > { %v5812_v57 = vadd.f32 %v5811_v8, %v5810_v28  ;;  %5677 = vst.msk [vmem:[%s9501_s20 + $0x1c] sm:$0xf] %vm5669_vm1, %v6662_v33  ;;  %v5713_v27 = vadd.f32 %v5712_v34, %v5711_v61  ;;  %v5714_v1 = vsel %vm5702_vm2, %v7231_v58, 0.0  ;;  %v5779_v26 = vmul.f32 %v7233_v16, %v7233_v16 }
 0x279   : > { %v7203_v44 = vpop.f32.mrb[8].mxu0  ;;  %5675 = vst.msk [vmem:[%s9501_s20 + $0x14] sm:$0xf] %vm5669_vm1, %v6660_v43  ;;  %v5813_v6 = vsel %vm5702_vm2, %v5777_v37, 0.0  ;;  %v5815_v4 = vsel %vm5702_vm2, %v5778_v14, 0.0 }
 0x27a   : > { %v7235_v50 = vadd.f32 %v7203_v44, %v9480_v25  ;;  %v5414_v9 = vpop.f32.mrb[9].mxu0  ;;  %v5715_v40 = vadd.f32 %v5714_v1, %v5713_v27  ;;  %v5814_v19 = vadd.f32 %v5813_v6, %v5812_v57  ;;  %v5716_v25 = vsel %vm5702_vm2, %v7233_v16, 0.0 }
 0x27b   : > { %v7236_v56 = vadd.f32 %v5414_v9, %v9482_v3  ;;  %v7204_v15 = vpop.f32.mrb[10].mxu0  ;;  %v5817_v47 = vsel %vm5702_vm2, %v5779_v26, 0.0 }
 0x27c   : > { %v6665_v35 = vpack.c.bf16 %v7235_v50, %v7235_v50  ;;  %v5417_v45 = vpop.f32.mrb[11].mxu0  ;;  %v5816_v48 = vadd.f32 %v5815_v4, %v5814_v19  ;;  %v5717_v20 = vadd.f32 %v5716_v25, %v5715_v40  ;;  %v7237_v3 = vadd.f32 %v7204_v15, %v9484_v17 }
 0x27d   : > { %v6663_v13 = vpack.c.bf16 %v7236_v56, %v7236_v56  ;;  %v5718_v63 = vsel %vm5702_vm2, %v7236_v56, 0.0  ;;  %v5780_v49 = vmul.f32 %v7236_v56, %v7236_v56  ;;  %v7238_v5 = vadd.f32 %v5417_v45, %v9486_v42 }
 0x27e   : > { %5680 = vst.msk [vmem:[%s9501_s20 + $0x28] sm:$0xf] %vm5669_vm1, %v6665_v35  ;;  %v5782_v23 = vmul.f32 %v7235_v50, %v7235_v50  ;;  %v5719_v52 = vadd.f32 %v5718_v63, %v5717_v20  ;;  %v5818_v18 = vadd.f32 %v5817_v47, %v5816_v48  ;;  %v6666_v12 = vpack.c.bf16 %v7237_v3, %v7237_v3 }
 0x27f   : > { %5678 = vst.msk [vmem:[%s9501_s20 + $0x20] sm:$0xf] %vm5669_vm1, %v6663_v13  ;;  %v5819_v29 = vsel %vm5702_vm2, %v5780_v49, 0.0  ;;  %v6664_v2 = vpack.c.bf16 %v7238_v5, %v7238_v5  ;;  %v5720_v60 = vsel %vm5702_vm2, %v7238_v5, 0.0  ;;  %v5781_v22 = vmul.f32 %v7238_v5, %v7238_v5 }
 0x280   : > { %v5820_v41 = vadd.f32 %v5819_v29, %v5818_v18  ;;  %5681 = vst.msk [vmem:[%s9501_s20 + $0x2c] sm:$0xf] %vm5669_vm1, %v6666_v12  ;;  %v5721_v17 = vadd.f32 %v5720_v60, %v5719_v52  ;;  %v5722_v10 = vsel %vm5702_vm2, %v7235_v50, 0.0  ;;  %v5783_v32 = vmul.f32 %v7237_v3, %v7237_v3 }
 0x281   : > { %v7207_v55 = vpop.f32.mrb[12].mxu0  ;;  %5679 = vst.msk [vmem:[%s9501_s20 + $0x24] sm:$0xf] %vm5669_vm1, %v6664_v2  ;;  %v5821_v54 = vsel %vm5702_vm2, %v5781_v22, 0.0  ;;  %v5823_v24 = vsel %vm5702_vm2, %v5782_v23, 0.0 }
 0x282   : > { %v7239_v42 = vadd.f32 %v7207_v55, %v9488_v21  ;;  %v5430_v58 = vpop.f32.mrb[13].mxu0  ;;  %v5723_v7 = vadd.f32 %v5722_v10, %v5721_v17  ;;  %v5822_v38 = vadd.f32 %v5821_v54, %v5820_v41  ;;  %v5724_v21 = vsel %vm5702_vm2, %v7237_v3, 0.0 }
 0x283   : > { %v7240_v30 = vadd.f32 %v5430_v58, %v9490_v31  ;;  %v7208_v36 = vpop.f32.mrb[14].mxu0  ;;  %v5825_v8 = vsel %vm5702_vm2, %v5783_v32, 0.0 }
 0x284   : > { %v6669_v53 = vpack.c.bf16 %v7239_v42, %v7239_v42  ;;  %v5433_v59 = vpop.f32.mrb[15].mxu0  ;;  %v5824_v28 = vadd.f32 %v5823_v24, %v5822_v38  ;;  %v5725_v16 = vadd.f32 %v5724_v21, %v5723_v7  ;;  %v7241_v31 = vadd.f32 %v7208_v36, %v9492_v11 }
 0x285   : > { %v6667_v62 = vpack.c.bf16 %v7240_v30, %v7240_v30  ;;  %v5726_v0 = vsel %vm5702_vm2, %v7240_v30, 0.0  ;;  %v5784_v51 = vmul.f32 %v7240_v30, %v7240_v30  ;;  %v7242_v46 = vadd.f32 %v5433_v59, %v9494_v39 }
 0x286   : > { %5684 = vst.msk [vmem:[%s9501_s20 + $0x38] sm:$0xf] %vm5669_vm1, %v6669_v53  ;;  %v5786_v33 = vmul.f32 %v7239_v42, %v7239_v42  ;;  %v5727_v43 = vadd.f32 %v5726_v0, %v5725_v16  ;;  %v5826_v34 = vadd.f32 %v5825_v8, %v5824_v28  ;;  %v6670_v37 = vpack.c.bf16 %v7241_v31, %v7241_v31 }
 0x287   : > { %5682 = vst.msk [vmem:[%s9501_s20 + $0x30] sm:$0xf] %vm5669_vm1, %v6667_v62  ;;  %v5827_v14 = vsel %vm5702_vm2, %v5784_v51, 0.0  ;;  %v6668_v27 = vpack.c.bf16 %v7242_v46, %v7242_v46  ;;  %v5728_v11 = vsel %vm5702_vm2, %v7242_v46, 0.0  ;;  %v5785_v50 = vmul.f32 %v7242_v46, %v7242_v46 }
 0x288   : > { %v5828_v1 = vadd.f32 %v5827_v14, %v5826_v34  ;;  %5685 = vst.msk [vmem:[%s9501_s20 + $0x3c] sm:$0xf] %vm5669_vm1, %v6670_v37  ;;  %v5729_v26 = vadd.f32 %v5728_v11, %v5727_v43  ;;  %v5730_v15 = vsel %vm5702_vm2, %v7239_v42, 0.0  ;;  %v5787_v4 = vmul.f32 %v7241_v31, %v7241_v31 }
 0x289   : > { %v7211_v39 = vpop.f32.mrb[16].mxu0  ;;  %5683 = vst.msk [vmem:[%s9501_s20 + $0x34] sm:$0xf] %vm5669_vm1, %v6668_v27  ;;  %v5829_v40 = vsel %vm5702_vm2, %v5785_v50, 0.0  ;;  %v5831_v45 = vsel %vm5702_vm2, %v5786_v33, 0.0  ;;  %v5732_v48 = vsel %vm5702_vm2, %v7241_v31, 0.0 }
 0x28a   : > { %v7075_v61 = vpop.f32.mrb[16].mxu1  ;;  %v5446_v56 = vpop.f32.mrb[17].mxu0  ;;  %v5731_v25 = vadd.f32 %v5730_v15, %v5729_v26  ;;  %v5830_v13 = vadd.f32 %v5829_v40, %v5828_v1  ;;  %v5833_v12 = vsel %vm5702_vm2, %v5787_v4, 0.0 }
 0x28b   : > { %v3418_v57 = vpop.f32.mrb[17].mxu1  ;;  %v7243_v6 = vadd.f32 %v7211_v39, %v7075_v61  ;;  %v7212_v35 = vpop.f32.mrb[18].mxu0 }
 0x28c   : > { %v7076_v44 = vpop.f32.mrb[18].mxu1  ;;  %v7244_v19 = vadd.f32 %v5446_v56, %v3418_v57  ;;  %v5449_v49 = vpop.f32.mrb[19].mxu0  ;;  %v5832_v47 = vadd.f32 %v5831_v45, %v5830_v13  ;;  %v5733_v29 = vadd.f32 %v5732_v48, %v5731_v25 }
 0x28d   : > { %v3421_v9 = vpop.f32.mrb[19].mxu1  ;;  %v6673_v63 = vpack.c.bf16 %v7243_v6, %v7243_v6  ;;  %v7245_v23 = vadd.f32 %v7212_v35, %v7076_v44  ;;  %v5790_v22 = vmul.f32 %v7243_v6, %v7243_v6  ;;  %v5738_v53 = vsel %vm5702_vm2, %v7243_v6, 0.0 }
 0x28e   : > { %v6671_v20 = vpack.c.bf16 %v7244_v19, %v7244_v19  ;;  %v5734_v3 = vsel %vm5702_vm2, %v7244_v19, 0.0  ;;  %v5788_v5 = vmul.f32 %v7244_v19, %v7244_v19  ;;  %v7246_v52 = vadd.f32 %v5449_v49, %v3421_v9 }
 0x28f   : > { %5688 = vst.msk [vmem:[%s9501_s20 + $0x48] sm:$0xf] %vm5669_vm1, %v6673_v63  ;;  %v5735_v55 = vadd.f32 %v5734_v3, %v5733_v29  ;;  %v5834_v41 = vadd.f32 %v5833_v12, %v5832_v47  ;;  %v6674_v17 = vpack.c.bf16 %v7245_v23, %v7245_v23  ;;  %v5791_v59 = vmul.f32 %v7245_v23, %v7245_v23 }
 0x290   : > { %5686 = vst.msk [vmem:[%s9501_s20 + $0x40] sm:$0xf] %vm5669_vm1, %v6671_v20  ;;  %v5835_v2 = vsel %vm5702_vm2, %v5788_v5, 0.0  ;;  %v6672_v58 = vpack.c.bf16 %v7246_v52, %v7246_v52  ;;  %v5736_v10 = vsel %vm5702_vm2, %v7246_v52, 0.0  ;;  %v5789_v32 = vmul.f32 %v7246_v52, %v7246_v52 }
 0x291   : > { %v7215_v54 = vpop.f32.mrb[20].mxu0  ;;  %v5836_v36 = vadd.f32 %v5835_v2, %v5834_v41  ;;  %5689 = vst.msk [vmem:[%s9501_s20 + $0x4c] sm:$0xf] %vm5669_vm1, %v6674_v17  ;;  %v5737_v24 = vadd.f32 %v5736_v10, %v5735_v55  ;;  %v5839_v51 = vsel %vm5702_vm2, %v5790_v22, 0.0  ;;  %v5740_v61 = vsel %vm5702_vm2, %v7245_v23, 0.0 }
 0x292   : > { %v7079_v18 = vpop.f32.mrb[20].mxu1  ;;  %v5462_v38 = vpop.f32.mrb[21].mxu0  ;;  %5687 = vst.msk [vmem:[%s9501_s20 + $0x44] sm:$0xf] %vm5669_vm1, %v6672_v58  ;;  %v5837_v21 = vsel %vm5702_vm2, %v5789_v32, 0.0  ;;  %v5841_v27 = vsel %vm5702_vm2, %v5791_v59, 0.0 }
 0x293   : > { %v3434_v60 = vpop.f32.mrb[21].mxu1  ;;  %v7247_v7 = vadd.f32 %v7215_v54, %v7079_v18  ;;  %v7216_v0 = vpop.f32.mrb[22].mxu0  ;;  %v5739_v28 = vadd.f32 %v5738_v53, %v5737_v24  ;;  %v5838_v16 = vadd.f32 %v5837_v21, %v5836_v36 }
 0x294   : > { %v7080_v42 = vpop.f32.mrb[22].mxu1  ;;  %v7248_v62 = vadd.f32 %v5462_v38, %v3434_v60  ;;  %v5465_v46 = vpop.f32.mrb[23].mxu0 }
 0x295   : > { %v3437_v30 = vpop.f32.mrb[23].mxu1  ;;  %v6677_v31 = vpack.c.bf16 %v7247_v7, %v7247_v7  ;;  %v5840_v33 = vadd.f32 %v5839_v51, %v5838_v16  ;;  %v5741_v43 = vadd.f32 %v5740_v61, %v5739_v28  ;;  %v7249_v34 = vadd.f32 %v7216_v0, %v7080_v42 }
 0x296   : > { %v6675_v8 = vpack.c.bf16 %v7248_v62, %v7248_v62  ;;  %v5742_v14 = vsel %vm5702_vm2, %v7248_v62, 0.0  ;;  %v5792_v57 = vmul.f32 %v7248_v62, %v7248_v62  ;;  %v7250_v37 = vadd.f32 %v5465_v46, %v3437_v30 }
 0x297   : > { %5692 = vst.msk [vmem:[%s9501_s20 + $0x58] sm:$0xf] %vm5669_vm1, %v6677_v31  ;;  %v5794_v39 = vmul.f32 %v7247_v7, %v7247_v7  ;;  %v5743_v9 = vadd.f32 %v5742_v14, %v5741_v43  ;;  %v5842_v1 = vadd.f32 %v5841_v27, %v5840_v33  ;;  %v6678_v26 = vpack.c.bf16 %v7249_v34, %v7249_v34 }
 0x298   : > { %5690 = vst.msk [vmem:[%s9501_s20 + $0x50] sm:$0xf] %vm5669_vm1, %v6675_v8  ;;  %v5843_v11 = vsel %vm5702_vm2, %v5792_v57, 0.0  ;;  %v6676_v56 = vpack.c.bf16 %v7250_v37, %v7250_v37  ;;  %v5744_v15 = vsel %vm5702_vm2, %v7250_v37, 0.0  ;;  %v5793_v4 = vmul.f32 %v7250_v37, %v7250_v37 }
 0x299   : > { %v7219_v40 = vpop.f32.mrb[24].mxu0  ;;  %v5844_v35 = vadd.f32 %v5843_v11, %v5842_v1  ;;  %5693 = vst.msk [vmem:[%s9501_s20 + $0x5c] sm:$0xf] %vm5669_vm1, %v6678_v26  ;;  %v5745_v45 = vadd.f32 %v5744_v15, %v5743_v9  ;;  %v5746_v63 = vsel %vm5702_vm2, %v7247_v7, 0.0  ;;  %v5795_v49 = vmul.f32 %v7249_v34, %v7249_v34 }
 0x29a   : > { %v7083_v44 = vpop.f32.mrb[24].mxu1  ;;  %v5478_v13 = vpop.f32.mrb[25].mxu0  ;;  %5691 = vst.msk [vmem:[%s9501_s20 + $0x54] sm:$0xf] %vm5669_vm1, %v6676_v56  ;;  %v5845_v48 = vsel %vm5702_vm2, %v5793_v4, 0.0  ;;  %v5847_v5 = vsel %vm5702_vm2, %v5794_v39, 0.0 }
 0x29b   : > { %v3450_v50 = vpop.f32.mrb[25].mxu1  ;;  %v7251_v25 = vadd.f32 %v7219_v40, %v7083_v44  ;;  %v7220_v3 = vpop.f32.mrb[26].mxu0  ;;  %v5747_v47 = vadd.f32 %v5746_v63, %v5745_v45  ;;  %v5846_v29 = vadd.f32 %v5845_v48, %v5844_v35  ;;  %v5748_v18 = vsel %vm5702_vm2, %v7249_v34, 0.0 }
 0x29c   : > { %v7084_v6 = vpop.f32.mrb[26].mxu1  ;;  %v7252_v20 = vadd.f32 %v5478_v13, %v3450_v50  ;;  %v5481_v52 = vpop.f32.mrb[27].mxu0  ;;  %v5849_v58 = vsel %vm5702_vm2, %v5795_v49, 0.0 }
 0x29d   : > { %v3453_v19 = vpop.f32.mrb[27].mxu1  ;;  %v6681_v23 = vpack.c.bf16 %v7251_v25, %v7251_v25  ;;  %v5848_v22 = vadd.f32 %v5847_v5, %v5846_v29  ;;  %v5749_v55 = vadd.f32 %v5748_v18, %v5747_v47  ;;  %v7253_v41 = vadd.f32 %v7220_v3, %v7084_v6 }
 0x29e   : > { %v6679_v12 = vpack.c.bf16 %v7252_v20, %v7252_v20  ;;  %v5750_v2 = vsel %vm5702_vm2, %v7252_v20, 0.0  ;;  %v5796_v60 = vmul.f32 %v7252_v20, %v7252_v20  ;;  %v7254_v17 = vadd.f32 %v5481_v52, %v3453_v19 }
 0x29f   : > { %5696 = vst.msk [vmem:[%s9501_s20 + $0x68] sm:$0xf] %vm5669_vm1, %v6681_v23  ;;  %v5798_v54 = vmul.f32 %v7251_v25, %v7251_v25  ;;  %v5751_v30 = vadd.f32 %v5750_v2, %v5749_v55  ;;  %v5850_v36 = vadd.f32 %v5849_v58, %v5848_v22  ;;  %v6682_v24 = vpack.c.bf16 %v7253_v41, %v7253_v41 }
 0x2a0   : > { %5694 = vst.msk [vmem:[%s9501_s20 + $0x60] sm:$0xf] %vm5669_vm1, %v6679_v12  ;;  %v5851_v10 = vsel %vm5702_vm2, %v5796_v60, 0.0  ;;  %v6680_v38 = vpack.c.bf16 %v7254_v17, %v7254_v17  ;;  %v5752_v53 = vsel %vm5702_vm2, %v7254_v17, 0.0  ;;  %v5797_v59 = vmul.f32 %v7254_v17, %v7254_v17 }
 0x2a1   : > { %v7223_v21 = vpop.f32.mrb[28].mxu0  ;;  %v5852_v0 = vadd.f32 %v5851_v10, %v5850_v36  ;;  %5697 = vst.msk [vmem:[%s9501_s20 + $0x6c] sm:$0xf] %vm5669_vm1, %v6682_v24  ;;  %v5753_v51 = vadd.f32 %v5752_v53, %v5751_v30  ;;  %v5754_v31 = vsel %vm5702_vm2, %v7251_v25, 0.0  ;;  %v5799_v46 = vmul.f32 %v7253_v41, %v7253_v41  ;;  %v5873_v36 = vld [vmem:[%s9476_s13] sm:$0x3] }
 0x2a2   : > { %v7087_v42 = vpop.f32.mrb[28].mxu1  ;;  %v5494_v16 = vpop.f32.mrb[29].mxu0  ;;  %5695 = vst.msk [vmem:[%s9501_s20 + $0x64] sm:$0xf] %vm5669_vm1, %v6680_v38  ;;  %v5853_v61 = vsel %vm5702_vm2, %v5797_v59, 0.0  ;;  %v5855_v57 = vsel %vm5702_vm2, %v5798_v54, 0.0 }
 0x2a3   : > { %v3466_v32 = vpop.f32.mrb[29].mxu1  ;;  %v7255_v28 = vadd.f32 %v7223_v21, %v7087_v42  ;;  %v7224_v14 = vpop.f32.mrb[30].mxu0  ;;  %v5755_v33 = vadd.f32 %v5754_v31, %v5753_v51  ;;  %v5854_v43 = vadd.f32 %v5853_v61, %v5852_v0  ;;  %v5756_v44 = vsel %vm5702_vm2, %v7253_v41, 0.0 }
 0x2a4   : > { %v7088_v7 = vpop.f32.mrb[30].mxu1  ;;  %v7256_v8 = vadd.f32 %v5494_v16, %v3466_v32  ;;  %v5497_v37 = vpop.f32.mrb[31].mxu0  ;;  %v5857_v6 = vsel %vm5702_vm2, %v5799_v46, 0.0 }
 0x2a5   : > { %v3469_v62 = vpop.f32.mrb[31].mxu1  ;;  %v6685_v34 = vpack.c.bf16 %v7255_v28, %v7255_v28  ;;  %v5856_v39 = vadd.f32 %v5855_v57, %v5854_v43  ;;  %v5757_v9 = vadd.f32 %v5756_v44, %v5755_v33  ;;  %v7257_v1 = vadd.f32 %v7224_v14, %v7088_v7 }
 0x2a6   : > { %v6683_v27 = vpack.c.bf16 %v7256_v8, %v7256_v8  ;;  %v5758_v11 = vsel %vm5702_vm2, %v7256_v8, 0.0  ;;  %v5800_v50 = vmul.f32 %v7256_v8, %v7256_v8  ;;  %v7258_v26 = vadd.f32 %v5497_v37, %v3469_v62 }
 0x2a7   : > { %5700 = vst.msk [vmem:[%s9501_s20 + $0x78] sm:$0xf] %vm5669_vm1, %v6685_v34  ;;  %v5759_v15 = vadd.f32 %v5758_v11, %v5757_v9  ;;  %v5858_v4 = vadd.f32 %v5857_v6, %v5856_v39  ;;  %v6686_v40 = vpack.c.bf16 %v7257_v1, %v7257_v1  ;;  %v5802_v19 = vmul.f32 %v7255_v28, %v7255_v28 }
 0x2a8   : > { %5698 = vst.msk [vmem:[%s9501_s20 + $0x70] sm:$0xf] %vm5669_vm1, %v6683_v27  ;;  %v5859_v56 = vsel %vm5702_vm2, %v5800_v50, 0.0  ;;  %v6684_v35 = vpack.c.bf16 %v7258_v26, %v7258_v26  ;;  %v5760_v45 = vsel %vm5702_vm2, %v7258_v26, 0.0  ;;  %v5801_v25 = vmul.f32 %v7258_v26, %v7258_v26 }
 0x2a9   : > { %v5860_v13 = vadd.f32 %v5859_v56, %v5858_v4  ;;  %5701 = vst.msk [vmem:[%s9501_s20 + $0x7c] sm:$0xf] %vm5669_vm1, %v6686_v40  ;;  %v5761_v63 = vadd.f32 %v5760_v45, %v5759_v15  ;;  %v5762_v49 = vsel %vm5702_vm2, %v7255_v28, 0.0  ;;  %v5803_v48 = vmul.f32 %v7257_v1, %v7257_v1 }
 0x2aa   : > { %5699 = vst.msk [vmem:[%s9501_s20 + $0x74] sm:$0xf] %vm5669_vm1, %v6684_v35  ;;  %v5861_v20 = vsel %vm5702_vm2, %v5801_v25, 0.0  ;;  %v5863_v47 = vsel %vm5702_vm2, %v5802_v19, 0.0  ;;  %v5764_v29 = vsel %vm5702_vm2, %v7257_v1, 0.0 }
 0x2ab   : > { %v5763_v3 = vadd.f32 %v5762_v49, %v5761_v63  ;;  %v5862_v5 = vadd.f32 %v5861_v20, %v5860_v13  ;;  %v5865_v18 = vsel %vm5702_vm2, %v5803_v48, 0.0 }
 0x2ad   : > { %v5765_v23 = vadd.f32 %v5764_v29, %v5763_v3  ;;  %v5864_v52 = vadd.f32 %v5863_v47, %v5862_v5 }
 0x2af   : > { %v5766_v12 = vrot.slane %v5765_v23, 4  ;;  %v5866_v2 = vadd.f32 %v5865_v18, %v5864_v52 }
 0x2b1   : > { %v5767_v60 = vadd.f32 %v5766_v12, %v5765_v23  ;;  %v5867_v22 = vrot.slane %v5866_v2, 4 }
 0x2b3   : > { %v5768_v55 = vrot.slane %v5767_v60, 2  ;;  %v5868_v41 = vadd.f32 %v5867_v22, %v5866_v2 }
 0x2b5   : > { %v5769_v17 = vadd.f32 %v5768_v55, %v5767_v60  ;;  %v5869_v42 = vrot.slane %v5868_v41, 2 }
 0x2b7   : > { %v5770_v58 = vrot.slane %v5769_v17, 1  ;;  %v5870_v10 = vadd.f32 %v5869_v42, %v5868_v41 }
 0x2b9   : > { %v5871_v32 = vrot.slane %v5870_v10, 1  ;;  %v5771_v54 = vadd.f32 %v5770_v58, %v5769_v17 }
 0x2bb   : > { %v5872_v30 = vadd.f32 %v5871_v32, %v5870_v10 }
 0x2bd   : > { %v5875_v24 = vsel %vm5874_vm3, %v5771_v54, %v5872_v30 }
 0x2be   : > { %v5876_v7 = vadd.f32 %v5875_v24, %v5873_v36 }
 0x2c0   : > { %5878 = vst.msk [vmem:[%s9476_s13] sm:$0x3] %vm970_vm0, %v5876_v7 }
 0x2c1 PF: > { %s15_s17 = sadd.s32 1, %s7636_s17   ;;  %s9739_s15 = smov %s7632_s16 }
 0x2c2   : > { %p12_p5 = scmp.ge.s32.totalorder %s15_s17, 4   ;;  %s9740_s16 = smov %s9742_s18 }
 0x2c4   :  { %14 = sbr.rel (!%p12_p5) target bundleno = 2 (0x2), region = 90 }

// kernel: resblock_forward.5
= control target key start
LH: loop header
LB: loop body
LE: loop exit
PB: predicated region body
PF: predicated region fallthrough
CT: control target
= control target key end

     0   :  { %s7696_s15 = smov 0   ;;  %s7698_s16 = smov 0   ;;  %s9717_s0 = inlined_call_operand.vmem [shape: bf16[2,16,16,8], index: 0, kind: input, shape index: {}]   ;;  %s9718_s1 = inlined_call_operand.vmem [shape: bf16[9,8,8], index: 1, kind: input, shape index: {}]   ;;  %s9719_s2 = inlined_call_operand.vmem [shape: f32[2,8], index: 2, kind: input, shape index: {}]   ;;  %s9720_s3 = inlined_call_operand.vmem [shape: bf16[2,16,16,8], index: 3, kind: output, shape index: {0}]   ;;  %s9721_s4 = inlined_call_operand.vmem [shape: f32[2,2,8], index: 4, kind: output, shape index: {1}]  }
   0x1   :  { %s7700_s17 = smov 0  }
   0x2 LB: > { %s27_s18 = sadd.s32 1, %s7663_s16  ;;  %p6042_p0 = scmp.ge.s32.totalorder %s7667_s17, 1  ;;  %s7667_s17 = sphi %s7700_s17, %s15_s17   ;;  %s7663_s16 = sphi %s7698_s16, %s9806_s16   ;;  %s7659_s15 = sphi %s7696_s15, %s9805_s15  }
   0x3   : > { %p29_p1 = scmp.ge.s32.totalorder %s27_s18, 2  ;;  %p179_p2 = scmp.lt.s32.totalorder %s7667_s17, 3 }
   0x5   : > { %s9808_s18 = smov (%p29_p1, %s27_s18), 0  ;;  %p180_p3 = pnand %p6042_p0, %p179_p2 }
   0x7   : > { %183 = sbr.rel (%p180_p3) target bundleno = 713 (0x2c9), region = 32 }
   0xe   : > { %v6082_v0 = vld [vmem:[%s9718_s1 + $0x4] sm:$0xf]  ;;  %vm1543_vm0 = vcmask 1043456   ;;  %v6309_v1 = vld [vmem:[%s9718_s1 + $0x10] sm:$0xf]  ;;  %vm239_vm1 = vcmask 60416  }
   0xf   : > { %7514 = vmatprep.subr.msk.bf16.mxu1 %vm1543_vm0, %v6082_v0  ;;  %7518 = vmatprep.subr.msk.bf16.mxu0 %vm1543_vm0, %v6309_v1  ;;  %v1545_v2 = vsel %vm1543_vm0, %v6082_v0, 0  ;;  %v7726_v3 = vsel %vm1543_vm0, %v6309_v1, 0  ;;  %vm242_vm2 = vcmask 57344   ;;  %p214_p4 = scmp.lt.s32.totalorder %s7659_s15, 1  ;;  %v7669_v4 = vmov 0  }
  0x10   : > { %9738 = vst [vmem:[#allocation3_spill] sm:$0xff] %v7726_v3  ;;  %6951 = vmatpush3.bf16.msra.mxu1 %v1545_v2  ;;  %7087 = vmatpush3.bf16.msra.mxu0 %v7726_v3  ;;  %240 = vst.msk [vmem:[#allocation2] sm:$0xf] %vm239_vm1, %v7669_v4  ;;  %v7793_v5 = vld [vmem:[%s9718_s1] sm:$0xf]  ;;  %vm1494_vm7 = vcmask 64512  }
  0x11   : > { %241 = vst.msk [vmem:[#allocation2 + $0x4] sm:$0xf] %vm239_vm1, %v7669_v4  ;;  %244 = vst.msk [vmem:[#allocation2 + $0xc] sm:$0xf] %vm239_vm1, %v7669_v4  ;;  %s9810_s15 = smov (!%p214_p4, %s7659_s15), 1  ;;  %7515 = vmatprep.subr.msk.bf16.mxu1 %vm1543_vm0, %v7793_v5  ;;  %vm2048_vm13 = vcmask 1042432  }
  0x12   : > { %243 = vst.msk [vmem:[#allocation2 + $0x8] sm:$0x1] %vm242_vm2, %v7669_v4  ;;  %246 = vst.msk [vmem:[#allocation2 + $0x14] sm:$0x1] %vm242_vm2, %v7669_v4  ;;  %s6652_s23 = sshll.u32 %s9810_s15, 7  ;;  %vm2049_vm14 = vcmask 1046532  }
  0x13   : > { %245 = vst.msk [vmem:[#allocation2 + $0x10] sm:$0xf] %vm239_vm1, %v7669_v4  ;;  %247 = vst.msk [vmem:[#allocation2 + $0x18] sm:$0xf] %vm239_vm1, %v7669_v4  ;;  %v7798_v6 = vld [vmem:[%s9718_s1 + $0x14] sm:$0xf]  ;;  %s7805_s30 = scalar_lea.vmem %s9717_s0, %s6652_s23  ;;  %s9567_s22 = scalar_lea.vmem %s9720_s3, %s6652_s23 }
  0x14   : > { %248 = vst.msk [vmem:[#allocation2 + $0x1c] sm:$0xf] %vm239_vm1, %v7669_v4  ;;  %250 = vst.msk [vmem:[#allocation2 + $0x24] sm:$0xf] %vm239_vm1, %v7669_v4  ;;  %7520 = vmatprep.subr.msk.bf16.mxu0 %vm1543_vm0, %v7798_v6  ;;  %vm1057_vm3 = vsmask.f32 3328 }
  0x15   : > { %249 = vst.msk [vmem:[#allocation2 + $0x20] sm:$0x1] %vm242_vm2, %v7669_v4  ;;  %252 = vst.msk [vmem:[#allocation2 + $0x2c] sm:$0x1] %vm242_vm2, %v7669_v4  ;;  %v6719_v7 = vld [vmem:[%s7805_s30] sm:$0xff]   ;;  %v6782_v8 = vld [vmem:[%s7805_s30 + $0x8] sm:$0xff]  }
  0x16   : > { %251 = vst.msk [vmem:[#allocation2 + $0x28] sm:$0xf] %vm239_vm1, %v7669_v4  ;;  %253 = vst.msk [vmem:[#allocation2 + $0x30] sm:$0xf] %vm239_vm1, %v7669_v4  ;;  %vm1058_vm4 = vsmask.f32 7440  ;;  %v6720_v9 = vunpack.c.l.bf16 %v6719_v7  ;;  %v6721_v10 = vunpack.c.h.bf16 %v6719_v7  ;;  %v6724_v12 = vunpack.c.l.bf16 %v6782_v8 }
  0x17   : > { %254 = vst.msk [vmem:[#allocation2 + $0x34] sm:$0xf] %vm239_vm1, %v7669_v4  ;;  %256 = vst.msk [vmem:[#allocation2 + $0x3c] sm:$0xf] %vm239_vm1, %v7669_v4  ;;  %v7816_v11 = vld [vmem:[%s9719_s2] ss:$0 sm:$0xff]  ;;  %v6725_v18 = vunpack.c.h.bf16 %v6782_v8 }
  0x18   : > { %255 = vst.msk [vmem:[#allocation2 + $0x38] sm:$0x1] %vm242_vm2, %v7669_v4  ;;  %258 = vst.msk [vmem:[#allocation2 + $0x44] sm:$0x1] %vm242_vm2, %v7669_v4  ;;  %v6783_v13 = vld [vmem:[%s7805_s30 + $0x10] sm:$0xff]   ;;  %v7820_v14 = vld [vmem:[%s7805_s30 + $0x18] sm:$0xff]   ;;  %v364_v28 = vmul.f32 %v6720_v9, %v7816_v11  ;;  %v365_v29 = vmul.f32 %v6721_v10, %v7816_v11  ;;  %v366_v38 = vmul.f32 %v6724_v12, %v7816_v11 }
  0x19   : > { %257 = vst.msk [vmem:[#allocation2 + $0x40] sm:$0xf] %vm239_vm1, %v7669_v4  ;;  %259 = vst.msk [vmem:[#allocation2 + $0x48] sm:$0xf] %vm239_vm1, %v7669_v4  ;;  %v1008_v15 = vld [vmem:[#allocation2] sm:$0xf]  ;;  %v6728_v19 = vunpack.c.l.bf16 %v6783_v13  ;;  %v6729_v20 = vunpack.c.h.bf16 %v6783_v13  ;;  %v6732_v21 = vunpack.c.l.bf16 %v7820_v14  ;;  %v6733_v30 = vunpack.c.h.bf16 %v7820_v14 }
  0x1a   : > { %260 = vst.msk [vmem:[#allocation2 + $0x4c] sm:$0xf] %vm239_vm1, %v7669_v4  ;;  %262 = vst.msk [vmem:[#allocation2 + $0x54] sm:$0xf] %vm239_vm1, %v7669_v4  ;;  %v1009_v16 = vld [vmem:[#allocation2 + $0x4] sm:$0xf]  ;;  %v367_v41 = vmul.f32 %v6725_v18, %v7816_v11 }
  0x1b   : > { %261 = vst.msk [vmem:[#allocation2 + $0x50] sm:$0x1] %vm242_vm2, %v7669_v4  ;;  %264 = vst.msk [vmem:[#allocation2 + $0x5c] sm:$0x1] %vm242_vm2, %v7669_v4  ;;  %v1041_v17 = vld [vmem:[#allocation2 + $0x8] sm:$0x1]  ;;  %v368_v42 = vmul.f32 %v6728_v19, %v7816_v11  ;;  %v369_v47 = vmul.f32 %v6729_v20, %v7816_v11 }
  0x1c   : > { %263 = vst.msk [vmem:[#allocation2 + $0x58] sm:$0xf] %vm239_vm1, %v7669_v4  ;;  %265 = vst.msk [vmem:[#allocation2 + $0x60] sm:$0xf] %vm239_vm1, %v7669_v4  ;;  %vm561_vm5 = vsmask.f32 256 }
  0x1d   : > { %266 = vst.msk [vmem:[#allocation2 + $0x64] sm:$0xf] %vm239_vm1, %v7669_v4  ;;  %268 = vst.msk [vmem:[#allocation2 + $0x6c] sm:$0xf] %vm239_vm1, %v7669_v4  ;;  %vm562_vm6 = vsmask.f32 4368 }
  0x1e   : > { %267 = vst.msk [vmem:[#allocation2 + $0x68] sm:$0x1] %vm242_vm2, %v7669_v4  ;;  %270 = vst.msk [vmem:[#allocation2 + $0x74] sm:$0x1] %vm242_vm2, %v7669_v4  ;;  %v1061_v22 = vshrl.u32 %v1008_v15, 16  ;;  %v1064_v23 = vshll.u32 %v1008_v15, 16 }
  0x1f   : > { %269 = vst.msk [vmem:[#allocation2 + $0x70] sm:$0xf] %vm239_vm1, %v7669_v4  ;;  %271 = vst.msk [vmem:[#allocation2 + $0x78] sm:$0xf] %vm239_vm1, %v7669_v4  ;;  %v1070_v24 = vshll.u32 %v1009_v16, 16  ;;  %v1074_v25 = vshrl.u32 %v1009_v16, 16  ;;  %v370_v16 = vmul.f32 %v6732_v21, %v7816_v11 }
  0x20   : > { %272 = vst.msk [vmem:[#allocation2 + $0x7c] sm:$0xf] %vm239_vm1, %v7669_v4  ;;  %274 = vst.msk [vmem:[#allocation2 + $0x84] sm:$0xf] %vm239_vm1, %v7669_v4  ;;  %v7826_v26 = vld [vmem:[%s9719_s2 + $0x1] ss:$0 sm:$0xff] }
  0x21   : > { %273 = vst.msk [vmem:[#allocation2 + $0x80] sm:$0x1] %vm242_vm2, %v7669_v4  ;;  %276 = vst.msk [vmem:[#allocation2 + $0x8c] sm:$0x1] %vm242_vm2, %v7669_v4  ;;  %vm886_vm8 = vsmask.f32 7938  ;;  %v401_v36 = vadd.f32 %v7826_v26, %v364_v28  ;;  %v402_v37 = vadd.f32 %v7826_v26, %v365_v29  ;;  %v403_v46 = vadd.f32 %v7826_v26, %v366_v38 }
  0x22   : > { %275 = vst.msk [vmem:[#allocation2 + $0x88] sm:$0xf] %vm239_vm1, %v7669_v4  ;;  %277 = vst.msk [vmem:[#allocation2 + $0x90] sm:$0xf] %vm239_vm1, %v7669_v4  ;;  %v1080_v27 = vshll.u32 %v1041_v17, 16  ;;  %v1063_v31 = vrot.slane %v1061_v22, 4  ;;  %v404_v50 = vadd.f32 %v7826_v26, %v367_v41  ;;  %v405_v51 = vadd.f32 %v7826_v26, %v368_v42 }
  0x23   : > { %278 = vst.msk [vmem:[#allocation2 + $0x94] sm:$0xf] %vm239_vm1, %v7669_v4  ;;  %280 = vst.msk [vmem:[#allocation2 + $0x9c] sm:$0xf] %vm239_vm1, %v7669_v4  ;;  %v1066_v32 = vrot.slane %v1064_v23, 5  ;;  %v1072_v33 = vrot.slane %v1070_v24, 5  ;;  %v406_v55 = vadd.f32 %v7826_v26, %v369_v47 }
  0x24   : > { %279 = vst.msk [vmem:[#allocation2 + $0x98] sm:$0x1] %vm242_vm2, %v7669_v4  ;;  %282 = vst.msk [vmem:[#allocation2 + $0xa4] sm:$0x1] %vm242_vm2, %v7669_v4  ;;  %v1076_v34 = vrot.slane %v1074_v25, 4  ;;  %v1082_v35 = vrot.slane %v1080_v27, 5 }
  0x25   : > { %281 = vst.msk [vmem:[#allocation2 + $0xa0] sm:$0xf] %vm239_vm1, %v7669_v4  ;;  %283 = vst.msk [vmem:[#allocation2 + $0xa8] sm:$0xf] %vm239_vm1, %v7669_v4  ;;  %v1067_v39 = vor.u32 %v1066_v32, %v1063_v31  ;;  %v433_v44 = vmax.f32 %v401_v36, 0.0  ;;  %v434_v45 = vmax.f32 %v402_v37, 0.0 }
  0x26   : > { %284 = vst.msk [vmem:[#allocation2 + $0xac] sm:$0xf] %vm239_vm1, %v7669_v4  ;;  %286 = vst.msk [vmem:[#allocation2 + $0xb4] sm:$0xf] %vm239_vm1, %v7669_v4  ;;  %v1077_v40 = vor.u32 %v1076_v34, %v1072_v33  ;;  %v435_v54 = vmax.f32 %v403_v46, 0.0  ;;  %v436_v58 = vmax.f32 %v404_v50, 0.0  ;;  %v371_v46 = vmul.f32 %v6733_v30, %v7816_v11 }
  0x27   : > { %285 = vst.msk [vmem:[#allocation2 + $0xb0] sm:$0x1] %vm242_vm2, %v7669_v4  ;;  %288 = vst.msk [vmem:[#allocation2 + $0xbc] sm:$0x1] %vm242_vm2, %v7669_v4  ;;  %v1068_v48 = vrot.slane %v1067_v39, 4  ;;  %v6654_v52 = vpack.c.bf16 %v433_v44, %v433_v44  ;;  %v6655_v53 = vpack.c.bf16 %v434_v45, %v434_v45  ;;  %v437_v59 = vmax.f32 %v405_v51, 0.0 }
  0x28   : > { %287 = vst.msk [vmem:[#allocation2 + $0xb8] sm:$0xf] %vm239_vm1, %v7669_v4  ;;  %289 = vst.msk [vmem:[#allocation2 + $0xc0] sm:$0xf] %vm239_vm1, %v7669_v4  ;;  %v1078_v49 = vrot.slane %v1077_v40, 4  ;;  %v6657_v7 = vpack.c.bf16 %v436_v58, %v436_v58  ;;  %v438_v8 = vmax.f32 %v406_v55, 0.0  ;;  %v408_v55 = vadd.f32 %v7826_v26, %v371_v46 }
  0x29   : > { %290 = vst.msk [vmem:[#allocation2 + $0xc4] sm:$0xf] %vm239_vm1, %v7669_v4  ;;  %292 = vst.msk [vmem:[#allocation2 + $0xcc] sm:$0xf] %vm239_vm1, %v7669_v4  ;;  %v565_v61 = vshrl.u32 %v6654_v52, 16  ;;  %v568_v62 = vshll.u32 %v6654_v52, 16  ;;  %v6658_v15 = vpack.c.bf16 %v437_v59, %v437_v59 }
  0x2a   : > { %291 = vst.msk [vmem:[#allocation2 + $0xc8] sm:$0x1] %vm242_vm2, %v7669_v4  ;;  %294 = vst.msk [vmem:[#allocation2 + $0xd4] sm:$0x1] %vm242_vm2, %v7669_v4  ;;  %v573_v63 = vshrl.u32 %v6655_v53, 16  ;;  %v576_v1 = vshll.u32 %v6655_v53, 16  ;;  %v6659_v31 = vpack.c.bf16 %v438_v8, %v438_v8  ;;  %v407_v53 = vadd.f32 %v7826_v26, %v370_v16 }
  0x2b   : > { %293 = vst.msk [vmem:[#allocation2 + $0xd0] sm:$0xf] %vm239_vm1, %v7669_v4  ;;  %vm7838_vm9 = vmor %vm1057_vm3, %vm1058_vm4  ;;  %v888_v2 = vld [vmem:[#allocation2 + $0xc] sm:$0xf]  ;;  %v6656_v4 = vpack.c.bf16 %v435_v54, %v435_v54  ;;  %v567_v9 = vrot.slane %v565_v61, 7  ;;  %v590_v20 = vshrl.u32 %v6657_v7, 16 }
  0x2c   : > { %v1073_v56 = vsel %vm7838_vm9, %v1068_v48, %v1072_v33  ;;  %v1083_v57 = vsel %vm7838_vm9, %v1078_v49, %v1082_v35  ;;  %vm7853_vm10 = vmor %vm561_vm5, %vm562_vm6  ;;  %v575_v10 = vrot.slane %v573_v63, 7  ;;  %v894_v13 = vld [vmem:[#allocation2 + $0x14] sm:$0x1]  ;;  %v593_v22 = vshll.u32 %v6657_v7, 16  ;;  %v897_v35 = vld [vmem:[#allocation2 + $0x18] sm:$0xf] }
  0x2d   : > { %v6083_v60 = vcombine.low %v1073_v56, %v1083_v57  ;;  %vm7860_vm11 = vmand %vm239_vm1, %vm886_vm8  ;;  %v582_v18 = vshrl.u32 %v6656_v4, 16  ;;  %v585_v19 = vshll.u32 %v6656_v4, 16  ;;  %v570_v23 = vor.u32 %v568_v62, %v567_v9  ;;  %v901_v36 = vld [vmem:[#allocation2 + $0x20] sm:$0x1]  ;;  %v7883_v48 = vld [vmem:[%s7805_s30 + $0x28] sm:$0xff]   ;;  %s6047_s12 = sshll.u32 %s9810_s15, 1 }
  0x2e   : > { %vm7867_vm12 = vmand %vm242_vm2, %vm561_vm5  ;;  %v571_v24 = vrot.slane %v567_v9, 4  ;;  %v578_v25 = vor.u32 %v576_v1, %v575_v10  ;;  %v580_v27 = vrot.slane %v575_v10, 4  ;;  %v592_v29 = vrot.slane %v590_v20, 7  ;;  %v6785_v47 = vld [vmem:[%s7805_s30 + $0x20] sm:$0xff]   ;;  %v908_v56 = vld [vmem:[#allocation2 + $0x2c] sm:$0x1]  ;;  %s9542_s19 = scalar_lea.vmem %s9721_s4, %s6047_s12 }
  0x2f   : > { %6952 = vmatprep.mubr.msk.bf16.mxu1 %vm1494_vm7, %v6083_v60  ;;  %v584_v28 = vrot.slane %v582_v18, 7  ;;  %v599_v32 = vshrl.u32 %v6658_v15, 16  ;;  %v889_v33 = vsel %vm7860_vm11, %v570_v23, %v888_v2  ;;  %v602_v37 = vshll.u32 %v6658_v15, 16  ;;  %v904_v52 = vld [vmem:[#allocation2 + $0x24] sm:$0xf]  ;;  %vm8145_vm15 = vmor %vm2048_vm13, %vm2049_vm14 }
  0x30   : > { %v579_v21 = vsel %vm7853_vm10, %v571_v24, %v578_v25  ;;  %v895_v34 = vsel %vm7867_vm12, %v580_v27, %v894_v13  ;;  %890 = vst [vmem:[#allocation2 + $0xc] sm:$0xf] %v889_v33  ;;  %v595_v40 = vor.u32 %v593_v22, %v592_v29  ;;  %v597_v41 = vrot.slane %v592_v29, 4 }
  0x31   : > { %891 = vst.msk [vmem:[#allocation2 + $0x10] sm:$0xf] %vm239_vm1, %v579_v21  ;;  %896 = vst [vmem:[#allocation2 + $0x14] sm:$0x1] %v895_v34  ;;  %v587_v38 = vor.u32 %v585_v19, %v584_v28  ;;  %v588_v39 = vrot.slane %v584_v28, 4  ;;  %v601_v42 = vrot.slane %v599_v32, 7  ;;  %v6736_v58 = vunpack.c.l.bf16 %v6785_v47 }
  0x32   : > { %v607_v44 = vshrl.u32 %v6659_v31, 16  ;;  %v610_v45 = vshll.u32 %v6659_v31, 16  ;;  %v902_v51 = vsel %vm7867_vm12, %v597_v41, %v901_v36  ;;  %v439_v57 = vmax.f32 %v407_v53, 0.0 }
  0x33   : > { %v596_v49 = vsel %vm7853_vm10, %v588_v39, %v595_v40  ;;  %v898_v50 = vsel %vm7860_vm11, %v587_v38, %v897_v35  ;;  %903 = vst [vmem:[#allocation2 + $0x20] sm:$0x1] %v902_v51  ;;  %v604_v14 = vor.u32 %v602_v37, %v601_v42  ;;  %v605_v30 = vrot.slane %v601_v42, 4 }
  0x34   : > { %899 = vst [vmem:[#allocation2 + $0x18] sm:$0xf] %v898_v50  ;;  %900 = vst.msk [vmem:[#allocation2 + $0x1c] sm:$0xf] %vm239_vm1, %v596_v49  ;;  %v609_v54 = vrot.slane %v607_v44, 7  ;;  %v6737_v59 = vunpack.c.h.bf16 %v6785_v47  ;;  %v6740_v60 = vunpack.c.l.bf16 %v7883_v48  ;;  %v440_v1 = vmax.f32 %v408_v55, 0.0 }
  0x35   : > { %v905_v63 = vsel %vm7860_vm11, %v604_v14, %v904_v52  ;;  %v7899_v2 = vsel %vm1543_vm0, %v7793_v5, 0  ;;  %v7903_v4 = vsel %vm1543_vm0, %v7798_v6, 0  ;;  %v7905_v7 = vpack.c.bf16 %v439_v57, %v439_v57 }
  0x36   : > { %v612_v61 = vor.u32 %v610_v45, %v609_v54  ;;  %v614_v62 = vrot.slane %v609_v54, 4  ;;  %906 = vst [vmem:[#allocation2 + $0x24] sm:$0xf] %v905_v63  ;;  %v7908_v8 = vmul.f32 %v6736_v58, %v7816_v11  ;;  %v7915_v16 = vmul.f32 %v6737_v59, %v7816_v11 }
  0x37   : > { %v1010_v9 = vld [vmem:[#allocation2 + $0xc] sm:$0xf]  ;;  %v6741_v6 = vunpack.c.h.bf16 %v7883_v48  ;;  %v7921_v28 = vpack.c.bf16 %v440_v1, %v440_v1  ;;  %v7924_v29 = vmul.f32 %v6740_v60, %v7816_v11  ;;  %v6787_v48 = vld [vmem:[%s7805_s30 + $0x30] sm:$0xff]   ;;  %v7670_v43 = vmov 0.0  }
  0x38   : > { %v1011_v10 = vld [vmem:[#allocation2 + $0x10] sm:$0xf]  ;;  %v1042_v13 = vld [vmem:[#allocation2 + $0x14] sm:$0x1]  ;;  %v613_v15 = vsel %vm7853_vm10, %v605_v30, %v612_v61  ;;  %v909_v5 = vsel %vm7867_vm12, %v614_v62, %v908_v56  ;;  %v1085_v18 = vshrl.u32 %v1010_v9, 16  ;;  %v1088_v19 = vshll.u32 %v1010_v9, 16 }
  0x39   : > { %v1094_v20 = vshll.u32 %v1011_v10, 16  ;;  %v1098_v22 = vshrl.u32 %v1011_v10, 16  ;;  %v6261_v23 = vld [vmem:[#allocation2 + $0xc] sm:$0xf]  ;;  %907 = vst.msk [vmem:[#allocation2 + $0x28] sm:$0xf] %vm239_vm1, %v613_v15 }
  0x3a   : > { %910 = vst [vmem:[#allocation2 + $0x2c] sm:$0x1] %v909_v5  ;;  %v1104_v24 = vshll.u32 %v1042_v13, 16  ;;  %v7919_v25 = vld [vmem:[#allocation2 + $0x10] sm:$0xf]  ;;  %v2868_v27 = vshrl.u32 %v6261_v23, 16 }
  0x3b   : > { %v1087_v31 = vrot.slane %v1085_v18, 4  ;;  %v1090_v32 = vrot.slane %v1088_v19, 5  ;;  %v1096_v21 = vrot.slane %v1094_v20, 5  ;;  %v1100_v33 = vrot.slane %v1098_v22, 4  ;;  %v7926_v34 = vld [vmem:[#allocation2 + $0x14] sm:$0x1] }
  0x3c   : > { %v1106_v35 = vrot.slane %v1104_v24, 5  ;;  %v2870_v36 = vrot.slane %v2868_v27, 4  ;;  %v2871_v37 = vshll.u32 %v6261_v23, 16  ;;  %v2877_v38 = vshll.u32 %v7919_v25, 16  ;;  %v6264_v44 = vld [vmem:[#allocation2 + $0x18] sm:$0xf] }
  0x3d   : > { %v1091_v39 = vor.u32 %v1090_v32, %v1087_v31  ;;  %v1101_v40 = vor.u32 %v1100_v33, %v1096_v21  ;;  %v2881_v41 = vshrl.u32 %v7919_v25, 16  ;;  %v2887_v42 = vshll.u32 %v7926_v34, 16  ;;  %v7931_v45 = vld [vmem:[#allocation2 + $0x1c] sm:$0xf]  ;;  %v7935_v54 = vld [vmem:[#allocation2 + $0x20] sm:$0x1] }
  0x3e   : > { %v2873_v46 = vrot.slane %v2871_v37, 5  ;;  %v2879_v47 = vrot.slane %v2877_v38, 5  ;;  %v3611_v49 = vrot.slane %v7919_v25, 5  ;;  %v3614_v50 = vrot.slane %v7926_v34, 5  ;;  %v1012_v10 = vld [vmem:[#allocation2 + $0x18] sm:$0xf] }
  0x3f   : > { %v1092_v51 = vrot.slane %v1091_v39, 4  ;;  %v1102_v52 = vrot.slane %v1101_v40, 4  ;;  %v2883_v53 = vrot.slane %v2881_v41, 4  ;;  %v2889_v14 = vrot.slane %v2887_v42, 5  ;;  %v1013_v24 = vld [vmem:[#allocation2 + $0x1c] sm:$0xf] }
  0x40   : > { %v2874_v30 = vor.u32 %v2873_v46, %v2870_v36  ;;  %v2892_v55 = vshrl.u32 %v6264_v44, 16  ;;  %v2895_v56 = vshll.u32 %v6264_v44, 16  ;;  %v2901_v57 = vshll.u32 %v7931_v45, 16  ;;  %v1015_v46 = vld [vmem:[#allocation2 + $0x28] sm:$0xf] }
  0x41   : > { %v1097_v58 = vsel %vm7838_vm9, %v1092_v51, %v1096_v21  ;;  %v1107_v59 = vsel %vm7838_vm9, %v1102_v52, %v1106_v35  ;;  %v2884_v60 = vor.u32 %v2883_v53, %v2879_v47  ;;  %v2905_v61 = vshrl.u32 %v7931_v45, 16  ;;  %v1043_v21 = vld [vmem:[#allocation2 + $0x20] sm:$0x1]  ;;  %v1014_v35 = vld [vmem:[#allocation2 + $0x24] sm:$0xf] }
  0x42   : > { %v6084_v62 = vcombine.low %v1097_v58, %v1107_v59  ;;  %v2875_v63 = vrot.slane %v2874_v30, 4  ;;  %v2894_v1 = vrot.slane %v2892_v55, 4  ;;  %v2897_v9 = vrot.slane %v2895_v56, 5  ;;  %v1044_v52 = vld [vmem:[#allocation2 + $0x2c] sm:$0x1] }
  0x43   : > { %v2885_v13 = vrot.slane %v2884_v60, 4  ;;  %v2903_v15 = vrot.slane %v2901_v57, 5  ;;  %v2907_v5 = vrot.slane %v2905_v61, 4  ;;  %v2911_v18 = vshll.u32 %v7935_v54, 16  ;;  %v6267_v57 = vld [vmem:[#allocation2 + $0x24] sm:$0xf] }
  0x44   : > { %6953 = vmatmul.mubr.msk.bf16.vlgmr.msra.gmra.mrb[0].mxu1 %vm1494_vm7, %v6084_v62  ;;  %v2880_v19 = vsel %vm7838_vm9, %v2875_v63, %v2879_v47  ;;  %v2898_v20 = vor.u32 %v2897_v9, %v2894_v1  ;;  %v3618_v22 = vrot.slane %v7931_v45, 5  ;;  %v3621_v23 = vrot.slane %v7935_v54, 5  ;;  %v7964_v58 = vld [vmem:[%s9718_s1 + $0x18] sm:$0xf]  ;;  %v7966_v63 = vld [vmem:[#allocation2 + $0x28] sm:$0xf] }
  0x45   : > { %v2890_v27 = vsel %vm7838_vm9, %v2885_v13, %v2889_v14  ;;  %6985 = vmatpush3.bf16.msra.mxu1 %v7899_v2  ;;  %v2908_v31 = vor.u32 %v2907_v5, %v2903_v15  ;;  %v2913_v32 = vrot.slane %v2911_v18, 5  ;;  %v1109_v33 = vshrl.u32 %v1012_v10, 16 }
  0x46   : > { %v6310_v36 = vcombine.low %v2880_v19, %v2890_v27  ;;  %v2899_v37 = vrot.slane %v2898_v20, 4  ;;  %v7954_v38 = vrot.slane %v3618_v22, 4  ;;  %v1112_v39 = vshll.u32 %v1012_v10, 16 }
  0x47   : > { %v2909_v40 = vrot.slane %v2908_v31, 4  ;;  %v1111_v41 = vrot.slane %v1109_v33, 4  ;;  %v1118_v42 = vshll.u32 %v1013_v24, 16  ;;  %v1122_v44 = vshrl.u32 %v1013_v24, 16 }
  0x48   : > { %7088 = vmatprep.mubr.msk.bf16.mxu0 %vm1494_vm7, %v6310_v36  ;;  %v2904_v2 = vsel %vm7838_vm9, %v2899_v37, %v2903_v15  ;;  %v1114_v47 = vrot.slane %v1112_v39, 5  ;;  %v1128_v51 = vshll.u32 %v1043_v21, 16  ;;  %v1133_v53 = vshrl.u32 %v1014_v35, 16  ;;  %v7968_v15 = vld [vmem:[#allocation2 + $0x2c] sm:$0x1] }
  0x49   : > { %v2914_v14 = vsel %vm7838_vm9, %v2909_v40, %v2913_v32  ;;  %v1120_v30 = vrot.slane %v1118_v42, 5  ;;  %v1124_v55 = vrot.slane %v1122_v44, 4  ;;  %v1136_v56 = vshll.u32 %v1014_v35, 16 }
  0x4a   : > { %v6311_v59 = vcombine.low %v2904_v2, %v2914_v14  ;;  %v1115_v60 = vor.u32 %v1114_v47, %v1111_v41  ;;  %v1130_v61 = vrot.slane %v1128_v51, 5  ;;  %v1135_v62 = vrot.slane %v1133_v53, 4 }
  0x4b   : > { %v1125_v1 = vor.u32 %v1124_v55, %v1120_v30  ;;  %v1138_v9 = vrot.slane %v1136_v56, 5  ;;  %v1142_v10 = vshll.u32 %v1015_v46, 16  ;;  %v1146_v13 = vshrl.u32 %v1015_v46, 16 }
  0x4c   : > { %7089 = vmatmul.mubr.msk.bf16.vlgmr.msra.gmra.mrb[0].mxu0 %vm1494_vm7, %v6311_v59  ;;  %v1116_v5 = vrot.slane %v1115_v60, 4  ;;  %v1152_v18 = vshll.u32 %v1044_v52, 16  ;;  %v2916_v19 = vshrl.u32 %v6267_v57, 16  ;;  %v2919_v20 = vshll.u32 %v6267_v57, 16 }
  0x4d   : > { %7121 = vmatpush3.bf16.msra.mxu0 %v7903_v4  ;;  %v1126_v24 = vrot.slane %v1125_v1, 4  ;;  %v1139_v27 = vor.u32 %v1138_v9, %v1135_v62  ;;  %v1144_v31 = vrot.slane %v1142_v10, 5  ;;  %v1148_v32 = vrot.slane %v1146_v13, 4  ;;  %v911_v9 = vld [vmem:[#allocation2 + $0x30] sm:$0xf] }
  0x4e   : > { %v1121_v21 = vsel %vm7838_vm9, %v1116_v5, %v1120_v30  ;;  %v1154_v33 = vrot.slane %v1152_v18, 5  ;;  %v2918_v35 = vrot.slane %v2916_v19, 4  ;;  %v2921_v36 = vrot.slane %v2919_v20, 5  ;;  %7521 = vmatprep.subr.msk.bf16.mxu0 %vm1543_vm0, %v7964_v58 }
  0x4f   : > { %v1131_v37 = vsel %vm7838_vm9, %v1126_v24, %v1130_v61  ;;  %v1140_v39 = vrot.slane %v1139_v27, 4  ;;  %v1149_v40 = vor.u32 %v1148_v32, %v1144_v31  ;;  %v2925_v4 = vshll.u32 %v7966_v63, 16 }
  0x50   : > { %v6085_v41 = vcombine.low %v1121_v21, %v1131_v37  ;;  %v2922_v42 = vor.u32 %v2921_v36, %v2918_v35  ;;  %v2929_v44 = vshrl.u32 %v7966_v63, 16  ;;  %v2935_v46 = vshll.u32 %v7968_v15, 16 }
  0x51   : > { %v1145_v2 = vsel %vm7838_vm9, %v1140_v39, %v1144_v31  ;;  %v1150_v47 = vrot.slane %v1149_v40, 4  ;;  %v2927_v51 = vrot.slane %v2925_v4, 5  ;;  %v616_v52 = vshrl.u32 %v7905_v7, 16 }
  0x52   : > { %6956 = vmatprep.mubr.msk.bf16.mxu1 %vm1494_vm7, %v6085_v41  ;;  %v2923_v53 = vrot.slane %v2922_v42, 4  ;;  %v2931_v14 = vrot.slane %v2929_v44, 4  ;;  %v2937_v30 = vrot.slane %v2935_v46, 5  ;;  %v619_v55 = vshll.u32 %v7905_v7, 16  ;;  %v8014_v44 = vld [vmem:[%s7805_s30 + $0x38] sm:$0xff]  }
  0x53   : > { %v1155_v56 = vsel %vm7838_vm9, %v1150_v47, %v1154_v33  ;;  %v618_v57 = vrot.slane %v616_v52, 7  ;;  %v624_v59 = vshrl.u32 %v7921_v28, 16  ;;  %v627_v60 = vshll.u32 %v7921_v28, 16  ;;  %v915_v28 = vld [vmem:[#allocation2 + $0x38] sm:$0x1] }
  0x54   : > { %v6086_v61 = vcombine.low %v1145_v2, %v1155_v56  ;;  %v2928_v62 = vsel %vm7838_vm9, %v2923_v53, %v2927_v51  ;;  %v2932_v1 = vor.u32 %v2931_v14, %v2927_v51  ;;  %v409_v10 = vadd.f32 %v7826_v26, %v7908_v8  ;;  %v918_v56 = vld [vmem:[#allocation2 + $0x3c] sm:$0xf] }
  0x55   : > { %v621_v13 = vor.u32 %v619_v55, %v618_v57  ;;  %v622_v5 = vrot.slane %v618_v57, 4  ;;  %v626_v7 = vrot.slane %v624_v59, 7  ;;  %v410_v18 = vadd.f32 %v7826_v26, %v7915_v16 }
  0x56   : > { %6957 = vmatmul.mubr.msk.bf16.gmra.mrb[4].mxu1 %vm1494_vm7, %v6086_v61  ;;  %v2933_v19 = vrot.slane %v2932_v1, 4  ;;  %v441_v20 = vmax.f32 %v409_v10, 0.0  ;;  %v375_v24 = vmul.f32 %v6741_v6, %v7816_v11  ;;  %v411_v27 = vadd.f32 %v7826_v26, %v7924_v29  ;;  %v922_v1 = vld [vmem:[#allocation2 + $0x44] sm:$0x1] }
  0x57   : > { %v629_v8 = vor.u32 %v627_v60, %v626_v7  ;;  %v631_v31 = vrot.slane %v626_v7, 4  ;;  %v912_v32 = vsel %vm7860_vm11, %v621_v13, %v911_v9  ;;  %v442_v21 = vmax.f32 %v410_v18, 0.0 }
  0x58   : > { %v2938_v16 = vsel %vm7838_vm9, %v2933_v19, %v2937_v30  ;;  %913 = vst [vmem:[#allocation2 + $0x30] sm:$0xf] %v912_v32  ;;  %v6662_v33 = vpack.c.bf16 %v441_v20, %v441_v20  ;;  %v412_v35 = vadd.f32 %v7826_v26, %v375_v24  ;;  %v443_v36 = vmax.f32 %v411_v27, 0.0 }
  0x59   : > { %v6312_v6 = vcombine.low %v2928_v62, %v2938_v16  ;;  %v630_v29 = vsel %vm7853_vm10, %v622_v5, %v629_v8  ;;  %v916_v37 = vsel %vm7867_vm12, %v631_v31, %v915_v28  ;;  %v6663_v39 = vpack.c.bf16 %v442_v21, %v442_v21 }
  0x5a   : > { %914 = vst.msk [vmem:[#allocation2 + $0x34] sm:$0xf] %vm239_vm1, %v630_v29  ;;  %917 = vst [vmem:[#allocation2 + $0x38] sm:$0x1] %v916_v37  ;;  %v633_v40 = vshrl.u32 %v6662_v33, 16  ;;  %v636_v4 = vshll.u32 %v6662_v33, 16  ;;  %v6664_v42 = vpack.c.bf16 %v443_v36, %v443_v36  ;;  %v6744_v47 = vunpack.c.l.bf16 %v6787_v48 }
  0x5b   : > { %v444_v41 = vmax.f32 %v412_v35, 0.0  ;;  %7092 = vmatprep.mubr.msk.bf16.mxu0 %vm1494_vm7, %v6312_v6  ;;  %v641_v46 = vshrl.u32 %v6663_v39, 16  ;;  %v644_v2 = vshll.u32 %v6663_v39, 16  ;;  %v6745_v51 = vunpack.c.h.bf16 %v6787_v48 }
  0x5c   : > { %v635_v52 = vrot.slane %v633_v40, 7  ;;  %v650_v14 = vshrl.u32 %v6664_v42, 16  ;;  %v653_v30 = vshll.u32 %v6664_v42, 16  ;;  %v376_v57 = vmul.f32 %v6744_v47, %v7816_v11 }
  0x5d   : > { %v8017_v53 = vpack.c.bf16 %v444_v41, %v444_v41  ;;  %v643_v55 = vrot.slane %v641_v46, 7  ;;  %v377_v59 = vmul.f32 %v6745_v51, %v7816_v11  ;;  %v6748_v60 = vunpack.c.l.bf16 %v8014_v44 }
  0x5e   : > { %v638_v61 = vor.u32 %v636_v4, %v635_v52  ;;  %v639_v62 = vrot.slane %v635_v52, 4  ;;  %v8022_v9 = vrot.slane %v650_v14, 7  ;;  %v8027_v28 = vadd.f32 %v7826_v26, %v376_v57  ;;  %v925_v52 = vld [vmem:[#allocation2 + $0x48] sm:$0xf] }
  0x5f   : > { %v658_v10 = vshrl.u32 %v8017_v53, 16  ;;  %v6270_v13 = vld [vmem:[#allocation2 + $0x30] sm:$0xf]  ;;  %v646_v7 = vor.u32 %v644_v2, %v643_v55  ;;  %v648_v18 = vrot.slane %v643_v55, 4  ;;  %v661_v19 = vshll.u32 %v8017_v53, 16 }
  0x60   : > { %v1016_v5 = vld [vmem:[#allocation2 + $0x30] sm:$0xf]  ;;  %v2940_v20 = vshrl.u32 %v6270_v13, 16  ;;  %v2943_v24 = vshll.u32 %v6270_v13, 16  ;;  %v919_v33 = vsel %vm7860_vm11, %v638_v61, %v918_v56  ;;  %v655_v36 = vor.u32 %v653_v30, %v8022_v9 }
  0x61   : > { %v1157_v27 = vshrl.u32 %v1016_v5, 16  ;;  %v1160_v8 = vshll.u32 %v1016_v5, 16  ;;  %v8029_v31 = vld [vmem:[#allocation2 + $0x34] sm:$0xf]  ;;  %v8031_v32 = vld [vmem:[#allocation2 + $0x38] sm:$0x1]  ;;  %v647_v16 = vsel %vm7853_vm10, %v639_v62, %v646_v7  ;;  %v923_v35 = vsel %vm7867_vm12, %v648_v18, %v922_v1 }
  0x62   : > { %v1017_v21 = vld [vmem:[#allocation2 + $0x34] sm:$0xf]  ;;  %v2942_v48 = vrot.slane %v2940_v20, 4  ;;  %v2945_v6 = vrot.slane %v2943_v24, 5  ;;  %v2949_v29 = vshll.u32 %v8029_v31, 16  ;;  %v2953_v37 = vshrl.u32 %v8029_v31, 16 }
  0x63   : > { %v1045_v39 = vld [vmem:[#allocation2 + $0x38] sm:$0x1]  ;;  %920 = vst [vmem:[#allocation2 + $0x3c] sm:$0xf] %v919_v33  ;;  %921 = vst.msk [vmem:[#allocation2 + $0x40] sm:$0xf] %vm239_vm1, %v647_v16  ;;  %v926_v7 = vsel %vm7860_vm11, %v655_v36, %v925_v52 }
  0x64   : > { %924 = vst [vmem:[#allocation2 + $0x44] sm:$0x1] %v923_v35  ;;  %v2959_v40 = vshll.u32 %v8031_v32, 16  ;;  %v1159_v4 = vrot.slane %v1157_v27, 4  ;;  %v1162_v41 = vrot.slane %v1160_v8, 5  ;;  %v1166_v42 = vshll.u32 %v1017_v21, 16 }
  0x65   : > { %v2946_v46 = vor.u32 %v2945_v6, %v2942_v48  ;;  %v2951_v2 = vrot.slane %v2949_v29, 5  ;;  %v2955_v47 = vrot.slane %v2953_v37, 4  ;;  %v1170_v51 = vshrl.u32 %v1017_v21, 16  ;;  %927 = vst [vmem:[#allocation2 + $0x48] sm:$0xf] %v926_v7 }
  0x66   : > { %v2961_v53 = vrot.slane %v2959_v40, 5  ;;  %v1163_v14 = vor.u32 %v1162_v41, %v1159_v4  ;;  %v1168_v30 = vrot.slane %v1166_v42, 5  ;;  %v1176_v55 = vshll.u32 %v1045_v39, 16  ;;  %v929_v7 = vld [vmem:[#allocation2 + $0x50] sm:$0x1] }
  0x67   : > { %v2947_v56 = vrot.slane %v2946_v46, 4  ;;  %v2956_v57 = vor.u32 %v2955_v47, %v2951_v2  ;;  %v1172_v61 = vrot.slane %v1170_v51, 4  ;;  %v656_v62 = vrot.slane %v8022_v9, 4 }
  0x68   : > { %v1164_v1 = vrot.slane %v1163_v14, 4  ;;  %v1178_v13 = vrot.slane %v1176_v55, 5  ;;  %v660_v5 = vrot.slane %v658_v10, 7  ;;  %v8050_v27 = vadd.f32 %v7826_v26, %v377_v59 }
  0x69   : > { %v2952_v18 = vsel %vm7838_vm9, %v2947_v56, %v2951_v2  ;;  %v2957_v20 = vrot.slane %v2956_v57, 4  ;;  %v1173_v24 = vor.u32 %v1172_v61, %v1168_v30  ;;  %v6749_v10 = vunpack.c.h.bf16 %v8014_v44 }
  0x6a   : > { %v1169_v8 = vsel %vm7838_vm9, %v1164_v1, %v1168_v30  ;;  %v1018_v21 = vld [vmem:[#allocation2 + $0x3c] sm:$0xf]  ;;  %v1019_v9 = vld [vmem:[#allocation2 + $0x40] sm:$0xf]  ;;  %v663_v33 = vor.u32 %v661_v19, %v660_v5  ;;  %v8058_v35 = vmul.f32 %v6748_v60, %v7816_v11 }
  0x6b   : > { %v1046_v16 = vld [vmem:[#allocation2 + $0x44] sm:$0x1]  ;;  %v2962_v36 = vsel %vm7838_vm9, %v2957_v20, %v2961_v53  ;;  %v1174_v48 = vrot.slane %v1173_v24, 4  ;;  %v1181_v59 = vshrl.u32 %v1018_v21, 16  ;;  %v1184_v6 = vshll.u32 %v1018_v21, 16 }
  0x6c   : > { %v6273_v29 = vld [vmem:[#allocation2 + $0x3c] sm:$0xf]  ;;  %v6313_v37 = vcombine.low %v2952_v18, %v2962_v36  ;;  %v1190_v39 = vshll.u32 %v1019_v9, 16  ;;  %v1194_v40 = vshrl.u32 %v1019_v9, 16  ;;  %v1200_v4 = vshll.u32 %v1046_v16, 16 }
  0x6d   : > { %v8062_v41 = vld [vmem:[#allocation2 + $0x40] sm:$0xf]  ;;  %v1179_v19 = vsel %vm7838_vm9, %v1174_v48, %v1178_v13  ;;  %v1183_v42 = vrot.slane %v1181_v59, 4  ;;  %v1186_v46 = vrot.slane %v1184_v6, 5  ;;  %v8066_v60 = vld [vmem:[#allocation2 + $0x44] sm:$0x1]  ;;  %v664_v13 = vsel %vm7853_vm10, %v656_v62, %v663_v33 }
  0x6e   : > { %v2964_v2 = vshrl.u32 %v6273_v29, 16  ;;  %7093 = vmatmul.mubr.msk.bf16.gmra.mrb[4].mxu0 %vm1494_vm7, %v6313_v37  ;;  %v6087_v47 = vcombine.low %v1169_v8, %v1179_v19  ;;  %v1192_v51 = vrot.slane %v1190_v39, 5  ;;  %v1196_v52 = vrot.slane %v1194_v40, 4  ;;  %v6276_v18 = vld [vmem:[#allocation2 + $0x48] sm:$0xf] }
  0x6f   : > { %v1202_v53 = vrot.slane %v1200_v4, 5  ;;  %v1187_v14 = vor.u32 %v1186_v46, %v1183_v42  ;;  %v2967_v55 = vshll.u32 %v6273_v29, 16  ;;  %v2973_v56 = vshll.u32 %v8062_v41, 16  ;;  %928 = vst.msk [vmem:[#allocation2 + $0x4c] sm:$0xf] %vm239_vm1, %v664_v13 }
  0x70   : > { %v2966_v30 = vrot.slane %v2964_v2, 4  ;;  %6960 = vmatprep.mubr.msk.bf16.mxu1 %vm1494_vm7, %v6087_v47  ;;  %v1197_v57 = vor.u32 %v1196_v52, %v1192_v51  ;;  %v2977_v61 = vshrl.u32 %v8062_v41, 16  ;;  %v2983_v1 = vshll.u32 %v8066_v60, 16  ;;  %v1020_v9 = vld [vmem:[#allocation2 + $0x48] sm:$0xf] }
  0x71   : > { %v1188_v20 = vrot.slane %v1187_v14, 4  ;;  %v2969_v24 = vrot.slane %v2967_v55, 5  ;;  %v2975_v8 = vrot.slane %v2973_v56, 5  ;;  %v665_v21 = vrot.slane %v660_v5, 4  ;;  %v8091_v56 = vld [vmem:[%s7805_s30 + $0x40] sm:$0xff]  }
  0x72   : > { %v1198_v16 = vrot.slane %v1197_v57, 4  ;;  %v2979_v36 = vrot.slane %v2977_v61, 4  ;;  %v2985_v48 = vrot.slane %v2983_v1, 5  ;;  %v2988_v59 = vshrl.u32 %v6276_v18, 16 }
  0x73   : > { %v1193_v6 = vsel %vm7838_vm9, %v1188_v20, %v1192_v51  ;;  %v2970_v29 = vor.u32 %v2969_v24, %v2966_v30  ;;  %v930_v62 = vsel %vm7867_vm12, %v665_v21, %v929_v7  ;;  %v2991_v33 = vshll.u32 %v6276_v18, 16 }
  0x74   : > { %v1203_v37 = vsel %vm7838_vm9, %v1198_v16, %v1202_v53  ;;  %v2980_v39 = vor.u32 %v2979_v36, %v2975_v8  ;;  %931 = vst [vmem:[#allocation2 + $0x50] sm:$0x1] %v930_v62  ;;  %v2990_v5 = vrot.slane %v2988_v59, 4  ;;  %v1205_v40 = vshrl.u32 %v1020_v9, 16 }
  0x75   : > { %v6088_v4 = vcombine.low %v1193_v6, %v1203_v37  ;;  %v2971_v19 = vrot.slane %v2970_v29, 4  ;;  %v2993_v42 = vrot.slane %v2991_v33, 5  ;;  %v1208_v46 = vshll.u32 %v1020_v9, 16 }
  0x76   : > { %v2981_v2 = vrot.slane %v2980_v39, 4  ;;  %v1207_v47 = vrot.slane %v1205_v40, 4  ;;  %v445_v51 = vmax.f32 %v8027_v28, 0.0  ;;  %v446_v52 = vmax.f32 %v8050_v27, 0.0  ;;  %v8095_v61 = vld [vmem:[#allocation2 + $0x4c] sm:$0xf] }
  0x77   : > { %6961 = vmatmul.mubr.msk.bf16.gmra.mrb[8].mxu1 %vm1494_vm7, %v6088_v4  ;;  %v2976_v53 = vsel %vm7838_vm9, %v2971_v19, %v2975_v8  ;;  %v2994_v14 = vor.u32 %v2993_v42, %v2990_v5  ;;  %v1210_v30 = vrot.slane %v1208_v46, 5  ;;  %v379_v55 = vmul.f32 %v6749_v10, %v7816_v11  ;;  %v1021_v28 = vld [vmem:[#allocation2 + $0x4c] sm:$0xf] }
  0x78   : > { %v2986_v57 = vsel %vm7838_vm9, %v2981_v2, %v2985_v48  ;;  %v6666_v27 = vpack.c.bf16 %v445_v51, %v445_v51  ;;  %v6667_v1 = vpack.c.bf16 %v446_v52, %v446_v52  ;;  %v415_v13 = vadd.f32 %v7826_v26, %v8058_v35  ;;  %v6163_v52 = vld [vmem:[%s9718_s1 + $0x8] sm:$0xf] }
  0x79   : > { %v6314_v7 = vcombine.low %v2976_v53, %v2986_v57  ;;  %v2995_v18 = vrot.slane %v2994_v14, 4  ;;  %v2997_v20 = vshll.u32 %v8095_v61, 16  ;;  %v3001_v44 = vshrl.u32 %v8095_v61, 16  ;;  %7516 = vmatprep.subr.msk.bf16.mxu1 %vm1543_vm0, %v6163_v52 }
  0x7a   : > { %v1211_v11 = vor.u32 %v1210_v30, %v1207_v47  ;;  %v1214_v10 = vshll.u32 %v1021_v28, 16  ;;  %v1218_v24 = vshrl.u32 %v1021_v28, 16  ;;  %v667_v8 = vshrl.u32 %v6666_v27, 16 }
  0x7b   : > { %7096 = vmatprep.mubr.msk.bf16.mxu0 %vm1494_vm7, %v6314_v7  ;;  %v8102_v21 = vld [vmem:[#allocation2 + $0x50] sm:$0x1]  ;;  %v2999_v9 = vrot.slane %v2997_v20, 5  ;;  %v3003_v16 = vrot.slane %v3001_v44, 4  ;;  %v416_v48 = vadd.f32 %v7826_v26, %v379_v55  ;;  %v6752_v35 = vunpack.c.l.bf16 %v8091_v56  ;;  %v932_v26 = vld [vmem:[#allocation2 + $0x54] sm:$0xf] }
  0x7c   : > { %v1047_v36 = vld [vmem:[#allocation2 + $0x50] sm:$0x1]  ;;  %v3007_v59 = vshll.u32 %v8102_v21, 16  ;;  %v1212_v6 = vrot.slane %v1211_v11, 4  ;;  %v1216_v29 = vrot.slane %v1214_v10, 5  ;;  %v1220_v62 = vrot.slane %v1218_v24, 4 }
  0x7d   : > { %v3000_v33 = vsel %vm7838_vm9, %v2995_v18, %v2999_v9  ;;  %v3004_v37 = vor.u32 %v3003_v16, %v2999_v9  ;;  %v1224_v39 = vshll.u32 %v1047_v36, 16  ;;  %v669_v5 = vrot.slane %v667_v8, 7  ;;  %v936_v11 = vld [vmem:[#allocation2 + $0x5c] sm:$0x1] }
  0x7e   : > { %v3009_v40 = vrot.slane %v3007_v59, 5  ;;  %v1217_v4 = vsel %vm7838_vm9, %v1212_v6, %v1216_v29  ;;  %v1221_v19 = vor.u32 %v1220_v62, %v1216_v29  ;;  %v670_v42 = vshll.u32 %v6666_v27, 16  ;;  %v6342_v59 = vld [vmem:[#allocation2 + $0xc] sm:$0xe] }
  0x7f   : > { %v3005_v46 = vrot.slane %v3004_v37, 4  ;;  %v1226_v2 = vrot.slane %v1224_v39, 5  ;;  %v673_v47 = vrot.slane %v669_v5, 4  ;;  %v675_v51 = vshrl.u32 %v6667_v1, 16 }
  0x80   : > { %v1222_v53 = vrot.slane %v1221_v19, 4  ;;  %v672_v14 = vor.u32 %v670_v42, %v669_v5  ;;  %v678_v30 = vshll.u32 %v6667_v1, 16  ;;  %v447_v55 = vmax.f32 %v415_v13, 0.0 }
  0x81   : > { %v3010_v57 = vsel %vm7838_vm9, %v3005_v46, %v3009_v40  ;;  %v677_v28 = vrot.slane %v675_v51, 7  ;;  %v448_v27 = vmax.f32 %v416_v48, 0.0  ;;  %v6753_v7 = vunpack.c.h.bf16 %v8091_v56  ;;  %v8126_v56 = vld [vmem:[%s9719_s2] ss:$0 sm:$0xff] }
  0x82   : > { %v6315_v18 = vcombine.low %v3000_v33, %v3010_v57  ;;  %v1227_v20 = vsel %vm7838_vm9, %v1222_v53, %v1226_v2  ;;  %v933_v44 = vsel %vm7860_vm11, %v672_v14, %v932_v26  ;;  %v6668_v10 = vpack.c.bf16 %v447_v55, %v447_v55  ;;  %v943_v14 = vld [vmem:[#allocation2 + $0x68] sm:$0x1] }
  0x83   : > { %v6089_v1 = vcombine.low %v1217_v4, %v1227_v20  ;;  %v680_v13 = vor.u32 %v678_v30, %v677_v28  ;;  %v682_v24 = vrot.slane %v677_v28, 4  ;;  %934 = vst [vmem:[#allocation2 + $0x54] sm:$0xf] %v933_v44  ;;  %v6669_v8 = vpack.c.bf16 %v448_v27, %v448_v27  ;;  %v939_v4 = vld [vmem:[#allocation2 + $0x60] sm:$0xf]  ;;  %v8168_v20 = vld [vmem:[%s7805_s30 + $0x48] sm:$0xff]  }
  0x84   : > { %7097 = vmatmul.mubr.msk.bf16.gmra.mrb[8].mxu0 %vm1494_vm7, %v6315_v18  ;;  %v684_v9 = vshrl.u32 %v6668_v10, 16  ;;  %v687_v16 = vshll.u32 %v6668_v10, 16  ;;  %v380_v36 = vmul.f32 %v8126_v56, %v6752_v35  ;;  %v381_v48 = vmul.f32 %v8126_v56, %v6753_v7  ;;  %v8139_v35 = vld [vmem:[%s9719_s2 + $0x1] ss:$0 sm:$0xff] }
  0x85   : > { %6964 = vmatprep.mubr.msk.bf16.mxu1 %vm1494_vm7, %v6089_v1  ;;  %v681_v6 = vsel %vm7853_vm10, %v673_v47, %v680_v13  ;;  %v937_v29 = vsel %vm7867_vm12, %v682_v24, %v936_v11  ;;  %v692_v62 = vshrl.u32 %v6669_v8, 16  ;;  %v695_v33 = vshll.u32 %v6669_v8, 16 }
  0x86   : > { %935 = vst.msk [vmem:[#allocation2 + $0x58] sm:$0xf] %vm239_vm1, %v681_v6  ;;  %938 = vst [vmem:[#allocation2 + $0x5c] sm:$0x1] %v937_v29  ;;  %v686_v37 = vrot.slane %v684_v9, 7  ;;  %v417_v39 = vadd.f32 %v8139_v35, %v380_v36  ;;  %v418_v5 = vadd.f32 %v8139_v35, %v381_v48  ;;  %v6358_v19 = vrot.slane %v6342_v59, 9 }
  0x87   : > { %v694_v40 = vrot.slane %v692_v62, 7  ;;  %v3613_v42 = vrot.slane %v3611_v49, 4  ;;  %v8180_v36 = vsel %vm8145_vm15, %v7954_v38, %v3621_v23  ;;  %v6756_v48 = vunpack.c.l.bf16 %v8168_v20 }
  0x88   : > { %v689_v26 = vor.u32 %v687_v16, %v686_v37  ;;  %v690_v46 = vrot.slane %v686_v37, 4  ;;  %v449_v2 = vmax.f32 %v417_v39, 0.0  ;;  %v450_v47 = vmax.f32 %v418_v5, 0.0 }
  0x89   : > { %v697_v52 = vor.u32 %v695_v33, %v694_v40  ;;  %v699_v53 = vrot.slane %v694_v40, 4  ;;  %v8153_v30 = vsel %vm8145_vm15, %v6358_v19, %v3611_v49  ;;  %v8159_v55 = vsel %vm8145_vm15, %v3613_v42, %v3614_v50 }
  0x8a   : > { %v1022_v57 = vld [vmem:[#allocation2 + $0x54] sm:$0xf]  ;;  %v940_v27 = vsel %vm7860_vm11, %v689_v26, %v939_v4  ;;  %v6670_v7 = vpack.c.bf16 %v449_v2, %v449_v2  ;;  %v8163_v18 = vpack.c.bf16 %v450_v47, %v450_v47  ;;  %v6375_v25 = vcombine.low %v8153_v30, %v8159_v55 }
  0x8b   : > { %v6279_v28 = vld [vmem:[#allocation2 + $0x54] sm:$0xf]  ;;  %v1229_v49 = vshrl.u32 %v1022_v57, 16  ;;  %v1232_v44 = vshll.u32 %v1022_v57, 16  ;;  %941 = vst [vmem:[#allocation2 + $0x60] sm:$0xf] %v940_v27  ;;  %v698_v50 = vsel %vm7853_vm10, %v690_v46, %v697_v52  ;;  %v944_v10 = vsel %vm7867_vm12, %v699_v53, %v943_v14 }
  0x8c   : > { %v3012_v34 = vshrl.u32 %v6279_v28, 16  ;;  %v3015_v11 = vshll.u32 %v6279_v28, 16  ;;  %v701_v1 = vshrl.u32 %v6670_v7, 16  ;;  %v704_v13 = vshll.u32 %v6670_v7, 16  ;;  %942 = vst.msk [vmem:[#allocation2 + $0x64] sm:$0xf] %vm239_vm1, %v698_v50 }
  0x8d   : > { %v1023_v24 = vld [vmem:[#allocation2 + $0x58] sm:$0xf]  ;;  %v1048_v8 = vld [vmem:[#allocation2 + $0x5c] sm:$0x1]  ;;  %v1231_v9 = vrot.slane %v1229_v49, 4  ;;  %v1234_v16 = vrot.slane %v1232_v44, 5  ;;  %v6757_v57 = vunpack.c.h.bf16 %v8168_v20 }
  0x8e   : > { %945 = vst [vmem:[#allocation2 + $0x68] sm:$0x1] %v944_v10  ;;  %v1238_v59 = vshll.u32 %v1023_v24, 16  ;;  %v1242_v6 = vshrl.u32 %v1023_v24, 16  ;;  %v1248_v29 = vshll.u32 %v1048_v8, 16  ;;  %v3014_v33 = vrot.slane %v3012_v34, 4 }
  0x8f   : > { %v8183_v62 = vld [vmem:[#allocation2 + $0x58] sm:$0xf]  ;;  %v1235_v37 = vor.u32 %v1234_v16, %v1231_v9  ;;  %v8185_v39 = vld [vmem:[#allocation2 + $0x5c] sm:$0x1]  ;;  %v3017_v5 = vrot.slane %v3015_v11, 5  ;;  %v8190_v14 = vrot.slane %v701_v1, 7  ;;  %v382_v1 = vmul.f32 %v8126_v56, %v6756_v48 }
  0x90   : > { %v3021_v40 = vshll.u32 %v8183_v62, 16  ;;  %v3025_v54 = vshrl.u32 %v8183_v62, 16  ;;  %v1240_v4 = vrot.slane %v1238_v59, 5  ;;  %v1244_v19 = vrot.slane %v1242_v6, 4  ;;  %v8861_v3 = vld [vmem:[#allocation2 + $0x5c] sm:$0x1] }
  0x91   : > { %v1250_v23 = vrot.slane %v1248_v29, 5  ;;  %v3031_v38 = vshll.u32 %v8185_v39, 16  ;;  %v1236_v42 = vrot.slane %v1235_v37, 4  ;;  %v3018_v26 = vor.u32 %v3017_v5, %v3014_v33 }
  0x92   : > { %v3023_v46 = vrot.slane %v3021_v40, 5  ;;  %v3027_v2 = vrot.slane %v3025_v54, 4  ;;  %v1245_v47 = vor.u32 %v1244_v19, %v1240_v4  ;;  %v6282_v53 = vld [vmem:[#allocation2 + $0x60] sm:$0xf]  ;;  %v706_v24 = vor.u32 %v704_v13, %v8190_v14 }
  0x93   : > { %v3033_v52 = vrot.slane %v3031_v38, 5  ;;  %v1241_v28 = vsel %vm7838_vm9, %v1236_v42, %v1240_v4  ;;  %v3019_v27 = vrot.slane %v3018_v26, 4  ;;  %v3036_v49 = vshrl.u32 %v6282_v53, 16  ;;  %v1024_v44 = vld [vmem:[#allocation2 + $0x60] sm:$0xf] }
  0x94   : > { %v3028_v7 = vor.u32 %v3027_v2, %v3023_v46  ;;  %v1246_v34 = vrot.slane %v1245_v47, 4  ;;  %v8195_v11 = vld [vmem:[#allocation2 + $0x64] sm:$0xf]  ;;  %v3039_v10 = vshll.u32 %v6282_v53, 16  ;;  %v1253_v54 = vshrl.u32 %v1024_v44, 16 }
  0x95   : > { %v8197_v50 = vld [vmem:[#allocation2 + $0x68] sm:$0x1]  ;;  %v3024_v20 = vsel %vm7838_vm9, %v3019_v27, %v3023_v46  ;;  %v3038_v9 = vrot.slane %v3036_v49, 4  ;;  %v3045_v16 = vshll.u32 %v8195_v11, 16  ;;  %v1025_v59 = vld [vmem:[#allocation2 + $0x64] sm:$0xf] }
  0x96   : > { %v3029_v8 = vrot.slane %v3028_v7, 4  ;;  %v1251_v6 = vsel %vm7838_vm9, %v1246_v34, %v1250_v23  ;;  %v3041_v29 = vrot.slane %v3039_v10, 5  ;;  %v3049_v33 = vshrl.u32 %v8195_v11, 16  ;;  %v1049_v5 = vld [vmem:[#allocation2 + $0x68] sm:$0x1] }
  0x97   : > { %v3055_v37 = vshll.u32 %v8197_v50, 16  ;;  %v6090_v13 = vcombine.low %v1241_v28, %v1251_v6  ;;  %v3047_v40 = vrot.slane %v3045_v16, 5  ;;  %v1255_v26 = vrot.slane %v1253_v54, 4 }
  0x98   : > { %v3034_v48 = vsel %vm7838_vm9, %v3029_v8, %v3033_v52  ;;  %v3042_v19 = vor.u32 %v3041_v29, %v3038_v9  ;;  %v3051_v38 = vrot.slane %v3049_v33, 4  ;;  %v1256_v23 = vshll.u32 %v1024_v44, 16  ;;  %v946_v52 = vld [vmem:[#allocation2 + $0x6c] sm:$0xf] }
  0x99   : > { %v6316_v4 = vcombine.low %v3024_v20, %v3034_v48  ;;  %v3057_v42 = vrot.slane %v3055_v37, 5  ;;  %6965 = vmatmul.mubr.msk.bf16.gmra.mrb[12].mxu1 %vm1494_vm7, %v6090_v13  ;;  %v1262_v46 = vshll.u32 %v1025_v59, 16  ;;  %v1266_v2 = vshrl.u32 %v1025_v59, 16  ;;  %v6343_v20 = vld [vmem:[#allocation2 + $0x18] sm:$0xe] }
  0x9a   : > { %v3043_v47 = vrot.slane %v3042_v19, 4  ;;  %v3052_v53 = vor.u32 %v3051_v38, %v3047_v40  ;;  %v1272_v28 = vshll.u32 %v1049_v5, 16  ;;  %v707_v27 = vrot.slane %v8190_v14, 4 }
  0x9b   : > { %7100 = vmatprep.mubr.msk.bf16.mxu0 %vm1494_vm7, %v6316_v4  ;;  %v1258_v7 = vrot.slane %v1256_v23, 5  ;;  %v1264_v49 = vrot.slane %v1262_v46, 5  ;;  %v1268_v34 = vrot.slane %v1266_v2, 4  ;;  %v709_v10 = vshrl.u32 %v8163_v18, 16  ;;  %v950_v4 = vld [vmem:[#allocation2 + $0x74] sm:$0x1] }
  0x9c   : > { %v3048_v8 = vsel %vm7838_vm9, %v3043_v47, %v3047_v40  ;;  %v3053_v44 = vrot.slane %v3052_v53, 4  ;;  %v1274_v9 = vrot.slane %v1272_v28, 5  ;;  %v712_v16 = vshll.u32 %v8163_v18, 16 }
  0x9d   : > { %v1259_v59 = vor.u32 %v1258_v7, %v1255_v26  ;;  %v1269_v6 = vor.u32 %v1268_v34, %v1264_v49  ;;  %v711_v29 = vrot.slane %v709_v10, 7  ;;  %v947_v14 = vsel %vm7860_vm11, %v706_v24, %v946_v52  ;;  %v6791_v26 = vld [vmem:[%s7805_s30 + $0x50] sm:$0xff]  }
  0x9e   : > { %v3058_v33 = vsel %vm7838_vm9, %v3053_v44, %v3057_v42  ;;  %948 = vst [vmem:[#allocation2 + $0x6c] sm:$0xf] %v947_v14  ;;  %v6359_v37 = vrot.slane %v6343_v20, 9  ;;  %v8223_v5 = vsel %vm1543_vm0, %v7964_v58, 0  ;;  %v383_v13 = vmul.f32 %v8126_v56, %v6757_v57  ;;  %v6344_v58 = vld [vmem:[#allocation2 + $0x24] sm:$0xe] }
  0x9f   : > { %v6317_v48 = vcombine.low %v3048_v8, %v3058_v33  ;;  %v1260_v18 = vrot.slane %v1259_v59, 4  ;;  %v1270_v40 = vrot.slane %v1269_v6, 4  ;;  %v714_v54 = vor.u32 %v712_v16, %v711_v29 }
  0xa0   : > { %v716_v19 = vrot.slane %v711_v29, 4  ;;  %v3619_v24 = vsel %vm8145_vm15, %v6359_v37, %v3618_v22  ;;  %v419_v38 = vadd.f32 %v8139_v35, %v382_v1  ;;  %v420_v42 = vadd.f32 %v8139_v35, %v383_v13  ;;  %v8241_v22 = vld [vmem:[#allocation2 + $0x30] sm:$0xe]  ;;  %v953_v29 = vld [vmem:[#allocation2 + $0x78] sm:$0xf] }
  0xa1   : > { %7101 = vmatmul.mubr.msk.bf16.gmra.mrb[12].mxu0 %vm1494_vm7, %v6317_v48  ;;  %v1265_v57 = vsel %vm7838_vm9, %v1260_v18, %v1264_v49  ;;  %v1275_v23 = vsel %vm7838_vm9, %v1270_v40, %v1274_v9  ;;  %v715_v45 = vsel %vm7853_vm10, %v707_v27, %v714_v54  ;;  %v6376_v46 = vcombine.low %v3619_v24, %v8180_v36  ;;  %v6520_v18 = vld [vmem:[%s9718_s1 + $0x1c] sm:$0xf] }
  0xa2   : > { %v6091_v1 = vcombine.low %v1265_v57, %v1275_v23  ;;  %949 = vst.msk [vmem:[#allocation2 + $0x70] sm:$0xf] %vm239_vm1, %v715_v45  ;;  %v951_v2 = vsel %vm7867_vm12, %v716_v19, %v950_v4  ;;  %7122 = vmatprep.mubr.msk.bf16.mxu0 %vm1494_vm7, %v6375_v25  ;;  %v451_v47 = vmax.f32 %v419_v38, 0.0  ;;  %v452_v53 = vmax.f32 %v420_v42, 0.0  ;;  %v957_v23 = vld [vmem:[#allocation2 + $0x80] sm:$0x1] }
  0xa3   : > { %952 = vst [vmem:[#allocation2 + $0x74] sm:$0x1] %v951_v2  ;;  %v6760_v28 = vunpack.c.l.bf16 %v6791_v26  ;;  %v6761_v27 = vunpack.c.h.bf16 %v6791_v26  ;;  %v6360_v52 = vrot.slane %v6344_v58, 9  ;;  %v3625_v36 = vrot.slane %v7966_v63, 5 }
  0xa4   : > { %6968 = vmatprep.mubr.msk.bf16.mxu1 %vm1494_vm7, %v6091_v1  ;;  %v6672_v7 = vpack.c.bf16 %v451_v47, %v451_v47  ;;  %v6673_v49 = vpack.c.bf16 %v452_v53, %v452_v53  ;;  %v3628_v34 = vrot.slane %v7968_v15, 5  ;;  %v6361_v10 = vrot.slane %v8241_v22, 9 }
  0xa5   : > { %v1026_v20 = vld [vmem:[#allocation2 + $0x6c] sm:$0xf]  ;;  %v384_v30 = vmul.f32 %v8126_v56, %v6760_v28  ;;  %v385_v55 = vmul.f32 %v8126_v56, %v6761_v27  ;;  %v3626_v25 = vsel %vm8145_vm15, %v6360_v52, %v3625_v36  ;;  %v3627_v8 = vrot.slane %v3625_v36, 4  ;;  %v6792_v52 = vld [vmem:[%s7805_s30 + $0x58] sm:$0xff]  }
  0xa6   : > { %v1277_v44 = vshrl.u32 %v1026_v20, 16  ;;  %v1280_v9 = vshll.u32 %v1026_v20, 16  ;;  %v718_v63 = vshrl.u32 %v6672_v7, 16  ;;  %v721_v16 = vshll.u32 %v6672_v7, 16 }
  0xa7   : > { %v726_v59 = vshrl.u32 %v6673_v49, 16  ;;  %v729_v6 = vshll.u32 %v6673_v49, 16  ;;  %v421_v15 = vadd.f32 %v8139_v35, %v384_v30  ;;  %v422_v14 = vadd.f32 %v8139_v35, %v385_v55 }
  0xa8   : > { %v1279_v33 = vrot.slane %v1277_v44, 4  ;;  %v1282_v37 = vrot.slane %v1280_v9, 5  ;;  %v720_v13 = vrot.slane %v718_v63, 7  ;;  %v3629_v48 = vsel %vm8145_vm15, %v3627_v8, %v3628_v34  ;;  %v6793_v63 = vld [vmem:[%s7805_s30 + $0x60] sm:$0xff]  }
  0xa9   : > { %v1027_v40 = vld [vmem:[#allocation2 + $0x70] sm:$0xf]  ;;  %7123 = vmatmul.mubr.msk.bf16.vlgmr.msra.gmra.mrb[0].mxu0 %vm1494_vm7, %v6376_v46  ;;  %v728_v54 = vrot.slane %v726_v59, 7  ;;  %v453_v4 = vmax.f32 %v421_v15, 0.0  ;;  %v454_v19 = vmax.f32 %v422_v14, 0.0  ;;  %v6377_v24 = vcombine.low %v3626_v25, %v3629_v48 }
  0xaa   : > { %v1050_v38 = vld [vmem:[#allocation2 + $0x74] sm:$0x1]  ;;  %v1283_v42 = vor.u32 %v1282_v37, %v1279_v33  ;;  %v1286_v26 = vshll.u32 %v1027_v40, 16  ;;  %v1290_v58 = vshrl.u32 %v1027_v40, 16  ;;  %7155 = vmatpush3.bf16.msra.mxu0 %v8223_v5  ;;  %v723_v57 = vor.u32 %v721_v16, %v720_v13 }
  0xab   : > { %v1296_v45 = vshll.u32 %v1050_v38, 16  ;;  %v724_v1 = vrot.slane %v720_v13, 4  ;;  %v731_v2 = vor.u32 %v729_v6, %v728_v54  ;;  %v733_v47 = vrot.slane %v728_v54, 4  ;;  %7126 = vmatprep.mubr.msk.bf16.mxu0 %vm1494_vm7, %v6377_v24  ;;  %7522 = vmatprep.subr.msk.bf16.mxu0 %vm1543_vm0, %v6520_v18  ;;  %v964_v38 = vld [vmem:[#allocation2 + $0x8c] sm:$0x1] }
  0xac   : > { %v1284_v46 = vrot.slane %v1283_v42, 4  ;;  %v1288_v53 = vrot.slane %v1286_v26, 5  ;;  %v1292_v28 = vrot.slane %v1290_v58, 4  ;;  %v954_v27 = vsel %vm7860_vm11, %v723_v57, %v953_v29 }
  0xad   : > { %v1298_v36 = vrot.slane %v1296_v45, 5  ;;  %v732_v5 = vsel %vm7853_vm10, %v724_v1, %v731_v2  ;;  %955 = vst [vmem:[#allocation2 + $0x78] sm:$0xf] %v954_v27  ;;  %v958_v7 = vsel %vm7867_vm12, %v733_v47, %v957_v23  ;;  %v6674_v49 = vpack.c.bf16 %v453_v4, %v453_v4 }
  0xae   : > { %v1289_v34 = vsel %vm7838_vm9, %v1284_v46, %v1288_v53  ;;  %v1293_v20 = vor.u32 %v1292_v28, %v1288_v53  ;;  %956 = vst.msk [vmem:[#allocation2 + $0x7c] sm:$0xf] %vm239_vm1, %v732_v5  ;;  %959 = vst [vmem:[#allocation2 + $0x80] sm:$0x1] %v958_v7  ;;  %v6675_v30 = vpack.c.bf16 %v454_v19, %v454_v19  ;;  %v3632_v55 = vrot.slane %v8029_v31, 5 }
  0xaf   : > { %v735_v25 = vshrl.u32 %v6674_v49, 16  ;;  %v738_v8 = vshll.u32 %v6674_v49, 16  ;;  %v3635_v44 = vrot.slane %v8031_v32, 5  ;;  %v6764_v9 = vunpack.c.l.bf16 %v6792_v52  ;;  %v960_v32 = vld [vmem:[#allocation2 + $0x84] sm:$0xf] }
  0xb0   : > { %v1294_v16 = vrot.slane %v1293_v20, 4  ;;  %v743_v59 = vshrl.u32 %v6675_v30, 16  ;;  %v746_v6 = vshll.u32 %v6675_v30, 16  ;;  %v3633_v29 = vsel %vm8145_vm15, %v6361_v10, %v3632_v55  ;;  %v6346_v7 = vld [vmem:[#allocation2 + $0x3c] sm:$0xe] }
  0xb1   : > { %v737_v15 = vrot.slane %v735_v25, 7  ;;  %v3634_v14 = vrot.slane %v3632_v55, 4  ;;  %v6765_v33 = vunpack.c.h.bf16 %v6792_v52  ;;  %v386_v37 = vmul.f32 %v8126_v56, %v6764_v9 }
  0xb2   : > { %v1299_v31 = vsel %vm7838_vm9, %v1294_v16, %v1298_v36  ;;  %v745_v13 = vrot.slane %v743_v59, 7  ;;  %v6768_v48 = vunpack.c.l.bf16 %v6793_v63  ;;  %v6769_v18 = vunpack.c.h.bf16 %v6793_v63 }
  0xb3   : > { %v6092_v40 = vcombine.low %v1289_v34, %v1299_v31  ;;  %v740_v54 = vor.u32 %v738_v8, %v737_v15  ;;  %v741_v4 = vrot.slane %v737_v15, 4  ;;  %v3636_v22 = vsel %vm8145_vm15, %v3634_v14, %v3635_v44 }
  0xb4   : > { %v8291_v19 = vld [vmem:[#allocation2 + $0x78] sm:$0xf]  ;;  %v748_v10 = vor.u32 %v746_v6, %v745_v13  ;;  %v750_v24 = vrot.slane %v745_v13, 4  ;;  %v6378_v42 = vcombine.low %v3633_v29, %v3636_v22  ;;  %v387_v26 = vmul.f32 %v8126_v56, %v6765_v33 }
  0xb5   : > { %6969 = vmatmul.mubr.msk.bf16.gmra.mrb[16].mxu1 %vm1494_vm7, %v6092_v40  ;;  %v8295_v58 = vld [vmem:[#allocation2 + $0x7c] sm:$0xf]  ;;  %v1051_v57 = vld [vmem:[#allocation2 + $0x80] sm:$0x1]  ;;  %v1301_v23 = vshrl.u32 %v8291_v19, 16  ;;  %v1304_v45 = vshll.u32 %v8291_v19, 16  ;;  %v961_v1 = vsel %vm7860_vm11, %v740_v54, %v960_v32  ;;  %v423_v2 = vadd.f32 %v8139_v35, %v386_v37 }
  0xb6   : > { %v1310_v47 = vshll.u32 %v8295_v58, 16  ;;  %v1314_v46 = vshrl.u32 %v8295_v58, 16  ;;  %v1320_v53 = vshll.u32 %v1051_v57, 16  ;;  %v749_v28 = vsel %vm7853_vm10, %v741_v4, %v748_v10  ;;  %962 = vst [vmem:[#allocation2 + $0x84] sm:$0xf] %v961_v1  ;;  %7127 = vmatmul.mubr.msk.bf16.gmra.mrb[4].mxu0 %vm1494_vm7, %v6378_v42 }
  0xb7   : > { %v1303_v27 = vrot.slane %v1301_v23, 4  ;;  %v1306_v52 = vrot.slane %v1304_v45, 5  ;;  %963 = vst.msk [vmem:[#allocation2 + $0x88] sm:$0xf] %vm239_vm1, %v749_v28  ;;  %v965_v36 = vsel %vm7867_vm12, %v750_v24, %v964_v38  ;;  %v424_v5 = vadd.f32 %v8139_v35, %v387_v26  ;;  %v967_v40 = vld [vmem:[#allocation2 + $0x90] sm:$0xf] }
  0xb8   : > { %v1312_v49 = vrot.slane %v1310_v47, 5  ;;  %v1316_v34 = vrot.slane %v1314_v46, 4  ;;  %v1322_v20 = vrot.slane %v1320_v53, 5  ;;  %966 = vst [vmem:[#allocation2 + $0x8c] sm:$0x1] %v965_v36  ;;  %v455_v30 = vmax.f32 %v423_v2, 0.0 }
  0xb9   : > { %v1307_v55 = vor.u32 %v1306_v52, %v1303_v27  ;;  %v456_v25 = vmax.f32 %v424_v5, 0.0  ;;  %v388_v8 = vmul.f32 %v8126_v56, %v6768_v48  ;;  %v389_v44 = vmul.f32 %v8126_v56, %v6769_v18  ;;  %v971_v36 = vld [vmem:[#allocation2 + $0x98] sm:$0x1] }
  0xba   : > { %v1317_v9 = vor.u32 %v1316_v34, %v1312_v49  ;;  %v6676_v63 = vpack.c.bf16 %v455_v30, %v455_v30  ;;  %v6362_v16 = vrot.slane %v6346_v7, 9  ;;  %v3639_v59 = vrot.slane %v8062_v41, 5 }
  0xbb   : > { %v1308_v6 = vrot.slane %v1307_v55, 4  ;;  %v6677_v29 = vpack.c.bf16 %v456_v25, %v456_v25  ;;  %v425_v15 = vadd.f32 %v8139_v35, %v388_v8  ;;  %v426_v14 = vadd.f32 %v8139_v35, %v389_v44 }
  0xbc   : > { %v1318_v33 = vrot.slane %v1317_v9, 4  ;;  %v752_v37 = vshrl.u32 %v6676_v63, 16  ;;  %v755_v31 = vshll.u32 %v6676_v63, 16  ;;  %v8318_v13 = vsel %vm8145_vm15, %v6362_v16, %v3639_v59 }
  0xbd   : > { %v1313_v32 = vsel %vm7838_vm9, %v1308_v6, %v1312_v49  ;;  %v8322_v48 = vld [vmem:[#allocation2 + $0x84] sm:$0xf]  ;;  %v760_v18 = vshrl.u32 %v6677_v29, 16  ;;  %v763_v41 = vshll.u32 %v6677_v29, 16  ;;  %v457_v54 = vmax.f32 %v425_v15, 0.0 }
  0xbe   : > { %v1323_v4 = vsel %vm7838_vm9, %v1318_v33, %v1322_v20  ;;  %v8326_v22 = vld [vmem:[#allocation2 + $0x88] sm:$0xf]  ;;  %v1325_v10 = vshrl.u32 %v8322_v48, 16  ;;  %v1328_v24 = vshll.u32 %v8322_v48, 16  ;;  %v754_v38 = vrot.slane %v752_v37, 7 }
  0xbf   : > { %v6093_v42 = vcombine.low %v1313_v32, %v1323_v4  ;;  %v1052_v26 = vld [vmem:[#allocation2 + $0x8c] sm:$0x1]  ;;  %v1334_v57 = vshll.u32 %v8326_v22, 16  ;;  %v1338_v23 = vshrl.u32 %v8326_v22, 16  ;;  %v762_v45 = vrot.slane %v760_v18, 7 }
  0xc0   : > { %v1327_v1 = vrot.slane %v1325_v10, 4  ;;  %v1330_v2 = vrot.slane %v1328_v24, 5  ;;  %v1344_v47 = vshll.u32 %v1052_v26, 16  ;;  %v757_v46 = vor.u32 %v755_v31, %v754_v38  ;;  %v6347_v20 = vld [vmem:[#allocation2 + $0x48] sm:$0xe] }
  0xc1   : > { %6972 = vmatprep.mubr.msk.bf16.mxu1 %vm1494_vm7, %v6093_v42  ;;  %v1336_v53 = vrot.slane %v1334_v57, 5  ;;  %v1340_v28 = vrot.slane %v1338_v23, 4  ;;  %v758_v27 = vrot.slane %v754_v38, 4  ;;  %v765_v52 = vor.u32 %v763_v41, %v762_v45  ;;  %v974_v23 = vld [vmem:[#allocation2 + $0x9c] sm:$0xf] }
  0xc2   : > { %v1331_v5 = vor.u32 %v1330_v2, %v1327_v1  ;;  %v1346_v7 = vrot.slane %v1344_v47, 5  ;;  %v767_v49 = vrot.slane %v762_v45, 4  ;;  %v968_v34 = vsel %vm7860_vm11, %v757_v46, %v967_v40  ;;  %v6794_v40 = vld [vmem:[%s7805_s30 + $0x68] sm:$0xff]   ;;  %v978_v1 = vld [vmem:[#allocation2 + $0xa4] sm:$0x1] }
  0xc3   : > { %v1341_v30 = vor.u32 %v1340_v28, %v1336_v53  ;;  %v766_v55 = vsel %vm7853_vm10, %v758_v27, %v765_v52  ;;  %969 = vst [vmem:[#allocation2 + $0x90] sm:$0xf] %v968_v34  ;;  %v458_v25 = vmax.f32 %v426_v14, 0.0  ;;  %v6678_v8 = vpack.c.bf16 %v457_v54, %v457_v54  ;;  %v6795_v54 = vld [vmem:[%s7805_s30 + $0x70] sm:$0xff]  }
  0xc4   : > { %v1332_v44 = vrot.slane %v1331_v5, 4  ;;  %970 = vst.msk [vmem:[#allocation2 + $0x94] sm:$0xf] %vm239_vm1, %v766_v55  ;;  %v972_v9 = vsel %vm7867_vm12, %v767_v49, %v971_v36  ;;  %v3641_v63 = vrot.slane %v3639_v59, 4  ;;  %v3642_v16 = vrot.slane %v8066_v60, 5 }
  0xc5   : > { %v1342_v6 = vrot.slane %v1341_v30, 4  ;;  %973 = vst [vmem:[#allocation2 + $0x98] sm:$0x1] %v972_v9  ;;  %v6679_v29 = vpack.c.bf16 %v458_v25, %v458_v25  ;;  %v769_v15 = vshrl.u32 %v6678_v8, 16  ;;  %v772_v33 = vshll.u32 %v6678_v8, 16 }
  0xc6   : > { %v1337_v14 = vsel %vm7838_vm9, %v1332_v44, %v1336_v53  ;;  %v3643_v37 = vsel %vm8145_vm15, %v3641_v63, %v3642_v16  ;;  %v6363_v31 = vrot.slane %v6347_v20, 9  ;;  %v3646_v32 = vrot.slane %v8095_v61, 5  ;;  %v6348_v8 = vld [vmem:[#allocation2 + $0x54] sm:$0xe] }
  0xc7   : > { %v1347_v59 = vsel %vm7838_vm9, %v1342_v6, %v1346_v7  ;;  %v771_v18 = vrot.slane %v769_v15, 7  ;;  %v777_v41 = vshrl.u32 %v6679_v29, 16  ;;  %v780_v60 = vshll.u32 %v6679_v29, 16 }
  0xc8   : > { %v6094_v4 = vcombine.low %v1337_v14, %v1347_v59  ;;  %v6379_v10 = vcombine.low %v8318_v13, %v3643_v37  ;;  %v3647_v24 = vsel %vm8145_vm15, %v6363_v31, %v3646_v32  ;;  %v3648_v38 = vrot.slane %v3646_v32, 4 }
  0xc9   : > { %v774_v42 = vor.u32 %v772_v33, %v771_v18  ;;  %v775_v26 = vrot.slane %v771_v18, 4  ;;  %v779_v57 = vrot.slane %v777_v41, 7  ;;  %v3649_v61 = vrot.slane %v8102_v21, 5 }
  0xca   : > { %6973 = vmatmul.mubr.msk.bf16.gmra.mrb[20].mxu1 %vm1494_vm7, %v6094_v4  ;;  %v8355_v45 = vld [vmem:[#allocation2 + $0x90] sm:$0xf]  ;;  %7130 = vmatprep.mubr.msk.bf16.mxu0 %vm1494_vm7, %v6379_v10  ;;  %v6772_v2 = vunpack.c.l.bf16 %v6794_v40  ;;  %v6773_v47 = vunpack.c.h.bf16 %v6794_v40  ;;  %v6776_v13 = vunpack.c.l.bf16 %v6795_v54  ;;  %v6777_v46 = vunpack.c.h.bf16 %v6795_v54 }
  0xcb   : > { %v8358_v53 = vld [vmem:[#allocation2 + $0x94] sm:$0xf]  ;;  %v1349_v28 = vshrl.u32 %v8355_v45, 16  ;;  %v1352_v27 = vshll.u32 %v8355_v45, 16  ;;  %v782_v52 = vor.u32 %v780_v60, %v779_v57  ;;  %v784_v36 = vrot.slane %v779_v57, 4 }
  0xcc   : > { %v1053_v21 = vld [vmem:[#allocation2 + $0x98] sm:$0x1]  ;;  %v1358_v5 = vshll.u32 %v8358_v53, 16  ;;  %v1362_v7 = vshrl.u32 %v8358_v53, 16  ;;  %v975_v49 = vsel %vm7860_vm11, %v774_v42, %v974_v23  ;;  %v3650_v34 = vsel %vm8145_vm15, %v3648_v38, %v3649_v61 }
  0xcd   : > { %v1351_v20 = vrot.slane %v1349_v28, 4  ;;  %v1354_v30 = vrot.slane %v1352_v27, 5  ;;  %v1368_v55 = vshll.u32 %v1053_v21, 16  ;;  %v783_v25 = vsel %vm7853_vm10, %v775_v26, %v782_v52  ;;  %976 = vst [vmem:[#allocation2 + $0x9c] sm:$0xf] %v975_v49 }
  0xce   : > { %v1360_v44 = vrot.slane %v1358_v5, 5  ;;  %v1364_v9 = vrot.slane %v1362_v7, 4  ;;  %977 = vst.msk [vmem:[#allocation2 + $0xa0] sm:$0xf] %vm239_vm1, %v783_v25  ;;  %v979_v63 = vsel %vm7867_vm12, %v784_v36, %v978_v1  ;;  %v6380_v16 = vcombine.low %v3647_v24, %v3650_v34 }
  0xcf   : > { %v1355_v6 = vor.u32 %v1354_v30, %v1351_v20  ;;  %v1370_v29 = vrot.slane %v1368_v55, 5  ;;  %980 = vst [vmem:[#allocation2 + $0xa4] sm:$0x1] %v979_v63  ;;  %v390_v15 = vmul.f32 %v8126_v56, %v6772_v2  ;;  %v391_v33 = vmul.f32 %v8126_v56, %v6773_v47 }
  0xd0   : > { %v1365_v14 = vor.u32 %v1364_v9, %v1360_v44  ;;  %7131 = vmatmul.mubr.msk.bf16.gmra.mrb[8].mxu0 %vm1494_vm7, %v6380_v16  ;;  %v392_v37 = vmul.f32 %v8126_v56, %v6776_v13  ;;  %v393_v31 = vmul.f32 %v8126_v56, %v6777_v46  ;;  %v6364_v32 = vrot.slane %v6348_v8, 9 }
  0xd1   : > { %v1356_v59 = vrot.slane %v1355_v6, 4  ;;  %v427_v18 = vadd.f32 %v8139_v35, %v390_v15  ;;  %v428_v41 = vadd.f32 %v8139_v35, %v391_v33  ;;  %v3653_v60 = vrot.slane %v8183_v62, 5  ;;  %v981_v6 = vld [vmem:[#allocation2 + $0xa8] sm:$0xf] }
  0xd2   : > { %v1366_v40 = vrot.slane %v1365_v14, 4  ;;  %v429_v54 = vadd.f32 %v8139_v35, %v392_v37  ;;  %v430_v4 = vadd.f32 %v8139_v35, %v393_v31  ;;  %v3656_v10 = vrot.slane %v8185_v39, 5  ;;  %v985_v31 = vld [vmem:[#allocation2 + $0xb0] sm:$0x1] }
  0xd3   : > { %v1361_v24 = vsel %vm7838_vm9, %v1356_v59, %v1360_v44  ;;  %v459_v38 = vmax.f32 %v427_v18, 0.0  ;;  %v460_v56 = vmax.f32 %v428_v41, 0.0  ;;  %v8388_v42 = vsel %vm8145_vm15, %v6364_v32, %v3653_v60 }
  0xd4   : > { %v1371_v26 = vsel %vm7838_vm9, %v1366_v40, %v1370_v29  ;;  %v8392_v62 = vld [vmem:[#allocation2 + $0x9c] sm:$0xf]  ;;  %v461_v57 = vmax.f32 %v429_v54, 0.0  ;;  %v462_v23 = vmax.f32 %v430_v4, 0.0  ;;  %v3655_v61 = vrot.slane %v3653_v60, 4 }
  0xd5   : > { %v6095_v35 = vcombine.low %v1361_v24, %v1371_v26  ;;  %v8394_v1 = vld [vmem:[#allocation2 + $0xa0] sm:$0xf]  ;;  %v1373_v2 = vshrl.u32 %v8392_v62, 16  ;;  %v1376_v47 = vshll.u32 %v8392_v62, 16  ;;  %v6680_v13 = vpack.c.bf16 %v459_v38, %v459_v38  ;;  %v988_v38 = vld [vmem:[#allocation2 + $0xb4] sm:$0xf] }
  0xd6   : > { %v1054_v46 = vld [vmem:[#allocation2 + $0xa4] sm:$0x1]  ;;  %v1382_v28 = vshll.u32 %v8394_v1, 16  ;;  %v1386_v27 = vshrl.u32 %v8394_v1, 16  ;;  %v6681_v52 = vpack.c.bf16 %v460_v56, %v460_v56  ;;  %v6682_v36 = vpack.c.bf16 %v461_v57, %v461_v57  ;;  %v6349_v56 = vld [vmem:[#allocation2 + $0x60] sm:$0xe] }
  0xd7   : > { %6976 = vmatprep.mubr.msk.bf16.mxu1 %vm1494_vm7, %v6095_v35  ;;  %v1375_v21 = vrot.slane %v1373_v2, 4  ;;  %v1378_v5 = vrot.slane %v1376_v47, 5  ;;  %v1392_v7 = vshll.u32 %v1054_v46, 16  ;;  %v786_v49 = vshrl.u32 %v6680_v13, 16  ;;  %v992_v46 = vld [vmem:[#allocation2 + $0xbc] sm:$0x1] }
  0xd8   : > { %v1384_v34 = vrot.slane %v1382_v28, 5  ;;  %v1388_v20 = vrot.slane %v1386_v27, 4  ;;  %v789_v30 = vshll.u32 %v6680_v13, 16  ;;  %v794_v55 = vshrl.u32 %v6681_v52, 16  ;;  %v6350_v27 = vld [vmem:[#allocation2 + $0x6c] sm:$0xe] }
  0xd9   : > { %v1379_v25 = vor.u32 %v1378_v5, %v1375_v21  ;;  %v1394_v8 = vrot.slane %v1392_v7, 5  ;;  %v788_v44 = vrot.slane %v786_v49, 7  ;;  %v797_v9 = vshll.u32 %v6681_v52, 16  ;;  %v6286_v7 = vld [vmem:[#allocation2 + $0x70] sm:$0xf] }
  0xda   : > { %v1389_v63 = vor.u32 %v1388_v20, %v1384_v34  ;;  %v796_v16 = vrot.slane %v794_v55, 7  ;;  %v6683_v29 = vpack.c.bf16 %v462_v23, %v462_v23  ;;  %v803_v15 = vshrl.u32 %v6682_v36, 16  ;;  %v6287_v49 = vld [vmem:[#allocation2 + $0x74] sm:$0x1] }
  0xdb   : > { %v1380_v33 = vrot.slane %v1379_v25, 4  ;;  %v791_v14 = vor.u32 %v789_v30, %v788_v44  ;;  %v792_v37 = vrot.slane %v788_v44, 4  ;;  %v806_v32 = vshll.u32 %v6682_v36, 16 }
  0xdc   : > { %v1390_v59 = vrot.slane %v1389_v63, 4  ;;  %v799_v18 = vor.u32 %v797_v9, %v796_v16  ;;  %v801_v41 = vrot.slane %v796_v16, 4  ;;  %v805_v60 = vrot.slane %v803_v15, 7 }
  0xdd   : > { %v1385_v40 = vsel %vm7838_vm9, %v1380_v33, %v1384_v34  ;;  %v982_v54 = vsel %vm7860_vm11, %v791_v14, %v981_v6  ;;  %v811_v4 = vshrl.u32 %v6683_v29, 16  ;;  %v814_v24 = vshll.u32 %v6683_v29, 16 }
  0xde   : > { %v1395_v26 = vsel %vm7838_vm9, %v1390_v59, %v1394_v8  ;;  %v800_v57 = vsel %vm7853_vm10, %v792_v37, %v799_v18  ;;  %983 = vst [vmem:[#allocation2 + $0xa8] sm:$0xf] %v982_v54  ;;  %v986_v23 = vsel %vm7867_vm12, %v801_v41, %v985_v31  ;;  %v808_v35 = vor.u32 %v806_v32, %v805_v60 }
  0xdf   : > { %v6096_v2 = vcombine.low %v1385_v40, %v1395_v26  ;;  %984 = vst.msk [vmem:[#allocation2 + $0xac] sm:$0xf] %vm239_vm1, %v800_v57  ;;  %987 = vst [vmem:[#allocation2 + $0xb0] sm:$0x1] %v986_v23  ;;  %v809_v47 = vrot.slane %v805_v60, 4  ;;  %v813_v13 = vrot.slane %v811_v4, 7  ;;  %v3657_v28 = vsel %vm8145_vm15, %v3655_v61, %v3656_v10 }
  0xe0   : > { %v989_v52 = vsel %vm7860_vm11, %v808_v35, %v988_v38  ;;  %v6381_v36 = vcombine.low %v8388_v42, %v3657_v28  ;;  %v6365_v21 = vrot.slane %v6349_v56, 9  ;;  %v3660_v5 = vrot.slane %v8195_v11, 5  ;;  %v6351_v60 = vld [vmem:[#allocation2 + $0x78] sm:$0xe]  ;;  %v8453_v26 = vld [vmem:[#allocation2 + $0x7c] sm:$0xf] }
  0xe1   : > { %6977 = vmatmul.mubr.msk.bf16.gmra.mrb[24].mxu1 %vm1494_vm7, %v6096_v2  ;;  %v816_v34 = vor.u32 %v814_v24, %v813_v13  ;;  %v818_v20 = vrot.slane %v813_v13, 4  ;;  %990 = vst [vmem:[#allocation2 + $0xb4] sm:$0xf] %v989_v52  ;;  %v3663_v39 = vrot.slane %v8197_v50, 5  ;;  %v6366_v30 = vrot.slane %v6350_v27, 9 }
  0xe2   : > { %7134 = vmatprep.mubr.msk.bf16.mxu0 %vm1494_vm7, %v6381_v36  ;;  %v3661_v10 = vsel %vm8145_vm15, %v6365_v21, %v3660_v5  ;;  %v3662_v61 = vrot.slane %v3660_v5, 4  ;;  %v3667_v55 = vrot.slane %v6286_v7, 5  ;;  %v3670_v25 = vrot.slane %v6287_v49, 5  ;;  %v8461_v52 = vld [vmem:[#allocation2 + $0x80] sm:$0x1] }
  0xe3   : > { %v817_v42 = vsel %vm7853_vm10, %v809_v47, %v816_v34  ;;  %v993_v11 = vsel %vm7867_vm12, %v818_v20, %v992_v46  ;;  %v6367_v47 = vrot.slane %v6351_v60, 9  ;;  %v6292_v36 = vld [vmem:[#allocation2 + $0x88] sm:$0xf]  ;;  %v6293_v21 = vld [vmem:[#allocation2 + $0x8c] sm:$0x1]  ;;  %v3674_v34 = vrot.slane %v8453_v26, 5 }
  0xe4   : > { %991 = vst.msk [vmem:[#allocation2 + $0xb8] sm:$0xf] %vm239_vm1, %v817_v42  ;;  %994 = vst [vmem:[#allocation2 + $0xbc] sm:$0x1] %v993_v11  ;;  %v3664_v50 = vsel %vm8145_vm15, %v3662_v61, %v3663_v39  ;;  %v3668_v9 = vsel %vm8145_vm15, %v6366_v30, %v3667_v55  ;;  %v3669_v63 = vrot.slane %v3667_v55, 4  ;;  %v3093_v12 = vshll.u32 %v8453_v26, 16 }
  0xe5   : > { %v8432_v8 = vld [vmem:[#allocation2 + $0xa8] sm:$0xf]  ;;  %v6382_v44 = vcombine.low %v3661_v10, %v3664_v50  ;;  %v6352_v5 = vld [vmem:[#allocation2 + $0x84] sm:$0xe]  ;;  %v6295_v20 = vld [vmem:[#allocation2 + $0x94] sm:$0xf] }
  0xe6   : > { %v8436_v16 = vld [vmem:[#allocation2 + $0xac] sm:$0xf]  ;;  %v8438_v6 = vld [vmem:[#allocation2 + $0xb0] sm:$0x1]  ;;  %v1397_v29 = vshrl.u32 %v8432_v8, 16  ;;  %v1400_v15 = vshll.u32 %v8432_v8, 16  ;;  %v3671_v31 = vsel %vm8145_vm15, %v3669_v63, %v3670_v25  ;;  %v3675_v25 = vsel %vm8145_vm15, %v6367_v47, %v3674_v34 }
  0xe7   : > { %v1406_v33 = vshll.u32 %v8436_v16, 16  ;;  %v1410_v14 = vshrl.u32 %v8436_v16, 16  ;;  %v1416_v37 = vshll.u32 %v8438_v6, 16  ;;  %7135 = vmatmul.mubr.msk.bf16.gmra.mrb[12].mxu0 %vm1494_vm7, %v6382_v44  ;;  %v6383_v41 = vcombine.low %v3668_v9, %v3671_v31  ;;  %v6353_v39 = vld [vmem:[#allocation2 + $0x90] sm:$0xe] }
  0xe8   : > { %v1399_v32 = vrot.slane %v1397_v29, 4  ;;  %v1402_v59 = vrot.slane %v1400_v15, 5  ;;  %v8448_v18 = vld [vmem:[#allocation2 + $0xb4] sm:$0xf]  ;;  %v3676_v63 = vrot.slane %v3674_v34, 4  ;;  %v3677_v15 = vrot.slane %v8461_v52, 5 }
  0xe9   : > { %v1408_v40 = vrot.slane %v1406_v33, 5  ;;  %v1412_v54 = vrot.slane %v1410_v14, 4  ;;  %v1421_v4 = vshrl.u32 %v8448_v18, 16  ;;  %v1418_v38 = vrot.slane %v1416_v37, 5  ;;  %7138 = vmatprep.mubr.msk.bf16.mxu0 %vm1494_vm7, %v6383_v41  ;;  %v6296_v29 = vld [vmem:[#allocation2 + $0x98] sm:$0x1] }
  0xea   : > { %v1403_v24 = vor.u32 %v1402_v59, %v1399_v32  ;;  %v1424_v56 = vshll.u32 %v8448_v18, 16  ;;  %v6368_v33 = vrot.slane %v6352_v5, 9  ;;  %v3681_v14 = vrot.slane %v6292_v36, 5  ;;  %v6354_v60 = vld [vmem:[#allocation2 + $0x9c] sm:$0xe] }
  0xeb   : > { %v1413_v57 = vor.u32 %v1412_v54, %v1408_v40  ;;  %v8455_v23 = vld [vmem:[#allocation2 + $0xb8] sm:$0xf]  ;;  %v8457_v35 = vld [vmem:[#allocation2 + $0xbc] sm:$0x1]  ;;  %v1423_v2 = vrot.slane %v1421_v4, 4  ;;  %v3684_v37 = vrot.slane %v6293_v21, 5 }
  0xec   : > { %v1404_v13 = vrot.slane %v1403_v24, 4  ;;  %v1426_v46 = vrot.slane %v1424_v56, 5  ;;  %v1430_v28 = vshll.u32 %v8455_v23, 16  ;;  %v1434_v27 = vshrl.u32 %v8455_v23, 16  ;;  %v6299_v56 = vld [vmem:[#allocation2 + $0xa4] sm:$0x1] }
  0xed   : > { %v1414_v7 = vrot.slane %v1413_v57, 4  ;;  %v1440_v49 = vshll.u32 %v8457_v35, 16  ;;  %v6369_v59 = vrot.slane %v6353_v39, 9  ;;  %v3688_v41 = vrot.slane %v6295_v20, 5  ;;  %v8481_v47 = vld [vmem:[#allocation2 + $0x4] sm:$0xf] }
  0xee   : > { %v1409_v10 = vsel %vm7838_vm9, %v1404_v13, %v1408_v40  ;;  %v1427_v61 = vor.u32 %v1426_v46, %v1423_v2  ;;  %v1432_v30 = vrot.slane %v1430_v28, 5  ;;  %v1436_v42 = vrot.slane %v1434_v27, 4  ;;  %v7584_v2 = vld [vmem:[#allocation2] sm:$0xf]  ;;  %v6301_v27 = vld [vmem:[#allocation2 + $0xac] sm:$0xf] }
  0xef   : > { %v1419_v11 = vsel %vm7838_vm9, %v1414_v7, %v1418_v38  ;;  %v1442_v55 = vrot.slane %v1440_v49, 5  ;;  %v3678_v40 = vsel %vm8145_vm15, %v3676_v63, %v3677_v15  ;;  %v3682_v54 = vsel %vm8145_vm15, %v6368_v33, %v3681_v14  ;;  %v6298_v38 = vld [vmem:[#allocation2 + $0xa0] sm:$0xf]  ;;  %v8500_v15 = vld [vmem:[#allocation2 + $0x1c] sm:$0xf] }
  0xf0   : > { %v6097_v50 = vcombine.low %v1409_v10, %v1419_v11  ;;  %v1428_v44 = vrot.slane %v1427_v61, 4  ;;  %v1437_v9 = vor.u32 %v1436_v42, %v1432_v30  ;;  %v3683_v4 = vrot.slane %v3681_v14, 4  ;;  %v6304_v10 = vld [vmem:[#allocation2 + $0xb8] sm:$0xf]  ;;  %v6355_v61 = vld [vmem:[#allocation2 + $0xa8] sm:$0xe] }
  0xf1   : > { %v3691_v24 = vrot.slane %v6296_v29, 5  ;;  %v6115_v13 = vcombine.low %v7584_v2, %v8481_v47  ;;  %v6384_v46 = vcombine.low %v3675_v25, %v3678_v40  ;;  %v3690_v28 = vrot.slane %v3688_v41, 4  ;;  %v6796_v42 = vld [vmem:[%s7805_s30 + $0x78] sm:$0xff]   ;;  %v6302_v25 = vld [vmem:[#allocation2 + $0xb0] sm:$0x1] }
  0xf2   : > { %6980 = vmatprep.mubr.msk.bf16.mxu1 %vm1494_vm7, %v6097_v50  ;;  %v1433_v31 = vsel %vm7838_vm9, %v1428_v44, %v1432_v30  ;;  %v1438_v32 = vrot.slane %v1437_v9, 4  ;;  %v3685_v21 = vsel %vm8145_vm15, %v3683_v4, %v3684_v37  ;;  %v3689_v5 = vsel %vm8145_vm15, %v6369_v59, %v3688_v41  ;;  %v6356_v50 = vld [vmem:[#allocation2 + $0xb4] sm:$0xe]  ;;  %v7586_v44 = vld [vmem:[#allocation2 + $0xc] sm:$0xf] }
  0xf3   : > { %v6370_v7 = vrot.slane %v6354_v60, 9  ;;  %7139 = vmatmul.mubr.msk.bf16.gmra.mrb[16].mxu0 %vm1494_vm7, %v6384_v46  ;;  %v6385_v49 = vcombine.low %v3682_v54, %v3685_v21  ;;  %v3692_v34 = vsel %vm8145_vm15, %v3690_v28, %v3691_v24  ;;  %v3695_v20 = vrot.slane %v6298_v38, 5  ;;  %v8497_v9 = vld [vmem:[#allocation2 + $0x10] sm:$0xf]  ;;  %v7588_v29 = vld [vmem:[#allocation2 + $0x18] sm:$0xf] }
  0xf4   : > { %v1443_v57 = vsel %vm7838_vm9, %v1438_v32, %v1442_v55  ;;  %v3698_v39 = vrot.slane %v6299_v56, 5  ;;  %v3702_v30 = vrot.slane %v6301_v27, 5  ;;  %v6116_v63 = vcombine.low %v7586_v44, %v8497_v9  ;;  %v6305_v37 = vld [vmem:[#allocation2 + $0xbc] sm:$0x1]  ;;  %v7591_v46 = vld [vmem:[%s9718_s1 + $0x8] sm:$0xf] }
  0xf5   : > { %v6098_v36 = vcombine.low %v1433_v31, %v1443_v57  ;;  %7142 = vmatprep.mubr.msk.bf16.mxu0 %vm1494_vm7, %v6385_v49  ;;  %v3696_v11 = vsel %vm8145_vm15, %v6370_v7, %v3695_v20  ;;  %v3697_v55 = vrot.slane %v3695_v20, 4  ;;  %v6117_v33 = vcombine.low %v7588_v29, %v8500_v15  ;;  %v7590_v57 = vld [vmem:[%s9719_s2] ss:$0 sm:$0xff]  ;;  %v7592_v27 = vld [vmem:[%s9719_s2 + $0x1] ss:$0 sm:$0xff] }
  0xf6   : > { %v6386_v14 = vcombine.low %v3689_v5, %v3692_v34  ;;  %v3709_v31 = vrot.slane %v6304_v10, 5  ;;  %v6371_v59 = vrot.slane %v6355_v61, 9  ;;  %v6780_v41 = vunpack.c.l.bf16 %v6796_v42  ;;  %v8519_v5 = vld [vmem:[%s9718_s1 + $0xc] sm:$0xf]  ;;  %v8537_v44 = vld [vmem:[#allocation2 + $0x34] sm:$0xf] }
  0xf7   : > { %6981 = vmatmul.mubr.msk.bf16.gmra.mrb[28].mxu1 %vm1494_vm7, %v6098_v36  ;;  %v3699_v32 = vsel %vm8145_vm15, %v3697_v55, %v3698_v39  ;;  %v6781_v60 = vunpack.c.h.bf16 %v6796_v42  ;;  %v3704_v54 = vrot.slane %v3702_v30, 4  ;;  %v3705_v4 = vrot.slane %v6302_v25, 5  ;;  %v8534_v55 = vld [vmem:[#allocation2 + $0x28] sm:$0xf] }
  0xf8   : > { %6986 = vmatprep.mubr.msk.bf16.mxu1 %vm1494_vm7, %v6115_v13  ;;  %v6387_v40 = vcombine.low %v3696_v11, %v3699_v32  ;;  %v6372_v24 = vrot.slane %v6356_v50, 9  ;;  %v3711_v38 = vrot.slane %v3709_v31, 4  ;;  %v3712_v56 = vrot.slane %v6305_v37, 5  ;;  %v7593_v11 = vld [vmem:[#allocation2 + $0x24] sm:$0xf] }
  0xf9   : > { %v394_v2 = vmul.f32 %v7590_v57, %v6780_v41  ;;  %v395_v13 = vmul.f32 %v7590_v57, %v6781_v60  ;;  %v2262_v28 = vsel %vm1543_vm0, %v7591_v46, 0  ;;  %v3703_v7 = vsel %vm8145_vm15, %v6371_v59, %v3702_v30  ;;  %v7595_v50 = vld [vmem:[#allocation2 + $0x30] sm:$0xf]  ;;  %v995_v41 = vld [vmem:[#allocation2 + $0xc0] sm:$0xf] }
  0xfa   : > { %v3706_v49 = vsel %vm8145_vm15, %v3704_v54, %v3705_v4  ;;  %v3710_v34 = vsel %vm8145_vm15, %v6372_v24, %v3709_v31  ;;  %v3713_v20 = vsel %vm8145_vm15, %v3711_v38, %v3712_v56  ;;  %v6118_v25 = vcombine.low %v7593_v11, %v8534_v55  ;;  %v999_v60 = vld [vmem:[#allocation2 + $0xc8] sm:$0x1]  ;;  %v7603_v11 = vld [vmem:[#allocation2 + $0x60] sm:$0xf] }
  0xfb   : > { %7143 = vmatmul.mubr.msk.bf16.gmra.mrb[20].mxu0 %vm1494_vm7, %v6386_v14  ;;  %v431_v36 = vadd.f32 %v7592_v27, %v394_v2  ;;  %v432_v21 = vadd.f32 %v7592_v27, %v395_v13  ;;  %v6388_v61 = vcombine.low %v3703_v7, %v3706_v49  ;;  %v6389_v29 = vcombine.low %v3710_v34, %v3713_v20  ;;  %v7597_v2 = vld [vmem:[#allocation2 + $0x3c] sm:$0xf]  ;;  %v8550_v13 = vld [vmem:[#allocation2 + $0x40] sm:$0xf]  ;;  %v8554_v27 = vld [vmem:[#allocation2 + $0x4c] sm:$0xf] }
  0xfc   : > { %7146 = vmatprep.mubr.msk.bf16.mxu0 %vm1494_vm7, %v6387_v40  ;;  %v6120_v46 = vcombine.low %v7597_v2, %v8550_v13  ;;  %v8561_v17 = vrot.slane %v3093_v12, 5  ;;  %v7601_v20 = vld [vmem:[#allocation2 + $0x54] sm:$0xf] }
  0xfd   : > { %v463_v39 = vmax.f32 %v431_v36, 0.0  ;;  %v464_v10 = vmax.f32 %v432_v21, 0.0  ;;  %v3097_v36 = vshrl.u32 %v8453_v26, 16  ;;  %v8566_v26 = vld [vmem:[#allocation2 + $0x64] sm:$0xf] }
  0xfe   : > { %9749 = vst [vmem:[#allocation4_spill] sm:$0xff] %v8561_v17 }
  0xff   : > { %6987 = vmatmul.mubr.msk.bf16.vlgmr.msra.gmra.mrb[0].mxu1 %vm1494_vm7, %v6116_v63  ;;  %v6684_v42 = vpack.c.bf16 %v463_v39, %v463_v39  ;;  %v6685_v30 = vpack.c.bf16 %v464_v10, %v464_v10  ;;  %v6119_v63 = vcombine.low %v7595_v50, %v8537_v44  ;;  %v3099_v21 = vrot.slane %v3097_v36, 4  ;;  %v8563_v39 = vld [vmem:[#allocation2 + $0x58] sm:$0xf] }
 0x100   : > { %7019 = vmatpush3.bf16.msra.mxu1 %v2262_v28  ;;  %6990 = vmatprep.mubr.msk.bf16.mxu1 %vm1494_vm7, %v6117_v33  ;;  %v7599_v28 = vld [vmem:[#allocation2 + $0x48] sm:$0xf]  ;;  %v6122_v10 = vcombine.low %v7601_v20, %v8563_v39 }
 0x101   : > { %7517 = vmatprep.subr.msk.bf16.mxu1 %vm1543_vm0, %v8519_v5  ;;  %v820_v33 = vshrl.u32 %v6684_v42, 16  ;;  %v823_v14 = vshll.u32 %v6684_v42, 16  ;;  %v828_v37 = vshrl.u32 %v6685_v30, 16  ;;  %v831_v31 = vshll.u32 %v6685_v30, 16 }
 0x102   : > { %v6121_v0 = vcombine.low %v7599_v28, %v8554_v27  ;;  %v7609_v28 = vld [vmem:[%s9718_s1 + $0x1c] sm:$0xf] }
 0x103   : > { %7147 = vmatmul.mubr.msk.bf16.gmra.mrb[24].mxu0 %vm1494_vm7, %v6388_v61  ;;  %v822_v32 = vrot.slane %v820_v33, 7  ;;  %v830_v59 = vrot.slane %v828_v37, 7  ;;  %v3103_v33 = vshll.u32 %v8461_v52, 16  ;;  %v7550_v37 = vld [vmem:[#allocation2 + $0x18] sm:$0xff]   ;;  %v2000_v52 = vld [vmem:[#allocation2] sm:$0xe] }
 0x104   : > { %7150 = vmatprep.mubr.msk.bf16.mxu0 %vm1494_vm7, %v6389_v29  ;;  %v3100_v29 = vor.u32 %v3099_v21, %v8561_v17  ;;  %v2003_v21 = vld [vmem:[#allocation2 + $0x24] sm:$0xe] }
 0x105   : > { %v825_v40 = vor.u32 %v823_v14, %v822_v32  ;;  %v826_v54 = vrot.slane %v822_v32, 4  ;;  %v833_v4 = vor.u32 %v831_v31, %v830_v59  ;;  %v835_v24 = vrot.slane %v830_v59, 4 }
 0x106   : > { %v2060_v31 = vrot.slane %v8497_v9, 5  ;;  %v2053_v59 = vrot.slane %v8481_v47, 5  ;;  %v7607_v9 = vld [vmem:[#allocation2 + $0x6c] sm:$0xf]  ;;  %v2002_v47 = vld [vmem:[#allocation2 + $0x18] sm:$0xe] }
 0x107   : > { %6991 = vmatmul.mubr.msk.bf16.gmra.mrb[4].mxu1 %vm1494_vm7, %v6118_v25  ;;  %v834_v38 = vsel %vm7853_vm10, %v826_v54, %v833_v4  ;;  %v996_v56 = vsel %vm7860_vm11, %v825_v40, %v995_v41  ;;  %v1000_v57 = vsel %vm7867_vm12, %v835_v24, %v999_v60  ;;  %v6123_v25 = vcombine.low %v7603_v11, %v8566_v26  ;;  %v2001_v41 = vld [vmem:[#allocation2 + $0xc] sm:$0xe]  ;;  %v7605_v60 = vld [vmem:[#allocation2 + $0x8] sm:$0x1]  ;;  %v7606_v54 = vld [vmem:[#allocation2 + $0x14] sm:$0x1] }
 0x108   : > { %6994 = vmatprep.mubr.msk.bf16.mxu1 %vm1494_vm7, %v6119_v63  ;;  %997 = vst [vmem:[#allocation2 + $0xc0] sm:$0xf] %v996_v56  ;;  %998 = vst.msk [vmem:[#allocation2 + $0xc4] sm:$0xf] %vm239_vm1, %v834_v38  ;;  %v2056_v40 = vrot.slane %v7605_v60, 5  ;;  %v2063_v4 = vrot.slane %v7606_v54, 5 }
 0x109   : > { %1001 = vst [vmem:[#allocation2 + $0xc8] sm:$0x1] %v1000_v57  ;;  %v2067_v24 = vrot.slane %v8500_v15, 5  ;;  %v8581_v38 = vrot.slane %v3100_v29, 4  ;;  %v8583_v56 = vrot.slane %v3103_v33, 5  ;;  %v4908_v15 = vsel %vm1543_vm0, %v7609_v28, 0 }
 0x10a   : > { %v8585_v57 = vld [vmem:[#allocation2 + $0x70] sm:$0xf]  ;;  %v6148_v12 = vrot.slane %v2001_v41, 9  ;;  %v2062_v36 = vrot.slane %v2060_v31, 4  ;;  %v2055_v20 = vrot.slane %v2053_v59, 4  ;;  %v8627_v60 = vsel %vm1543_vm0, %v8519_v5, 0 }
 0x10b   : > { %9750 = vst [vmem:[#allocation5_spill] sm:$0xff] %v8581_v38  ;;  %9751 = vst [vmem:[#allocation6_spill] sm:$0xff] %v8583_v56  ;;  %v6124_v2 = vcombine.low %v7607_v9, %v8585_v57  ;;  %v2004_v11 = vld [vmem:[#allocation2 + $0x30] sm:$0xe]  ;;  %v7612_v5 = vld [vmem:[#allocation2 + $0x38] sm:$0x1] }
 0x10c   : > { %v8623_v41 = vsel %vm8145_vm15, %v2055_v20, %v2056_v40  ;;  %v6151_v54 = vrot.slane %v2004_v11, 9  ;;  %v2084_v9 = vrot.slane %v7612_v5, 5  ;;  %v7561_v38 = vld [vmem:[#allocation2 + $0x9c] sm:$0xff]  }
 0x10f   : > { %6995 = vmatmul.mubr.msk.bf16.gmra.mrb[8].mxu1 %vm1494_vm7, %v6120_v46  ;;  %v6307_v7 = vld [vmem:[#allocation2 + $0xc4] sm:$0xf]  ;;  %v6357_v34 = vld [vmem:[#allocation2 + $0xc0] sm:$0xe]  ;;  %v2074_v46 = vrot.slane %v8534_v55, 5  ;;  %v6147_v55 = vrot.slane %v2000_v52, 9 }
 0x110   : > { %6998 = vmatprep.mubr.msk.bf16.mxu1 %vm1494_vm7, %v6121_v0  ;;  %v6308_v49 = vld [vmem:[#allocation2 + $0xc8] sm:$0x1]  ;;  %v6373_v61 = vrot.slane %v6357_v34, 9  ;;  %v3716_v42 = vrot.slane %v6307_v7, 5  ;;  %v6125_v0 = vcombine.low %v8291_v19, %v8295_v58  ;;  %v6127_v34 = vcombine.low %v8355_v45, %v8358_v53  ;;  %v7552_v19 = vld [vmem:[#allocation2 + $0x30] sm:$0xff]  }
 0x111   : > { %v3719_v30 = vrot.slane %v6308_v49, 5  ;;  %v7551_v7 = vld [vmem:[#allocation2 + $0x24] sm:$0xff]   ;;  %v6126_v49 = vcombine.low %v8322_v48, %v8326_v22  ;;  %v6128_v58 = vcombine.low %v8392_v62, %v8394_v1  ;;  %v2076_v48 = vrot.slane %v2074_v46, 4  ;;  %v7611_v22 = vld [vmem:[#allocation2 + $0x2c] sm:$0x1] }
 0x112   : > { %v3717_v50 = vsel %vm8145_vm15, %v6373_v61, %v3716_v42  ;;  %v3718_v63 = vrot.slane %v3716_v42, 4  ;;  %v2069_v61 = vrot.slane %v2067_v24, 4  ;;  %v7610_v42 = vld [vmem:[#allocation2 + $0x20] sm:$0x1]  ;;  %v2102_v53 = vrot.slane %v8563_v39, 5 }
 0x114   : > { %v3720_v14 = vsel %vm8145_vm15, %v3718_v63, %v3719_v30  ;;  %v2070_v30 = vrot.slane %v7610_v42, 5  ;;  %v2077_v63 = vrot.slane %v7611_v22, 5  ;;  %v7553_v42 = vld [vmem:[#allocation2 + $0x3c] sm:$0xff]   ;;  %v6476_v22 = vld [vmem:[#allocation2 + $0x28] sm:$0xf] }
 0x115   : > { %v6390_v32 = vcombine.low %v3717_v50, %v3720_v14  ;;  %v6150_v50 = vrot.slane %v2003_v21, 9  ;;  %v8615_v14 = vsel %vm8145_vm15, %v2062_v36, %v2063_v4  ;;  %v8632_v4 = vld [vmem:[%s9718_s1 + $0x20] sm:$0xf] }
 0x116   : > { %v8641_v40 = vsel %vm8145_vm15, %v2069_v61, %v2070_v30  ;;  %v6475_v61 = vld [vmem:[#allocation2 + $0x24] sm:$0xf] }
 0x117   : > { %6999 = vmatmul.mubr.msk.bf16.gmra.mrb[12].mxu1 %vm1494_vm7, %v6122_v10  ;;  %7151 = vmatmul.mubr.msk.bf16.gmra.mrb[28].mxu0 %vm1494_vm7, %v6390_v32  ;;  %v6149_v10 = vrot.slane %v2002_v47, 9  ;;  %v8619_v32 = vsel %vm8145_vm15, %v6147_v55, %v2053_v59  ;;  %v8648_v28 = vsel %vm8145_vm15, %v6150_v50, %v2074_v46  ;;  %v4453_v30 = vshll.u32 %v6475_v61, 16  ;;  %v7555_v47 = vld [vmem:[#allocation2 + $0x54] sm:$0xff]  }
 0x118   : > { %7002 = vmatprep.mubr.msk.bf16.mxu1 %vm1494_vm7, %v6123_v25  ;;  %7156 = vmatprep.mubr.msk.bf16.mxu0 %vm1494_vm7, %v7550_v37  ;;  %v2081_v25 = vrot.slane %v8537_v44, 5  ;;  %v8611_v44 = vsel %vm8145_vm15, %v6148_v12, %v2060_v31  ;;  %v6472_v37 = vld [vmem:[#allocation2 + $0x18] sm:$0xf]  ;;  %v6473_v31 = vld [vmem:[#allocation2 + $0x1c] sm:$0xf]  ;;  %v4463_v46 = vshrl.u32 %v6476_v22, 16 }
 0x119   : > { %v8637_v59 = vsel %vm8145_vm15, %v6149_v10, %v2067_v24  ;;  %v8652_v24 = vsel %vm8145_vm15, %v2076_v48, %v2077_v63  ;;  %v2006_v12 = vld [vmem:[#allocation2 + $0x48] sm:$0xe]  ;;  %v4426_v21 = vshrl.u32 %v6472_v37, 16  ;;  %v4435_v55 = vshll.u32 %v6473_v31, 16 }
 0x11a   : > { %v2083_v52 = vrot.slane %v2081_v25, 4  ;;  %v8665_v20 = vsel %vm8145_vm15, %v6151_v54, %v2081_v25  ;;  %v4439_v10 = vshrl.u32 %v6473_v31, 16  ;;  %v6153_v48 = vrot.slane %v2006_v12, 9  ;;  %v7554_v63 = vld [vmem:[#allocation2 + $0x48] sm:$0xff]   ;;  %v8675_v54 = vld [vmem:[#allocation2 + $0x50] sm:$0x1] }
 0x11b   : > { %v2098_v31 = vrot.slane %v8675_v54, 5  ;;  %v6474_v12 = vld [vmem:[#allocation2 + $0x20] sm:$0x1]  ;;  %v6477_v54 = vld [vmem:[#allocation2 + $0x2c] sm:$0x1] }
 0x11c   : > { %v8671_v11 = vsel %vm8145_vm15, %v2083_v52, %v2084_v9  ;;  %v4428_v52 = vrot.slane %v4426_v21, 4 }
 0x11f   : > { %7003 = vmatmul.mubr.msk.bf16.gmra.mrb[16].mxu1 %vm1494_vm7, %v6124_v2  ;;  %7157 = vmatmul.mubr.msk.bf16.vlgmr.msra.gmra.mrb[0].mxu0 %vm1494_vm7, %v7551_v7  ;;  %v2005_v2 = vld [vmem:[#allocation2 + $0x3c] sm:$0xe]  ;;  %v4429_v7 = vshll.u32 %v6472_v37, 16  ;;  %v2095_v37 = vrot.slane %v8554_v27, 5  ;;  %v4459_v27 = vshll.u32 %v6476_v22, 16  ;;  %v4445_v22 = vshll.u32 %v6474_v12, 16 }
 0x120   : > { %7006 = vmatprep.mubr.msk.bf16.mxu1 %vm1494_vm7, %v6125_v0  ;;  %7189 = vmatpush3.bf16.msra.mxu0 %v4908_v15  ;;  %v2088_v0 = vrot.slane %v8550_v13, 5  ;;  %v8657_v15 = vld [vmem:[#allocation2 + $0x54] sm:$0xe]  ;;  %v6152_v13 = vrot.slane %v2005_v2, 9  ;;  %v8683_v2 = vrot.slane %v4435_v55, 5 }
 0x121   : > { %7160 = vmatprep.mubr.msk.bf16.mxu0 %vm1494_vm7, %v7552_v19  ;;  %7523 = vmatprep.subr.msk.bf16.mxu0 %vm1543_vm0, %v8632_v4  ;;  %v7613_v19 = vld [vmem:[#allocation2 + $0x44] sm:$0x1]  ;;  %v6154_v5 = vrot.slane %v8657_v15, 9  ;;  %v4431_v9 = vrot.slane %v4429_v7, 5  ;;  %v8697_v21 = vsel %vm8145_vm15, %v6153_v48, %v2095_v37  ;;  %v2097_v7 = vrot.slane %v2095_v37, 4 }
 0x122   : > { %v2091_v50 = vrot.slane %v7613_v19, 5  ;;  %v2090_v25 = vrot.slane %v2088_v0, 4  ;;  %v4441_v19 = vrot.slane %v4439_v10, 4  ;;  %v8690_v45 = vsel %vm8145_vm15, %v6152_v13, %v2088_v0  ;;  %v7615_v55 = vld [vmem:[#allocation2 + $0x5c] sm:$0x1] }
 0x123   : > { %v2105_v10 = vrot.slane %v7615_v55, 5  ;;  %v2009_v13 = vld [vmem:[#allocation2 + $0x6c] sm:$0xe]  ;;  %v4432_v39 = vor.u32 %v4431_v9, %v4428_v52  ;;  %v4455_v15 = vrot.slane %v4453_v30, 5  ;;  %v8705_v48 = vrot.slane %v4459_v27, 5 }
 0x124   : > { %v8702_v0 = vsel %vm8145_vm15, %v2090_v25, %v2091_v50  ;;  %v4465_v37 = vrot.slane %v4463_v46, 4  ;;  %v2104_v55 = vrot.slane %v2102_v53, 4  ;;  %v7556_v50 = vld [vmem:[#allocation2 + $0x60] sm:$0xff]   ;;  %v8713_v25 = vsel %vm8145_vm15, %v6154_v5, %v2102_v53  ;;  %v7617_v9 = vld [vmem:[#allocation2 + $0x74] sm:$0x1] }
 0x125   : > { %v6156_v30 = vrot.slane %v2009_v13, 9  ;;  %v2119_v46 = vrot.slane %v7617_v9, 5  ;;  %v4433_v62 = vrot.slane %v4432_v39, 4  ;;  %v4447_v1 = vrot.slane %v4445_v22, 5  ;;  %v2010_v53 = vld [vmem:[#allocation2 + $0x78] sm:$0xe] }
 0x126   : > { %v4466_v5 = vor.u32 %v4465_v37, %v8705_v48  ;;  %v7618_v13 = vld [vmem:[#allocation2 + $0x7c] sm:$0xf]  ;;  %v8729_v9 = vsel %vm8145_vm15, %v2104_v55, %v2105_v10  ;;  %v7557_v55 = vld [vmem:[#allocation2 + $0x6c] sm:$0xff]  }
 0x127   : > { %7007 = vmatmul.mubr.msk.bf16.gmra.mrb[20].mxu1 %vm1494_vm7, %v6126_v49  ;;  %v4450_v49 = vshrl.u32 %v6475_v61, 16  ;;  %7161 = vmatmul.mubr.msk.bf16.gmra.mrb[4].mxu0 %vm1494_vm7, %v7553_v42  ;;  %v2008_v61 = vld [vmem:[#allocation2 + $0x60] sm:$0xe]  ;;  %v2116_v42 = vrot.slane %v8585_v57, 5  ;;  %v7616_v57 = vld [vmem:[#allocation2 + $0x68] sm:$0x1] }
 0x128   : > { %7010 = vmatprep.mubr.msk.bf16.mxu1 %vm1494_vm7, %v6127_v34  ;;  %v2109_v34 = vrot.slane %v8566_v26, 5  ;;  %7164 = vmatprep.mubr.msk.bf16.mxu0 %vm1494_vm7, %v7554_v63  ;;  %v4442_v63 = vor.u32 %v4441_v19, %v8683_v2  ;;  %v6155_v36 = vrot.slane %v2008_v61, 9  ;;  %v2112_v29 = vrot.slane %v7616_v57, 5  ;;  %v6478_v19 = vld [vmem:[#allocation2 + $0x30] sm:$0xf] }
 0x129   : > { %v4452_v26 = vrot.slane %v4450_v49, 4  ;;  %v2118_v52 = vrot.slane %v2116_v42, 4  ;;  %v9752_v49 = vcombine.low %v8432_v8, %v8436_v16  ;;  %v2123_v57 = vrot.slane %v7618_v13, 5 }
 0x12a   : > { %v2111_v33 = vrot.slane %v2109_v34, 4  ;;  %v4443_v27 = vrot.slane %v4442_v63, 4  ;;  %v8725_v8 = vsel %vm8145_vm15, %v2097_v7, %v2098_v31  ;;  %v8733_v39 = vsel %vm8145_vm15, %v6155_v36, %v2109_v34  ;;  %v2011_v7 = vld [vmem:[#allocation2 + $0x84] sm:$0xe] }
 0x12b   : > { %v4456_v61 = vor.u32 %v4455_v15, %v4452_v26  ;;  %v8746_v31 = vsel %vm8145_vm15, %v2118_v52, %v2119_v46  ;;  %v4474_v10 = vshrl.u32 %v6478_v19, 16  ;;  %v4477_v22 = vshll.u32 %v6478_v19, 16  ;;  %v8759_v46 = vld [vmem:[#allocation2 + $0x34] sm:$0xf] }
 0x12c   : > { %v8737_v15 = vsel %vm8145_vm15, %v2111_v33, %v2112_v29  ;;  %v4438_v36 = vsel %vm7838_vm9, %v4433_v62, %v8683_v2  ;;  %v6157_v29 = vrot.slane %v2010_v53, 9  ;;  %v7619_v33 = vld [vmem:[#allocation2 + $0x80] sm:$0x1]  ;;  %v4448_v63 = vsel %vm7838_vm9, %v4443_v27, %v4447_v1  ;;  %9753 = vst [vmem:[#allocation7_spill] sm:$0xff] %v8759_v46  ;;  %v7558_v62 = vld [vmem:[#allocation2 + $0x78] sm:$0xff]  }
 0x12d   : > { %v2126_v26 = vrot.slane %v7619_v33, 5  ;;  %v2125_v37 = vrot.slane %v2123_v57, 4  ;;  %v6158_v52 = vrot.slane %v2011_v7, 9  ;;  %v4476_v27 = vrot.slane %v4474_v10, 4  ;;  %v7621_v33 = vld [vmem:[#allocation2 + $0x8c] sm:$0x1] }
 0x12e   : > { %v9755_v53 = vcombine.low %v8619_v32, %v8623_v41  ;;  %v8771_v13 = vcombine.low %v4438_v36, %v4448_v63  ;;  %v8779_v7 = vsel %vm8145_vm15, %v6157_v29, %v2123_v57  ;;  %v8781_v10 = vld [vmem:[#allocation2 + $0x40] sm:$0xf]  ;;  %v4483_v57 = vshll.u32 %v8759_v46, 16  ;;  %v6484_v36 = vld [vmem:[#allocation2 + $0x48] sm:$0xf] }
 0x12f   : > { %7011 = vmatmul.mubr.msk.bf16.gmra.mrb[24].mxu1 %vm1494_vm7, %v6128_v58  ;;  %v4469_v58 = vshll.u32 %v6477_v54, 16  ;;  %7165 = vmatmul.mubr.msk.bf16.gmra.mrb[8].mxu0 %vm1494_vm7, %v7555_v47  ;;  %v8742_v47 = vsel %vm8145_vm15, %v6156_v30, %v2116_v42  ;;  %v4457_v42 = vrot.slane %v4456_v61, 4  ;;  %v4467_v54 = vrot.slane %v4466_v5, 4  ;;  %v6481_v5 = vld [vmem:[#allocation2 + $0x3c] sm:$0xf]  ;;  %9756 = vst [vmem:[#allocation8_spill] sm:$0xff] %v8781_v10 }
 0x130   : > { %7014 = vmatprep.mubr.msk.bf16.mxu1 %vm1494_vm7, %v9752_v49  ;;  %7168 = vmatprep.mubr.msk.bf16.mxu0 %vm1494_vm7, %v7556_v50  ;;  %v9754_v49 = vcombine.low %v8448_v18, %v8455_v23  ;;  %v4479_v61 = vrot.slane %v4477_v22, 5  ;;  %v8775_v18 = vsel %vm1543_vm0, %v8632_v4, 0  ;;  %v8790_v22 = vsel %vm8145_vm15, %v2125_v37, %v2126_v26  ;;  %v8792_v4 = vld [vmem:[#allocation2 + $0x38] sm:$0x1]  ;;  %v8804_v37 = vld [vmem:[#allocation2 + $0x44] sm:$0x1] }
 0x131   : > { %v4471_v34 = vrot.slane %v4469_v58, 5  ;;  %v7620_v58 = vld [vmem:[#allocation2 + $0x88] sm:$0xf]  ;;  %v4462_v32 = vsel %vm7838_vm9, %v4457_v42, %v8705_v48  ;;  %9757 = vst [vmem:[#allocation9_spill] sm:$0xff] %v8792_v4  ;;  %v4487_v48 = vshrl.u32 %v8759_v46, 16  ;;  %v4498_v63 = vshrl.u32 %v6481_v5, 16 }
 0x132   : > { %v2130_v19 = vrot.slane %v7620_v58, 5  ;;  %v4501_v42 = vshll.u32 %v6481_v5, 16  ;;  %9758 = vst [vmem:[#allocation10_spill] sm:$0xff] %v8804_v37  ;;  %v4507_v58 = vshll.u32 %v8781_v10, 16  ;;  %v4522_v1 = vshrl.u32 %v6484_v36, 16 }
 0x133   : > { %v4472_v41 = vsel %vm7838_vm9, %v4467_v54, %v4471_v34  ;;  %v8801_v34 = vld [vmem:[#allocation2 + $0x4c] sm:$0xf]  ;;  %v4480_v54 = vor.u32 %v4479_v61, %v4476_v27  ;;  %v4525_v5 = vshll.u32 %v6484_v36, 16  ;;  %v8812_v2 = vrot.slane %v4483_v57, 5  ;;  %v6487_v61 = vld [vmem:[#allocation2 + $0x54] sm:$0xf] }
 0x134   : > { %v8798_v29 = vsel %vm8145_vm15, %v6158_v52, %v2130_v19  ;;  %v2132_v26 = vrot.slane %v2130_v19, 4  ;;  %v4531_v19 = vshll.u32 %v8801_v34, 16  ;;  %v4535_v27 = vshrl.u32 %v8801_v34, 16  ;;  %v7560_v57 = vld [vmem:[#allocation2 + $0x90] sm:$0xff]  }
 0x135   : > { %v4489_v30 = vrot.slane %v4487_v48, 4  ;;  %v4500_v50 = vrot.slane %v4498_v63, 4  ;;  %v4503_v12 = vrot.slane %v4501_v42, 5  ;;  %v9760_v52 = vcombine.low %v8611_v44, %v8615_v14  ;;  %v2012_v44 = vld [vmem:[#allocation2 + $0x90] sm:$0xe] }
 0x136   : > { %v9761_v63 = vcombine.low %v8637_v59, %v8641_v40  ;;  %v4524_v14 = vrot.slane %v4522_v1, 4  ;;  %v4527_v42 = vrot.slane %v4525_v5, 5  ;;  %v8837_v46 = vrot.slane %v4531_v19, 5 }
 0x137   : > { %7015 = vmatmul.mubr.msk.bf16.gmra.mrb[28].mxu1 %vm1494_vm7, %v9754_v49  ;;  %v2133_v49 = vrot.slane %v7621_v33, 5  ;;  %7169 = vmatmul.mubr.msk.bf16.gmra.mrb[12].mxu0 %vm1494_vm7, %v7557_v55  ;;  %v4511_v55 = vshrl.u32 %v8781_v10, 16  ;;  %v8808_v33 = vcombine.low %v4462_v32, %v4472_v41  ;;  %v4517_v32 = vshll.u32 %v8804_v37, 16  ;;  %v8818_v41 = vld [vmem:[#allocation2 + $0x58] sm:$0xf] }
 0x138   : > { %7020 = vmatprep.mubr.msk.bf16.mxu1 %vm1494_vm7, %v9755_v53  ;;  %7172 = vmatprep.mubr.msk.bf16.mxu0 %vm1494_vm7, %v7558_v62  ;;  %v7559_v53 = vld [vmem:[#allocation2 + $0x84] sm:$0xff]   ;;  %v4493_v62 = vshll.u32 %v8792_v4, 16  ;;  %9759 = vst [vmem:[#allocation11_spill] sm:$0xff] %v8818_v41  ;;  %v8828_v10 = vrot.slane %v4480_v54, 4  ;;  %v8830_v4 = vrot.slane %v4507_v58, 5  ;;  %v4549_v37 = vshll.u32 %v6487_v61, 16 }
 0x139   : > { %v8826_v36 = vsel %vm8145_vm15, %v2132_v26, %v2133_v49  ;;  %v4513_v48 = vrot.slane %v4511_v55, 4  ;;  %v4537_v49 = vrot.slane %v4535_v27, 4  ;;  %v4555_v26 = vshll.u32 %v8818_v41, 16  ;;  %v8851_v55 = vld [vmem:[#allocation2 + $0x50] sm:$0x1] }
 0x13a   : > { %v4559_v54 = vshrl.u32 %v8818_v41, 16  ;;  %v4490_v59 = vor.u32 %v4489_v30, %v8812_v2  ;;  %v8847_v40 = vrot.slane %v4493_v62, 5  ;;  %v4504_v1 = vor.u32 %v4503_v12, %v4500_v50  ;;  %9762 = vst [vmem:[#allocation12_spill] sm:$0xff] %v8851_v55  ;;  %v2013_v30 = vld [vmem:[#allocation2 + $0x9c] sm:$0xe] }
 0x13b   : > { %v8849_v58 = vrot.slane %v4517_v32, 5  ;;  %v4514_v19 = vor.u32 %v4513_v48, %v8830_v4  ;;  %v6159_v27 = vrot.slane %v2012_v44, 9  ;;  %v7624_v62 = vld [vmem:[#allocation2 + $0xa0] sm:$0xf]  ;;  %v4528_v12 = vor.u32 %v4527_v42, %v4524_v14  ;;  %v7562_v48 = vld [vmem:[#allocation2 + $0xa8] sm:$0xff]  }
 0x13c   : > { %v4551_v32 = vrot.slane %v4549_v37, 5  ;;  %v8863_v17 = vrot.slane %v4555_v26, 5  ;;  %v4561_v5 = vrot.slane %v4559_v54, 4  ;;  %v4491_v44 = vrot.slane %v4490_v59, 4 }
 0x13d   : > { %v4505_v56 = vrot.slane %v4504_v1, 4  ;;  %v9763_v37 = vcombine.low %v8648_v28, %v8652_v24  ;;  %v4515_v14 = vrot.slane %v4514_v19, 4  ;;  %v9764_v54 = vcombine.low %v8665_v20, %v8671_v11 }
 0x13e   : > { %v4529_v1 = vrot.slane %v4528_v12, 4  ;;  %v4496_v20 = vsel %vm7838_vm9, %v4491_v44, %v8847_v40  ;;  %v2154_v12 = vrot.slane %v8438_v6, 5  ;;  %v6490_v6 = vld [vmem:[#allocation2 + $0x60] sm:$0xf] }
 0x13f   : > { %7021 = vmatmul.mubr.msk.bf16.vlgmr.msra.gmra.mrb[0].mxu1 %vm1494_vm7, %v9760_v52  ;;  %v4546_v52 = vshrl.u32 %v6487_v61, 16  ;;  %7173 = vmatmul.mubr.msk.bf16.gmra.mrb[16].mxu0 %vm1494_vm7, %v7559_v53  ;;  %v7623_v53 = vld [vmem:[#allocation2 + $0x94] sm:$0xf]  ;;  %v4573_v44 = vshll.u32 %v6490_v6, 16 }
 0x140   : > { %7053 = vmatpush3.bf16.msra.mxu1 %v8627_v60  ;;  %7024 = vmatprep.mubr.msk.bf16.mxu1 %vm1494_vm7, %v9761_v63  ;;  %v7622_v60 = vld [vmem:[%s9718_s1 + $0x10] sm:$0xf]  ;;  %v2137_v61 = vrot.slane %v7623_v53, 5  ;;  %v2144_v63 = vrot.slane %v7624_v62, 5  ;;  %v7625_v53 = vld [vmem:[#allocation2 + $0x98] sm:$0x1] }
 0x141   : > { %7519 = vmatprep.subr.msk.bf16.mxu1 %vm1543_vm0, %v7622_v60  ;;  %7176 = vmatprep.mubr.msk.bf16.mxu0 %vm1494_vm7, %v7560_v57  ;;  %v4548_v50 = vrot.slane %v4546_v52, 4  ;;  %v4538_v60 = vor.u32 %v4537_v49, %v8837_v46  ;;  %v4541_v57 = vshll.u32 %v8851_v55, 16  ;;  %v2140_v41 = vrot.slane %v7625_v53, 5  ;;  %v7626_v49 = vld [vmem:[#allocation2 + $0xa4] sm:$0x1] }
 0x142   : > { %v2151_v62 = vrot.slane %v8436_v16, 5  ;;  %v2139_v42 = vrot.slane %v2137_v61, 4  ;;  %v6160_v52 = vrot.slane %v2013_v30, 9  ;;  %v2147_v26 = vrot.slane %v7626_v49, 5  ;;  %v2014_v55 = vld [vmem:[#allocation2 + $0xa8] sm:$0xe] }
 0x143   : > { %v2146_v59 = vrot.slane %v2144_v63, 4  ;;  %v4552_v53 = vor.u32 %v4551_v32, %v4548_v50  ;;  %v4565_v16 = vshll.u32 %v8861_v3, 16  ;;  %v8877_v28 = vsel %vm8145_vm15, %v6159_v27, %v2137_v61  ;;  %v2015_v50 = vld [vmem:[#allocation2 + $0xb4] sm:$0xe] }
 0x144   : > { %v4539_v24 = vrot.slane %v4538_v60, 4  ;;  %v4543_v19 = vrot.slane %v4541_v57, 5  ;;  %v4562_v30 = vor.u32 %v4561_v5, %v8863_v17  ;;  %v6161_v11 = vrot.slane %v2014_v55, 9  ;;  %v7563_v60 = vld [vmem:[#allocation2 + $0xb4] sm:$0xff]  }
 0x145   : > { %v4510_v27 = vsel %vm7838_vm9, %v4505_v56, %v8830_v4  ;;  %v4520_v5 = vsel %vm7838_vm9, %v4515_v14, %v8849_v58  ;;  %v8898_v40 = vsel %vm8145_vm15, %v6160_v52, %v2144_v63  ;;  %v8902_v55 = vsel %vm8145_vm15, %v2146_v59, %v2147_v26 }
 0x146   : > { %v4534_v56 = vsel %vm7838_vm9, %v4529_v1, %v8837_v46  ;;  %v8907_v4 = vrot.slane %v4552_v53, 4  ;;  %v8909_v58 = vrot.slane %v4565_v16, 5  ;;  %v8913_v61 = vrot.slane %v4562_v30, 4  ;;  %v8956_v53 = vld [vmem:[#allocation2 + $0x70] sm:$0xf] }
 0x147   : > { %7025 = vmatmul.mubr.msk.bf16.gmra.mrb[4].mxu1 %vm1494_vm7, %v9763_v37  ;;  %7177 = vmatmul.mubr.msk.bf16.gmra.mrb[20].mxu0 %vm1494_vm7, %v7561_v38  ;;  %v2153_v37 = vrot.slane %v2151_v62, 4  ;;  %v8894_v38 = vsel %vm8145_vm15, %v2139_v42, %v2140_v41  ;;  %v4544_v41 = vsel %vm7838_vm9, %v4539_v24, %v4543_v19  ;;  %v6162_v63 = vrot.slane %v2015_v50, 9  ;;  %v7564_v42 = vld [vmem:[#allocation2 + $0xc0] sm:$0xff]   ;;  %9770 = vst [vmem:[#allocation15_spill] sm:$0xff] %v8956_v53  ;;  %v6496_v16 = vld [vmem:[#allocation2 + $0x78] sm:$0xf] }
 0x148   : > { %7028 = vmatprep.mubr.msk.bf16.mxu1 %vm1494_vm7, %v9764_v54  ;;  %7180 = vmatprep.mubr.msk.bf16.mxu0 %vm1494_vm7, %v7562_v48  ;;  %v2158_v32 = vrot.slane %v8455_v23, 5  ;;  %v8918_v57 = vsel %vm8145_vm15, %v6161_v11, %v2151_v62  ;;  %v4570_v48 = vshrl.u32 %v6490_v6, 16  ;;  %v9767_v14 = vcombine.low %v8690_v45, %v8702_v0  ;;  %v8941_v54 = vld [vmem:[#allocation2 + $0x64] sm:$0xf]  ;;  %v6493_v45 = vld [vmem:[#allocation2 + $0x6c] sm:$0xf] }
 0x149   : > { %9765 = vst [vmem:[#allocation13_spill] sm:$0xff] %v8918_v57  ;;  %v8922_v46 = vsel %vm8145_vm15, %v2153_v37, %v2154_v12  ;;  %v9768_v62 = vsel %vm7838_vm9, %v8828_v10, %v8812_v2  ;;  %v8937_v49 = vcombine.low %v4510_v27, %v4520_v5  ;;  %v9769_v0 = vcombine.low %v8697_v21, %v8725_v8  ;;  %v8970_v30 = vld [vmem:[#allocation2 + $0x7c] sm:$0xf]  ;;  %v8975_v27 = vld [vmem:[#allocation2 + $0x88] sm:$0xf]  ;;  %v7565_v8 = vld [vmem:[#allocation2 + $0xcc] sm:$0xff]  }
 0x14a   : > { %9766 = vst [vmem:[#allocation14_spill] sm:$0xff] %v8922_v46  ;;  %v8935_v52 = vcombine.low %v9768_v62, %v4496_v20  ;;  %v8949_v1 = vcombine.low %v4534_v56, %v4544_v41  ;;  %v8966_v24 = vsel %vm8145_vm15, %v6162_v63, %v2158_v32  ;;  %v8968_v19 = vrot.slane %v2158_v32, 4  ;;  %9771 = vst [vmem:[#allocation16_spill] sm:$0xff] %v8970_v30  ;;  %v6499_v20 = vld [vmem:[#allocation2 + $0x84] sm:$0xf] }
 0x14b   : > { %v4572_v11 = vrot.slane %v4570_v48, 4  ;;  %v4575_v37 = vrot.slane %v4573_v44, 5  ;;  %v4579_v12 = vshll.u32 %v8941_v54, 16  ;;  %v4583_v50 = vshrl.u32 %v8941_v54, 16  ;;  %9772 = vst [vmem:[#allocation17_spill] sm:$0xff] %v8975_v27 }
 0x14c   : > { %v8978_v5 = vld [vmem:[#allocation2 + $0x68] sm:$0x1]  ;;  %v4594_v6 = vshrl.u32 %v6493_v45, 16  ;;  %v4597_v56 = vshll.u32 %v6493_v45, 16  ;;  %v4603_v41 = vshll.u32 %v8956_v53, 16  ;;  %v4607_v63 = vshrl.u32 %v8956_v53, 16 }
 0x14d   : > { %9773 = vst [vmem:[#allocation18_spill] sm:$0xff] %v8978_v5  ;;  %v4618_v32 = vshrl.u32 %v6496_v16, 16  ;;  %v4627_v48 = vshll.u32 %v8970_v30, 16  ;;  %v4631_v44 = vshrl.u32 %v8970_v30, 16  ;;  %v4645_v62 = vshll.u32 %v6499_v20, 16 }
 0x14e   : > { %v4576_v59 = vor.u32 %v4575_v37, %v4572_v11  ;;  %v8986_v26 = vrot.slane %v4579_v12, 5  ;;  %v4585_v45 = vrot.slane %v4583_v50, 4  ;;  %v4589_v2 = vshll.u32 %v8978_v5, 16  ;;  %v8989_v21 = vld [vmem:[#allocation2 + $0x74] sm:$0x1] }
 0x14f   : > { %7029 = vmatmul.mubr.msk.bf16.gmra.mrb[8].mxu1 %vm1494_vm7, %v9767_v14  ;;  %7181 = vmatmul.mubr.msk.bf16.gmra.mrb[24].mxu0 %vm1494_vm7, %v7563_v60  ;;  %v4621_v60 = vshll.u32 %v6496_v16, 16  ;;  %v4642_v14 = vshrl.u32 %v6499_v20, 16  ;;  %9774 = vst [vmem:[#allocation19_spill] sm:$0xff] %v8989_v21  ;;  %v9775_v16 = vcombine.low %v8713_v25, %v8729_v9  ;;  %v4596_v23 = vrot.slane %v4594_v6, 4  ;;  %v9003_v5 = vld [vmem:[#allocation2 + $0x94] sm:$0xf] }
 0x150   : > { %7032 = vmatprep.mubr.msk.bf16.mxu1 %vm1494_vm7, %v9769_v0  ;;  %7184 = vmatprep.mubr.msk.bf16.mxu0 %vm1494_vm7, %v7564_v42  ;;  %v4651_v0 = vshll.u32 %v8975_v27, 16  ;;  %v4655_v42 = vshrl.u32 %v8975_v27, 16  ;;  %v4599_v20 = vrot.slane %v4597_v56, 5  ;;  %v8995_v10 = vrot.slane %v4603_v41, 5  ;;  %v6502_v27 = vld [vmem:[#allocation2 + $0x90] sm:$0xf] }
 0x151   : > { %v4609_v30 = vrot.slane %v4607_v63, 4  ;;  %v9776_v11 = vcombine.low %v8733_v39, %v8737_v15  ;;  %v4620_v37 = vrot.slane %v4618_v32, 4  ;;  %v4623_v12 = vrot.slane %v4621_v60, 5  ;;  %9777 = vst [vmem:[#allocation20_spill] sm:$0xff] %v9003_v5  ;;  %v9005_v25 = vld [vmem:[#allocation2 + $0x80] sm:$0x1] }
 0x152   : > { %v9001_v50 = vrot.slane %v4627_v48, 5  ;;  %v4633_v53 = vrot.slane %v4631_v44, 4  ;;  %v4644_v9 = vrot.slane %v4642_v14, 4  ;;  %v4647_v6 = vrot.slane %v4645_v62, 5  ;;  %v9013_v63 = vld [vmem:[#allocation2 + $0x8c] sm:$0x1] }
 0x153   : > { %v9007_v56 = vrot.slane %v4651_v0, 5  ;;  %v4657_v41 = vrot.slane %v4655_v42, 4  ;;  %v4586_v39 = vor.u32 %v4585_v45, %v8986_v26  ;;  %v9011_v15 = vrot.slane %v4589_v2, 5 }
 0x154   : > { %v4666_v32 = vshrl.u32 %v6502_v27, 16  ;;  %v4669_v60 = vshll.u32 %v6502_v27, 16  ;;  %v9017_v48 = vrot.slane %v4576_v59, 4  ;;  %v4613_v44 = vshll.u32 %v8989_v21, 16 }
 0x155   : > { %v4675_v14 = vshll.u32 %v9003_v5, 16  ;;  %v4679_v62 = vshrl.u32 %v9003_v5, 16  ;;  %v4600_v0 = vor.u32 %v4599_v20, %v4596_v23  ;;  %v4610_v2 = vor.u32 %v4609_v30, %v8995_v10 }
 0x156   : > { %v4624_v42 = vor.u32 %v4623_v12, %v4620_v37  ;;  %v4637_v45 = vshll.u32 %v9005_v25, 16  ;;  %v4634_v27 = vor.u32 %v4633_v53, %v9001_v50  ;;  %v4661_v59 = vshll.u32 %v9013_v63, 16 }
 0x157   : > { %7033 = vmatmul.mubr.msk.bf16.gmra.mrb[12].mxu1 %vm1494_vm7, %v9775_v16  ;;  %7185 = vmatmul.mubr.msk.bf16.gmra.mrb[28].mxu0 %vm1494_vm7, %v7565_v8  ;;  %v6505_v8 = vld [vmem:[#allocation2 + $0x9c] sm:$0xf]  ;;  %v4648_v16 = vor.u32 %v4647_v6, %v4644_v9  ;;  %v4671_v21 = vrot.slane %v4669_v60, 5  ;;  %v9778_v5 = vcombine.low %v8742_v47, %v8746_v31  ;;  %v4587_v23 = vrot.slane %v4586_v39, 4  ;;  %v9039_v39 = vld [vmem:[#allocation2 + $0xa0] sm:$0xf] }
 0x158   : > { %7036 = vmatprep.mubr.msk.bf16.mxu1 %vm1494_vm7, %v9776_v11  ;;  %7190 = vmatprep.mubr.msk.bf16.mxu0 %vm1494_vm7, %v8771_v13  ;;  %v4658_v13 = vor.u32 %v4657_v41, %v9007_v56  ;;  %v4668_v11 = vrot.slane %v4666_v32, 4  ;;  %v4690_v46 = vshrl.u32 %v6505_v8, 16  ;;  %v4693_v57 = vshll.u32 %v6505_v8, 16  ;;  %v9037_v32 = vld [vmem:[#allocation2 + $0x98] sm:$0x1] }
 0x159   : > { %v4615_v30 = vrot.slane %v4613_v44, 5  ;;  %v9031_v20 = vrot.slane %v4675_v14, 5  ;;  %v4681_v37 = vrot.slane %v4679_v62, 4  ;;  %v9779_v53 = vcombine.low %v8779_v7, %v8790_v22 }
 0x15a   : > { %v4601_v12 = vrot.slane %v4600_v0, 4  ;;  %v4611_v9 = vrot.slane %v4610_v2, 4  ;;  %v4625_v6 = vrot.slane %v4624_v42, 4  ;;  %v4639_v41 = vrot.slane %v4637_v45, 5  ;;  %v9083_v42 = vld [vmem:[#allocation2 + $0xa4] sm:$0x1] }
 0x15b   : > { %v4635_v60 = vrot.slane %v4634_v27, 4  ;;  %v4649_v47 = vrot.slane %v4648_v16, 4  ;;  %v4659_v31 = vrot.slane %v4658_v13, 4  ;;  %v9780_v44 = vrot.slane %v8457_v35, 5 }
 0x15c   : > { %v4672_v22 = vor.u32 %v4671_v21, %v4668_v11  ;;  %v4692_v14 = vrot.slane %v4690_v46, 4  ;;  %v4695_v62 = vrot.slane %v4693_v57, 5  ;;  %v4592_v35 = vsel %vm7838_vm9, %v4587_v23, %v9011_v15  ;;  %v6508_v46 = vld [vmem:[#allocation2 + $0xa8] sm:$0xf] }
 0x15d   : > { %v9048_v7 = vsel %vm8145_vm15, %v8968_v19, %v9780_v44  ;;  %v4682_v19 = vor.u32 %v4681_v37, %v9031_v20  ;;  %v4685_v21 = vshll.u32 %v9037_v32, 16  ;;  %v4616_v57 = vsel %vm7838_vm9, %v4611_v9, %v4615_v30 }
 0x15e   : > { %v4630_v15 = vsel %vm7838_vm9, %v4625_v6, %v9001_v50  ;;  %v4640_v8 = vsel %vm7838_vm9, %v4635_v60, %v4639_v41  ;;  %v9081_v2 = vrot.slane %v4672_v22, 4  ;;  %v4696_v45 = vor.u32 %v4695_v62, %v4692_v14  ;;  %v9115_v6 = vld [vmem:[#allocation2 + $0xb0] sm:$0x1]  ;;  %v6559_v14 = vld [vmem:[#allocation2 + $0x60] sm:$0xe] }
 0x15f   : > { %7037 = vmatmul.mubr.msk.bf16.gmra.mrb[16].mxu1 %vm1494_vm7, %v9778_v5  ;;  %v4663_v5 = vrot.slane %v4661_v59, 5  ;;  %7191 = vmatmul.mubr.msk.bf16.vlgmr.msra.gmra.mrb[0].mxu0 %vm1494_vm7, %v8808_v33  ;;  %v4582_v33 = vsel %vm7838_vm9, %v9017_v48, %v8986_v26  ;;  %v4703_v26 = vshrl.u32 %v9039_v39, 16  ;;  %v9069_v48 = vld [vmem:[#allocation2 + $0xac] sm:$0xf]  ;;  %v4714_v27 = vshrl.u32 %v6508_v46, 16 }
 0x160   : > { %7040 = vmatprep.mubr.msk.bf16.mxu1 %vm1494_vm7, %v9779_v53  ;;  %7223 = vmatpush3.bf16.msra.mxu0 %v8775_v18  ;;  %v4606_v18 = vsel %vm7838_vm9, %v4601_v12, %v8995_v10  ;;  %v4654_v10 = vsel %vm7838_vm9, %v4649_v47, %v9007_v56  ;;  %v4717_v16 = vshll.u32 %v6508_v46, 16  ;;  %v9781_v50 = vcombine.low %v8798_v29, %v8826_v36  ;;  %v6557_v53 = vld [vmem:[#allocation2 + $0x48] sm:$0xe]  ;;  %v9786_v46 = vld [vmem:[#allocation11_spill] sm:$0xff] }
 0x161   : > { %7194 = vmatprep.mubr.msk.bf16.mxu0 %vm1494_vm7, %v8935_v52  ;;  %v4699_v52 = vshll.u32 %v9039_v39, 16  ;;  %v4664_v0 = vsel %vm7838_vm9, %v4659_v31, %v4663_v5  ;;  %v9782_v56 = vsel %vm7838_vm9, %v8913_v61, %v8909_v58  ;;  %v9783_v13 = vsel %vm7838_vm9, %v8907_v4, %v8863_v17  ;;  %v6558_v31 = vld [vmem:[#allocation2 + $0x54] sm:$0xe] }
 0x162   : > { %v6526_v59 = vcombine.low %v9783_v13, %v9782_v56  ;;  %v4683_v11 = vrot.slane %v4682_v19, 4  ;;  %v4687_v23 = vrot.slane %v4685_v21, 5  ;;  %v4723_v30 = vshll.u32 %v9069_v48, 16  ;;  %v9785_v19 = vld [vmem:[#allocation12_spill] sm:$0xff] }
 0x163   : > { %v9784_v29 = vcombine.low %v8877_v28, %v8894_v38  ;;  %v6179_v36 = vcombine.low %v8966_v24, %v9048_v7  ;;  %v6527_v37 = vcombine.low %v4582_v33, %v4592_v35  ;;  %v9106_v58 = vrot.slane %v4699_v52, 5  ;;  %v9117_v28 = vld [vmem:[#allocation2 + $0xb4] sm:$0xf]  ;;  %v6560_v52 = vld [vmem:[#allocation2 + $0x6c] sm:$0xe] }
 0x164   : > { %v4705_v61 = vrot.slane %v4703_v26, 4  ;;  %v9108_v12 = vcombine.low %v4606_v18, %v4616_v57  ;;  %v9110_v17 = vcombine.low %v4630_v15, %v4640_v8  ;;  %v9112_v4 = vcombine.low %v4654_v10, %v4664_v0  ;;  %v9230_v7 = vld [vmem:[#allocation2 + $0xc4] sm:$0xf] }
 0x165   : > { %v4709_v9 = vshll.u32 %v9083_v42, 16  ;;  %v4678_v38 = vsel %vm7838_vm9, %v9081_v2, %v9031_v20  ;;  %v9125_v41 = vrot.slane %v4696_v45, 4  ;;  %v4716_v60 = vrot.slane %v4714_v27, 4  ;;  %v9788_v27 = vld [vmem:[#allocation13_spill] sm:$0xff] }
 0x166   : > { %v4719_v47 = vrot.slane %v4717_v16, 5  ;;  %v4688_v5 = vsel %vm7838_vm9, %v4683_v11, %v4687_v23  ;;  %v9131_v44 = vrot.slane %v4723_v30, 5  ;;  %v6573_v22 = vrot.slane %v6557_v53, 9  ;;  %v9789_v16 = vld [vmem:[#allocation14_spill] sm:$0xff]  ;;  %v9792_v11 = vld [vmem:[#allocation15_spill] sm:$0xff] }
 0x167   : > { %7041 = vmatmul.mubr.msk.bf16.gmra.mrb[20].mxu1 %vm1494_vm7, %v9781_v50  ;;  %7195 = vmatmul.mubr.msk.bf16.gmra.mrb[4].mxu0 %vm1494_vm7, %v8937_v49  ;;  %v4727_v49 = vshrl.u32 %v9069_v48, 16  ;;  %v4706_v62 = vor.u32 %v4705_v61, %v9106_v58  ;;  %v4733_v20 = vshll.u32 %v9115_v6, 16  ;;  %v4738_v33 = vshrl.u32 %v9117_v28, 16 }
 0x168   : > { %7044 = vmatprep.mubr.msk.bf16.mxu1 %vm1494_vm7, %v9784_v29  ;;  %7198 = vmatprep.mubr.msk.bf16.mxu0 %vm1494_vm7, %v8949_v1  ;;  %v5197_v35 = vrot.slane %v8801_v34, 5  ;;  %v5200_v21 = vrot.slane %v9785_v19, 5  ;;  %v6574_v1 = vrot.slane %v6558_v31, 9  ;;  %v5204_v18 = vrot.slane %v9786_v46, 5  ;;  %v9793_v31 = vld [vmem:[#allocation19_spill] sm:$0xff] }
 0x169   : > { %v5207_v57 = vrot.slane %v8861_v3, 5  ;;  %v4720_v26 = vor.u32 %v4719_v47, %v4716_v60  ;;  %v6575_v10 = vrot.slane %v6559_v14, 9  ;;  %v9787_v0 = vcombine.low %v8898_v40, %v8902_v55  ;;  %v9791_v40 = vld [vmem:[#allocation18_spill] sm:$0xff] }
 0x16a   : > { %v9143_v15 = vsel %vm8145_vm15, %v6573_v22, %v5197_v35  ;;  %v5199_v8 = vrot.slane %v5197_v35, 4  ;;  %v4729_v34 = vrot.slane %v4727_v49, 4  ;;  %v9151_v2 = vsel %vm8145_vm15, %v6574_v1, %v5204_v18  ;;  %v9191_v35 = vld [vmem:[#allocation2 + $0xb8] sm:$0xf]  ;;  %v7566_v1 = vld [vmem:[#allocation2 + $0xc] sm:$0xff]  }
 0x16b   : > { %v5206_v45 = vrot.slane %v5204_v18, 4  ;;  %v5211_v3 = vrot.slane %v8941_v54, 5  ;;  %v9790_v50 = vcombine.low %v9788_v27, %v9789_v16  ;;  %v5214_v55 = vrot.slane %v9791_v40, 5 }
 0x16c   : > { %v9160_v56 = vsel %vm8145_vm15, %v5199_v8, %v5200_v21  ;;  %v6576_v13 = vrot.slane %v6560_v52, 9  ;;  %v5218_v23 = vrot.slane %v9792_v11, 5  ;;  %v5221_v49 = vrot.slane %v9793_v31, 5  ;;  %v6288_v21 = vld [vmem:[#allocation2 + $0x78] sm:$0xf] }
 0x16d   : > { %v6590_v30 = vcombine.low %v9143_v15, %v9160_v56  ;;  %v9168_v54 = vsel %vm8145_vm15, %v5206_v45, %v5207_v57  ;;  %v9172_v29 = vsel %vm8145_vm15, %v6575_v10, %v5211_v3  ;;  %v5213_v61 = vrot.slane %v5211_v3, 4  ;;  %v6514_v8 = vld [vmem:[#allocation2 + $0xc0] sm:$0xf]  ;;  %v6562_v3 = vld [vmem:[#allocation2 + $0x84] sm:$0xe] }
 0x16e   : > { %v6591_v53 = vcombine.low %v9151_v2, %v9168_v54  ;;  %v9179_v60 = vsel %vm8145_vm15, %v6576_v13, %v5218_v23  ;;  %v5220_v47 = vrot.slane %v5218_v23, 4  ;;  %v9183_v22 = vcombine.low %v4678_v38, %v4688_v5  ;;  %v9238_v31 = vld [vmem:[#allocation2 + $0xbc] sm:$0x1]  ;;  %v7635_v15 = vld [vmem:[#allocation2 + $0x94] sm:$0xf] }
 0x16f   : > { %7045 = vmatmul.mubr.msk.bf16.gmra.mrb[24].mxu1 %vm1494_vm7, %v9787_v0  ;;  %7199 = vmatmul.mubr.msk.bf16.gmra.mrb[8].mxu0 %vm1494_vm7, %v6526_v59  ;;  %v4702_v14 = vsel %vm7838_vm9, %v9125_v41, %v9106_v58  ;;  %v9189_v59 = vrot.slane %v4709_v9, 5  ;;  %v9195_v19 = vsel %vm8145_vm15, %v5213_v61, %v5214_v55  ;;  %v9197_v46 = vrot.slane %v4706_v62, 4  ;;  %v6561_v9 = vld [vmem:[#allocation2 + $0x78] sm:$0xe]  ;;  %v9800_v41 = vld [vmem:[#allocation20_spill] sm:$0xff] }
 0x170   : > { %7048 = vmatprep.mubr.msk.bf16.mxu1 %vm1494_vm7, %v9790_v50  ;;  %7202 = vmatprep.mubr.msk.bf16.mxu0 %vm1494_vm7, %v6527_v37  ;;  %v4741_v37 = vshll.u32 %v9117_v28, 16  ;;  %v6592_v38 = vcombine.low %v9172_v29, %v9195_v19  ;;  %v9204_v5 = vsel %vm8145_vm15, %v5220_v47, %v5221_v49  ;;  %v9206_v18 = vrot.slane %v4720_v26, 4  ;;  %v9795_v26 = vld [vmem:[#allocation5_spill] sm:$0xff]  ;;  %v9796_v50 = vld [vmem:[#allocation16_spill] sm:$0xff]  ;;  %v6303_v29 = vld [vmem:[#allocation2 + $0xb4] sm:$0xf] }
 0x171   : > { %v9208_v57 = vrot.slane %v4733_v20, 5  ;;  %v9210_v52 = vrot.slane %v4738_v33, 4  ;;  %v6593_v62 = vcombine.low %v9179_v60, %v9204_v5  ;;  %v4730_v28 = vor.u32 %v4729_v34, %v9131_v44  ;;  %v9794_v33 = vld [vmem:[#allocation6_spill] sm:$0xff]  ;;  %v6306_v5 = vld [vmem:[#allocation2 + $0xc0] sm:$0xf] }
 0x172   : > { %v4747_v10 = vshll.u32 %v9191_v35, 16  ;;  %v3084_v0 = vshrl.u32 %v6288_v21, 16  ;;  %v3087_v45 = vshll.u32 %v6288_v21, 16  ;;  %v4751_v20 = vshrl.u32 %v9191_v35, 16 }
 0x173   : > { %v3106_v27 = vsel %vm7838_vm9, %v9795_v26, %v9794_v33  ;;  %v6577_v16 = vrot.slane %v6561_v9, 9  ;;  %v5225_v34 = vrot.slane %v9796_v50, 5  ;;  %v9227_v40 = vrot.slane %v4741_v37, 5  ;;  %v7567_v37 = vld [vmem:[#allocation2 + $0x18] sm:$0xff]  }
 0x174   : > { %v3086_v55 = vrot.slane %v3084_v0, 4  ;;  %v3089_v13 = vrot.slane %v3087_v45, 5  ;;  %v5228_v24 = vrot.slane %v9005_v25, 5  ;;  %v6578_v61 = vrot.slane %v6562_v3, 9 }
 0x175   : > { %v9234_v11 = vsel %vm8145_vm15, %v6577_v16, %v5225_v34  ;;  %v5227_v23 = vrot.slane %v5225_v34, 4  ;;  %v4731_v47 = vrot.slane %v4730_v28, 4  ;;  %v9240_v49 = vrot.slane %v4747_v10, 5  ;;  %v7568_v28 = vld [vmem:[#allocation2 + $0x24] sm:$0xff]  }
 0x176   : > { %v3090_v21 = vor.u32 %v3089_v13, %v3086_v55  ;;  %v4753_v9 = vrot.slane %v4751_v20, 4  ;;  %v4765_v0 = vshll.u32 %v6514_v8, 16  ;;  %v4771_v3 = vshll.u32 %v9230_v7, 16  ;;  %v9269_v34 = vld [vmem:[#allocation2 + $0xc8] sm:$0x1]  ;;  %v9798_v13 = vld [vmem:[#allocation4_spill] sm:$0xff] }
 0x177   : > { %7049 = vmatmul.mubr.msk.bf16.gmra.mrb[28].mxu1 %vm1494_vm7, %v6179_v36  ;;  %v4762_v36 = vshrl.u32 %v6514_v8, 16  ;;  %7203 = vmatmul.mubr.msk.bf16.gmra.mrb[12].mxu0 %vm1494_vm7, %v9108_v12  ;;  %v9247_v45 = vsel %vm8145_vm15, %v5227_v23, %v5228_v24  ;;  %v5235_v12 = vrot.slane %v9013_v63, 5  ;;  %v4775_v10 = vshrl.u32 %v9230_v7, 16  ;;  %v6517_v23 = vld [vmem:[#allocation2 + $0xcc] sm:$0xf] }
 0x178   : > { %7054 = vmatprep.mubr.msk.bf16.mxu1 %vm1494_vm7, %v7566_v1  ;;  %v9797_v1 = vld [vmem:[#allocation17_spill] sm:$0xff]  ;;  %7206 = vmatprep.mubr.msk.bf16.mxu0 %vm1494_vm7, %v9110_v17  ;;  %v3091_v33 = vrot.slane %v3090_v21, 4  ;;  %v6594_v26 = vcombine.low %v9234_v11, %v9247_v45  ;;  %v4712_v17 = vsel %vm7838_vm9, %v9197_v46, %v9189_v59  ;;  %v4757_v8 = vshll.u32 %v9238_v31, 16  ;;  %v7641_v11 = vld [vmem:[#allocation2 + $0xb0] sm:$0x1] }
 0x179   : > { %v5232_v25 = vrot.slane %v9797_v1, 5  ;;  %v4726_v16 = vsel %vm7838_vm9, %v9206_v18, %v9131_v44  ;;  %v4744_v50 = vor.u32 %v9227_v40, %v9210_v52  ;;  %v4764_v55 = vrot.slane %v4762_v36, 4  ;;  %v6563_v18 = vld [vmem:[#allocation2 + $0x90] sm:$0xe]  ;;  %v9799_v52 = vld [vmem:[#allocation3_spill] sm:$0xff] }
 0x17a   : > { %v3096_v59 = vsel %vm7838_vm9, %v3091_v33, %v9798_v13  ;;  %v4736_v46 = vsel %vm7838_vm9, %v4731_v47, %v9208_v57  ;;  %v4767_v24 = vrot.slane %v4765_v0, 5  ;;  %v4754_v40 = vor.u32 %v4753_v9, %v9240_v49  ;;  %v9289_v1 = vld [vmem:[#allocation2 + $0xd0] sm:$0xf] }
 0x17b   : > { %v9261_v20 = vsel %vm8145_vm15, %v6578_v61, %v5232_v25  ;;  %v5234_v63 = vrot.slane %v5232_v25, 4  ;;  %v9278_v61 = vcombine.low %v3096_v59, %v3106_v27  ;;  %v9287_v36 = vrot.slane %v4771_v3, 5  ;;  %v7569_v3 = vld [vmem:[#allocation2 + $0x30] sm:$0xff]  }
 0x17c   : > { %v4777_v21 = vrot.slane %v4775_v10, 4  ;;  %v6532_v27 = vcombine.low %v4702_v14, %v4712_v17  ;;  %v4759_v47 = vrot.slane %v4757_v8, 5  ;;  %v4781_v25 = vshll.u32 %v9269_v34, 16  ;;  %v7570_v17 = vld [vmem:[#allocation2 + $0x3c] sm:$0xff]  }
 0x17d   : > { %v9282_v44 = vsel %vm8145_vm15, %v5234_v63, %v5235_v12  ;;  %v4786_v9 = vshrl.u32 %v6517_v23, 16  ;;  %v4789_v0 = vshll.u32 %v6517_v23, 16  ;;  %v6579_v12 = vrot.slane %v6563_v18, 9 }
 0x17e   : > { %v6595_v57 = vcombine.low %v9261_v20, %v9282_v44  ;;  %v4768_v10 = vor.u32 %v4767_v24, %v4764_v55  ;;  %v4795_v33 = vshll.u32 %v9289_v1, 16  ;;  %v4799_v58 = vshrl.u32 %v9289_v1, 16 }
 0x17f   : > { %7055 = vmatmul.mubr.msk.bf16.vlgmr.msra.gmra.mrb[0].mxu1 %vm1494_vm7, %v7567_v37  ;;  %7207 = vmatmul.mubr.msk.bf16.gmra.mrb[16].mxu0 %vm1494_vm7, %v9112_v4  ;;  %v6533_v37 = vcombine.low %v4726_v16, %v4736_v46  ;;  %v5239_v14 = vrot.slane %v9800_v41, 5  ;;  %v4745_v8 = vrot.slane %v4744_v50, 4  ;;  %v4755_v63 = vrot.slane %v4754_v40, 4 }
 0x180   : > { %7257 = vmatpush3.bf16.msra.mxu1 %v9799_v52  ;;  %7058 = vmatprep.mubr.msk.bf16.mxu1 %vm1494_vm7, %v7568_v28  ;;  %v6564_v28 = vld [vmem:[#allocation2 + $0x9c] sm:$0xe]  ;;  %v4778_v4 = vor.u32 %v4777_v21, %v9287_v36  ;;  %v5242_v16 = vrot.slane %v9037_v32, 5  ;;  %v4783_v13 = vrot.slane %v4781_v25, 5  ;;  %v4788_v46 = vrot.slane %v4786_v9, 4 }
 0x181   : > { %7210 = vmatprep.mubr.msk.bf16.mxu0 %vm1494_vm7, %v9183_v22  ;;  %v9310_v59 = vsel %vm8145_vm15, %v6579_v12, %v5239_v14  ;;  %v5241_v22 = vrot.slane %v5239_v14, 4  ;;  %v6580_v55 = vrot.slane %v6564_v28, 9  ;;  %v4791_v24 = vrot.slane %v4789_v0, 5  ;;  %v9322_v25 = vld [vmem:[#allocation2 + $0xd4] sm:$0x1] }
 0x182   : > { %v5246_v23 = vrot.slane %v9039_v39, 5  ;;  %v5249_v18 = vrot.slane %v9083_v42, 5  ;;  %v4769_v50 = vrot.slane %v4768_v10, 4  ;;  %v9315_v52 = vrot.slane %v4795_v33, 5  ;;  %v7572_v14 = vld [vmem:[#allocation2 + $0x54] sm:$0xff]  }
 0x183   : > { %v4801_v40 = vrot.slane %v4799_v58, 4  ;;  %v9319_v32 = vsel %vm8145_vm15, %v5241_v22, %v5242_v16  ;;  %v4779_v21 = vrot.slane %v4778_v4, 4  ;;  %v4750_v0 = vsel %vm7838_vm9, %v4745_v8, %v9240_v49  ;;  %v6565_v49 = vld [vmem:[#allocation2 + $0xa8] sm:$0xe]  ;;  %v7627_v8 = vld [vmem:[#allocation2 + $0x1c] sm:$0xf] }
 0x184   : > { %v6596_v39 = vcombine.low %v9310_v59, %v9319_v32  ;;  %v9328_v42 = vsel %vm8145_vm15, %v6580_v55, %v5246_v23  ;;  %v5248_v9 = vrot.slane %v5246_v23, 4  ;;  %v4760_v12 = vsel %vm7838_vm9, %v4755_v63, %v4759_v47  ;;  %v6566_v22 = vld [vmem:[#allocation2 + $0xb4] sm:$0xe]  ;;  %v7644_v32 = vld [vmem:[#allocation2 + $0xc8] sm:$0x1] }
 0x185   : > { %v4792_v10 = vor.u32 %v4791_v24, %v4788_v46  ;;  %v4802_v33 = vor.u32 %v4801_v40, %v9315_v52  ;;  %v4805_v58 = vshll.u32 %v9322_v25, 16  ;;  %v4774_v47 = vsel %vm7838_vm9, %v4769_v50, %v9287_v36  ;;  %v7628_v40 = vld [vmem:[#allocation2 + $0x20] sm:$0x1] }
 0x186   : > { %v9338_v28 = vsel %vm8145_vm15, %v5248_v9, %v5249_v18  ;;  %v6534_v63 = vcombine.low %v4750_v0, %v4760_v12  ;;  %v6581_v16 = vrot.slane %v6565_v49, 9  ;;  %v5172_v36 = vrot.slane %v7628_v40, 5 }
 0x187   : > { %7059 = vmatmul.mubr.msk.bf16.gmra.mrb[4].mxu1 %vm1494_vm7, %v7569_v3  ;;  %7211 = vmatmul.mubr.msk.bf16.gmra.mrb[20].mxu0 %vm1494_vm7, %v6532_v27  ;;  %v7571_v3 = vld [vmem:[#allocation2 + $0x48] sm:$0xff]   ;;  %v6553_v27 = vld [vmem:[#allocation2 + $0x18] sm:$0xe]  ;;  %v6597_v41 = vcombine.low %v9328_v42, %v9338_v28  ;;  %v4793_v46 = vrot.slane %v4792_v10, 4  ;;  %v4803_v24 = vrot.slane %v4802_v33, 4  ;;  %v4807_v23 = vrot.slane %v4805_v58, 5 }
 0x188   : > { %7062 = vmatprep.mubr.msk.bf16.mxu1 %vm1494_vm7, %v7570_v17  ;;  %7214 = vmatprep.mubr.msk.bf16.mxu0 %vm1494_vm7, %v6533_v37  ;;  %v4784_v17 = vsel %vm7838_vm9, %v4779_v21, %v4783_v13  ;;  %v5169_v37 = vrot.slane %v7627_v8, 5  ;;  %v6569_v4 = vrot.slane %v6553_v27, 9  ;;  %v5253_v50 = vrot.slane %v9069_v48, 5  ;;  %v7629_v21 = vld [vmem:[#allocation2 + $0x28] sm:$0xf]  ;;  %v7573_v27 = vld [vmem:[#allocation2 + $0x60] sm:$0xff]  }
 0x189   : > { %v6535_v55 = vcombine.low %v4774_v47, %v4784_v17  ;;  %v5256_v13 = vrot.slane %v9115_v6, 5  ;;  %v5176_v9 = vrot.slane %v7629_v21, 5  ;;  %v6582_v0 = vrot.slane %v6566_v22, 9  ;;  %v6554_v10 = vld [vmem:[#allocation2 + $0x24] sm:$0xe]  ;;  %v7574_v47 = vld [vmem:[#allocation2 + $0x6c] sm:$0xff]  }
 0x18a   : > { %v5171_v18 = vrot.slane %v5169_v37, 4  ;;  %v5260_v12 = vrot.slane %v9191_v35, 5  ;;  %v9360_v33 = vsel %vm8145_vm15, %v6581_v16, %v5253_v50  ;;  %v5255_v58 = vrot.slane %v5253_v50, 4  ;;  %v9801_v35 = vld [vmem:[#allocation7_spill] sm:$0xff]  ;;  %v6555_v8 = vld [vmem:[#allocation2 + $0x30] sm:$0xe] }
 0x18b   : > { %v4798_v48 = vsel %vm7838_vm9, %v4793_v46, %v9315_v52  ;;  %v4808_v6 = vsel %vm7838_vm9, %v4803_v24, %v4807_v23  ;;  %v5183_v49 = vrot.slane %v9801_v35, 5  ;;  %v5263_v52 = vrot.slane %v9238_v31, 5  ;;  %v7630_v22 = vld [vmem:[#allocation2 + $0x2c] sm:$0x1]  ;;  %v6556_v21 = vld [vmem:[#allocation2 + $0x3c] sm:$0xe] }
 0x18c   : > { %v5173_v17 = vsel %vm8145_vm15, %v5171_v18, %v5172_v36  ;;  %v5178_v16 = vrot.slane %v5176_v9, 4  ;;  %v6536_v24 = vcombine.low %v4798_v48, %v4808_v6  ;;  %v6571_v40 = vrot.slane %v6555_v8, 9  ;;  %v9802_v50 = vld [vmem:[#allocation9_spill] sm:$0xff]  ;;  %v9803_v35 = vld [vmem:[#allocation8_spill] sm:$0xff] }
 0x18d   : > { %v5185_v31 = vrot.slane %v5183_v49, 4  ;;  %v6572_v6 = vrot.slane %v6556_v21, 9  ;;  %v7576_v8 = vld [vmem:[#allocation2 + $0x84] sm:$0xff]   ;;  %v3141_v56 = vshll.u32 %v7635_v15, 16  ;;  %v3199_v45 = vshll.u32 %v7641_v11, 16 }
 0x18e   : > { %v5184_v48 = vsel %vm8145_vm15, %v6571_v40, %v5183_v49  ;;  %vm1002_vm0 = vcmask 58368  }
 0x18f   : > { %7063 = vmatmul.mubr.msk.bf16.gmra.mrb[8].mxu1 %vm1494_vm7, %v7571_v3  ;;  %7215 = vmatmul.mubr.msk.bf16.gmra.mrb[24].mxu0 %vm1494_vm7, %v6534_v63  ;;  %v5170_v3 = vsel %vm8145_vm15, %v6569_v4, %v5169_v37  ;;  %v9373_v37 = vsel %vm8145_vm15, %v5255_v58, %v5256_v13  ;;  %v9377_v63 = vsel %vm8145_vm15, %v6582_v0, %v5260_v12  ;;  %v6570_v4 = vrot.slane %v6554_v10, 9  ;;  %v6567_v0 = vld [vmem:[#allocation2 + $0xc0] sm:$0xe]  ;;  %v6568_v58 = vld [vmem:[#allocation2 + $0xcc] sm:$0xe] }
 0x190   : > { %7066 = vmatprep.mubr.msk.bf16.mxu1 %vm1494_vm7, %v7572_v14  ;;  %7218 = vmatprep.mubr.msk.bf16.mxu0 %vm1494_vm7, %v6535_v55  ;;  %v5262_v14 = vrot.slane %v5260_v12, 4  ;;  %v5179_v55 = vrot.slane %v7630_v22, 5  ;;  %v6598_v46 = vcombine.low %v9360_v33, %v9373_v37  ;;  %v6586_v18 = vcombine.low %v5170_v3, %v5173_v17  ;;  %v6285_v3 = vld [vmem:[#allocation2 + $0x6c] sm:$0xf]  ;;  %1003 = vst.msk [vmem:[%s9542_s19] sm:$0x3] %vm1002_vm0, %v7670_v43 }
 0x191   : > { %v5186_v13 = vrot.slane %v9802_v50, 5  ;;  %v5177_v12 = vsel %vm8145_vm15, %v6570_v4, %v5176_v9  ;;  %v5270_v4 = vrot.slane %v9269_v34, 5  ;;  %v3063_v22 = vshll.u32 %v6285_v3, 16 }
 0x192   : > { %v9384_v23 = vsel %vm8145_vm15, %v5262_v14, %v5263_v52  ;;  %v5180_v10 = vsel %vm8145_vm15, %v5178_v16, %v5179_v55  ;;  %v5190_v14 = vrot.slane %v9803_v35, 5  ;;  %v5267_v52 = vrot.slane %v9230_v7, 5  ;;  %v9804_v7 = vld [vmem:[#allocation10_spill] sm:$0xff] }
 0x193   : > { %v6599_v36 = vcombine.low %v9377_v63, %v9384_v23  ;;  %v6587_v17 = vcombine.low %v5177_v12, %v5180_v10  ;;  %v5187_v9 = vsel %vm8145_vm15, %v5185_v31, %v5186_v13  ;;  %v3060_v16 = vshrl.u32 %v6285_v3, 16 }
 0x194   : > { %v6584_v55 = vrot.slane %v6568_v58, 9  ;;  %v5269_v21 = vrot.slane %v5267_v52, 4  ;;  %v6588_v31 = vcombine.low %v5184_v48, %v5187_v9  ;;  %v5192_v13 = vrot.slane %v5190_v14, 4 }
 0x195   : > { %v5277_v10 = vrot.slane %v9322_v25, 5  ;;  %v3062_v3 = vrot.slane %v3060_v16, 4  ;;  %v3065_v58 = vrot.slane %v3063_v22, 5  ;;  %v5191_v9 = vsel %vm8145_vm15, %v6572_v6, %v5190_v14  ;;  %v7633_v6 = vld [vmem:[#allocation2 + $0x88] sm:$0xf] }
 0x196   : > { %v3117_v14 = vshll.u32 %v7633_v6, 16  ;;  %v3121_v51 = vshrl.u32 %v7633_v6, 16 }
 0x197   : > { %7067 = vmatmul.mubr.msk.bf16.gmra.mrb[12].mxu1 %vm1494_vm7, %v7573_v27  ;;  %7219 = vmatmul.mubr.msk.bf16.gmra.mrb[28].mxu0 %vm1494_vm7, %v6536_v24  ;;  %v7575_v27 = vld [vmem:[#allocation2 + $0x78] sm:$0xff]   ;;  %v5274_v24 = vrot.slane %v9289_v1, 5  ;;  %v9414_v1 = vsel %vm8145_vm15, %v5269_v21, %v5270_v4  ;;  %v3066_v16 = vor.u32 %v3065_v58, %v3062_v3 }
 0x198   : > { %7070 = vmatprep.mubr.msk.bf16.mxu1 %vm1494_vm7, %v7574_v47  ;;  %7224 = vmatprep.mubr.msk.bf16.mxu0 %vm1494_vm7, %v6586_v18  ;;  %v6583_v47 = vrot.slane %v6567_v0, 9  ;;  %v7631_v18 = vld [vmem:[#allocation2 + $0x70] sm:$0xf]  ;;  %v5193_v0 = vrot.slane %v9804_v7, 5  ;;  %v7578_v4 = vld [vmem:[#allocation2 + $0x9c] sm:$0xff]   ;;  %v9442_v58 = vrot.slane %v3117_v14, 5 }
 0x199   : > { %v3069_v49 = vshll.u32 %v7631_v18, 16  ;;  %v3073_v40 = vshrl.u32 %v7631_v18, 16  ;;  %v5276_v34 = vrot.slane %v5274_v24, 4  ;;  %v9418_v12 = vsel %vm8145_vm15, %v6584_v55, %v5274_v24  ;;  %v7632_v24 = vld [vmem:[#allocation2 + $0x74] sm:$0x1] }
 0x19a   : > { %v9407_v50 = vsel %vm8145_vm15, %v6583_v47, %v5267_v52  ;;  %v5194_v25 = vsel %vm8145_vm15, %v5192_v13, %v5193_v0  ;;  %v3079_v18 = vshll.u32 %v7632_v24, 16  ;;  %v3067_v21 = vrot.slane %v3066_v16, 4  ;;  %v7579_v0 = vld [vmem:[#allocation2 + $0xa8] sm:$0xff]  }
 0x19b   : > { %v3071_v48 = vrot.slane %v3069_v49, 5  ;;  %v3075_v35 = vrot.slane %v3073_v40, 4  ;;  %v9426_v47 = vsel %vm8145_vm15, %v5276_v34, %v5277_v10  ;;  %v6589_v22 = vcombine.low %v5191_v9, %v5194_v25  ;;  %v7580_v34 = vld [vmem:[#allocation2 + $0xb4] sm:$0xff]   ;;  %v6297_v25 = vld [vmem:[#allocation2 + $0x9c] sm:$0xf] }
 0x19c   : > { %v6601_v52 = vcombine.low %v9418_v12, %v9426_v47  ;;  %v3081_v7 = vrot.slane %v3079_v18, 5  ;;  %v7634_v16 = vld [vmem:[#allocation2 + $0x8c] sm:$0x1]  ;;  %v3159_v24 = vshll.u32 %v6297_v25, 16  ;;  %v7636_v18 = vld [vmem:[#allocation2 + $0xa0] sm:$0xf] }
 0x19d   : > { %v3076_v55 = vor.u32 %v3075_v35, %v3071_v48  ;;  %v3123_v35 = vrot.slane %v3121_v51, 4 }
 0x19f   : > { %7071 = vmatmul.mubr.msk.bf16.gmra.mrb[16].mxu1 %vm1494_vm7, %v7575_v27  ;;  %v6600_v27 = vcombine.low %v9407_v50, %v9414_v1  ;;  %7225 = vmatmul.mubr.msk.bf16.vlgmr.msra.gmra.mrb[0].mxu0 %vm1494_vm7, %v6587_v17  ;;  %v6291_v17 = vld [vmem:[#allocation2 + $0x84] sm:$0xf]  ;;  %v3077_v13 = vrot.slane %v3076_v55, 4  ;;  %v3156_v55 = vshrl.u32 %v6297_v25, 16 }
 0x1a0   : > { %7074 = vmatprep.mubr.msk.bf16.mxu1 %vm1494_vm7, %v7576_v8  ;;  %v7577_v8 = vld [vmem:[#allocation2 + $0x90] sm:$0xff]   ;;  %7228 = vmatprep.mubr.msk.bf16.mxu0 %vm1494_vm7, %v6588_v31  ;;  %v3108_v49 = vshrl.u32 %v6291_v17, 16  ;;  %v3111_v40 = vshll.u32 %v6291_v17, 16 }
 0x1a1   : > { %v6294_v31 = vld [vmem:[#allocation2 + $0x90] sm:$0xf]  ;;  %v3082_v17 = vsel %vm7838_vm9, %v3077_v13, %v3081_v7  ;;  %v9455_v7 = vrot.slane %v3141_v56, 5  ;;  %v7639_v56 = vld [vmem:[#allocation2 + $0xac] sm:$0xf] }
 0x1a2   : > { %v3110_v10 = vrot.slane %v3108_v49, 4  ;;  %v3113_v3 = vrot.slane %v3111_v40, 5  ;;  %v3135_v9 = vshll.u32 %v6294_v31, 16  ;;  %v3165_v49 = vshll.u32 %v7636_v18, 16 }
 0x1a3   : > { %v3169_v40 = vshrl.u32 %v7636_v18, 16 }
 0x1a4   : > { %v3114_v6 = vor.u32 %v3113_v3, %v3110_v10  ;;  %v3137_v51 = vrot.slane %v3135_v9, 5  ;;  %v3161_v10 = vrot.slane %v3159_v24, 5  ;;  %v9461_v3 = vrot.slane %v3165_v49, 5  ;;  %v7637_v9 = vld [vmem:[#allocation2 + $0x98] sm:$0x1] }
 0x1a5   : > { %v3151_v25 = vshll.u32 %v7637_v9, 16 }
 0x1a6   : > { %v3115_v2 = vrot.slane %v3114_v6, 4  ;;  %v3204_v6 = vshrl.u32 %v6303_v29, 16 }
 0x1a7   : > { %7075 = vmatmul.mubr.msk.bf16.gmra.mrb[20].mxu1 %vm1494_vm7, %v7577_v8  ;;  %7229 = vmatmul.mubr.msk.bf16.gmra.mrb[4].mxu0 %vm1494_vm7, %v6589_v22  ;;  %v3132_v8 = vshrl.u32 %v6294_v31, 16  ;;  %v3127_v22 = vshll.u32 %v7634_v16, 16 }
 0x1a8   : > { %7078 = vmatprep.mubr.msk.bf16.mxu1 %vm1494_vm7, %v7578_v4  ;;  %7232 = vmatprep.mubr.msk.bf16.mxu0 %vm1494_vm7, %v6590_v30  ;;  %v3072_v4 = vsel %vm7838_vm9, %v3067_v21, %v3071_v48  ;;  %v3145_v30 = vshrl.u32 %v7635_v15, 16  ;;  %v3124_v48 = vor.u32 %v3123_v35, %v9442_v58  ;;  %v7581_v21 = vld [vmem:[#allocation2 + $0xc0] sm:$0xff]   ;;  %v3171_v35 = vrot.slane %v3169_v40, 4 }
 0x1a9   : > { %v3134_v14 = vrot.slane %v3132_v8, 4  ;;  %v6318_v31 = vcombine.low %v3072_v4, %v3082_v17  ;;  %v3129_v13 = vrot.slane %v3127_v22, 5  ;;  %v6300_v8 = vld [vmem:[#allocation2 + $0xa8] sm:$0xf]  ;;  %v7638_v17 = vld [vmem:[#allocation2 + $0xa4] sm:$0x1]  ;;  %v3120_v24 = vsel %vm7838_vm9, %v3115_v2, %v9442_v58 }
 0x1aa   : > { %v3125_v54 = vrot.slane %v3124_v48, 4  ;;  %v3175_v16 = vshll.u32 %v7638_v17, 16  ;;  %v3180_v22 = vshrl.u32 %v6300_v8, 16  ;;  %v3183_v15 = vshll.u32 %v6300_v8, 16 }
 0x1ab   : > { %v3153_v40 = vrot.slane %v3151_v25, 5  ;;  %v3207_v48 = vshll.u32 %v6303_v29, 16 }
 0x1ac   : > { %v3130_v18 = vsel %vm7838_vm9, %v3125_v54, %v3129_v13  ;;  %v3206_v54 = vrot.slane %v3204_v6, 4 }
 0x1ad   : > { %v6320_v2 = vcombine.low %v3120_v24, %v3130_v18 }
 0x1af   : > { %7079 = vmatmul.mubr.msk.bf16.gmra.mrb[24].mxu1 %vm1494_vm7, %v7579_v0  ;;  %7233 = vmatmul.mubr.msk.bf16.gmra.mrb[8].mxu0 %vm1494_vm7, %v6591_v53  ;;  %v3147_v0 = vrot.slane %v3145_v30, 4  ;;  %v3138_v53 = vor.u32 %v3137_v51, %v3134_v14  ;;  %v3189_v30 = vshll.u32 %v7639_v56, 16  ;;  %v7640_v14 = vld [vmem:[#allocation2 + $0xb8] sm:$0xf] }
 0x1b0   : > { %7082 = vmatprep.mubr.msk.bf16.mxu1 %vm1494_vm7, %v7580_v34  ;;  %7236 = vmatprep.mubr.msk.bf16.mxu0 %vm1494_vm7, %v6592_v38  ;;  %v3158_v34 = vrot.slane %v3156_v55, 4  ;;  %v3172_v38 = vor.u32 %v3171_v35, %v9461_v3  ;;  %v3193_v55 = vshrl.u32 %v7639_v56, 16  ;;  %v3213_v51 = vshll.u32 %v7640_v14, 16 }
 0x1b1   : > { %v3148_v4 = vor.u32 %v3147_v0, %v9455_v7  ;;  %v3139_v49 = vrot.slane %v3138_v53, 4  ;;  %v3177_v0 = vrot.slane %v3175_v16, 5  ;;  %v3191_v35 = vrot.slane %v3189_v30, 5  ;;  %v7643_v30 = vld [vmem:[#allocation2 + $0xbc] sm:$0x1] }
 0x1b2   : > { %v3162_v19 = vor.u32 %v3161_v10, %v3158_v34  ;;  %v3182_v34 = vrot.slane %v3180_v22, 4  ;;  %v3185_v10 = vrot.slane %v3183_v15, 5  ;;  %v3173_v13 = vrot.slane %v3172_v38, 4  ;;  %v7642_v15 = vld [vmem:[#allocation2 + $0xc4] sm:$0xf] }
 0x1b3   : > { %v3195_v8 = vrot.slane %v3193_v55, 4  ;;  %v3209_v53 = vrot.slane %v3207_v48, 5  ;;  %v3215_v9 = vrot.slane %v3213_v51, 5  ;;  %v3231_v22 = vshll.u32 %v6306_v5, 16 }
 0x1b4   : > { %v3163_v58 = vrot.slane %v3162_v19, 4  ;;  %v3186_v17 = vor.u32 %v3185_v10, %v3182_v34  ;;  %v3237_v29 = vshll.u32 %v7642_v15, 16  ;;  %v3241_v19 = vshrl.u32 %v7642_v15, 16 }
 0x1b5   : > { %v3196_v16 = vor.u32 %v3195_v8, %v3191_v35  ;;  %v3210_v38 = vor.u32 %v3209_v53, %v3206_v54  ;;  %v3233_v6 = vrot.slane %v3231_v22, 5 }
 0x1b6   : > { %v3187_v24 = vrot.slane %v3186_v17, 4  ;;  %v3239_v48 = vrot.slane %v3237_v29, 5 }
 0x1b7   : > { %7083 = vmatmul.mubr.msk.bf16.gmra.mrb[28].mxu1 %vm1494_vm7, %v7581_v21  ;;  %v3217_v21 = vshrl.u32 %v7640_v14, 16  ;;  %7237 = vmatmul.mubr.msk.bf16.gmra.mrb[12].mxu0 %vm1494_vm7, %v6593_v62  ;;  %v3144_v62 = vsel %vm7838_vm9, %v3139_v49, %v9455_v7  ;;  %v3228_v7 = vshrl.u32 %v6306_v5, 16  ;;  %v3197_v18 = vrot.slane %v3196_v16, 4 }
 0x1b8   : > { %7104 = vmatprep.mubr.msk.bf16.mxu1 %vm1494_vm7, %v6318_v31  ;;  %v3149_v31 = vrot.slane %v3148_v4, 4  ;;  %7240 = vmatprep.mubr.msk.bf16.mxu0 %vm1494_vm7, %v6594_v26  ;;  %v3168_v26 = vsel %vm7838_vm9, %v3163_v58, %v9461_v3  ;;  %v3178_v4 = vsel %vm7838_vm9, %v3173_v13, %v3177_v0  ;;  %v3201_v49 = vrot.slane %v3199_v45, 5 }
 0x1b9   : > { %v3219_v60 = vrot.slane %v3217_v21, 4  ;;  %v6322_v55 = vcombine.low %v3168_v26, %v3178_v4  ;;  %v3243_v14 = vrot.slane %v3241_v19, 4  ;;  %v3211_v51 = vrot.slane %v3210_v38, 4 }
 0x1ba   : > { %v3154_v25 = vsel %vm7838_vm9, %v3149_v31, %v3153_v40  ;;  %v3230_v40 = vrot.slane %v3228_v7, 4  ;;  %v3192_v20 = vsel %vm7838_vm9, %v3187_v24, %v3191_v35  ;;  %v3202_v44 = vsel %vm7838_vm9, %v3197_v18, %v3201_v49 }
 0x1bb   : > { %v3220_v56 = vor.u32 %v3219_v60, %v3215_v9  ;;  %v6321_v3 = vcombine.low %v3144_v62, %v3154_v25  ;;  %v3244_v59 = vor.u32 %v3243_v14, %v3239_v48  ;;  %v3216_v0 = vsel %vm7838_vm9, %v3211_v51, %v3215_v9 }
 0x1bc   : > { %v6323_v10 = vcombine.low %v3192_v20, %v3202_v44 }
 0x1bd   : > { %v3221_v21 = vrot.slane %v3220_v56, 4  ;;  %v3245_v35 = vrot.slane %v3244_v59, 4 }
 0x1bf   : > { %7105 = vmatmul.mubr.msk.bf16.vlgmr.msra.gmra.mrb[16].mxu1 %vm1494_vm7, %v9278_v61  ;;  %v3223_v61 = vshll.u32 %v7643_v30, 16  ;;  %7241 = vmatmul.mubr.msk.bf16.gmra.mrb[16].mxu0 %vm1494_vm7, %v6595_v57  ;;  %v3234_v57 = vor.u32 %v3233_v6, %v3230_v40 }
 0x1c0   : > { %7108 = vmatprep.mubr.msk.bf16.mxu1 %vm1494_vm7, %v6320_v2  ;;  %7244 = vmatprep.mubr.msk.bf16.mxu0 %vm1494_vm7, %v6596_v39  ;;  %v3247_v39 = vshll.u32 %v7644_v32, 16 }
 0x1c1   : > { %v3225_v31 = vrot.slane %v3223_v61, 5  ;;  %v3235_v13 = vrot.slane %v3234_v57, 4 }
 0x1c2   : > { %v3249_v8 = vrot.slane %v3247_v39, 5 }
 0x1c3   : > { %v3226_v34 = vsel %vm7838_vm9, %v3221_v21, %v3225_v31  ;;  %v3240_v42 = vsel %vm7838_vm9, %v3235_v13, %v3239_v48 }
 0x1c4   : > { %v6324_v58 = vcombine.low %v3216_v0, %v3226_v34  ;;  %v3250_v28 = vsel %vm7838_vm9, %v3245_v35, %v3249_v8 }
 0x1c7   : > { %7109 = vmatmul.mubr.msk.bf16.gmra.mrb[20].mxu1 %vm1494_vm7, %v6321_v3  ;;  %7245 = vmatmul.mubr.msk.bf16.gmra.mrb[20].mxu0 %vm1494_vm7, %v6597_v41  ;;  %v6325_v41 = vcombine.low %v3240_v42, %v3250_v28 }
 0x1c8   : > { %7112 = vmatprep.mubr.msk.bf16.mxu1 %vm1494_vm7, %v6322_v55  ;;  %7248 = vmatprep.mubr.msk.bf16.mxu0 %vm1494_vm7, %v6598_v46 }
 0x1cf   : > { %7113 = vmatmul.mubr.msk.bf16.gmra.mrb[24].mxu1 %vm1494_vm7, %v6323_v10  ;;  %7249 = vmatmul.mubr.msk.bf16.gmra.mrb[24].mxu0 %vm1494_vm7, %v6599_v36 }
 0x1d0   : > { %7116 = vmatprep.mubr.msk.bf16.mxu1 %vm1494_vm7, %v6324_v58  ;;  %7252 = vmatprep.mubr.msk.bf16.mxu0 %vm1494_vm7, %v6600_v27 }
 0x1d7   : > { %7117 = vmatmul.mubr.msk.bf16.gmra.mrb[28].mxu1 %vm1494_vm7, %v6325_v41  ;;  %7253 = vmatmul.mubr.msk.bf16.gmra.mrb[28].mxu0 %vm1494_vm7, %v6601_v52 }
 0x252   : > { %v7056_v33 = vpop.f32.mrb[0].mxu1 }
 0x253   : > { %v2660_v37 = vpop.f32.mrb[1].mxu1 }
 0x254   : > { %v7057_v63 = vpop.f32.mrb[2].mxu1 }
 0x255   : > { %v2663_v46 = vpop.f32.mrb[3].mxu1 }
 0x25a   : > { %v7060_v23 = vpop.f32.mrb[4].mxu1 }
 0x25b   : > { %v2676_v36 = vpop.f32.mrb[5].mxu1 }
 0x25c   : > { %v7061_v50 = vpop.f32.mrb[6].mxu1 }
 0x25d   : > { %v2679_v1 = vpop.f32.mrb[7].mxu1 }
 0x262   : > { %v9546_v12 = vpop.f32.mrb[8].mxu1 }
 0x263   : > { %v9548_v27 = vpop.f32.mrb[9].mxu1 }
 0x264   : > { %v9550_v47 = vpop.f32.mrb[10].mxu1 }
 0x265   : > { %v9552_v52 = vpop.f32.mrb[11].mxu1 }
 0x26a   : > { %v9554_v2 = vpop.f32.mrb[12].mxu1 }
 0x26b   : > { %v9556_v54 = vpop.f32.mrb[13].mxu1 }
 0x26c   : > { %v9558_v53 = vpop.f32.mrb[14].mxu1 }
 0x26d   : > { %v9560_v9 = vpop.f32.mrb[15].mxu1 }
 0x272   : > { %v7226_v60 = vpop.f32.mrb[0].mxu0 }
 0x273   : > { %v7258_v5 = vadd.f32 %v7226_v60, %v7056_v33  ;;  %v5414_v62 = vpop.f32.mrb[1].mxu0 }
 0x274   : > { %v7259_v25 = vadd.f32 %v5414_v62, %v2660_v37  ;;  %v7227_v11 = vpop.f32.mrb[2].mxu0 }
 0x275   : > { %v6688_v45 = vpack.c.bf16 %v7258_v5, %v7258_v5  ;;  %v7260_v26 = vadd.f32 %v7227_v11, %v7057_v63  ;;  %v5417_v4 = vpop.f32.mrb[3].mxu0  ;;  %v5805_v22 = vmul.f32 %v7258_v5, %v7258_v5  ;;  %v5737_v3 = vsel %vm1494_vm7, %v7258_v5, 0.0 }
 0x276   : > { %v6686_v17 = vpack.c.bf16 %v7259_v25, %v7259_v25  ;;  %v5803_v16 = vmul.f32 %v7259_v25, %v7259_v25  ;;  %v7261_v7 = vadd.f32 %v5417_v4, %v2663_v46  ;;  %v5734_v29 = vsel %vm1494_vm7, %v7259_v25, 0.0 }
 0x277   : > { %5704 = vst.msk [vmem:[%s9567_s22 + $0x8] sm:$0xf] %vm239_vm1, %v6688_v45  ;;  %v6689_v15 = vpack.c.bf16 %v7260_v26, %v7260_v26  ;;  %v5806_v30 = vmul.f32 %v7260_v26, %v7260_v26  ;;  %v5838_v14 = vsel %vm1494_vm7, %v5805_v22, 0.0  ;;  %v5739_v31 = vsel %vm1494_vm7, %v7260_v26, 0.0 }
 0x278   : > { %5702 = vst.msk [vmem:[%s9567_s22] sm:$0xf] %vm239_vm1, %v6686_v17  ;;  %v6687_v19 = vpack.c.bf16 %v7261_v7, %v7261_v7  ;;  %v5735_v38 = vsel %vm1494_vm7, %v7261_v7, 0.0  ;;  %v5804_v56 = vmul.f32 %v7261_v7, %v7261_v7  ;;  %v5835_v55 = vsel %vm1494_vm7, %v5803_v16, 0.0 }
 0x279   : > { %5705 = vst.msk [vmem:[%s9567_s22 + $0xc] sm:$0xf] %vm239_vm1, %v6689_v15  ;;  %v5736_v61 = vadd.f32 %v5735_v38, %v5734_v29  ;;  %v5840_v20 = vsel %vm1494_vm7, %v5806_v30, 0.0 }
 0x27a   : > { %5703 = vst.msk [vmem:[%s9567_s22 + $0x4] sm:$0xf] %vm239_vm1, %v6687_v19  ;;  %v5836_v24 = vsel %vm1494_vm7, %v5804_v56, 0.0  ;;  %v7230_v18 = vpop.f32.mrb[4].mxu0 }
 0x27b   : > { %v5738_v49 = vadd.f32 %v5737_v3, %v5736_v61  ;;  %v5837_v40 = vadd.f32 %v5836_v24, %v5835_v55  ;;  %v7262_v6 = vadd.f32 %v7230_v18, %v7060_v23  ;;  %v5430_v48 = vpop.f32.mrb[5].mxu0 }
 0x27c   : > { %v7263_v51 = vadd.f32 %v5430_v48, %v2676_v36  ;;  %v7231_v21 = vpop.f32.mrb[6].mxu0 }
 0x27d   : > { %v5839_v44 = vadd.f32 %v5838_v14, %v5837_v40  ;;  %v6692_v57 = vpack.c.bf16 %v7262_v6, %v7262_v6  ;;  %v5433_v59 = vpop.f32.mrb[7].mxu0  ;;  %v5740_v39 = vadd.f32 %v5739_v31, %v5738_v49  ;;  %v7264_v58 = vadd.f32 %v7231_v21, %v7061_v50 }
 0x27e   : > { %v6690_v32 = vpack.c.bf16 %v7263_v51, %v7263_v51  ;;  %v5741_v0 = vsel %vm1494_vm7, %v7263_v51, 0.0  ;;  %v5807_v34 = vmul.f32 %v7263_v51, %v7263_v51  ;;  %v7265_v13 = vadd.f32 %v5433_v59, %v2679_v1 }
 0x27f   : > { %5708 = vst.msk [vmem:[%s9567_s22 + $0x18] sm:$0xf] %vm239_vm1, %v6692_v57  ;;  %v5841_v10 = vadd.f32 %v5840_v20, %v5839_v44  ;;  %v5742_v35 = vadd.f32 %v5741_v0, %v5740_v39  ;;  %v5809_v42 = vmul.f32 %v7262_v6, %v7262_v6  ;;  %v6693_v41 = vpack.c.bf16 %v7264_v58, %v7264_v58 }
 0x280   : > { %5706 = vst.msk [vmem:[%s9567_s22 + $0x10] sm:$0xf] %vm239_vm1, %v6690_v32  ;;  %v5842_v8 = vsel %vm1494_vm7, %v5807_v34, 0.0  ;;  %v6691_v43 = vpack.c.bf16 %v7265_v13, %v7265_v13  ;;  %v5743_v33 = vsel %vm1494_vm7, %v7265_v13, 0.0  ;;  %v5808_v37 = vmul.f32 %v7265_v13, %v7265_v13 }
 0x281   : > { %v5843_v28 = vadd.f32 %v5842_v8, %v5841_v10  ;;  %5709 = vst.msk [vmem:[%s9567_s22 + $0x1c] sm:$0xf] %vm239_vm1, %v6693_v41  ;;  %v5744_v46 = vadd.f32 %v5743_v33, %v5742_v35  ;;  %v5745_v50 = vsel %vm1494_vm7, %v7262_v6, 0.0  ;;  %v5810_v1 = vmul.f32 %v7264_v58, %v7264_v58 }
 0x282   : > { %v7234_v63 = vpop.f32.mrb[8].mxu0  ;;  %5707 = vst.msk [vmem:[%s9567_s22 + $0x14] sm:$0xf] %vm239_vm1, %v6691_v43  ;;  %v5844_v60 = vsel %vm1494_vm7, %v5808_v37, 0.0  ;;  %v5846_v25 = vsel %vm1494_vm7, %v5809_v42, 0.0 }
 0x283   : > { %v7266_v23 = vadd.f32 %v7234_v63, %v9546_v12  ;;  %v5446_v36 = vpop.f32.mrb[9].mxu0  ;;  %v5746_v11 = vadd.f32 %v5745_v50, %v5744_v46  ;;  %v5845_v45 = vadd.f32 %v5844_v60, %v5843_v28  ;;  %v5747_v12 = vsel %vm1494_vm7, %v7264_v58, 0.0 }
 0x284   : > { %v7267_v5 = vadd.f32 %v5446_v36, %v9548_v27  ;;  %v7235_v62 = vpop.f32.mrb[10].mxu0  ;;  %v5848_v19 = vsel %vm1494_vm7, %v5810_v1, 0.0 }
 0x285   : > { %v6696_v26 = vpack.c.bf16 %v7266_v23, %v7266_v23  ;;  %v5449_v4 = vpop.f32.mrb[11].mxu0  ;;  %v5847_v22 = vadd.f32 %v5846_v25, %v5845_v45  ;;  %v5748_v15 = vadd.f32 %v5747_v12, %v5746_v11  ;;  %v7268_v27 = vadd.f32 %v7235_v62, %v9550_v47 }
 0x286   : > { %v6694_v17 = vpack.c.bf16 %v7267_v5, %v7267_v5  ;;  %v5749_v16 = vsel %vm1494_vm7, %v7267_v5, 0.0  ;;  %v5811_v7 = vmul.f32 %v7267_v5, %v7267_v5  ;;  %v7269_v29 = vadd.f32 %v5449_v4, %v9552_v52 }
 0x287   : > { %5712 = vst.msk [vmem:[%s9567_s22 + $0x28] sm:$0xf] %vm239_vm1, %v6696_v26  ;;  %v5813_v56 = vmul.f32 %v7266_v23, %v7266_v23  ;;  %v5750_v30 = vadd.f32 %v5749_v16, %v5748_v15  ;;  %v5849_v61 = vadd.f32 %v5848_v19, %v5847_v22  ;;  %v6697_v3 = vpack.c.bf16 %v7268_v27, %v7268_v27 }
 0x288   : > { %5710 = vst.msk [vmem:[%s9567_s22 + $0x20] sm:$0xf] %vm239_vm1, %v6694_v17  ;;  %v5850_v38 = vsel %vm1494_vm7, %v5811_v7, 0.0  ;;  %v6695_v55 = vpack.c.bf16 %v7269_v29, %v7269_v29  ;;  %v5751_v24 = vsel %vm1494_vm7, %v7269_v29, 0.0  ;;  %v5812_v18 = vmul.f32 %v7269_v29, %v7269_v29 }
 0x289   : > { %v5851_v40 = vadd.f32 %v5850_v38, %v5849_v61  ;;  %5713 = vst.msk [vmem:[%s9567_s22 + $0x2c] sm:$0xf] %vm239_vm1, %v6697_v3  ;;  %v5752_v47 = vadd.f32 %v5751_v24, %v5750_v30  ;;  %v5753_v48 = vsel %vm1494_vm7, %v7266_v23, 0.0  ;;  %v5814_v14 = vmul.f32 %v7268_v27, %v7268_v27 }
 0x28a   : > { %v7238_v49 = vpop.f32.mrb[12].mxu0  ;;  %5711 = vst.msk [vmem:[%s9567_s22 + $0x24] sm:$0xf] %vm239_vm1, %v6695_v55  ;;  %v5852_v51 = vsel %vm1494_vm7, %v5812_v18, 0.0  ;;  %v5854_v20 = vsel %vm1494_vm7, %v5813_v56, 0.0 }
 0x28b   : > { %v7270_v52 = vadd.f32 %v7238_v49, %v9554_v2  ;;  %v5462_v6 = vpop.f32.mrb[13].mxu0  ;;  %v5754_v44 = vadd.f32 %v5753_v48, %v5752_v47  ;;  %v5853_v57 = vadd.f32 %v5852_v51, %v5851_v40  ;;  %v5755_v2 = vsel %vm1494_vm7, %v7268_v27, 0.0 }
 0x28c   : > { %v7271_v21 = vadd.f32 %v5462_v6, %v9556_v54  ;;  %v7239_v31 = vpop.f32.mrb[14].mxu0  ;;  %v5856_v8 = vsel %vm1494_vm7, %v5814_v14, 0.0 }
 0x28d   : > { %v6700_v59 = vpack.c.bf16 %v7270_v52, %v7270_v52  ;;  %v5465_v32 = vpop.f32.mrb[15].mxu0  ;;  %v5855_v10 = vadd.f32 %v5854_v20, %v5853_v57  ;;  %v5756_v58 = vadd.f32 %v5755_v2, %v5754_v44  ;;  %v7272_v54 = vadd.f32 %v7239_v31, %v9558_v53 }
 0x28e   : > { %v6698_v39 = vpack.c.bf16 %v7271_v21, %v7271_v21  ;;  %v5757_v0 = vsel %vm1494_vm7, %v7271_v21, 0.0  ;;  %v5815_v34 = vmul.f32 %v7271_v21, %v7271_v21  ;;  %v7273_v13 = vadd.f32 %v5465_v32, %v9560_v9 }
 0x28f   : > { %5716 = vst.msk [vmem:[%s9567_s22 + $0x38] sm:$0xf] %vm239_vm1, %v6700_v59  ;;  %v5817_v41 = vmul.f32 %v7270_v52, %v7270_v52  ;;  %v5758_v43 = vadd.f32 %v5757_v0, %v5756_v58  ;;  %v5857_v33 = vadd.f32 %v5856_v8, %v5855_v10  ;;  %v6701_v37 = vpack.c.bf16 %v7272_v54, %v7272_v54 }
 0x290   : > { %5714 = vst.msk [vmem:[%s9567_s22 + $0x30] sm:$0xf] %vm239_vm1, %v6698_v39  ;;  %v5858_v42 = vsel %vm1494_vm7, %v5815_v34, 0.0  ;;  %v6699_v46 = vpack.c.bf16 %v7273_v13, %v7273_v13  ;;  %v5759_v53 = vsel %vm1494_vm7, %v7273_v13, 0.0  ;;  %v5816_v23 = vmul.f32 %v7273_v13, %v7273_v13 }
 0x291   : > { %v5859_v50 = vadd.f32 %v5858_v42, %v5857_v33  ;;  %5717 = vst.msk [vmem:[%s9567_s22 + $0x3c] sm:$0xf] %vm239_vm1, %v6701_v37  ;;  %v5760_v1 = vadd.f32 %v5759_v53, %v5758_v43  ;;  %v5761_v62 = vsel %vm1494_vm7, %v7270_v52, 0.0  ;;  %v5818_v25 = vmul.f32 %v7272_v54, %v7272_v54 }
 0x292   : > { %v7106_v35 = vpop.f32.mrb[16].mxu1  ;;  %v7242_v9 = vpop.f32.mrb[16].mxu0  ;;  %5715 = vst.msk [vmem:[%s9567_s22 + $0x34] sm:$0xf] %vm239_vm1, %v6699_v46  ;;  %v5860_v11 = vsel %vm1494_vm7, %v5816_v23, 0.0  ;;  %v5862_v4 = vsel %vm1494_vm7, %v5817_v41, 0.0 }
 0x293   : > { %v3450_v28 = vpop.f32.mrb[17].mxu1  ;;  %v7274_v60 = vadd.f32 %v7242_v9, %v7106_v35  ;;  %v5478_v5 = vpop.f32.mrb[17].mxu0  ;;  %v5762_v12 = vadd.f32 %v5761_v62, %v5760_v1  ;;  %v5861_v17 = vadd.f32 %v5860_v11, %v5859_v50  ;;  %v5763_v22 = vsel %vm1494_vm7, %v7272_v54, 0.0 }
 0x294   : > { %v7107_v63 = vpop.f32.mrb[18].mxu1  ;;  %v7275_v45 = vadd.f32 %v5478_v5, %v3450_v28  ;;  %v7243_v26 = vpop.f32.mrb[18].mxu0  ;;  %v5864_v3 = vsel %vm1494_vm7, %v5818_v25, 0.0 }
 0x295   : > { %v3453_v36 = vpop.f32.mrb[19].mxu1  ;;  %v6704_v16 = vpack.c.bf16 %v7274_v60, %v7274_v60  ;;  %v5481_v7 = vpop.f32.mrb[19].mxu0  ;;  %v5863_v19 = vadd.f32 %v5862_v4, %v5861_v17  ;;  %v5764_v38 = vadd.f32 %v5763_v22, %v5762_v12  ;;  %v7276_v56 = vadd.f32 %v7243_v26, %v7107_v63 }
 0x296   : > { %v6702_v15 = vpack.c.bf16 %v7275_v45, %v7275_v45  ;;  %v5765_v27 = vsel %vm1494_vm7, %v7275_v45, 0.0  ;;  %v5819_v29 = vmul.f32 %v7275_v45, %v7275_v45  ;;  %v7277_v30 = vadd.f32 %v5481_v7, %v3453_v36 }
 0x297   : > { %5720 = vst.msk [vmem:[%s9567_s22 + $0x48] sm:$0xf] %vm239_vm1, %v6704_v16  ;;  %v5821_v18 = vmul.f32 %v7274_v60, %v7274_v60  ;;  %v5766_v49 = vadd.f32 %v5765_v27, %v5764_v38  ;;  %v5865_v40 = vadd.f32 %v5864_v3, %v5863_v19  ;;  %v6705_v47 = vpack.c.bf16 %v7276_v56, %v7276_v56 }
 0x298   : > { %5718 = vst.msk [vmem:[%s9567_s22 + $0x40] sm:$0xf] %vm239_vm1, %v6702_v15  ;;  %v5866_v55 = vsel %vm1494_vm7, %v5819_v29, 0.0  ;;  %v6703_v6 = vpack.c.bf16 %v7277_v30, %v7277_v30  ;;  %v5767_v48 = vsel %vm1494_vm7, %v7277_v30, 0.0  ;;  %v5820_v14 = vmul.f32 %v7277_v30, %v7277_v30 }
 0x299   : > { %v5867_v31 = vadd.f32 %v5866_v55, %v5865_v40  ;;  %5721 = vst.msk [vmem:[%s9567_s22 + $0x4c] sm:$0xf] %vm239_vm1, %v6705_v47  ;;  %v5768_v20 = vadd.f32 %v5767_v48, %v5766_v49  ;;  %v5769_v59 = vsel %vm1494_vm7, %v7274_v60, 0.0  ;;  %v5822_v32 = vmul.f32 %v7276_v56, %v7276_v56 }
 0x29a   : > { %v7110_v61 = vpop.f32.mrb[20].mxu1  ;;  %v7246_v51 = vpop.f32.mrb[20].mxu0  ;;  %5719 = vst.msk [vmem:[%s9567_s22 + $0x44] sm:$0xf] %vm239_vm1, %v6703_v6  ;;  %v5868_v2 = vsel %vm1494_vm7, %v5820_v14, 0.0  ;;  %v5870_v34 = vsel %vm1494_vm7, %v5821_v18, 0.0 }
 0x29b   : > { %v3466_v24 = vpop.f32.mrb[21].mxu1  ;;  %v7278_v44 = vadd.f32 %v7246_v51, %v7110_v61  ;;  %v5494_v57 = vpop.f32.mrb[21].mxu0  ;;  %v5770_v10 = vadd.f32 %v5769_v59, %v5768_v20  ;;  %v5869_v58 = vadd.f32 %v5868_v2, %v5867_v31  ;;  %v5771_v35 = vsel %vm1494_vm7, %v7276_v56, 0.0 }
 0x29c   : > { %v7111_v52 = vpop.f32.mrb[22].mxu1  ;;  %v7279_v39 = vadd.f32 %v5494_v57, %v3466_v24  ;;  %v7247_v0 = vpop.f32.mrb[22].mxu0  ;;  %v5872_v46 = vsel %vm1494_vm7, %v5822_v32, 0.0 }
 0x29d   : > { %v3469_v21 = vpop.f32.mrb[23].mxu1  ;;  %v6708_v54 = vpack.c.bf16 %v7278_v44, %v7278_v44  ;;  %v5497_v13 = vpop.f32.mrb[23].mxu0  ;;  %v5871_v41 = vadd.f32 %v5870_v34, %v5869_v58  ;;  %v5772_v43 = vadd.f32 %v5771_v35, %v5770_v10  ;;  %v7280_v33 = vadd.f32 %v7247_v0, %v7111_v52 }
 0x29e   : > { %v6706_v8 = vpack.c.bf16 %v7279_v39, %v7279_v39  ;;  %v5773_v42 = vsel %vm1494_vm7, %v7279_v39, 0.0  ;;  %v5823_v28 = vmul.f32 %v7279_v39, %v7279_v39  ;;  %v7281_v37 = vadd.f32 %v5497_v13, %v3469_v21 }
 0x29f   : > { %5724 = vst.msk [vmem:[%s9567_s22 + $0x58] sm:$0xf] %vm239_vm1, %v6708_v54  ;;  %v5825_v9 = vmul.f32 %v7278_v44, %v7278_v44  ;;  %v5774_v36 = vadd.f32 %v5773_v42, %v5772_v43  ;;  %v5873_v50 = vadd.f32 %v5872_v46, %v5871_v41  ;;  %v6709_v1 = vpack.c.bf16 %v7280_v33, %v7280_v33 }
 0x2a0   : > { %5722 = vst.msk [vmem:[%s9567_s22 + $0x50] sm:$0xf] %vm239_vm1, %v6706_v8  ;;  %v5874_v53 = vsel %vm1494_vm7, %v5823_v28, 0.0  ;;  %v6707_v5 = vpack.c.bf16 %v7281_v37, %v7281_v37  ;;  %v5775_v62 = vsel %vm1494_vm7, %v7281_v37, 0.0  ;;  %v5824_v25 = vmul.f32 %v7281_v37, %v7281_v37 }
 0x2a1   : > { %v5875_v26 = vadd.f32 %v5874_v53, %v5873_v50  ;;  %5725 = vst.msk [vmem:[%s9567_s22 + $0x5c] sm:$0xf] %vm239_vm1, %v6709_v1  ;;  %v5776_v4 = vadd.f32 %v5775_v62, %v5774_v36  ;;  %v5777_v16 = vsel %vm1494_vm7, %v7278_v44, 0.0  ;;  %v5826_v7 = vmul.f32 %v7280_v33, %v7280_v33 }
 0x2a2   : > { %v7114_v63 = vpop.f32.mrb[24].mxu1  ;;  %v7250_v11 = vpop.f32.mrb[24].mxu0  ;;  %5723 = vst.msk [vmem:[%s9567_s22 + $0x54] sm:$0xf] %vm239_vm1, %v6707_v5  ;;  %v5876_v22 = vsel %vm1494_vm7, %v5824_v25, 0.0  ;;  %v5878_v29 = vsel %vm1494_vm7, %v5825_v9, 0.0 }
 0x2a3   : > { %v3482_v23 = vpop.f32.mrb[25].mxu1  ;;  %v7282_v12 = vadd.f32 %v7250_v11, %v7114_v63  ;;  %v5510_v17 = vpop.f32.mrb[25].mxu0  ;;  %v5778_v19 = vadd.f32 %v5777_v16, %v5776_v4  ;;  %v5877_v38 = vadd.f32 %v5876_v22, %v5875_v26  ;;  %v5779_v61 = vsel %vm1494_vm7, %v7280_v33, 0.0 }
 0x2a4   : > { %v7115_v60 = vpop.f32.mrb[26].mxu1  ;;  %v7283_v15 = vadd.f32 %v5510_v17, %v3482_v23  ;;  %v7251_v27 = vpop.f32.mrb[26].mxu0  ;;  %v5880_v6 = vsel %vm1494_vm7, %v5826_v7, 0.0 }
 0x2a5   : > { %v3485_v45 = vpop.f32.mrb[27].mxu1  ;;  %v6712_v56 = vpack.c.bf16 %v7282_v12, %v7282_v12  ;;  %v5513_v30 = vpop.f32.mrb[27].mxu0  ;;  %v5879_v18 = vadd.f32 %v5878_v29, %v5877_v38  ;;  %v5780_v49 = vadd.f32 %v5779_v61, %v5778_v19  ;;  %v7284_v40 = vadd.f32 %v7251_v27, %v7115_v60 }
 0x2a6   : > { %v6710_v3 = vpack.c.bf16 %v7283_v15, %v7283_v15  ;;  %v5781_v55 = vsel %vm1494_vm7, %v7283_v15, 0.0  ;;  %v5827_v24 = vmul.f32 %v7283_v15, %v7283_v15  ;;  %v7285_v47 = vadd.f32 %v5513_v30, %v3485_v45 }
 0x2a7   : > { %5728 = vst.msk [vmem:[%s9567_s22 + $0x68] sm:$0xf] %vm239_vm1, %v6712_v56  ;;  %v5829_v51 = vmul.f32 %v7282_v12, %v7282_v12  ;;  %v5782_v21 = vadd.f32 %v5781_v55, %v5780_v49  ;;  %v5881_v31 = vadd.f32 %v5880_v6, %v5879_v18  ;;  %v6713_v20 = vpack.c.bf16 %v7284_v40, %v7284_v40 }
 0x2a8   : > { %5726 = vst.msk [vmem:[%s9567_s22 + $0x60] sm:$0xf] %vm239_vm1, %v6710_v3  ;;  %v5882_v48 = vsel %vm1494_vm7, %v5827_v24, 0.0  ;;  %v6711_v57 = vpack.c.bf16 %v7285_v47, %v7285_v47  ;;  %v5783_v59 = vsel %vm1494_vm7, %v7285_v47, 0.0  ;;  %v5828_v32 = vmul.f32 %v7285_v47, %v7285_v47 }
 0x2a9   : > { %v5883_v0 = vadd.f32 %v5882_v48, %v5881_v31  ;;  %5729 = vst.msk [vmem:[%s9567_s22 + $0x6c] sm:$0xf] %vm239_vm1, %v6713_v20  ;;  %v5784_v34 = vadd.f32 %v5783_v59, %v5782_v21  ;;  %v5785_v54 = vsel %vm1494_vm7, %v7282_v12, 0.0  ;;  %v5830_v13 = vmul.f32 %v7284_v40, %v7284_v40  ;;  %v5904_v31 = vld [vmem:[%s9542_s19] sm:$0x3] }
 0x2aa   : > { %v7118_v52 = vpop.f32.mrb[28].mxu1  ;;  %v7254_v2 = vpop.f32.mrb[28].mxu0  ;;  %5727 = vst.msk [vmem:[%s9567_s22 + $0x64] sm:$0xf] %vm239_vm1, %v6711_v57  ;;  %v5884_v35 = vsel %vm1494_vm7, %v5828_v32, 0.0  ;;  %v5886_v28 = vsel %vm1494_vm7, %v5829_v51, 0.0 }
 0x2ab   : > { %v3498_v14 = vpop.f32.mrb[29].mxu1  ;;  %v7286_v10 = vadd.f32 %v7254_v2, %v7118_v52  ;;  %v5526_v58 = vpop.f32.mrb[29].mxu0  ;;  %v5786_v41 = vadd.f32 %v5785_v54, %v5784_v34  ;;  %v5885_v43 = vadd.f32 %v5884_v35, %v5883_v0  ;;  %v5787_v63 = vsel %vm1494_vm7, %v7284_v40, 0.0 }
 0x2ac   : > { %v7119_v44 = vpop.f32.mrb[30].mxu1  ;;  %v7287_v8 = vadd.f32 %v5526_v58, %v3498_v14  ;;  %v7255_v42 = vpop.f32.mrb[30].mxu0  ;;  %v5888_v60 = vsel %vm1494_vm7, %v5830_v13, 0.0 }
 0x2ad   : > { %v3501_v39 = vpop.f32.mrb[31].mxu1  ;;  %v6716_v33 = vpack.c.bf16 %v7286_v10, %v7286_v10  ;;  %v5529_v37 = vpop.f32.mrb[31].mxu0  ;;  %v5887_v9 = vadd.f32 %v5886_v28, %v5885_v43  ;;  %v5788_v36 = vadd.f32 %v5787_v63, %v5786_v41  ;;  %v7288_v50 = vadd.f32 %v7255_v42, %v7119_v44 }
 0x2ae   : > { %v6714_v46 = vpack.c.bf16 %v7287_v8, %v7287_v8  ;;  %v5789_v53 = vsel %vm1494_vm7, %v7287_v8, 0.0  ;;  %v5831_v23 = vmul.f32 %v7287_v8, %v7287_v8  ;;  %v7289_v1 = vadd.f32 %v5529_v37, %v3501_v39 }
 0x2af   : > { %5732 = vst.msk [vmem:[%s9567_s22 + $0x78] sm:$0xf] %vm239_vm1, %v6716_v33  ;;  %v5790_v62 = vadd.f32 %v5789_v53, %v5788_v36  ;;  %v5889_v25 = vadd.f32 %v5888_v60, %v5887_v9  ;;  %v6717_v11 = vpack.c.bf16 %v7288_v50, %v7288_v50  ;;  %v5833_v45 = vmul.f32 %v7286_v10, %v7286_v10 }
 0x2b0   : > { %5730 = vst.msk [vmem:[%s9567_s22 + $0x70] sm:$0xf] %vm239_vm1, %v6714_v46  ;;  %v5890_v5 = vsel %vm1494_vm7, %v5831_v23, 0.0  ;;  %v6715_v26 = vpack.c.bf16 %v7289_v1, %v7289_v1  ;;  %v5791_v4 = vsel %vm1494_vm7, %v7289_v1, 0.0  ;;  %v5832_v12 = vmul.f32 %v7289_v1, %v7289_v1 }
 0x2b1   : > { %v5891_v17 = vadd.f32 %v5890_v5, %v5889_v25  ;;  %5733 = vst.msk [vmem:[%s9567_s22 + $0x7c] sm:$0xf] %vm239_vm1, %v6717_v11  ;;  %v5792_v16 = vadd.f32 %v5791_v4, %v5790_v62  ;;  %v5793_v7 = vsel %vm1494_vm7, %v7286_v10, 0.0  ;;  %v5834_v22 = vmul.f32 %v7288_v50, %v7288_v50 }
 0x2b2   : > { %5731 = vst.msk [vmem:[%s9567_s22 + $0x74] sm:$0xf] %vm239_vm1, %v6715_v26  ;;  %v5892_v15 = vsel %vm1494_vm7, %v5832_v12, 0.0  ;;  %v5894_v19 = vsel %vm1494_vm7, %v5833_v45, 0.0  ;;  %v5795_v38 = vsel %vm1494_vm7, %v7288_v50, 0.0  ;;  %vm5905_vm1 = vcmask 1040384  }
 0x2b3   : > { %v5794_v27 = vadd.f32 %v5793_v7, %v5792_v16  ;;  %v5893_v29 = vadd.f32 %v5892_v15, %v5891_v17  ;;  %v5896_v61 = vsel %vm1494_vm7, %v5834_v22, 0.0 }
 0x2b5   : > { %v5796_v56 = vadd.f32 %v5795_v38, %v5794_v27  ;;  %v5895_v30 = vadd.f32 %v5894_v19, %v5893_v29 }
 0x2b7   : > { %v5797_v3 = vrot.slane %v5796_v56, 4  ;;  %v5897_v55 = vadd.f32 %v5896_v61, %v5895_v30 }
 0x2b9   : > { %v5798_v24 = vadd.f32 %v5797_v3, %v5796_v56  ;;  %v5898_v18 = vrot.slane %v5897_v55, 4 }
 0x2bb   : > { %v5799_v49 = vrot.slane %v5798_v24, 2  ;;  %v5899_v40 = vadd.f32 %v5898_v18, %v5897_v55 }
 0x2bd   : > { %v5800_v47 = vadd.f32 %v5799_v49, %v5798_v24  ;;  %v5900_v52 = vrot.slane %v5899_v40, 2 }
 0x2bf   : > { %v5801_v6 = vrot.slane %v5800_v47, 1  ;;  %v5901_v48 = vadd.f32 %v5900_v52, %v5899_v40 }
 0x2c1   : > { %v5902_v14 = vrot.slane %v5901_v48, 1  ;;  %v5802_v51 = vadd.f32 %v5801_v6, %v5800_v47 }
 0x2c3   : > { %v5903_v21 = vadd.f32 %v5902_v14, %v5901_v48 }
 0x2c5   : > { %v5906_v20 = vsel %vm5905_vm1, %v5802_v51, %v5903_v21 }
 0x2c6   : > { %v5907_v44 = vadd.f32 %v5906_v20, %v5904_v31 }
 0x2c8   : > { %5909 = vst.msk [vmem:[%s9542_s19] sm:$0x3] %vm1002_vm0, %v5907_v44 }
 0x2c9 PF: > { %s15_s17 = sadd.s32 1, %s7667_s17   ;;  %s9805_s15 = smov %s7663_s16 }
 0x2ca   : > { %p12_p5 = scmp.ge.s32.totalorder %s15_s17, 4   ;;  %s9806_s16 = smov %s9808_s18 }
 0x2cc   :  { %14 = sbr.rel (!%p12_p5) target bundleno = 2 (0x2), region = 90 }

</bundles_post_ra>
